<compile_context>
chip_gen: v7x
topology: tpu7x:2x2x1
jax: 0.10.0
libtpu: 0.0.40
codegen_flags: <defaults>
</compile_context>

<pallas_src>
import numpy as np
import jax
import jax.numpy as jnp
from jax.experimental import pallas as pl
from jax.experimental.pallas import tpu as pltpu

# Geometry fixed by the PyTorch module (MNIST 28x28, capacity=64, latent=2).
CAP = 64
LAT = 2
C1 = CAP          # encoder conv1 channels
C2 = 2 * CAP      # bottleneck channels

_PHASES = ((0, 0), (0, 1), (1, 0), (1, 1))                 # (py,px) / (ry,rx)
_OFFS9 = tuple((oy, ox) for oy in range(3) for ox in range(3))


def _kt(r, d):
    """ConvTranspose2d(k=4,s=2,p=1): kernel tap used by output parity r and
    offset d in {0,1} into the 1-padded input."""
    return 3 - 2 * d - r


# ----------------------------------------------------------------------------
# The fused VAE kernel (one grid step == one batch element)
# ----------------------------------------------------------------------------
def _vae_kernel(x0_ref, eps_ref, w1_ref, b1_ref, s1_ref, w2_ref, b2_ref,
                wfc_ref, bfc_ref, wdk_ref, wt2_ref, bt2_ref, s3_ref,
                wt1_ref, bt1_ref, mu_ref, lv_ref, xpar_ref):
    f32, bf16 = jnp.float32, jnp.bfloat16

    # ------------------------- encoder conv1 -------------------------
    # stride-2 4x4 conv == stride-1 2x2 conv over 4 space-to-depth phases on a
    # 15x15 grid; rows flattened with width 15, tap (qy,qx) = row offset.
    a0 = x0_ref[0]                                               # (232, 4) f32
    h1 = jnp.zeros((216, C1), f32)                               # rows m*15+n
    for q, (qy, qx) in enumerate(_PHASES):
        off = qy * 15 + qx
        h1 = h1 + jnp.dot(a0[off:off + 216, :].astype(bf16), w1_ref[q],
                          preferred_element_type=f32)
    h1 = jnp.maximum(h1 + b1_ref[...], 0.0)                      # ReLU
    h1b = h1.astype(bf16)

    # -------------------- conv1 -> conv2 boundary --------------------
    # zero-pad to 16x16 + stride-2 phase split via 4 precomputed 0/1 selection
    # matmuls; result: 4 phase slabs on an 8x8 grid (rows flattened, width 8).
    phases = [jnp.dot(s1_ref[p], h1b, preferred_element_type=f32)
              for p in range(4)]                                 # 4 x (72, 64)

    # ------------------------- encoder conv2 -------------------------
    h2 = jnp.zeros((56, C2), f32)                                # rows mo*8+no
    for t, (qy, qx) in enumerate(_PHASES):                       # 2x2 taps
        off = qy * 8 + qx
        for p in range(4):                                       # input phases
            h2 = h2 + jnp.dot(phases[p][off:off + 56, :].astype(bf16),
                              w2_ref[t, p], preferred_element_type=f32)
    h2 = jnp.maximum(h2 + b2_ref[...], 0.0)                      # (56, 128)

    # ---------------- fc_mu / fc_logvar (VPU, f32) ----------------
    # K=6272 -> 2: elementwise multiply + full reduce; NCHW-flatten ordering is
    # baked into wfc's layout (garbage columns zeroed).
    def _red(i):
        s = jnp.sum(h2 * wfc_ref[i], axis=1, keepdims=True)      # (56, 1)
        return jnp.sum(s, axis=0, keepdims=True)                 # (1, 1)

    lane = jax.lax.broadcasted_iota(jnp.int32, (1, LAT), 1)
    mu = jnp.where(lane == 0, _red(0), _red(1)) + bfc_ref[:, 0:2]
    lv = jnp.where(lane == 0, _red(2), _red(3)) + bfc_ref[:, 2:4]
    mu_ref[0] = mu
    lv_ref[0] = lv

    # ------------- reparametrize + decoder fc (VPU, f32) -------------
    z = mu + eps_ref[0] * jnp.exp(0.5 * lv)                      # (1, 2)
    # K=2 contraction as two broadcast-FMAs; wdk already holds the decoder
    # activation in ConvT2's padded-9x9 NHWC layout (padding rows zero).
    d2 = z[:, 0:1] * wdk_ref[0] + z[:, 1:2] * wdk_ref[1] + wdk_ref[2]  # (88,128)

    # ------------------------- decoder ConvT2 -------------------------
    # 4 output parities merged on lanes (N=256); the 9 distinct row offsets of
    # {parity + tap} each share one (128, 256) weight slab.
    t2 = jnp.zeros((64, 4 * C1), f32)                            # rows m*9+n
    for o, (oy, ox) in enumerate(_OFFS9):
        off = oy * 9 + ox
        t2 = t2 + jnp.dot(d2[off:off + 64, :].astype(bf16), wt2_ref[o],
                          preferred_element_type=f32)
    t2 = jnp.maximum(t2 + bt2_ref[...], 0.0)                     # (64, 256)

    # -------------------- ConvT2 -> ConvT1 boundary --------------------
    # parity interleave back to a zero-padded 16x16 NHWC slab (rows flattened,
    # width 16), again via 4 selection matmuls.
    h3 = jnp.zeros((264, C1), f32)
    for pr in range(4):
        h3 = h3 + jnp.dot(s3_ref[pr],
                          t2[:, pr * C1:(pr + 1) * C1].astype(bf16),
                          preferred_element_type=f32)

    # ------------------- decoder ConvT1 + sigmoid -------------------
    # Cout=1; the 4 output parities live on lanes -> (224, 4) result.
    v = jnp.zeros((224, 4), f32)                                 # rows m*16+n
    for o, (oy, ox) in enumerate(_OFFS9):
        off = oy * 16 + ox
        v = v + jnp.dot(h3[off:off + 224, :].astype(bf16), wt1_ref[o],
                        preferred_element_type=f32)
    v = v + bt1_ref[...]
    xpar_ref[0] = 1.0 / (1.0 + jnp.exp(-v))                      # exact sigmoid


# ----------------------------------------------------------------------------
# Forward wrapper: tiny input/output re-layout + ONE pallas_call
# ----------------------------------------------------------------------------
def vae_forward(kp, x, eps):
    """x: (B, 1, 28, 28) f32, eps: (B, 2) f32  ->  (x_hat, mu, logvar)."""
    B = x.shape[0]

    # input prep: pad + space-to-depth (a handful of tiny HLOs on ~7 KB)
    xp = jnp.pad(x[:, 0], ((0, 0), (1, 1), (1, 1)))              # (B, 30, 30)
    xs = xp.reshape(B, 15, 2, 15, 2).transpose(0, 1, 3, 2, 4)    # (B,15,15,2,2)
    x0 = jnp.pad(xs.reshape(B, 225, 4), ((0, 0), (0, 7), (0, 0)))  # (B, 232, 4)
    eps3 = eps.reshape(B, 1, LAT)

    def full(shape):
        return pl.BlockSpec(shape, lambda b, _n=len(shape): (0,) * _n)

    mu, lv, xpar = pl.pallas_call(
        _vae_kernel,
        out_shape=(jax.ShapeDtypeStruct((B, 1, LAT), jnp.float32),
                   jax.ShapeDtypeStruct((B, 1, LAT), jnp.float32),
                   jax.ShapeDtypeStruct((B, 224, 4), jnp.float32)),
        grid=(B,),
        in_specs=[
            pl.BlockSpec((1, 232, 4), lambda b: (b, 0, 0)),      # x0
            pl.BlockSpec((1, 1, LAT), lambda b: (b, 0, 0)),      # eps
            full((4, 4, C1)),            # w1   conv1 tap weights
            full((1, C1)),               # b1
            full((4, 72, 216)),          # s1   conv1->conv2 selection
            full((4, 4, C1, C2)),        # w2   conv2 tap/phase weights
            full((1, C2)),               # b2
            full((4, 56, C2)),           # wfc  fc_mu/fc_logvar maps
            full((1, 4)),                # bfc
            full((3, 88, C2)),           # wdk  decoder fc (+bias) maps
            full((9, C2, 4 * C1)),       # wt2  ConvT2 offset weights
            full((1, 4 * C1)),           # bt2
            full((4, 264, C1)),          # s3   ConvT2->ConvT1 selection
            full((9, C1, 4)),            # wt1  ConvT1 offset weights
            full((1, 4)),                # bt1
        ],
        out_specs=(pl.BlockSpec((1, 1, LAT), lambda b: (b, 0, 0)),
                   pl.BlockSpec((1, 1, LAT), lambda b: (b, 0, 0)),
                   pl.BlockSpec((1, 224, 4), lambda b: (b, 0, 0))),
        compiler_params=pltpu.CompilerParams(
            dimension_semantics=("parallel",)),
        cost_estimate=pl.CostEstimate(
            flops=int(7.1e7 * B),
            transcendentals=int(B * (224 * 4 + 2 * LAT)),
            bytes_accessed=int(1.4e6 + 16_000 * B)),
    )(x0, eps3, kp["w1"], kp["b1"], kp["s1"], kp["w2"], kp["b2"],
      kp["wfc"], kp["bfc"], kp["wdk"], kp["wt2"], kp["bt2"], kp["s3"],
      kp["wt1"], kp["bt1"])

    # output: interleave the 4 ConvT1 parities (tiny HLOs on ~3.5 KB)
    xq = xpar.reshape(B, 14, 16, 4)[:, :, :14, :].reshape(B, 14, 14, 2, 2)
    x_hat = xq.transpose(0, 1, 3, 2, 4).reshape(B, 1, 28, 28)
    return x_hat, mu.reshape(B, LAT), lv.reshape(B, LAT)


# ----------------------------------------------------------------------------
# One-time parameter re-layout (host, numpy) - NOT part of the jitted forward
# ----------------------------------------------------------------------------
def prepare_params(p):
    f = lambda a: np.asarray(a, np.float32)

    # encoder conv1: 2x2-phase taps (4 taps, 4 phase-ch, 64)
    w1t = f(p["enc_conv1_w"])                                   # (64,1,4,4)
    w1 = np.zeros((4, 4, C1), np.float32)
    for q, (qy, qx) in enumerate(_PHASES):
        for ph, (py, px) in enumerate(_PHASES):
            w1[q, ph] = w1t[:, 0, 2 * qy + py, 2 * qx + px]
    b1 = f(p["enc_conv1_b"]).reshape(1, C1)

    # conv1 -> conv2 boundary: pad-to-16 + stride-2 phase-split selection
    s1 = np.zeros((4, 72, 216), np.float32)
    for ph, (py, px) in enumerate(_PHASES):
        for i in range(8):
            for j in range(8):
                m, n = 2 * i + py - 1, 2 * j + px - 1
                if 0 <= m <= 13 and 0 <= n <= 13:
                    s1[ph, i * 8 + j, m * 15 + n] = 1.0

    # encoder conv2: (4 taps, 4 phases, 64, 128)
    w2t = f(p["enc_conv2_w"])                                   # (128,64,4,4)
    w2 = np.zeros((4, 4, C1, C2), np.float32)
    for t, (qy, qx) in enumerate(_PHASES):
        for ph, (py, px) in enumerate(_PHASES):
            w2[t, ph] = w2t[:, :, 2 * qy + py, 2 * qx + px].T
    b2 = f(p["enc_conv2_b"]).reshape(1, C2)

    # fc_mu / fc_logvar scattered onto the kernel's (56 rows, 128 ch) layout
    wfc = np.zeros((4, 7, 8, C2), np.float32)
    rows = [f(p["fc_mu_w"])[0], f(p["fc_mu_w"])[1],
            f(p["fc_lv_w"])[0], f(p["fc_lv_w"])[1]]
    for s, w in enumerate(rows):
        wfc[s, :, :7, :] = w.reshape(C2, 7, 7).transpose(1, 2, 0)
    wfc = wfc.reshape(4, 56, C2)
    bfc = np.array([[f(p["fc_mu_b"])[0], f(p["fc_mu_b"])[1],
                     f(p["fc_lv_b"])[0], f(p["fc_lv_b"])[1]]], np.float32)

    # decoder fc: z-weights + bias directly in ConvT2's padded 9x9 NHWC layout
    wd = f(p["dec_fc_w"])                                       # (6272, 2)
    bd = f(p["dec_fc_b"])                                       # (6272,)
    wdk = np.zeros((3, 9, 9, C2), np.float32)
    wdk[0, 1:8, 1:8] = wd[:, 0].reshape(C2, 7, 7).transpose(1, 2, 0)
    wdk[1, 1:8, 1:8] = wd[:, 1].reshape(C2, 7, 7).transpose(1, 2, 0)
    wdk[2, 1:8, 1:8] = bd.reshape(C2, 7, 7).transpose(1, 2, 0)
    wdk = np.pad(wdk.reshape(3, 81, C2), ((0, 0), (0, 7), (0, 0)))  # (3,88,128)

    # ConvT2: parities merged on lanes, 9 shared row offsets (9, 128, 256)
    wt2t = f(p["dec_conv2_w"])                                  # (128,64,4,4)
    wt2 = np.zeros((9, C2, 4, C1), np.float32)
    for o, (oy, ox) in enumerate(_OFFS9):
        for pr, (ry, rx) in enumerate(_PHASES):
            dy, dx = oy - ry, ox - rx
            if dy in (0, 1) and dx in (0, 1):
                wt2[o, :, pr] = wt2t[:, :, _kt(ry, dy), _kt(rx, dx)]
    wt2 = wt2.reshape(9, C2, 4 * C1)
    bt2 = np.tile(f(p["dec_conv2_b"]), 4).reshape(1, 4 * C1)

    # ConvT2 -> ConvT1 boundary: parity interleave + pad-to-16 selection
    s3 = np.zeros((4, 264, C1), np.float32)
    for pr, (ry, rx) in enumerate(_PHASES):
        for m in range(7):
            for n in range(7):
                s3[pr, (2 * m + ry + 1) * 16 + (2 * n + rx + 1), m * 9 + n] = 1.0

    # ConvT1 (Cout=1): 4 parities on lanes, 9 shared row offsets (9, 64, 4)
    wt1t = f(p["dec_conv1_w"])                                  # (64,1,4,4)
    wt1 = np.zeros((9, C1, 4), np.float32)
    for o, (oy, ox) in enumerate(_OFFS9):
        for pr, (ry, rx) in enumerate(_PHASES):
            dy, dx = oy - ry, ox - rx
            if dy in (0, 1) and dx in (0, 1):
                wt1[o, :, pr] = wt1t[:, 0, _kt(ry, dy), _kt(rx, dx)]
    bt1 = np.full((1, 4), float(f(p["dec_conv1_b"])[0]), np.float32)

    bf, f32 = jnp.bfloat16, jnp.float32
    return {
        "w1": jnp.asarray(w1, bf), "b1": jnp.asarray(b1, f32),
        "s1": jnp.asarray(s1, bf),
        "w2": jnp.asarray(w2, bf), "b2": jnp.asarray(b2, f32),
        "wfc": jnp.asarray(wfc, f32), "bfc": jnp.asarray(bfc, f32),
        "wdk": jnp.asarray(wdk, f32),
        "wt2": jnp.asarray(wt2, bf), "bt2": jnp.asarray(bt2, f32),
        "s3": jnp.asarray(s3, bf),
        "wt1": jnp.asarray(wt1, bf), "bt1": jnp.asarray(bt1, f32),
    }


# ----------------------------------------------------------------------------
# PyTorch-layout parameter init (default-style U(-1/sqrt(fan_in), ..))
# ----------------------------------------------------------------------------
def init_params(key, capacity=CAP, latent=LAT):
    c = capacity

    def uni(k, shape, fan_in):
        bound = 1.0 / float(fan_in) ** 0.5
        return jax.random.uniform(k, shape, jnp.float32, -bound, bound)

    ks = jax.random.split(key, 14)
    flat = 2 * c * 7 * 7
    return {
        "enc_conv1_w": uni(ks[0], (c, 1, 4, 4), 1 * 16),
        "enc_conv1_b": uni(ks[1], (c,), 1 * 16),
        "enc_conv2_w": uni(ks[2], (2 * c, c, 4, 4), c * 16),
        "enc_conv2_b": uni(ks[3], (2 * c,), c * 16),
        "fc_mu_w": uni(ks[4], (latent, flat), flat),
        "fc_mu_b": uni(ks[5], (latent,), flat),
        "fc_lv_w": uni(ks[6], (latent, flat), flat),
        "fc_lv_b": uni(ks[7], (latent,), flat),
        "dec_fc_w": uni(ks[8], (flat, latent), latent),
        "dec_fc_b": uni(ks[9], (flat,), latent),
        "dec_conv2_w": uni(ks[10], (2 * c, c, 4, 4), 2 * c * 16),  # (Cin,Cout,k,k)
        "dec_conv2_b": uni(ks[11], (c,), 2 * c * 16),
        "dec_conv1_w": uni(ks[12], (c, 1, 4, 4), c * 16),          # (Cin,Cout,k,k)
        "dec_conv1_b": uni(ks[13], (1,), c * 16),
    }


# ----------------------------------------------------------------------------
# Pure-JAX reference (PyTorch semantics) - validation only
# ----------------------------------------------------------------------------
def vae_reference(p, x, eps, capacity=CAP):
    dn = ("NCHW", "OIHW", "NCHW")
    hi = jax.lax.Precision.HIGHEST
    B = x.shape[0]

    def conv(v, w, b):
        y = jax.lax.conv_general_dilated(v, w, (2, 2), ((1, 1), (1, 1)),
                                         dimension_numbers=dn, precision=hi)
        return y + b.reshape(1, -1, 1, 1)

    def convt(v, w, b):  # ConvTranspose2d(k=4, s=2, p=1)
        wf = jnp.transpose(w, (1, 0, 2, 3))[:, :, ::-1, ::-1]
        y = jax.lax.conv_general_dilated(v, wf, (1, 1), ((2, 2), (2, 2)),
                                         lhs_dilation=(2, 2),
                                         dimension_numbers=dn, precision=hi)
        return y + b.reshape(1, -1, 1, 1)

    h = jax.nn.relu(conv(x, p["enc_conv1_w"], p["enc_conv1_b"]))
    h = jax.nn.relu(conv(h, p["enc_conv2_w"], p["enc_conv2_b"]))
    hf = h.reshape(B, -1)
    mu = hf @ p["fc_mu_w"].T + p["fc_mu_b"]
    lv = hf @ p["fc_lv_w"].T + p["fc_lv_b"]
    z = mu + eps * jnp.exp(0.5 * lv)
    d = (z @ p["dec_fc_w"].T + p["dec_fc_b"]).reshape(B, 2 * capacity, 7, 7)
    d = jax.nn.relu(convt(d, p["dec_conv2_w"], p["dec_conv2_b"]))
    x_hat = jax.nn.sigmoid(convt(d, p["dec_conv1_w"], p["dec_conv1_b"]))
    return x_hat, mu, lv


if __name__ == "__main__":
    key = jax.random.PRNGKey(0)
    pkey, xkey, ekey = jax.random.split(key, 3)

    params = init_params(pkey)                  # PyTorch-layout parameters
    kparams = prepare_params(params)            # one-time kernel re-layout
    x = jax.random.uniform(xkey, (2, 1, 28, 28), jnp.float32)   # MNIST-shaped
    eps = jax.random.normal(ekey, (2, LAT), jnp.float32)        # reparam noise

    x_hat, mu, logvar = jax.jit(vae_forward)(kparams, x, eps)
    jax.block_until_ready((x_hat, mu, logvar))

    assert x_hat.shape == (2, 1, 28, 28)
    assert mu.shape == (2, LAT) and logvar.shape == (2, LAT)
    assert bool(jnp.all(jnp.isfinite(x_hat)))
    assert bool(jnp.all(x_hat >= 0.0)) and bool(jnp.all(x_hat <= 1.0))

    # numerical validation against the pure-JAX reference (bf16 MXU operands
    # in the kernel -> expect ~1e-3 level agreement)
    xr, mur, lvr = jax.jit(vae_reference)(params, x, eps)
    assert float(jnp.max(jnp.abs(x_hat - xr))) < 5e-3
    assert float(jnp.max(jnp.abs(mu - mur))) < 1e-2
    assert float(jnp.max(jnp.abs(logvar - lvr))) < 1e-2

    print("KERNEL_OK")
</pallas_src>

<mosaic_0001>
module attributes {stable_mosaic.version = 11 : i64} {
  func.func @_vae_kernel(%arg0: i32, %arg1: memref<1x232x4xf32, #tpu.memory_space<vmem>>, %arg2: memref<1x1x2xf32, #tpu.memory_space<vmem>>, %arg3: memref<4x4x64xbf16, #tpu.memory_space<vmem>>, %arg4: memref<1x64xf32, #tpu.memory_space<vmem>>, %arg5: memref<4x72x216xbf16, #tpu.memory_space<vmem>>, %arg6: memref<4x4x64x128xbf16, #tpu.memory_space<vmem>>, %arg7: memref<1x128xf32, #tpu.memory_space<vmem>>, %arg8: memref<4x56x128xf32, #tpu.memory_space<vmem>>, %arg9: memref<1x4xf32, #tpu.memory_space<vmem>>, %arg10: memref<3x88x128xf32, #tpu.memory_space<vmem>>, %arg11: memref<9x128x256xbf16, #tpu.memory_space<vmem>>, %arg12: memref<1x256xf32, #tpu.memory_space<vmem>>, %arg13: memref<4x264x64xbf16, #tpu.memory_space<vmem>>, %arg14: memref<9x64x4xbf16, #tpu.memory_space<vmem>>, %arg15: memref<1x4xf32, #tpu.memory_space<vmem>>, %arg16: memref<1x1x2xf32, #tpu.memory_space<vmem>>, %arg17: memref<1x1x2xf32, #tpu.memory_space<vmem>>, %arg18: memref<1x224x4xf32, #tpu.memory_space<vmem>>) attributes {dimension_semantics = [#tpu.dimension_semantics<parallel>], iteration_bounds = array<i64: 2>, scalar_prefetch = 0 : i64, scratch_operands = 0 : i64, tpu.core_type = #tpu.core_type<tc>, window_params = [{transform_indices = @transform_0, window_bounds = array<i64: 1, 232, 4>}, {transform_indices = @transform_1, window_bounds = array<i64: 1, 1, 2>}, {pipeline_mode = #tpu.pipeline_mode<synchronous>, transform_indices = @transform_2, window_bounds = array<i64: 4, 4, 64>}, {pipeline_mode = #tpu.pipeline_mode<synchronous>, transform_indices = @transform_3, window_bounds = array<i64: 1, 64>}, {pipeline_mode = #tpu.pipeline_mode<synchronous>, transform_indices = @transform_4, window_bounds = array<i64: 4, 72, 216>}, {pipeline_mode = #tpu.pipeline_mode<synchronous>, transform_indices = @transform_5, window_bounds = array<i64: 4, 4, 64, 128>}, {pipeline_mode = #tpu.pipeline_mode<synchronous>, transform_indices = @transform_6, window_bounds = array<i64: 1, 128>}, {pipeline_mode = #tpu.pipeline_mode<synchronous>, transform_indices = @transform_7, window_bounds = array<i64: 4, 56, 128>}, {pipeline_mode = #tpu.pipeline_mode<synchronous>, transform_indices = @transform_8, window_bounds = array<i64: 1, 4>}, {pipeline_mode = #tpu.pipeline_mode<synchronous>, transform_indices = @transform_9, window_bounds = array<i64: 3, 88, 128>}, {pipeline_mode = #tpu.pipeline_mode<synchronous>, transform_indices = @transform_10, window_bounds = array<i64: 9, 128, 256>}, {pipeline_mode = #tpu.pipeline_mode<synchronous>, transform_indices = @transform_11, window_bounds = array<i64: 1, 256>}, {pipeline_mode = #tpu.pipeline_mode<synchronous>, transform_indices = @transform_12, window_bounds = array<i64: 4, 264, 64>}, {pipeline_mode = #tpu.pipeline_mode<synchronous>, transform_indices = @transform_13, window_bounds = array<i64: 9, 64, 4>}, {pipeline_mode = #tpu.pipeline_mode<synchronous>, transform_indices = @transform_14, window_bounds = array<i64: 1, 4>}, {transform_indices = @transform_15, window_bounds = array<i64: 1, 1, 2>}, {transform_indices = @transform_16, window_bounds = array<i64: 1, 1, 2>}, {transform_indices = @transform_17, window_bounds = array<i64: 1, 224, 4>}]} {
    %c0 = arith.constant 0 : index
    %c0_0 = arith.constant 0 : index
    %c0_1 = arith.constant 0 : index
    %0 = vector.load %arg1[%c0, %c0_0, %c0_1] : memref<1x232x4xf32, #tpu.memory_space<vmem>>, vector<1x232x4xf32>
    %1 = vector.shape_cast %0 : vector<1x232x4xf32> to vector<232x4xf32>
    %cst = arith.constant 0.000000e+00 : f32
    %2 = vector.broadcast %cst : f32 to vector<216x64xf32>
    %3 = vector.extract_strided_slice %1 {offsets = [0, 0], sizes = [216, 4], strides = [1, 1]} : vector<232x4xf32> to vector<216x4xf32>
    %4 = arith.truncf %3 : vector<216x4xf32> to vector<216x4xbf16>
    %c0_2 = arith.constant 0 : index
    %c0_3 = arith.constant 0 : index
    %c0_4 = arith.constant 0 : index
    %5 = vector.load %arg3[%c0_2, %c0_3, %c0_4] : memref<4x4x64xbf16, #tpu.memory_space<vmem>>, vector<1x4x64xbf16>
    %6 = vector.shape_cast %5 : vector<1x4x64xbf16> to vector<4x64xbf16>
    %cst_5 = arith.constant dense<0.000000e+00> : vector<216x64xf32>
    %7 = tpu.matmul %4, %6, %cst_5 {dimension_numbers = #tpu.dot_dimension_numbers<[1], [0], [0], [1], [0, 0, 1, 1], [], []>} : vector<216x4xbf16>, vector<4x64xbf16>, vector<216x64xf32> -> vector<216x64xf32>
    %8 = arith.addf %2, %7 : vector<216x64xf32>
    %9 = vector.extract_strided_slice %1 {offsets = [1, 0], sizes = [216, 4], strides = [1, 1]} : vector<232x4xf32> to vector<216x4xf32>
    %10 = arith.truncf %9 : vector<216x4xf32> to vector<216x4xbf16>
    %c1 = arith.constant 1 : index
    %c0_6 = arith.constant 0 : index
    %c0_7 = arith.constant 0 : index
    %11 = vector.load %arg3[%c1, %c0_6, %c0_7] : memref<4x4x64xbf16, #tpu.memory_space<vmem>>, vector<1x4x64xbf16>
    %12 = vector.shape_cast %11 : vector<1x4x64xbf16> to vector<4x64xbf16>
    %cst_8 = arith.constant dense<0.000000e+00> : vector<216x64xf32>
    %13 = tpu.matmul %10, %12, %cst_8 {dimension_numbers = #tpu.dot_dimension_numbers<[1], [0], [0], [1], [0, 0, 1, 1], [], []>} : vector<216x4xbf16>, vector<4x64xbf16>, vector<216x64xf32> -> vector<216x64xf32>
    %14 = arith.addf %8, %13 : vector<216x64xf32>
    %15 = vector.extract_strided_slice %1 {offsets = [15, 0], sizes = [216, 4], strides = [1, 1]} : vector<232x4xf32> to vector<216x4xf32>
    %16 = arith.truncf %15 : vector<216x4xf32> to vector<216x4xbf16>
    %c2 = arith.constant 2 : index
    %c0_9 = arith.constant 0 : index
    %c0_10 = arith.constant 0 : index
    %17 = vector.load %arg3[%c2, %c0_9, %c0_10] : memref<4x4x64xbf16, #tpu.memory_space<vmem>>, vector<1x4x64xbf16>
    %18 = vector.shape_cast %17 : vector<1x4x64xbf16> to vector<4x64xbf16>
    %cst_11 = arith.constant dense<0.000000e+00> : vector<216x64xf32>
    %19 = tpu.matmul %16, %18, %cst_11 {dimension_numbers = #tpu.dot_dimension_numbers<[1], [0], [0], [1], [0, 0, 1, 1], [], []>} : vector<216x4xbf16>, vector<4x64xbf16>, vector<216x64xf32> -> vector<216x64xf32>
    %20 = arith.addf %14, %19 : vector<216x64xf32>
    %21 = vector.extract_strided_slice %1 {offsets = [16, 0], sizes = [216, 4], strides = [1, 1]} : vector<232x4xf32> to vector<216x4xf32>
    %22 = arith.truncf %21 : vector<216x4xf32> to vector<216x4xbf16>
    %c3 = arith.constant 3 : index
    %c0_12 = arith.constant 0 : index
    %c0_13 = arith.constant 0 : index
    %23 = vector.load %arg3[%c3, %c0_12, %c0_13] : memref<4x4x64xbf16, #tpu.memory_space<vmem>>, vector<1x4x64xbf16>
    %24 = vector.shape_cast %23 : vector<1x4x64xbf16> to vector<4x64xbf16>
    %cst_14 = arith.constant dense<0.000000e+00> : vector<216x64xf32>
    %25 = tpu.matmul %22, %24, %cst_14 {dimension_numbers = #tpu.dot_dimension_numbers<[1], [0], [0], [1], [0, 0, 1, 1], [], []>} : vector<216x4xbf16>, vector<4x64xbf16>, vector<216x64xf32> -> vector<216x64xf32>
    %26 = arith.addf %20, %25 : vector<216x64xf32>
    %c0_15 = arith.constant 0 : index
    %c0_16 = arith.constant 0 : index
    %27 = vector.load %arg4[%c0_15, %c0_16] : memref<1x64xf32, #tpu.memory_space<vmem>>, vector<1x64xf32>
    %28 = vector.broadcast %27 : vector<1x64xf32> to vector<216x64xf32>
    %29 = arith.addf %26, %28 : vector<216x64xf32>
    %cst_17 = arith.constant 0.000000e+00 : f32
    %30 = vector.broadcast %cst_17 : f32 to vector<216x64xf32>
    %31 = arith.maximumf %29, %30 : vector<216x64xf32>
    %32 = arith.truncf %31 : vector<216x64xf32> to vector<216x64xbf16>
    %c0_18 = arith.constant 0 : index
    %c0_19 = arith.constant 0 : index
    %c0_20 = arith.constant 0 : index
    %33 = vector.load %arg5[%c0_18, %c0_19, %c0_20] : memref<4x72x216xbf16, #tpu.memory_space<vmem>>, vector<1x72x216xbf16>
    %34 = vector.shape_cast %33 : vector<1x72x216xbf16> to vector<72x216xbf16>
    %cst_21 = arith.constant dense<0.000000e+00> : vector<72x64xf32>
    %35 = tpu.matmul %34, %32, %cst_21 {dimension_numbers = #tpu.dot_dimension_numbers<[1], [0], [0], [1], [0, 0, 1, 1], [], []>} : vector<72x216xbf16>, vector<216x64xbf16>, vector<72x64xf32> -> vector<72x64xf32>
    %c1_22 = arith.constant 1 : index
    %c0_23 = arith.constant 0 : index
    %c0_24 = arith.constant 0 : index
    %36 = vector.load %arg5[%c1_22, %c0_23, %c0_24] : memref<4x72x216xbf16, #tpu.memory_space<vmem>>, vector<1x72x216xbf16>
    %37 = vector.shape_cast %36 : vector<1x72x216xbf16> to vector<72x216xbf16>
    %cst_25 = arith.constant dense<0.000000e+00> : vector<72x64xf32>
    %38 = tpu.matmul %37, %32, %cst_25 {dimension_numbers = #tpu.dot_dimension_numbers<[1], [0], [0], [1], [0, 0, 1, 1], [], []>} : vector<72x216xbf16>, vector<216x64xbf16>, vector<72x64xf32> -> vector<72x64xf32>
    %c2_26 = arith.constant 2 : index
    %c0_27 = arith.constant 0 : index
    %c0_28 = arith.constant 0 : index
    %39 = vector.load %arg5[%c2_26, %c0_27, %c0_28] : memref<4x72x216xbf16, #tpu.memory_space<vmem>>, vector<1x72x216xbf16>
    %40 = vector.shape_cast %39 : vector<1x72x216xbf16> to vector<72x216xbf16>
    %cst_29 = arith.constant dense<0.000000e+00> : vector<72x64xf32>
    %41 = tpu.matmul %40, %32, %cst_29 {dimension_numbers = #tpu.dot_dimension_numbers<[1], [0], [0], [1], [0, 0, 1, 1], [], []>} : vector<72x216xbf16>, vector<216x64xbf16>, vector<72x64xf32> -> vector<72x64xf32>
    %c3_30 = arith.constant 3 : index
    %c0_31 = arith.constant 0 : index
    %c0_32 = arith.constant 0 : index
    %42 = vector.load %arg5[%c3_30, %c0_31, %c0_32] : memref<4x72x216xbf16, #tpu.memory_space<vmem>>, vector<1x72x216xbf16>
    %43 = vector.shape_cast %42 : vector<1x72x216xbf16> to vector<72x216xbf16>
    %cst_33 = arith.constant dense<0.000000e+00> : vector<72x64xf32>
    %44 = tpu.matmul %43, %32, %cst_33 {dimension_numbers = #tpu.dot_dimension_numbers<[1], [0], [0], [1], [0, 0, 1, 1], [], []>} : vector<72x216xbf16>, vector<216x64xbf16>, vector<72x64xf32> -> vector<72x64xf32>
    %cst_34 = arith.constant 0.000000e+00 : f32
    %45 = vector.broadcast %cst_34 : f32 to vector<56x128xf32>
    %46 = vector.extract_strided_slice %35 {offsets = [0, 0], sizes = [56, 64], strides = [1, 1]} : vector<72x64xf32> to vector<56x64xf32>
    %47 = arith.truncf %46 : vector<56x64xf32> to vector<56x64xbf16>
    %c0_35 = arith.constant 0 : index
    %c0_36 = arith.constant 0 : index
    %c0_37 = arith.constant 0 : index
    %c0_38 = arith.constant 0 : index
    %48 = vector.load %arg6[%c0_35, %c0_36, %c0_37, %c0_38] : memref<4x4x64x128xbf16, #tpu.memory_space<vmem>>, vector<1x1x64x128xbf16>
    %49 = vector.shape_cast %48 : vector<1x1x64x128xbf16> to vector<64x128xbf16>
    %cst_39 = arith.constant dense<0.000000e+00> : vector<56x128xf32>
    %50 = tpu.matmul %47, %49, %cst_39 {dimension_numbers = #tpu.dot_dimension_numbers<[1], [0], [0], [1], [0, 0, 1, 1], [], []>} : vector<56x64xbf16>, vector<64x128xbf16>, vector<56x128xf32> -> vector<56x128xf32>
    %51 = arith.addf %45, %50 : vector<56x128xf32>
    %52 = vector.extract_strided_slice %38 {offsets = [0, 0], sizes = [56, 64], strides = [1, 1]} : vector<72x64xf32> to vector<56x64xf32>
    %53 = arith.truncf %52 : vector<56x64xf32> to vector<56x64xbf16>
    %c0_40 = arith.constant 0 : index
    %c1_41 = arith.constant 1 : index
    %c0_42 = arith.constant 0 : index
    %c0_43 = arith.constant 0 : index
    %54 = vector.load %arg6[%c0_40, %c1_41, %c0_42, %c0_43] : memref<4x4x64x128xbf16, #tpu.memory_space<vmem>>, vector<1x1x64x128xbf16>
    %55 = vector.shape_cast %54 : vector<1x1x64x128xbf16> to vector<64x128xbf16>
    %cst_44 = arith.constant dense<0.000000e+00> : vector<56x128xf32>
    %56 = tpu.matmul %53, %55, %cst_44 {dimension_numbers = #tpu.dot_dimension_numbers<[1], [0], [0], [1], [0, 0, 1, 1], [], []>} : vector<56x64xbf16>, vector<64x128xbf16>, vector<56x128xf32> -> vector<56x128xf32>
    %57 = arith.addf %51, %56 : vector<56x128xf32>
    %58 = vector.extract_strided_slice %41 {offsets = [0, 0], sizes = [56, 64], strides = [1, 1]} : vector<72x64xf32> to vector<56x64xf32>
    %59 = arith.truncf %58 : vector<56x64xf32> to vector<56x64xbf16>
    %c0_45 = arith.constant 0 : index
    %c2_46 = arith.constant 2 : index
    %c0_47 = arith.constant 0 : index
    %c0_48 = arith.constant 0 : index
    %60 = vector.load %arg6[%c0_45, %c2_46, %c0_47, %c0_48] : memref<4x4x64x128xbf16, #tpu.memory_space<vmem>>, vector<1x1x64x128xbf16>
    %61 = vector.shape_cast %60 : vector<1x1x64x128xbf16> to vector<64x128xbf16>
    %cst_49 = arith.constant dense<0.000000e+00> : vector<56x128xf32>
    %62 = tpu.matmul %59, %61, %cst_49 {dimension_numbers = #tpu.dot_dimension_numbers<[1], [0], [0], [1], [0, 0, 1, 1], [], []>} : vector<56x64xbf16>, vector<64x128xbf16>, vector<56x128xf32> -> vector<56x128xf32>
    %63 = arith.addf %57, %62 : vector<56x128xf32>
    %64 = vector.extract_strided_slice %44 {offsets = [0, 0], sizes = [56, 64], strides = [1, 1]} : vector<72x64xf32> to vector<56x64xf32>
    %65 = arith.truncf %64 : vector<56x64xf32> to vector<56x64xbf16>
    %c0_50 = arith.constant 0 : index
    %c3_51 = arith.constant 3 : index
    %c0_52 = arith.constant 0 : index
    %c0_53 = arith.constant 0 : index
    %66 = vector.load %arg6[%c0_50, %c3_51, %c0_52, %c0_53] : memref<4x4x64x128xbf16, #tpu.memory_space<vmem>>, vector<1x1x64x128xbf16>
    %67 = vector.shape_cast %66 : vector<1x1x64x128xbf16> to vector<64x128xbf16>
    %cst_54 = arith.constant dense<0.000000e+00> : vector<56x128xf32>
    %68 = tpu.matmul %65, %67, %cst_54 {dimension_numbers = #tpu.dot_dimension_numbers<[1], [0], [0], [1], [0, 0, 1, 1], [], []>} : vector<56x64xbf16>, vector<64x128xbf16>, vector<56x128xf32> -> vector<56x128xf32>
    %69 = arith.addf %63, %68 : vector<56x128xf32>
    %70 = vector.extract_strided_slice %35 {offsets = [1, 0], sizes = [56, 64], strides = [1, 1]} : vector<72x64xf32> to vector<56x64xf32>
    %71 = arith.truncf %70 : vector<56x64xf32> to vector<56x64xbf16>
    %c1_55 = arith.constant 1 : index
    %c0_56 = arith.constant 0 : index
    %c0_57 = arith.constant 0 : index
    %c0_58 = arith.constant 0 : index
    %72 = vector.load %arg6[%c1_55, %c0_56, %c0_57, %c0_58] : memref<4x4x64x128xbf16, #tpu.memory_space<vmem>>, vector<1x1x64x128xbf16>
    %73 = vector.shape_cast %72 : vector<1x1x64x128xbf16> to vector<64x128xbf16>
    %cst_59 = arith.constant dense<0.000000e+00> : vector<56x128xf32>
    %74 = tpu.matmul %71, %73, %cst_59 {dimension_numbers = #tpu.dot_dimension_numbers<[1], [0], [0], [1], [0, 0, 1, 1], [], []>} : vector<56x64xbf16>, vector<64x128xbf16>, vector<56x128xf32> -> vector<56x128xf32>
    %75 = arith.addf %69, %74 : vector<56x128xf32>
    %76 = vector.extract_strided_slice %38 {offsets = [1, 0], sizes = [56, 64], strides = [1, 1]} : vector<72x64xf32> to vector<56x64xf32>
    %77 = arith.truncf %76 : vector<56x64xf32> to vector<56x64xbf16>
    %c1_60 = arith.constant 1 : index
    %c1_61 = arith.constant 1 : index
    %c0_62 = arith.constant 0 : index
    %c0_63 = arith.constant 0 : index
    %78 = vector.load %arg6[%c1_60, %c1_61, %c0_62, %c0_63] : memref<4x4x64x128xbf16, #tpu.memory_space<vmem>>, vector<1x1x64x128xbf16>
    %79 = vector.shape_cast %78 : vector<1x1x64x128xbf16> to vector<64x128xbf16>
    %cst_64 = arith.constant dense<0.000000e+00> : vector<56x128xf32>
    %80 = tpu.matmul %77, %79, %cst_64 {dimension_numbers = #tpu.dot_dimension_numbers<[1], [0], [0], [1], [0, 0, 1, 1], [], []>} : vector<56x64xbf16>, vector<64x128xbf16>, vector<56x128xf32> -> vector<56x128xf32>
    %81 = arith.addf %75, %80 : vector<56x128xf32>
    %82 = vector.extract_strided_slice %41 {offsets = [1, 0], sizes = [56, 64], strides = [1, 1]} : vector<72x64xf32> to vector<56x64xf32>
    %83 = arith.truncf %82 : vector<56x64xf32> to vector<56x64xbf16>
    %c1_65 = arith.constant 1 : index
    %c2_66 = arith.constant 2 : index
    %c0_67 = arith.constant 0 : index
    %c0_68 = arith.constant 0 : index
    %84 = vector.load %arg6[%c1_65, %c2_66, %c0_67, %c0_68] : memref<4x4x64x128xbf16, #tpu.memory_space<vmem>>, vector<1x1x64x128xbf16>
    %85 = vector.shape_cast %84 : vector<1x1x64x128xbf16> to vector<64x128xbf16>
    %cst_69 = arith.constant dense<0.000000e+00> : vector<56x128xf32>
    %86 = tpu.matmul %83, %85, %cst_69 {dimension_numbers = #tpu.dot_dimension_numbers<[1], [0], [0], [1], [0, 0, 1, 1], [], []>} : vector<56x64xbf16>, vector<64x128xbf16>, vector<56x128xf32> -> vector<56x128xf32>
    %87 = arith.addf %81, %86 : vector<56x128xf32>
    %88 = vector.extract_strided_slice %44 {offsets = [1, 0], sizes = [56, 64], strides = [1, 1]} : vector<72x64xf32> to vector<56x64xf32>
    %89 = arith.truncf %88 : vector<56x64xf32> to vector<56x64xbf16>
    %c1_70 = arith.constant 1 : index
    %c3_71 = arith.constant 3 : index
    %c0_72 = arith.constant 0 : index
    %c0_73 = arith.constant 0 : index
    %90 = vector.load %arg6[%c1_70, %c3_71, %c0_72, %c0_73] : memref<4x4x64x128xbf16, #tpu.memory_space<vmem>>, vector<1x1x64x128xbf16>
    %91 = vector.shape_cast %90 : vector<1x1x64x128xbf16> to vector<64x128xbf16>
    %cst_74 = arith.constant dense<0.000000e+00> : vector<56x128xf32>
    %92 = tpu.matmul %89, %91, %cst_74 {dimension_numbers = #tpu.dot_dimension_numbers<[1], [0], [0], [1], [0, 0, 1, 1], [], []>} : vector<56x64xbf16>, vector<64x128xbf16>, vector<56x128xf32> -> vector<56x128xf32>
    %93 = arith.addf %87, %92 : vector<56x128xf32>
    %94 = vector.extract_strided_slice %35 {offsets = [8, 0], sizes = [56, 64], strides = [1, 1]} : vector<72x64xf32> to vector<56x64xf32>
    %95 = arith.truncf %94 : vector<56x64xf32> to vector<56x64xbf16>
    %c2_75 = arith.constant 2 : index
    %c0_76 = arith.constant 0 : index
    %c0_77 = arith.constant 0 : index
    %c0_78 = arith.constant 0 : index
    %96 = vector.load %arg6[%c2_75, %c0_76, %c0_77, %c0_78] : memref<4x4x64x128xbf16, #tpu.memory_space<vmem>>, vector<1x1x64x128xbf16>
    %97 = vector.shape_cast %96 : vector<1x1x64x128xbf16> to vector<64x128xbf16>
    %cst_79 = arith.constant dense<0.000000e+00> : vector<56x128xf32>
    %98 = tpu.matmul %95, %97, %cst_79 {dimension_numbers = #tpu.dot_dimension_numbers<[1], [0], [0], [1], [0, 0, 1, 1], [], []>} : vector<56x64xbf16>, vector<64x128xbf16>, vector<56x128xf32> -> vector<56x128xf32>
    %99 = arith.addf %93, %98 : vector<56x128xf32>
    %100 = vector.extract_strided_slice %38 {offsets = [8, 0], sizes = [56, 64], strides = [1, 1]} : vector<72x64xf32> to vector<56x64xf32>
    %101 = arith.truncf %100 : vector<56x64xf32> to vector<56x64xbf16>
    %c2_80 = arith.constant 2 : index
    %c1_81 = arith.constant 1 : index
    %c0_82 = arith.constant 0 : index
    %c0_83 = arith.constant 0 : index
    %102 = vector.load %arg6[%c2_80, %c1_81, %c0_82, %c0_83] : memref<4x4x64x128xbf16, #tpu.memory_space<vmem>>, vector<1x1x64x128xbf16>
    %103 = vector.shape_cast %102 : vector<1x1x64x128xbf16> to vector<64x128xbf16>
    %cst_84 = arith.constant dense<0.000000e+00> : vector<56x128xf32>
    %104 = tpu.matmul %101, %103, %cst_84 {dimension_numbers = #tpu.dot_dimension_numbers<[1], [0], [0], [1], [0, 0, 1, 1], [], []>} : vector<56x64xbf16>, vector<64x128xbf16>, vector<56x128xf32> -> vector<56x128xf32>
    %105 = arith.addf %99, %104 : vector<56x128xf32>
    %106 = vector.extract_strided_slice %41 {offsets = [8, 0], sizes = [56, 64], strides = [1, 1]} : vector<72x64xf32> to vector<56x64xf32>
    %107 = arith.truncf %106 : vector<56x64xf32> to vector<56x64xbf16>
    %c2_85 = arith.constant 2 : index
    %c2_86 = arith.constant 2 : index
    %c0_87 = arith.constant 0 : index
    %c0_88 = arith.constant 0 : index
    %108 = vector.load %arg6[%c2_85, %c2_86, %c0_87, %c0_88] : memref<4x4x64x128xbf16, #tpu.memory_space<vmem>>, vector<1x1x64x128xbf16>
    %109 = vector.shape_cast %108 : vector<1x1x64x128xbf16> to vector<64x128xbf16>
    %cst_89 = arith.constant dense<0.000000e+00> : vector<56x128xf32>
    %110 = tpu.matmul %107, %109, %cst_89 {dimension_numbers = #tpu.dot_dimension_numbers<[1], [0], [0], [1], [0, 0, 1, 1], [], []>} : vector<56x64xbf16>, vector<64x128xbf16>, vector<56x128xf32> -> vector<56x128xf32>
    %111 = arith.addf %105, %110 : vector<56x128xf32>
    %112 = vector.extract_strided_slice %44 {offsets = [8, 0], sizes = [56, 64], strides = [1, 1]} : vector<72x64xf32> to vector<56x64xf32>
    %113 = arith.truncf %112 : vector<56x64xf32> to vector<56x64xbf16>
    %c2_90 = arith.constant 2 : index
    %c3_91 = arith.constant 3 : index
    %c0_92 = arith.constant 0 : index
    %c0_93 = arith.constant 0 : index
    %114 = vector.load %arg6[%c2_90, %c3_91, %c0_92, %c0_93] : memref<4x4x64x128xbf16, #tpu.memory_space<vmem>>, vector<1x1x64x128xbf16>
    %115 = vector.shape_cast %114 : vector<1x1x64x128xbf16> to vector<64x128xbf16>
    %cst_94 = arith.constant dense<0.000000e+00> : vector<56x128xf32>
    %116 = tpu.matmul %113, %115, %cst_94 {dimension_numbers = #tpu.dot_dimension_numbers<[1], [0], [0], [1], [0, 0, 1, 1], [], []>} : vector<56x64xbf16>, vector<64x128xbf16>, vector<56x128xf32> -> vector<56x128xf32>
    %117 = arith.addf %111, %116 : vector<56x128xf32>
    %118 = vector.extract_strided_slice %35 {offsets = [9, 0], sizes = [56, 64], strides = [1, 1]} : vector<72x64xf32> to vector<56x64xf32>
    %119 = arith.truncf %118 : vector<56x64xf32> to vector<56x64xbf16>
    %c3_95 = arith.constant 3 : index
    %c0_96 = arith.constant 0 : index
    %c0_97 = arith.constant 0 : index
    %c0_98 = arith.constant 0 : index
    %120 = vector.load %arg6[%c3_95, %c0_96, %c0_97, %c0_98] : memref<4x4x64x128xbf16, #tpu.memory_space<vmem>>, vector<1x1x64x128xbf16>
    %121 = vector.shape_cast %120 : vector<1x1x64x128xbf16> to vector<64x128xbf16>
    %cst_99 = arith.constant dense<0.000000e+00> : vector<56x128xf32>
    %122 = tpu.matmul %119, %121, %cst_99 {dimension_numbers = #tpu.dot_dimension_numbers<[1], [0], [0], [1], [0, 0, 1, 1], [], []>} : vector<56x64xbf16>, vector<64x128xbf16>, vector<56x128xf32> -> vector<56x128xf32>
    %123 = arith.addf %117, %122 : vector<56x128xf32>
    %124 = vector.extract_strided_slice %38 {offsets = [9, 0], sizes = [56, 64], strides = [1, 1]} : vector<72x64xf32> to vector<56x64xf32>
    %125 = arith.truncf %124 : vector<56x64xf32> to vector<56x64xbf16>
    %c3_100 = arith.constant 3 : index
    %c1_101 = arith.constant 1 : index
    %c0_102 = arith.constant 0 : index
    %c0_103 = arith.constant 0 : index
    %126 = vector.load %arg6[%c3_100, %c1_101, %c0_102, %c0_103] : memref<4x4x64x128xbf16, #tpu.memory_space<vmem>>, vector<1x1x64x128xbf16>
    %127 = vector.shape_cast %126 : vector<1x1x64x128xbf16> to vector<64x128xbf16>
    %cst_104 = arith.constant dense<0.000000e+00> : vector<56x128xf32>
    %128 = tpu.matmul %125, %127, %cst_104 {dimension_numbers = #tpu.dot_dimension_numbers<[1], [0], [0], [1], [0, 0, 1, 1], [], []>} : vector<56x64xbf16>, vector<64x128xbf16>, vector<56x128xf32> -> vector<56x128xf32>
    %129 = arith.addf %123, %128 : vector<56x128xf32>
    %130 = vector.extract_strided_slice %41 {offsets = [9, 0], sizes = [56, 64], strides = [1, 1]} : vector<72x64xf32> to vector<56x64xf32>
    %131 = arith.truncf %130 : vector<56x64xf32> to vector<56x64xbf16>
    %c3_105 = arith.constant 3 : index
    %c2_106 = arith.constant 2 : index
    %c0_107 = arith.constant 0 : index
    %c0_108 = arith.constant 0 : index
    %132 = vector.load %arg6[%c3_105, %c2_106, %c0_107, %c0_108] : memref<4x4x64x128xbf16, #tpu.memory_space<vmem>>, vector<1x1x64x128xbf16>
    %133 = vector.shape_cast %132 : vector<1x1x64x128xbf16> to vector<64x128xbf16>
    %cst_109 = arith.constant dense<0.000000e+00> : vector<56x128xf32>
    %134 = tpu.matmul %131, %133, %cst_109 {dimension_numbers = #tpu.dot_dimension_numbers<[1], [0], [0], [1], [0, 0, 1, 1], [], []>} : vector<56x64xbf16>, vector<64x128xbf16>, vector<56x128xf32> -> vector<56x128xf32>
    %135 = arith.addf %129, %134 : vector<56x128xf32>
    %136 = vector.extract_strided_slice %44 {offsets = [9, 0], sizes = [56, 64], strides = [1, 1]} : vector<72x64xf32> to vector<56x64xf32>
    %137 = arith.truncf %136 : vector<56x64xf32> to vector<56x64xbf16>
    %c3_110 = arith.constant 3 : index
    %c3_111 = arith.constant 3 : index
    %c0_112 = arith.constant 0 : index
    %c0_113 = arith.constant 0 : index
    %138 = vector.load %arg6[%c3_110, %c3_111, %c0_112, %c0_113] : memref<4x4x64x128xbf16, #tpu.memory_space<vmem>>, vector<1x1x64x128xbf16>
    %139 = vector.shape_cast %138 : vector<1x1x64x128xbf16> to vector<64x128xbf16>
    %cst_114 = arith.constant dense<0.000000e+00> : vector<56x128xf32>
    %140 = tpu.matmul %137, %139, %cst_114 {dimension_numbers = #tpu.dot_dimension_numbers<[1], [0], [0], [1], [0, 0, 1, 1], [], []>} : vector<56x64xbf16>, vector<64x128xbf16>, vector<56x128xf32> -> vector<56x128xf32>
    %141 = arith.addf %135, %140 : vector<56x128xf32>
    %c0_115 = arith.constant 0 : index
    %c0_116 = arith.constant 0 : index
    %142 = vector.load %arg7[%c0_115, %c0_116] : memref<1x128xf32, #tpu.memory_space<vmem>>, vector<1x128xf32>
    %143 = vector.broadcast %142 : vector<1x128xf32> to vector<56x128xf32>
    %144 = arith.addf %141, %143 : vector<56x128xf32>
    %cst_117 = arith.constant 0.000000e+00 : f32
    %145 = vector.broadcast %cst_117 : f32 to vector<56x128xf32>
    %146 = arith.maximumf %144, %145 : vector<56x128xf32>
    %147 = tpu.iota {dimensions = array<i32: 1>} : vector<1x2xi32>
    %c0_i32 = arith.constant 0 : i32
    %148 = vector.broadcast %c0_i32 : i32 to vector<1x2xi32>
    %149 = arith.cmpi eq, %147, %148 : vector<1x2xi32>
    %c0_118 = arith.constant 0 : index
    %c0_119 = arith.constant 0 : index
    %c0_120 = arith.constant 0 : index
    %150 = vector.load %arg8[%c0_118, %c0_119, %c0_120] : memref<4x56x128xf32, #tpu.memory_space<vmem>>, vector<1x56x128xf32>
    %151 = vector.shape_cast %150 : vector<1x56x128xf32> to vector<56x128xf32>
    %152 = arith.mulf %146, %151 : vector<56x128xf32>
    %cst_121 = arith.constant dense<0.000000e+00> : vector<56xf32>
    %153 = vector.multi_reduction <add>, %152, %cst_121 [1] : vector<56x128xf32> to vector<56xf32>
    %154 = vector.shape_cast %153 : vector<56xf32> to vector<56x1xf32>
    %cst_122 = arith.constant dense<0.000000e+00> : vector<1xf32>
    %155 = vector.multi_reduction <add>, %154, %cst_122 [0] : vector<56x1xf32> to vector<1xf32>
    %156 = vector.shape_cast %155 : vector<1xf32> to vector<1x1xf32>
    %c1_123 = arith.constant 1 : index
    %c0_124 = arith.constant 0 : index
    %c0_125 = arith.constant 0 : index
    %157 = vector.load %arg8[%c1_123, %c0_124, %c0_125] : memref<4x56x128xf32, #tpu.memory_space<vmem>>, vector<1x56x128xf32>
    %158 = vector.shape_cast %157 : vector<1x56x128xf32> to vector<56x128xf32>
    %159 = arith.mulf %146, %158 : vector<56x128xf32>
    %cst_126 = arith.constant dense<0.000000e+00> : vector<56xf32>
    %160 = vector.multi_reduction <add>, %159, %cst_126 [1] : vector<56x128xf32> to vector<56xf32>
    %161 = vector.shape_cast %160 : vector<56xf32> to vector<56x1xf32>
    %cst_127 = arith.constant dense<0.000000e+00> : vector<1xf32>
    %162 = vector.multi_reduction <add>, %161, %cst_127 [0] : vector<56x1xf32> to vector<1xf32>
    %163 = vector.shape_cast %162 : vector<1xf32> to vector<1x1xf32>
    %164 = vector.shape_cast %156 : vector<1x1xf32> to vector<1x1xf32>
    %165 = vector.broadcast %164 : vector<1x1xf32> to vector<1x2xf32>
    %166 = vector.shape_cast %163 : vector<1x1xf32> to vector<1x1xf32>
    %167 = vector.broadcast %166 : vector<1x1xf32> to vector<1x2xf32>
    %168 = arith.select %149, %165, %167 : vector<1x2xi1>, vector<1x2xf32>
    %c0_128 = arith.constant 0 : index
    %c0_129 = arith.constant 0 : index
    %169 = vector.load %arg9[%c0_128, %c0_129] : memref<1x4xf32, #tpu.memory_space<vmem>>, vector<1x2xf32>
    %170 = arith.addf %168, %169 : vector<1x2xf32>
    %c0_i32_130 = arith.constant 0 : i32
    %171 = vector.broadcast %c0_i32_130 : i32 to vector<1x2xi32>
    %172 = arith.cmpi eq, %147, %171 : vector<1x2xi32>
    %c2_131 = arith.constant 2 : index
    %c0_132 = arith.constant 0 : index
    %c0_133 = arith.constant 0 : index
    %173 = vector.load %arg8[%c2_131, %c0_132, %c0_133] : memref<4x56x128xf32, #tpu.memory_space<vmem>>, vector<1x56x128xf32>
    %174 = vector.shape_cast %173 : vector<1x56x128xf32> to vector<56x128xf32>
    %175 = arith.mulf %146, %174 : vector<56x128xf32>
    %cst_134 = arith.constant dense<0.000000e+00> : vector<56xf32>
    %176 = vector.multi_reduction <add>, %175, %cst_134 [1] : vector<56x128xf32> to vector<56xf32>
    %177 = vector.shape_cast %176 : vector<56xf32> to vector<56x1xf32>
    %cst_135 = arith.constant dense<0.000000e+00> : vector<1xf32>
    %178 = vector.multi_reduction <add>, %177, %cst_135 [0] : vector<56x1xf32> to vector<1xf32>
    %179 = vector.shape_cast %178 : vector<1xf32> to vector<1x1xf32>
    %c3_136 = arith.constant 3 : index
    %c0_137 = arith.constant 0 : index
    %c0_138 = arith.constant 0 : index
    %180 = vector.load %arg8[%c3_136, %c0_137, %c0_138] : memref<4x56x128xf32, #tpu.memory_space<vmem>>, vector<1x56x128xf32>
    %181 = vector.shape_cast %180 : vector<1x56x128xf32> to vector<56x128xf32>
    %182 = arith.mulf %146, %181 : vector<56x128xf32>
    %cst_139 = arith.constant dense<0.000000e+00> : vector<56xf32>
    %183 = vector.multi_reduction <add>, %182, %cst_139 [1] : vector<56x128xf32> to vector<56xf32>
    %184 = vector.shape_cast %183 : vector<56xf32> to vector<56x1xf32>
    %cst_140 = arith.constant dense<0.000000e+00> : vector<1xf32>
    %185 = vector.multi_reduction <add>, %184, %cst_140 [0] : vector<56x1xf32> to vector<1xf32>
    %186 = vector.shape_cast %185 : vector<1xf32> to vector<1x1xf32>
    %187 = vector.shape_cast %179 : vector<1x1xf32> to vector<1x1xf32>
    %188 = vector.broadcast %187 : vector<1x1xf32> to vector<1x2xf32>
    %189 = vector.shape_cast %186 : vector<1x1xf32> to vector<1x1xf32>
    %190 = vector.broadcast %189 : vector<1x1xf32> to vector<1x2xf32>
    %191 = arith.select %172, %188, %190 : vector<1x2xi1>, vector<1x2xf32>
    %c0_141 = arith.constant 0 : index
    %c2_142 = arith.constant 2 : index
    %192 = vector.load %arg9[%c0_141, %c2_142] : memref<1x4xf32, #tpu.memory_space<vmem>>, vector<1x2xf32>
    %193 = arith.addf %191, %192 : vector<1x2xf32>
    %c0_143 = arith.constant 0 : index
    %c0_144 = arith.constant 0 : index
    %c0_145 = arith.constant 0 : index
    %194 = vector.load %arg16[%c0_143, %c0_144, %c0_145] : memref<1x1x2xf32, #tpu.memory_space<vmem>>, vector<1x1x2xf32>
    %195 = vector.shape_cast %194 : vector<1x1x2xf32> to vector<1x2xf32>
    %196 = vector.shape_cast %170 : vector<1x2xf32> to vector<1x1x2xf32>
    tpu.vector_store %arg16[%c0_143, %c0_144, %c0_145], %196 {strides = array<i32>} : memref<1x1x2xf32, #tpu.memory_space<vmem>>, vector<1x1x2xf32>,
    %c0_146 = arith.constant 0 : index
    %c0_147 = arith.constant 0 : index
    %c0_148 = arith.constant 0 : index
    %197 = vector.load %arg17[%c0_146, %c0_147, %c0_148] : memref<1x1x2xf32, #tpu.memory_space<vmem>>, vector<1x1x2xf32>
    %198 = vector.shape_cast %197 : vector<1x1x2xf32> to vector<1x2xf32>
    %199 = vector.shape_cast %193 : vector<1x2xf32> to vector<1x1x2xf32>
    tpu.vector_store %arg17[%c0_146, %c0_147, %c0_148], %199 {strides = array<i32>} : memref<1x1x2xf32, #tpu.memory_space<vmem>>, vector<1x1x2xf32>,
    %c0_149 = arith.constant 0 : index
    %c0_150 = arith.constant 0 : index
    %c0_151 = arith.constant 0 : index
    %200 = vector.load %arg2[%c0_149, %c0_150, %c0_151] : memref<1x1x2xf32, #tpu.memory_space<vmem>>, vector<1x1x2xf32>
    %201 = vector.shape_cast %200 : vector<1x1x2xf32> to vector<1x2xf32>
    %cst_152 = arith.constant 5.000000e-01 : f32
    %202 = vector.broadcast %cst_152 : f32 to vector<1x2xf32>
    %203 = arith.mulf %202, %193 : vector<1x2xf32>
    %204 = math.exp %203 : vector<1x2xf32>
    %205 = arith.mulf %201, %204 : vector<1x2xf32>
    %206 = arith.addf %170, %205 : vector<1x2xf32>
    %207 = vector.extract_strided_slice %206 {offsets = [0, 0], sizes = [1, 1], strides = [1, 1]} : vector<1x2xf32> to vector<1x1xf32>
    %c0_153 = arith.constant 0 : index
    %c0_154 = arith.constant 0 : index
    %c0_155 = arith.constant 0 : index
    %208 = vector.load %arg10[%c0_153, %c0_154, %c0_155] : memref<3x88x128xf32, #tpu.memory_space<vmem>>, vector<1x88x128xf32>
    %209 = vector.shape_cast %208 : vector<1x88x128xf32> to vector<88x128xf32>
    %210 = vector.broadcast %207 : vector<1x1xf32> to vector<88x128xf32>
    %211 = arith.mulf %210, %209 : vector<88x128xf32>
    %212 = vector.extract_strided_slice %206 {offsets = [0, 1], sizes = [1, 1], strides = [1, 1]} : vector<1x2xf32> to vector<1x1xf32>
    %c1_156 = arith.constant 1 : index
    %c0_157 = arith.constant 0 : index
    %c0_158 = arith.constant 0 : index
    %213 = vector.load %arg10[%c1_156, %c0_157, %c0_158] : memref<3x88x128xf32, #tpu.memory_space<vmem>>, vector<1x88x128xf32>
    %214 = vector.shape_cast %213 : vector<1x88x128xf32> to vector<88x128xf32>
    %215 = vector.broadcast %212 : vector<1x1xf32> to vector<88x128xf32>
    %216 = arith.mulf %215, %214 : vector<88x128xf32>
    %217 = arith.addf %211, %216 : vector<88x128xf32>
    %c2_159 = arith.constant 2 : index
    %c0_160 = arith.constant 0 : index
    %c0_161 = arith.constant 0 : index
    %218 = vector.load %arg10[%c2_159, %c0_160, %c0_161] : memref<3x88x128xf32, #tpu.memory_space<vmem>>, vector<1x88x128xf32>
    %219 = vector.shape_cast %218 : vector<1x88x128xf32> to vector<88x128xf32>
    %220 = arith.addf %217, %219 : vector<88x128xf32>
    %cst_162 = arith.constant 0.000000e+00 : f32
    %221 = vector.broadcast %cst_162 : f32 to vector<64x256xf32>
    %222 = vector.extract_strided_slice %220 {offsets = [0, 0], sizes = [64, 128], strides = [1, 1]} : vector<88x128xf32> to vector<64x128xf32>
    %223 = arith.truncf %222 : vector<64x128xf32> to vector<64x128xbf16>
    %c0_163 = arith.constant 0 : index
    %c0_164 = arith.constant 0 : index
    %c0_165 = arith.constant 0 : index
    %224 = vector.load %arg11[%c0_163, %c0_164, %c0_165] : memref<9x128x256xbf16, #tpu.memory_space<vmem>>, vector<1x128x256xbf16>
    %225 = vector.shape_cast %224 : vector<1x128x256xbf16> to vector<128x256xbf16>
    %cst_166 = arith.constant dense<0.000000e+00> : vector<64x256xf32>
    %226 = tpu.matmul %223, %225, %cst_166 {dimension_numbers = #tpu.dot_dimension_numbers<[1], [0], [0], [1], [0, 0, 1, 1], [], []>} : vector<64x128xbf16>, vector<128x256xbf16>, vector<64x256xf32> -> vector<64x256xf32>
    %227 = arith.addf %221, %226 : vector<64x256xf32>
    %228 = vector.extract_strided_slice %220 {offsets = [1, 0], sizes = [64, 128], strides = [1, 1]} : vector<88x128xf32> to vector<64x128xf32>
    %229 = arith.truncf %228 : vector<64x128xf32> to vector<64x128xbf16>
    %c1_167 = arith.constant 1 : index
    %c0_168 = arith.constant 0 : index
    %c0_169 = arith.constant 0 : index
    %230 = vector.load %arg11[%c1_167, %c0_168, %c0_169] : memref<9x128x256xbf16, #tpu.memory_space<vmem>>, vector<1x128x256xbf16>
    %231 = vector.shape_cast %230 : vector<1x128x256xbf16> to vector<128x256xbf16>
    %cst_170 = arith.constant dense<0.000000e+00> : vector<64x256xf32>
    %232 = tpu.matmul %229, %231, %cst_170 {dimension_numbers = #tpu.dot_dimension_numbers<[1], [0], [0], [1], [0, 0, 1, 1], [], []>} : vector<64x128xbf16>, vector<128x256xbf16>, vector<64x256xf32> -> vector<64x256xf32>
    %233 = arith.addf %227, %232 : vector<64x256xf32>
    %234 = vector.extract_strided_slice %220 {offsets = [2, 0], sizes = [64, 128], strides = [1, 1]} : vector<88x128xf32> to vector<64x128xf32>
    %235 = arith.truncf %234 : vector<64x128xf32> to vector<64x128xbf16>
    %c2_171 = arith.constant 2 : index
    %c0_172 = arith.constant 0 : index
    %c0_173 = arith.constant 0 : index
    %236 = vector.load %arg11[%c2_171, %c0_172, %c0_173] : memref<9x128x256xbf16, #tpu.memory_space<vmem>>, vector<1x128x256xbf16>
    %237 = vector.shape_cast %236 : vector<1x128x256xbf16> to vector<128x256xbf16>
    %cst_174 = arith.constant dense<0.000000e+00> : vector<64x256xf32>
    %238 = tpu.matmul %235, %237, %cst_174 {dimension_numbers = #tpu.dot_dimension_numbers<[1], [0], [0], [1], [0, 0, 1, 1], [], []>} : vector<64x128xbf16>, vector<128x256xbf16>, vector<64x256xf32> -> vector<64x256xf32>
    %239 = arith.addf %233, %238 : vector<64x256xf32>
    %240 = vector.extract_strided_slice %220 {offsets = [9, 0], sizes = [64, 128], strides = [1, 1]} : vector<88x128xf32> to vector<64x128xf32>
    %241 = arith.truncf %240 : vector<64x128xf32> to vector<64x128xbf16>
    %c3_175 = arith.constant 3 : index
    %c0_176 = arith.constant 0 : index
    %c0_177 = arith.constant 0 : index
    %242 = vector.load %arg11[%c3_175, %c0_176, %c0_177] : memref<9x128x256xbf16, #tpu.memory_space<vmem>>, vector<1x128x256xbf16>
    %243 = vector.shape_cast %242 : vector<1x128x256xbf16> to vector<128x256xbf16>
    %cst_178 = arith.constant dense<0.000000e+00> : vector<64x256xf32>
    %244 = tpu.matmul %241, %243, %cst_178 {dimension_numbers = #tpu.dot_dimension_numbers<[1], [0], [0], [1], [0, 0, 1, 1], [], []>} : vector<64x128xbf16>, vector<128x256xbf16>, vector<64x256xf32> -> vector<64x256xf32>
    %245 = arith.addf %239, %244 : vector<64x256xf32>
    %246 = vector.extract_strided_slice %220 {offsets = [10, 0], sizes = [64, 128], strides = [1, 1]} : vector<88x128xf32> to vector<64x128xf32>
    %247 = arith.truncf %246 : vector<64x128xf32> to vector<64x128xbf16>
    %c4 = arith.constant 4 : index
    %c0_179 = arith.constant 0 : index
    %c0_180 = arith.constant 0 : index
    %248 = vector.load %arg11[%c4, %c0_179, %c0_180] : memref<9x128x256xbf16, #tpu.memory_space<vmem>>, vector<1x128x256xbf16>
    %249 = vector.shape_cast %248 : vector<1x128x256xbf16> to vector<128x256xbf16>
    %cst_181 = arith.constant dense<0.000000e+00> : vector<64x256xf32>
    %250 = tpu.matmul %247, %249, %cst_181 {dimension_numbers = #tpu.dot_dimension_numbers<[1], [0], [0], [1], [0, 0, 1, 1], [], []>} : vector<64x128xbf16>, vector<128x256xbf16>, vector<64x256xf32> -> vector<64x256xf32>
    %251 = arith.addf %245, %250 : vector<64x256xf32>
    %252 = vector.extract_strided_slice %220 {offsets = [11, 0], sizes = [64, 128], strides = [1, 1]} : vector<88x128xf32> to vector<64x128xf32>
    %253 = arith.truncf %252 : vector<64x128xf32> to vector<64x128xbf16>
    %c5 = arith.constant 5 : index
    %c0_182 = arith.constant 0 : index
    %c0_183 = arith.constant 0 : index
    %254 = vector.load %arg11[%c5, %c0_182, %c0_183] : memref<9x128x256xbf16, #tpu.memory_space<vmem>>, vector<1x128x256xbf16>
    %255 = vector.shape_cast %254 : vector<1x128x256xbf16> to vector<128x256xbf16>
    %cst_184 = arith.constant dense<0.000000e+00> : vector<64x256xf32>
    %256 = tpu.matmul %253, %255, %cst_184 {dimension_numbers = #tpu.dot_dimension_numbers<[1], [0], [0], [1], [0, 0, 1, 1], [], []>} : vector<64x128xbf16>, vector<128x256xbf16>, vector<64x256xf32> -> vector<64x256xf32>
    %257 = arith.addf %251, %256 : vector<64x256xf32>
    %258 = vector.extract_strided_slice %220 {offsets = [18, 0], sizes = [64, 128], strides = [1, 1]} : vector<88x128xf32> to vector<64x128xf32>
    %259 = arith.truncf %258 : vector<64x128xf32> to vector<64x128xbf16>
    %c6 = arith.constant 6 : index
    %c0_185 = arith.constant 0 : index
    %c0_186 = arith.constant 0 : index
    %260 = vector.load %arg11[%c6, %c0_185, %c0_186] : memref<9x128x256xbf16, #tpu.memory_space<vmem>>, vector<1x128x256xbf16>
    %261 = vector.shape_cast %260 : vector<1x128x256xbf16> to vector<128x256xbf16>
    %cst_187 = arith.constant dense<0.000000e+00> : vector<64x256xf32>
    %262 = tpu.matmul %259, %261, %cst_187 {dimension_numbers = #tpu.dot_dimension_numbers<[1], [0], [0], [1], [0, 0, 1, 1], [], []>} : vector<64x128xbf16>, vector<128x256xbf16>, vector<64x256xf32> -> vector<64x256xf32>
    %263 = arith.addf %257, %262 : vector<64x256xf32>
    %264 = vector.extract_strided_slice %220 {offsets = [19, 0], sizes = [64, 128], strides = [1, 1]} : vector<88x128xf32> to vector<64x128xf32>
    %265 = arith.truncf %264 : vector<64x128xf32> to vector<64x128xbf16>
    %c7 = arith.constant 7 : index
    %c0_188 = arith.constant 0 : index
    %c0_189 = arith.constant 0 : index
    %266 = vector.load %arg11[%c7, %c0_188, %c0_189] : memref<9x128x256xbf16, #tpu.memory_space<vmem>>, vector<1x128x256xbf16>
    %267 = vector.shape_cast %266 : vector<1x128x256xbf16> to vector<128x256xbf16>
    %cst_190 = arith.constant dense<0.000000e+00> : vector<64x256xf32>
    %268 = tpu.matmul %265, %267, %cst_190 {dimension_numbers = #tpu.dot_dimension_numbers<[1], [0], [0], [1], [0, 0, 1, 1], [], []>} : vector<64x128xbf16>, vector<128x256xbf16>, vector<64x256xf32> -> vector<64x256xf32>
    %269 = arith.addf %263, %268 : vector<64x256xf32>
    %270 = vector.extract_strided_slice %220 {offsets = [20, 0], sizes = [64, 128], strides = [1, 1]} : vector<88x128xf32> to vector<64x128xf32>
    %271 = arith.truncf %270 : vector<64x128xf32> to vector<64x128xbf16>
    %c8 = arith.constant 8 : index
    %c0_191 = arith.constant 0 : index
    %c0_192 = arith.constant 0 : index
    %272 = vector.load %arg11[%c8, %c0_191, %c0_192] : memref<9x128x256xbf16, #tpu.memory_space<vmem>>, vector<1x128x256xbf16>
    %273 = vector.shape_cast %272 : vector<1x128x256xbf16> to vector<128x256xbf16>
    %cst_193 = arith.constant dense<0.000000e+00> : vector<64x256xf32>
    %274 = tpu.matmul %271, %273, %cst_193 {dimension_numbers = #tpu.dot_dimension_numbers<[1], [0], [0], [1], [0, 0, 1, 1], [], []>} : vector<64x128xbf16>, vector<128x256xbf16>, vector<64x256xf32> -> vector<64x256xf32>
    %275 = arith.addf %269, %274 : vector<64x256xf32>
    %c0_194 = arith.constant 0 : index
    %c0_195 = arith.constant 0 : index
    %276 = vector.load %arg12[%c0_194, %c0_195] : memref<1x256xf32, #tpu.memory_space<vmem>>, vector<1x256xf32>
    %277 = vector.broadcast %276 : vector<1x256xf32> to vector<64x256xf32>
    %278 = arith.addf %275, %277 : vector<64x256xf32>
    %cst_196 = arith.constant 0.000000e+00 : f32
    %279 = vector.broadcast %cst_196 : f32 to vector<64x256xf32>
    %280 = arith.maximumf %278, %279 : vector<64x256xf32>
    %cst_197 = arith.constant 0.000000e+00 : f32
    %281 = vector.broadcast %cst_197 : f32 to vector<264x64xf32>
    %c0_198 = arith.constant 0 : index
    %c0_199 = arith.constant 0 : index
    %c0_200 = arith.constant 0 : index
    %282 = vector.load %arg13[%c0_198, %c0_199, %c0_200] : memref<4x264x64xbf16, #tpu.memory_space<vmem>>, vector<1x264x64xbf16>
    %283 = vector.shape_cast %282 : vector<1x264x64xbf16> to vector<264x64xbf16>
    %284 = vector.extract_strided_slice %280 {offsets = [0, 0], sizes = [64, 64], strides = [1, 1]} : vector<64x256xf32> to vector<64x64xf32>
    %285 = arith.truncf %284 : vector<64x64xf32> to vector<64x64xbf16>
    %cst_201 = arith.constant dense<0.000000e+00> : vector<264x64xf32>
    %286 = tpu.matmul %283, %285, %cst_201 {dimension_numbers = #tpu.dot_dimension_numbers<[1], [0], [0], [1], [0, 0, 1, 1], [], []>} : vector<264x64xbf16>, vector<64x64xbf16>, vector<264x64xf32> -> vector<264x64xf32>
    %287 = arith.addf %281, %286 : vector<264x64xf32>
    %c1_202 = arith.constant 1 : index
    %c0_203 = arith.constant 0 : index
    %c0_204 = arith.constant 0 : index
    %288 = vector.load %arg13[%c1_202, %c0_203, %c0_204] : memref<4x264x64xbf16, #tpu.memory_space<vmem>>, vector<1x264x64xbf16>
    %289 = vector.shape_cast %288 : vector<1x264x64xbf16> to vector<264x64xbf16>
    %290 = vector.extract_strided_slice %280 {offsets = [0, 64], sizes = [64, 64], strides = [1, 1]} : vector<64x256xf32> to vector<64x64xf32>
    %291 = arith.truncf %290 : vector<64x64xf32> to vector<64x64xbf16>
    %cst_205 = arith.constant dense<0.000000e+00> : vector<264x64xf32>
    %292 = tpu.matmul %289, %291, %cst_205 {dimension_numbers = #tpu.dot_dimension_numbers<[1], [0], [0], [1], [0, 0, 1, 1], [], []>} : vector<264x64xbf16>, vector<64x64xbf16>, vector<264x64xf32> -> vector<264x64xf32>
    %293 = arith.addf %287, %292 : vector<264x64xf32>
    %c2_206 = arith.constant 2 : index
    %c0_207 = arith.constant 0 : index
    %c0_208 = arith.constant 0 : index
    %294 = vector.load %arg13[%c2_206, %c0_207, %c0_208] : memref<4x264x64xbf16, #tpu.memory_space<vmem>>, vector<1x264x64xbf16>
    %295 = vector.shape_cast %294 : vector<1x264x64xbf16> to vector<264x64xbf16>
    %296 = vector.extract_strided_slice %280 {offsets = [0, 128], sizes = [64, 64], strides = [1, 1]} : vector<64x256xf32> to vector<64x64xf32>
    %297 = arith.truncf %296 : vector<64x64xf32> to vector<64x64xbf16>
    %cst_209 = arith.constant dense<0.000000e+00> : vector<264x64xf32>
    %298 = tpu.matmul %295, %297, %cst_209 {dimension_numbers = #tpu.dot_dimension_numbers<[1], [0], [0], [1], [0, 0, 1, 1], [], []>} : vector<264x64xbf16>, vector<64x64xbf16>, vector<264x64xf32> -> vector<264x64xf32>
    %299 = arith.addf %293, %298 : vector<264x64xf32>
    %c3_210 = arith.constant 3 : index
    %c0_211 = arith.constant 0 : index
    %c0_212 = arith.constant 0 : index
    %300 = vector.load %arg13[%c3_210, %c0_211, %c0_212] : memref<4x264x64xbf16, #tpu.memory_space<vmem>>, vector<1x264x64xbf16>
    %301 = vector.shape_cast %300 : vector<1x264x64xbf16> to vector<264x64xbf16>
    %302 = vector.extract_strided_slice %280 {offsets = [0, 192], sizes = [64, 64], strides = [1, 1]} : vector<64x256xf32> to vector<64x64xf32>
    %303 = arith.truncf %302 : vector<64x64xf32> to vector<64x64xbf16>
    %cst_213 = arith.constant dense<0.000000e+00> : vector<264x64xf32>
    %304 = tpu.matmul %301, %303, %cst_213 {dimension_numbers = #tpu.dot_dimension_numbers<[1], [0], [0], [1], [0, 0, 1, 1], [], []>} : vector<264x64xbf16>, vector<64x64xbf16>, vector<264x64xf32> -> vector<264x64xf32>
    %305 = arith.addf %299, %304 : vector<264x64xf32>
    %cst_214 = arith.constant 0.000000e+00 : f32
    %306 = vector.broadcast %cst_214 : f32 to vector<224x4xf32>
    %307 = vector.extract_strided_slice %305 {offsets = [0, 0], sizes = [224, 64], strides = [1, 1]} : vector<264x64xf32> to vector<224x64xf32>
    %308 = arith.truncf %307 : vector<224x64xf32> to vector<224x64xbf16>
    %c0_215 = arith.constant 0 : index
    %c0_216 = arith.constant 0 : index
    %c0_217 = arith.constant 0 : index
    %309 = vector.load %arg14[%c0_215, %c0_216, %c0_217] : memref<9x64x4xbf16, #tpu.memory_space<vmem>>, vector<1x64x4xbf16>
    %310 = vector.shape_cast %309 : vector<1x64x4xbf16> to vector<64x4xbf16>
    %cst_218 = arith.constant dense<0.000000e+00> : vector<224x4xf32>
    %311 = tpu.matmul %308, %310, %cst_218 {dimension_numbers = #tpu.dot_dimension_numbers<[1], [0], [0], [1], [0, 0, 1, 1], [], []>} : vector<224x64xbf16>, vector<64x4xbf16>, vector<224x4xf32> -> vector<224x4xf32>
    %312 = arith.addf %306, %311 : vector<224x4xf32>
    %313 = vector.extract_strided_slice %305 {offsets = [1, 0], sizes = [224, 64], strides = [1, 1]} : vector<264x64xf32> to vector<224x64xf32>
    %314 = arith.truncf %313 : vector<224x64xf32> to vector<224x64xbf16>
    %c1_219 = arith.constant 1 : index
    %c0_220 = arith.constant 0 : index
    %c0_221 = arith.constant 0 : index
    %315 = vector.load %arg14[%c1_219, %c0_220, %c0_221] : memref<9x64x4xbf16, #tpu.memory_space<vmem>>, vector<1x64x4xbf16>
    %316 = vector.shape_cast %315 : vector<1x64x4xbf16> to vector<64x4xbf16>
    %cst_222 = arith.constant dense<0.000000e+00> : vector<224x4xf32>
    %317 = tpu.matmul %314, %316, %cst_222 {dimension_numbers = #tpu.dot_dimension_numbers<[1], [0], [0], [1], [0, 0, 1, 1], [], []>} : vector<224x64xbf16>, vector<64x4xbf16>, vector<224x4xf32> -> vector<224x4xf32>
    %318 = arith.addf %312, %317 : vector<224x4xf32>
    %319 = vector.extract_strided_slice %305 {offsets = [2, 0], sizes = [224, 64], strides = [1, 1]} : vector<264x64xf32> to vector<224x64xf32>
    %320 = arith.truncf %319 : vector<224x64xf32> to vector<224x64xbf16>
    %c2_223 = arith.constant 2 : index
    %c0_224 = arith.constant 0 : index
    %c0_225 = arith.constant 0 : index
    %321 = vector.load %arg14[%c2_223, %c0_224, %c0_225] : memref<9x64x4xbf16, #tpu.memory_space<vmem>>, vector<1x64x4xbf16>
    %322 = vector.shape_cast %321 : vector<1x64x4xbf16> to vector<64x4xbf16>
    %cst_226 = arith.constant dense<0.000000e+00> : vector<224x4xf32>
    %323 = tpu.matmul %320, %322, %cst_226 {dimension_numbers = #tpu.dot_dimension_numbers<[1], [0], [0], [1], [0, 0, 1, 1], [], []>} : vector<224x64xbf16>, vector<64x4xbf16>, vector<224x4xf32> -> vector<224x4xf32>
    %324 = arith.addf %318, %323 : vector<224x4xf32>
    %325 = vector.extract_strided_slice %305 {offsets = [16, 0], sizes = [224, 64], strides = [1, 1]} : vector<264x64xf32> to vector<224x64xf32>
    %326 = arith.truncf %325 : vector<224x64xf32> to vector<224x64xbf16>
    %c3_227 = arith.constant 3 : index
    %c0_228 = arith.constant 0 : index
    %c0_229 = arith.constant 0 : index
    %327 = vector.load %arg14[%c3_227, %c0_228, %c0_229] : memref<9x64x4xbf16, #tpu.memory_space<vmem>>, vector<1x64x4xbf16>
    %328 = vector.shape_cast %327 : vector<1x64x4xbf16> to vector<64x4xbf16>
    %cst_230 = arith.constant dense<0.000000e+00> : vector<224x4xf32>
    %329 = tpu.matmul %326, %328, %cst_230 {dimension_numbers = #tpu.dot_dimension_numbers<[1], [0], [0], [1], [0, 0, 1, 1], [], []>} : vector<224x64xbf16>, vector<64x4xbf16>, vector<224x4xf32> -> vector<224x4xf32>
    %330 = arith.addf %324, %329 : vector<224x4xf32>
    %331 = vector.extract_strided_slice %305 {offsets = [17, 0], sizes = [224, 64], strides = [1, 1]} : vector<264x64xf32> to vector<224x64xf32>
    %332 = arith.truncf %331 : vector<224x64xf32> to vector<224x64xbf16>
    %c4_231 = arith.constant 4 : index
    %c0_232 = arith.constant 0 : index
    %c0_233 = arith.constant 0 : index
    %333 = vector.load %arg14[%c4_231, %c0_232, %c0_233] : memref<9x64x4xbf16, #tpu.memory_space<vmem>>, vector<1x64x4xbf16>
    %334 = vector.shape_cast %333 : vector<1x64x4xbf16> to vector<64x4xbf16>
    %cst_234 = arith.constant dense<0.000000e+00> : vector<224x4xf32>
    %335 = tpu.matmul %332, %334, %cst_234 {dimension_numbers = #tpu.dot_dimension_numbers<[1], [0], [0], [1], [0, 0, 1, 1], [], []>} : vector<224x64xbf16>, vector<64x4xbf16>, vector<224x4xf32> -> vector<224x4xf32>
    %336 = arith.addf %330, %335 : vector<224x4xf32>
    %337 = vector.extract_strided_slice %305 {offsets = [18, 0], sizes = [224, 64], strides = [1, 1]} : vector<264x64xf32> to vector<224x64xf32>
    %338 = arith.truncf %337 : vector<224x64xf32> to vector<224x64xbf16>
    %c5_235 = arith.constant 5 : index
    %c0_236 = arith.constant 0 : index
    %c0_237 = arith.constant 0 : index
    %339 = vector.load %arg14[%c5_235, %c0_236, %c0_237] : memref<9x64x4xbf16, #tpu.memory_space<vmem>>, vector<1x64x4xbf16>
    %340 = vector.shape_cast %339 : vector<1x64x4xbf16> to vector<64x4xbf16>
    %cst_238 = arith.constant dense<0.000000e+00> : vector<224x4xf32>
    %341 = tpu.matmul %338, %340, %cst_238 {dimension_numbers = #tpu.dot_dimension_numbers<[1], [0], [0], [1], [0, 0, 1, 1], [], []>} : vector<224x64xbf16>, vector<64x4xbf16>, vector<224x4xf32> -> vector<224x4xf32>
    %342 = arith.addf %336, %341 : vector<224x4xf32>
    %343 = vector.extract_strided_slice %305 {offsets = [32, 0], sizes = [224, 64], strides = [1, 1]} : vector<264x64xf32> to vector<224x64xf32>
    %344 = arith.truncf %343 : vector<224x64xf32> to vector<224x64xbf16>
    %c6_239 = arith.constant 6 : index
    %c0_240 = arith.constant 0 : index
    %c0_241 = arith.constant 0 : index
    %345 = vector.load %arg14[%c6_239, %c0_240, %c0_241] : memref<9x64x4xbf16, #tpu.memory_space<vmem>>, vector<1x64x4xbf16>
    %346 = vector.shape_cast %345 : vector<1x64x4xbf16> to vector<64x4xbf16>
    %cst_242 = arith.constant dense<0.000000e+00> : vector<224x4xf32>
    %347 = tpu.matmul %344, %346, %cst_242 {dimension_numbers = #tpu.dot_dimension_numbers<[1], [0], [0], [1], [0, 0, 1, 1], [], []>} : vector<224x64xbf16>, vector<64x4xbf16>, vector<224x4xf32> -> vector<224x4xf32>
    %348 = arith.addf %342, %347 : vector<224x4xf32>
    %349 = vector.extract_strided_slice %305 {offsets = [33, 0], sizes = [224, 64], strides = [1, 1]} : vector<264x64xf32> to vector<224x64xf32>
    %350 = arith.truncf %349 : vector<224x64xf32> to vector<224x64xbf16>
    %c7_243 = arith.constant 7 : index
    %c0_244 = arith.constant 0 : index
    %c0_245 = arith.constant 0 : index
    %351 = vector.load %arg14[%c7_243, %c0_244, %c0_245] : memref<9x64x4xbf16, #tpu.memory_space<vmem>>, vector<1x64x4xbf16>
    %352 = vector.shape_cast %351 : vector<1x64x4xbf16> to vector<64x4xbf16>
    %cst_246 = arith.constant dense<0.000000e+00> : vector<224x4xf32>
    %353 = tpu.matmul %350, %352, %cst_246 {dimension_numbers = #tpu.dot_dimension_numbers<[1], [0], [0], [1], [0, 0, 1, 1], [], []>} : vector<224x64xbf16>, vector<64x4xbf16>, vector<224x4xf32> -> vector<224x4xf32>
    %354 = arith.addf %348, %353 : vector<224x4xf32>
    %355 = vector.extract_strided_slice %305 {offsets = [34, 0], sizes = [224, 64], strides = [1, 1]} : vector<264x64xf32> to vector<224x64xf32>
    %356 = arith.truncf %355 : vector<224x64xf32> to vector<224x64xbf16>
    %c8_247 = arith.constant 8 : index
    %c0_248 = arith.constant 0 : index
    %c0_249 = arith.constant 0 : index
    %357 = vector.load %arg14[%c8_247, %c0_248, %c0_249] : memref<9x64x4xbf16, #tpu.memory_space<vmem>>, vector<1x64x4xbf16>
    %358 = vector.shape_cast %357 : vector<1x64x4xbf16> to vector<64x4xbf16>
    %cst_250 = arith.constant dense<0.000000e+00> : vector<224x4xf32>
    %359 = tpu.matmul %356, %358, %cst_250 {dimension_numbers = #tpu.dot_dimension_numbers<[1], [0], [0], [1], [0, 0, 1, 1], [], []>} : vector<224x64xbf16>, vector<64x4xbf16>, vector<224x4xf32> -> vector<224x4xf32>
    %360 = arith.addf %354, %359 : vector<224x4xf32>
    %c0_251 = arith.constant 0 : index
    %c0_252 = arith.constant 0 : index
    %361 = vector.load %arg15[%c0_251, %c0_252] : memref<1x4xf32, #tpu.memory_space<vmem>>, vector<1x4xf32>
    %362 = vector.broadcast %361 : vector<1x4xf32> to vector<224x4xf32>
    %363 = arith.addf %360, %362 : vector<224x4xf32>
    %cst_253 = arith.constant 0.000000e+00 : f32
    %364 = vector.broadcast %cst_253 : f32 to vector<224x4xf32>
    %365 = arith.subf %364, %363 : vector<224x4xf32>
    %366 = math.exp %365 : vector<224x4xf32>
    %cst_254 = arith.constant 1.000000e+00 : f32
    %367 = vector.broadcast %cst_254 : f32 to vector<224x4xf32>
    %368 = arith.addf %367, %366 : vector<224x4xf32>
    %cst_255 = arith.constant 1.000000e+00 : f32
    %369 = vector.broadcast %cst_255 : f32 to vector<224x4xf32>
    %370 = arith.divf %369, %368 : vector<224x4xf32>
    %c0_256 = arith.constant 0 : index
    %c0_257 = arith.constant 0 : index
    %c0_258 = arith.constant 0 : index
    %371 = vector.load %arg18[%c0_256, %c0_257, %c0_258] : memref<1x224x4xf32, #tpu.memory_space<vmem>>, vector<1x224x4xf32>
    %372 = vector.shape_cast %371 : vector<1x224x4xf32> to vector<224x4xf32>
    %373 = vector.shape_cast %370 : vector<224x4xf32> to vector<1x224x4xf32>
    tpu.vector_store %arg18[%c0_256, %c0_257, %c0_258], %373 {strides = array<i32>} : memref<1x224x4xf32, #tpu.memory_space<vmem>>, vector<1x224x4xf32>,
    return
  }
  func.func @transform_0(%arg0: i32) -> (i32, i32, i32) {
    %c0_i32 = arith.constant 0 : i32
    %c0_i32_0 = arith.constant 0 : i32
    %c0_i32_1 = arith.constant 0 : i32
    return %arg0, %c0_i32, %c0_i32_0 : i32, i32, i32
  }
  func.func @transform_1(%arg0: i32) -> (i32, i32, i32) {
    %c0_i32 = arith.constant 0 : i32
    %c0_i32_0 = arith.constant 0 : i32
    %c0_i32_1 = arith.constant 0 : i32
    return %arg0, %c0_i32, %c0_i32_0 : i32, i32, i32
  }
  func.func @transform_2(%arg0: i32) -> (i32, i32, i32) {
    %c0_i32 = arith.constant 0 : i32
    %c0_i32_0 = arith.constant 0 : i32
    %c0_i32_1 = arith.constant 0 : i32
    %c0_i32_2 = arith.constant 0 : i32
    return %c0_i32, %c0_i32_0, %c0_i32_1 : i32, i32, i32
  }
  func.func @transform_3(%arg0: i32) -> (i32, i32) {
    %c0_i32 = arith.constant 0 : i32
    %c0_i32_0 = arith.constant 0 : i32
    %c0_i32_1 = arith.constant 0 : i32
    return %c0_i32, %c0_i32_0 : i32, i32
  }
  func.func @transform_4(%arg0: i32) -> (i32, i32, i32) {
    %c0_i32 = arith.constant 0 : i32
    %c0_i32_0 = arith.constant 0 : i32
    %c0_i32_1 = arith.constant 0 : i32
    %c0_i32_2 = arith.constant 0 : i32
    return %c0_i32, %c0_i32_0, %c0_i32_1 : i32, i32, i32
  }
  func.func @transform_5(%arg0: i32) -> (i32, i32, i32, i32) {
    %c0_i32 = arith.constant 0 : i32
    %c0_i32_0 = arith.constant 0 : i32
    %c0_i32_1 = arith.constant 0 : i32
    %c0_i32_2 = arith.constant 0 : i32
    %c0_i32_3 = arith.constant 0 : i32
    return %c0_i32, %c0_i32_0, %c0_i32_1, %c0_i32_2 : i32, i32, i32, i32
  }
  func.func @transform_6(%arg0: i32) -> (i32, i32) {
    %c0_i32 = arith.constant 0 : i32
    %c0_i32_0 = arith.constant 0 : i32
    %c0_i32_1 = arith.constant 0 : i32
    return %c0_i32, %c0_i32_0 : i32, i32
  }
  func.func @transform_7(%arg0: i32) -> (i32, i32, i32) {
    %c0_i32 = arith.constant 0 : i32
    %c0_i32_0 = arith.constant 0 : i32
    %c0_i32_1 = arith.constant 0 : i32
    %c0_i32_2 = arith.constant 0 : i32
    return %c0_i32, %c0_i32_0, %c0_i32_1 : i32, i32, i32
  }
  func.func @transform_8(%arg0: i32) -> (i32, i32) {
    %c0_i32 = arith.constant 0 : i32
    %c0_i32_0 = arith.constant 0 : i32
    %c0_i32_1 = arith.constant 0 : i32
    return %c0_i32, %c0_i32_0 : i32, i32
  }
  func.func @transform_9(%arg0: i32) -> (i32, i32, i32) {
    %c0_i32 = arith.constant 0 : i32
    %c0_i32_0 = arith.constant 0 : i32
    %c0_i32_1 = arith.constant 0 : i32
    %c0_i32_2 = arith.constant 0 : i32
    return %c0_i32, %c0_i32_0, %c0_i32_1 : i32, i32, i32
  }
  func.func @transform_10(%arg0: i32) -> (i32, i32, i32) {
    %c0_i32 = arith.constant 0 : i32
    %c0_i32_0 = arith.constant 0 : i32
    %c0_i32_1 = arith.constant 0 : i32
    %c0_i32_2 = arith.constant 0 : i32
    return %c0_i32, %c0_i32_0, %c0_i32_1 : i32, i32, i32
  }
  func.func @transform_11(%arg0: i32) -> (i32, i32) {
    %c0_i32 = arith.constant 0 : i32
    %c0_i32_0 = arith.constant 0 : i32
    %c0_i32_1 = arith.constant 0 : i32
    return %c0_i32, %c0_i32_0 : i32, i32
  }
  func.func @transform_12(%arg0: i32) -> (i32, i32, i32) {
    %c0_i32 = arith.constant 0 : i32
    %c0_i32_0 = arith.constant 0 : i32
    %c0_i32_1 = arith.constant 0 : i32
    %c0_i32_2 = arith.constant 0 : i32
    return %c0_i32, %c0_i32_0, %c0_i32_1 : i32, i32, i32
  }
  func.func @transform_13(%arg0: i32) -> (i32, i32, i32) {
    %c0_i32 = arith.constant 0 : i32
    %c0_i32_0 = arith.constant 0 : i32
    %c0_i32_1 = arith.constant 0 : i32
    %c0_i32_2 = arith.constant 0 : i32
    return %c0_i32, %c0_i32_0, %c0_i32_1 : i32, i32, i32
  }
  func.func @transform_14(%arg0: i32) -> (i32, i32) {
    %c0_i32 = arith.constant 0 : i32
    %c0_i32_0 = arith.constant 0 : i32
    %c0_i32_1 = arith.constant 0 : i32
    return %c0_i32, %c0_i32_0 : i32, i32
  }
  func.func @transform_15(%arg0: i32) -> (i32, i32, i32) {
    %c0_i32 = arith.constant 0 : i32
    %c0_i32_0 = arith.constant 0 : i32
    %c0_i32_1 = arith.constant 0 : i32
    return %arg0, %c0_i32, %c0_i32_0 : i32, i32, i32
  }
  func.func @transform_16(%arg0: i32) -> (i32, i32, i32) {
    %c0_i32 = arith.constant 0 : i32
    %c0_i32_0 = arith.constant 0 : i32
    %c0_i32_1 = arith.constant 0 : i32
    return %arg0, %c0_i32, %c0_i32_0 : i32, i32, i32
  }
  func.func @transform_17(%arg0: i32) -> (i32, i32, i32) {
    %c0_i32 = arith.constant 0 : i32
    %c0_i32_0 = arith.constant 0 : i32
    %c0_i32_1 = arith.constant 0 : i32
    return %arg0, %c0_i32, %c0_i32_0 : i32, i32, i32
  }
}

</mosaic_0001>

<bundles_post_ra>
// kernel: vae_forward.1
= control target key start
LH: loop header
LB: loop body
LE: loop exit
PB: predicated region body
PF: predicated region fallthrough
CT: control target
= control target key end

     0   :  { %s18091_s0 = inlined_call_operand.vmem [shape: f32[2,232,4], index: 0, kind: input, shape index: {}]   ;;  %s18092_s1 = inlined_call_operand.vmem [shape: f32[2,1,2], index: 1, kind: input, shape index: {}]   ;;  %s18093_s2 = inlined_call_operand.vmem [shape: bf16[4,4,64], index: 2, kind: input, shape index: {}]   ;;  %s18094_s3 = inlined_call_operand.vmem [shape: f32[1,64], index: 3, kind: input, shape index: {}]   ;;  %s18095_s4 = inlined_call_operand.vmem [shape: bf16[4,72,216], index: 4, kind: input, shape index: {}]   ;;  %s18096_s5 = inlined_call_operand.vmem [shape: bf16[4,4,64,128], index: 5, kind: input, shape index: {}]   ;;  %s18097_s6 = inlined_call_operand.vmem [shape: f32[1,128], index: 6, kind: input, shape index: {}]   ;;  %s18098_s7 = inlined_call_operand.vmem [shape: f32[4,56,128], index: 7, kind: input, shape index: {}]   ;;  %s18099_s8 = inlined_call_operand.vmem [shape: f32[1,4], index: 8, kind: input, shape index: {}]   ;;  %s18100_s9 = inlined_call_operand.vmem [shape: f32[3,88,128], index: 9, kind: input, shape index: {}]   ;;  %s18101_s10 = inlined_call_operand.vmem [shape: bf16[9,128,256], index: 10, kind: input, shape index: {}]   ;;  %s18102_s11 = inlined_call_operand.vmem [shape: f32[1,256], index: 11, kind: input, shape index: {}]   ;;  %s18103_s12 = inlined_call_operand.vmem [shape: bf16[4,264,64], index: 12, kind: input, shape index: {}]   ;;  %s18104_s13 = inlined_call_operand.vmem [shape: bf16[9,64,4], index: 13, kind: input, shape index: {}]   ;;  %s18105_s14 = inlined_call_operand.vmem [shape: f32[1,4], index: 14, kind: input, shape index: {}]   ;;  %s18106_s15 = inlined_call_operand.hbm [shape: f32[2,1,2], index: 15, kind: output, shape index: {0}]   ;;  %s18107_s16 = inlined_call_operand.hbm [shape: f32[2,1,2], index: 16, kind: output, shape index: {1}]   ;;  %s18108_s17 = inlined_call_operand.vmem [shape: f32[2,224,4], index: 17, kind: output, shape index: {2}]  }
   0x1   :  { %18122 = sst [smem:[#allocation18_spill]] %s18091_s0 }
   0x2   :  { %18123 = sst [smem:[#allocation19_spill]] %s18092_s1 }
   0x3   :  { %18124 = sst [smem:[#allocation20_spill]] %s18093_s2 }
   0x4   :  { %18125 = sst [smem:[#allocation21_spill]] %s18094_s3 }
   0x5   :  { %18126 = sst [smem:[#allocation22_spill]] %s18095_s4 }
   0x6   :  { %18127 = sst [smem:[#allocation23_spill]] %s18096_s5 }
   0x7   :  { %18128 = sst [smem:[#allocation24_spill]] %s18097_s6 }
   0x8   :  { %18129 = sst [smem:[#allocation25_spill]] %s18098_s7 }
   0x9   :  { %18130 = sst [smem:[#allocation26_spill]] %s18099_s8 }
   0xa   :  { %18131 = sst [smem:[#allocation27_spill]] %s18100_s9 }
   0xb   :  { %23 = vsyncpa [#allocation3], 0 }
   0xc   :  { %25 = vsyncpa [#allocation3 + $0x1], 0 }
   0xd   :  { %26 = vsyncpa [#allocation5], 0 }
   0xe   :  { %28 = vsyncpa [#allocation5 + $0x1], 0  ;;  %s14717_s24 = smov 0   ;;  %s14719_s25 = smov 0  }
   0xf   :  { %s14721_s26 = smov 0   ;;  %s14723_s27 = smov 0  }
  0x10 LB: > { %18132 = sst [smem:[#allocation8_spill]] %s14613_s26  ;;  %s14738_s28 = sadd.s32 4294967295, %s14617_s27   ;;  %s14617_s27 = sphi %s14723_s27, %s18176_s27   ;;  %s14613_s26 = sphi %s14721_s26, %s18173_s26   ;;  %s14609_s25 = sphi %s14719_s25, %s18175_s25   ;;  %s14605_s24 = sphi %s14717_s24, %s18174_s24  }
  0x11   : > { %s10571_s29 = sadd.s32 4294967294, %s14617_s27   ;;  %s14742_s0 = sadd.s32 1, %s14617_s27  }
  0x12   : > { %s366_s30 = sadd.s32 1, %s14613_s26  ;;  %s363_s18 = ssub.s32 %s14617_s27, %s14742_s0 }
  0x13   : > { %p376_p0 = scmp.ne.s32.totalorder %s14613_s26, %s14609_s25  ;;  %p364_p1 = scmp.eq.s32.totalorder %s363_s18, 0 }
  0x14   : > { %p377_p2 = scmp.eq.s32.totalorder %s14738_s28, 1  ;;  %p382_p3 = scmp.ne.s32.totalorder %s14609_s25, %s14605_s24 }
  0x15   : > { %p383_p4 = scmp.eq.s32.totalorder %s10571_s29, 1  ;;  %p10574_p7 = scmp.ge.s32.totalorder %s14617_s27, 1 }
  0x16   : > { %s14753_s19 = scalar_select %p364_p1, %s14613_s26, %s366_s30  }
  0x17   : > { %p14755_p5 = por %p377_p2, %p376_p0  ;;  %p14759_p6 = por %p383_p4, %p382_p3 }
  0x18   : > { %18133 = sst [smem:[#allocation9_spill]] %s14753_s19  ;;  %p506_p8 = scmp.lt.s32.totalorder %s14617_s27, 3 }
  0x1a   : > { %p507_p9 = pnand %p10574_p7, %p506_p8 }
  0x1c   : > { %510 = sbr.rel (%p507_p9) target bundleno = 3754 (0xeaa), region = 80 }
  0x23   : > { %s18136_s2 = sld [smem:[#allocation20_spill]]  ;;  %vm785_vm0 = vcmask 1041408   ;;  %p569_p10 = scmp.lt.s32.totalorder %s14738_s28, 1  ;;  %vm630_vm1 = vsmask.f32 7424  ;;  %vm742_vm2 = vcmask 31744  }
  0x24   : > { %s18137_s19 = sld [smem:[#allocation18_spill]]  ;;  %vm1125_vm3 = vsmask.f32 4352  ;;  %s18145_s4 = sld [smem:[#allocation22_spill]]  ;;  %vm1775_vm4 = vcmask 719872   ;;  %vm1791_vm5 = vcmask 1043456  }
  0x25   : > { %s14775_s30 = scalar_select %p569_p10, %s14738_s28, 1  ;;  %vm2333_vm6 = vcmask 523264   ;;  %vm4590_vm8 = vcmask 8192   ;;  %vm5093_vm9 = vcmask 1046528   ;;  %vm5728_vm10 = vsmask.f32 6400 }
  0x26   : > { %s18146_s3 = sld [smem:[#allocation21_spill]]  ;;  %s18147_s5 = sld [smem:[#allocation23_spill]]  ;;  %vm6355_vm11 = vcmask 1045504   ;;  %vm14624_vm12 = vmmov 0  }
  0x27   : > { %s13912_s18 = smul.u32 232, %s14775_s30  ;;  %s18164_s6 = sld [smem:[#allocation24_spill]] }
  0x28   : > { %s18165_s7 = sld [smem:[#allocation25_spill]]  ;;  %s18166_s8 = sld [smem:[#allocation26_spill]] }
  0x29   : > { %v10577_v0 = vld [vmem:[%s18136_s2 + $0x2] sm:$0x3]  ;;  %v626_v2 = vld [vmem:[%s18136_s2] sm:$0x3]  ;;  %v10606_v37 = vld [vmem:[%s18136_s2 + $0x4] sm:$0x3] }
  0x2a   : > { %13908 = vmatprep.subr.msk.bf16.mxu0 %vm785_vm0, %v10577_v0  ;;  %v787_v1 = vsel %vm785_vm0, %v10577_v0, 0  ;;  %s14782_s26 = scalar_lea.vmem %s18137_s19, %s13912_s18  ;;  %v963_v39 = vsel %vm785_vm0, %v626_v2, 0  ;;  %v14885_v57 = vsel %vm785_vm0, %v10606_v37, 0  ;;  %s14620_s21 = smov 126  }
  0x2b   : > { %12189 = vmatpush3.bf16.msra.mxu0 %v787_v1  ;;  %v583_v3 = vld [vmem:[%s14782_s26] sm:$0xff]  ;;  %v584_v4 = vld [vmem:[%s14782_s26 + $0x8] sm:$0xff]  ;;  %v585_v5 = vld [vmem:[%s14782_s26 + $0x10] sm:$0xff]  ;;  %s16110_s22 = sand.u32 1, %s14609_s25   ;;  %s14621_s23 = smov 127  }
  0x2c   : > { %13909 = vmatprep.subr.msk.bf16.mxu0 %vm785_vm0, %v626_v2  ;;  %v586_v6 = vld [vmem:[%s14782_s26 + $0x18] sm:$0xff]  ;;  %v14788_v7 = vpack.c.bf16 %v584_v4, %v583_v3  ;;  %v587_v8 = vld [vmem:[%s14782_s26 + $0x20] sm:$0xff]  ;;  %v14792_v9 = vld [vmem:[%s14782_s26 + $0x28] sm:$0xff]  ;;  %v14794_v10 = vpack.c.bf16 %v585_v5, %v584_v4  ;;  %s18168_s9 = sld [smem:[#allocation27_spill]]  ;;  %s14625_s29 = smov [#allocation2]  }
  0x2d   : > { %v14796_v11 = vpack.c.bf16 %v586_v6, %v585_v5  ;;  %v14799_v12 = vpack.c.bf16 %v14792_v9, %v587_v8  ;;  %v14802_v13 = vld [vmem:[%s14782_s26 + $0x30] sm:$0xff]  ;;  %v14805_v14 = vld [vmem:[%s14782_s26 + $0x38] sm:$0xff]  ;;  %v14808_v15 = vld [vmem:[%s14782_s26 + $0x40] sm:$0xff]  ;;  %v14810_v16 = vpack.c.bf16 %v587_v8, %v586_v6 }
  0x2e   : > { %v632_v17 = vshrl.u32 %v14788_v7, 16  ;;  %v634_v18 = vshll.u32 %v14788_v7, 16  ;;  %v14816_v19 = vpack.c.bf16 %v14805_v14, %v14802_v13  ;;  %v14819_v20 = vld [vmem:[%s14782_s26 + $0x48] sm:$0xff]  ;;  %v14822_v21 = vld [vmem:[%s14782_s26 + $0x50] sm:$0xff]  ;;  %v14825_v22 = vld [vmem:[%s14782_s26 + $0x58] sm:$0xff]  ;;  %v1127_v2 = vshrl.u32 %v14794_v10, 16 }
  0x2f   : > { %v639_v23 = vshll.u32 %v14796_v11, 16  ;;  %v643_v24 = vshrl.u32 %v14796_v11, 16  ;;  %v647_v25 = vshll.u32 %v14799_v12, 16  ;;  %v651_v26 = vshrl.u32 %v14799_v12, 16  ;;  %v14832_v27 = vld [vmem:[%s14782_s26 + $0x60] sm:$0xff]  ;;  %v14835_v28 = vld [vmem:[%s14782_s26 + $0x68] sm:$0xff] }
  0x30   : > { %v636_v29 = vrot.slane %v634_v18, 1  ;;  %v655_v30 = vshll.u32 %v14816_v19, 16  ;;  %v14840_v31 = vpack.c.bf16 %v14819_v20, %v14808_v15  ;;  %v659_v32 = vshrl.u32 %v14816_v19, 16  ;;  %v14857_v42 = vld [vmem:[%s14782_s26 + $0x70] sm:$0xff]  ;;  %v14860_v43 = vld [vmem:[%s14782_s26 + $0x78] sm:$0xff]  ;;  %v14863_v44 = vld [vmem:[%s14782_s26 + $0x80] sm:$0xff] }
  0x31   : > { %v641_v33 = vrot.slane %v639_v23, 1  ;;  %v649_v34 = vrot.slane %v647_v25, 1  ;;  %v14845_v35 = vpack.c.bf16 %v14825_v22, %v14822_v21  ;;  %v14849_v36 = vpack.c.bf16 %v14835_v28, %v14832_v27  ;;  %v14868_v49 = vld [vmem:[%s14782_s26 + $0x88] sm:$0xff]  ;;  %v14871_v50 = vld [vmem:[%s14782_s26 + $0x90] sm:$0xff]  ;;  %v14874_v51 = vld [vmem:[%s14782_s26 + $0x98] sm:$0xff] }
  0x32   : > { %v637_v38 = vor.u32 %v636_v29, %v632_v17  ;;  %v657_v40 = vrot.slane %v655_v30, 1  ;;  %v663_v41 = vshll.u32 %v14840_v31, 16  ;;  %v667_v47 = vshrl.u32 %v14840_v31, 16  ;;  %v14879_v55 = vld [vmem:[%s14782_s26 + $0xa0] sm:$0xff]  ;;  %v14882_v56 = vld [vmem:[%s14782_s26 + $0xa8] sm:$0xff]  ;;  %v14895_v62 = vld [vmem:[%s14782_s26 + $0xb0] sm:$0xff] }
  0x33   : > { %v645_v45 = vor.u32 %v643_v24, %v641_v33  ;;  %v653_v46 = vor.u32 %v651_v26, %v649_v34  ;;  %v671_v48 = vshll.u32 %v14845_v35, 16  ;;  %v679_v54 = vshll.u32 %v14849_v36, 16  ;;  %v14898_v63 = vld [vmem:[%s14782_s26 + $0xb8] sm:$0xff]  ;;  %v14910_v8 = vld [vmem:[%s14782_s26 + $0xc0] sm:$0xff]  ;;  %v14913_v17 = vld [vmem:[%s14782_s26 + $0xc8] sm:$0xff] }
  0x34   : > { %v642_v52 = vsel %vm630_vm1, %v637_v38, %v641_v33  ;;  %v661_v53 = vor.u32 %v659_v32, %v657_v40  ;;  %v665_v60 = vrot.slane %v663_v41, 1  ;;  %v14892_v61 = vpack.c.bf16 %v14860_v43, %v14857_v42  ;;  %v14926_v26 = vld [vmem:[%s14782_s26 + $0xd0] sm:$0xff]  ;;  %v14929_v29 = vld [vmem:[%s14782_s26 + $0xd8] sm:$0xff] }
  0x35   : > { %12190 = vmatprep.mubr.msk.bf16.mxu0 %vm742_vm2, %v642_v52  ;;  %v650_v58 = vsel %vm630_vm1, %v645_v45, %v649_v34  ;;  %v658_v59 = vsel %vm630_vm1, %v653_v46, %v657_v40  ;;  %v673_v0 = vrot.slane %v671_v48, 1  ;;  %v675_v1 = vshrl.u32 %v14845_v35, 16 }
  0x36   : > { %12191 = vmatmul.mubr.msk.bf16.vlgmr.msra.gmra.mrb[0].mxu0 %vm742_vm2, %v650_v58  ;;  %v669_v3 = vor.u32 %v667_v47, %v665_v60  ;;  %v681_v4 = vrot.slane %v679_v54, 1  ;;  %v687_v5 = vshll.u32 %v14892_v61, 16  ;;  %v14907_v6 = vpack.c.bf16 %v14868_v49, %v14863_v44 }
  0x37   : > { %12219 = vmatpush3.bf16.msra.mxu0 %v963_v39  ;;  %12194 = vmatprep.mubr.msk.bf16.mxu0 %vm742_vm2, %v658_v59  ;;  %v683_v18 = vshrl.u32 %v14849_v36, 16  ;;  %v691_v23 = vshrl.u32 %v14892_v61, 16  ;;  %v14919_v24 = vpack.c.bf16 %v14874_v51, %v14871_v50  ;;  %v14923_v25 = vpack.c.bf16 %v14882_v56, %v14879_v55 }
  0x38   : > { %13910 = vmatprep.subr.msk.bf16.mxu0 %vm785_vm0, %v10606_v37  ;;  %v666_v30 = vsel %vm630_vm1, %v661_v53, %v665_v60  ;;  %v689_v32 = vrot.slane %v687_v5, 1  ;;  %v695_v33 = vshll.u32 %v14907_v6, 16  ;;  %v699_v34 = vshrl.u32 %v14907_v6, 16 }
  0x39   : > { %18138 = vst [vmem:[#allocation10_spill] sm:$0xff] %v14919_v24  ;;  %18139 = vst [vmem:[#allocation11_spill] sm:$0xff] %v14923_v25  ;;  %v703_v38 = vshll.u32 %v14919_v24, 16  ;;  %v707_v39 = vshrl.u32 %v14919_v24, 16  ;;  %v711_v40 = vshll.u32 %v14923_v25, 16  ;;  %v14940_v41 = vpack.c.bf16 %v14898_v63, %v14895_v62 }
  0x3a   : > { %v674_v45 = vsel %vm630_vm1, %v669_v3, %v673_v0  ;;  %v677_v37 = vor.u32 %v675_v1, %v673_v0  ;;  %v697_v46 = vrot.slane %v695_v33, 1  ;;  %v715_v47 = vshrl.u32 %v14923_v25, 16 }
  0x3b   : > { %v705_v48 = vrot.slane %v703_v38, 1  ;;  %v713_v52 = vrot.slane %v711_v40, 1  ;;  %v719_v53 = vshll.u32 %v14940_v41, 16  ;;  %v14947_v54 = vpack.c.bf16 %v14913_v17, %v14910_v8 }
  0x3c   : > { %v685_v58 = vor.u32 %v683_v18, %v681_v4  ;;  %v14952_v60 = vpack.c.bf16 %v14929_v29, %v14926_v26  ;;  %v693_v0 = vor.u32 %v691_v23, %v689_v32  ;;  %v701_v1 = vor.u32 %v699_v34, %v697_v46 }
  0x3d   : > { %v14955_v3 = vrot.slane %v719_v53, 1  ;;  %v727_v5 = vshll.u32 %v14947_v54, 16  ;;  %v709_v33 = vor.u32 %v707_v39, %v705_v48  ;;  %v682_v59 = vsel %vm630_vm1, %v677_v37, %v681_v4 }
  0x3e   : > { %12195 = vmatmul.mubr.msk.bf16.gmra.mrb[4].mxu0 %vm742_vm2, %v666_v30  ;;  %v735_v38 = vshll.u32 %v14952_v60, 16  ;;  %v717_v25 = vor.u32 %v715_v47, %v713_v52  ;;  %v690_v23 = vsel %vm630_vm1, %v685_v58, %v689_v32  ;;  %v1129_v34 = vrot.slane %v1127_v2, 3 }
  0x3f   : > { %12198 = vmatprep.mubr.msk.bf16.mxu0 %vm742_vm2, %v674_v45  ;;  %v14963_v24 = vrot.slane %v727_v5, 1  ;;  %v1130_v53 = vshll.u32 %v14794_v10, 16  ;;  %v698_v39 = vsel %vm630_vm1, %v693_v0, %v697_v46  ;;  %v706_v45 = vsel %vm630_vm1, %v701_v1, %v705_v48 }
  0x40   : > { %v14966_v30 = vrot.slane %v735_v38, 1  ;;  %v1135_v18 = vshrl.u32 %v14810_v16, 16  ;;  %v1138_v40 = vshll.u32 %v14810_v16, 16  ;;  %v14974_v4 = vsel %vm630_vm1, %v709_v33, %v713_v52 }
  0x41   : > { %v1132_v37 = vrot.slane %v1130_v53, 4  ;;  %v1111_v32 = vpack.c.bf16 %v14802_v13, %v14792_v9  ;;  %v1112_v2 = vpack.c.bf16 %v14808_v15, %v14805_v14  ;;  %v14982_v10 = vsel %vm630_vm1, %v717_v25, %v14955_v3 }
  0x42   : > { %v1137_v46 = vrot.slane %v1135_v18, 3  ;;  %v1140_v47 = vrot.slane %v1138_v40, 4  ;;  %v1113_v48 = vpack.c.bf16 %v14822_v21, %v14819_v20  ;;  %v1114_v33 = vpack.c.bf16 %v14832_v27, %v14825_v22 }
  0x43   : > { %v1133_v16 = vor.u32 %v1132_v37, %v1129_v34  ;;  %v1144_v58 = vshrl.u32 %v1111_v32, 16  ;;  %v1147_v52 = vshll.u32 %v1111_v32, 16  ;;  %v1153_v0 = vshrl.u32 %v1112_v2, 16 }
  0x44   : > { %v1141_v1 = vor.u32 %v1140_v47, %v1137_v46  ;;  %v1156_v9 = vshll.u32 %v1112_v2, 16  ;;  %v1162_v13 = vshrl.u32 %v1113_v48, 16  ;;  %v1165_v5 = vshll.u32 %v1113_v48, 16 }
  0x45   : > { %v1146_v14 = vrot.slane %v1144_v58, 3  ;;  %v1149_v15 = vrot.slane %v1147_v52, 4  ;;  %v1155_v25 = vrot.slane %v1153_v0, 3  ;;  %v1174_v34 = vshll.u32 %v1114_v33, 16 }
  0x46   : > { %12199 = vmatmul.mubr.msk.bf16.gmra.mrb[8].mxu0 %vm742_vm2, %v682_v59  ;;  %v14991_v20 = vsel %vm1125_vm3, %v1133_v16, %v1141_v1  ;;  %v1158_v21 = vrot.slane %v1156_v9, 4  ;;  %v1164_v18 = vrot.slane %v1162_v13, 3  ;;  %v1167_v38 = vrot.slane %v1165_v5, 4 }
  0x47   : > { %12202 = vmatprep.mubr.msk.bf16.mxu0 %vm742_vm2, %v690_v23  ;;  %v1150_v40 = vor.u32 %v1149_v15, %v1146_v14  ;;  %v1171_v59 = vshrl.u32 %v1114_v33, 16  ;;  %v1115_v53 = vpack.c.bf16 %v14857_v42, %v14835_v28  ;;  %v1116_v32 = vpack.c.bf16 %v14863_v44, %v14860_v43 }
  0x48   : > { %v1159_v37 = vor.u32 %v1158_v21, %v1155_v25  ;;  %v1168_v23 = vor.u32 %v1167_v38, %v1164_v18  ;;  %v1117_v22 = vpack.c.bf16 %v14871_v50, %v14868_v49  ;;  %v1176_v46 = vrot.slane %v1174_v34, 4  ;;  %v611_v21 = vld [vmem:[%s14782_s26 + $0xe0] sm:$0xff] }
  0x49   : > { %v15000_v27 = vsel %vm1125_vm3, %v1141_v1, %v1150_v40  ;;  %v1173_v2 = vrot.slane %v1171_v59, 3  ;;  %v1180_v47 = vshrl.u32 %v1115_v53, 16  ;;  %v1183_v28 = vshll.u32 %v1115_v53, 16 }
  0x4a   : > { %v15003_v48 = vsel %vm1125_vm3, %v1150_v40, %v1159_v37  ;;  %v15006_v16 = vsel %vm1125_vm3, %v1159_v37, %v1168_v23  ;;  %v1189_v42 = vshrl.u32 %v1116_v32, 16  ;;  %v1192_v43 = vshll.u32 %v1116_v32, 16 }
  0x4b   : > { %v1177_v58 = vor.u32 %v1176_v46, %v1173_v2  ;;  %v1182_v52 = vrot.slane %v1180_v47, 3  ;;  %v1198_v44 = vshrl.u32 %v1117_v22, 16  ;;  %v1185_v49 = vrot.slane %v1183_v28, 4 }
  0x4c   : > { %v1191_v50 = vrot.slane %v1189_v42, 3  ;;  %v1201_v0 = vshll.u32 %v1117_v22, 16  ;;  %v1118_v1 = vpack.c.bf16 %v14879_v55, %v14874_v51  ;;  %v1194_v13 = vrot.slane %v1192_v43, 4 }
  0x4d   : > { %v15013_v9 = vsel %vm1125_vm3, %v1168_v23, %v1177_v58  ;;  %v1200_v5 = vrot.slane %v1198_v44, 3  ;;  %v1119_v14 = vpack.c.bf16 %v14895_v62, %v14882_v56  ;;  %v1186_v15 = vor.u32 %v1185_v49, %v1182_v52 }
  0x4e   : > { %12203 = vmatmul.mubr.msk.bf16.gmra.mrb[12].mxu0 %vm742_vm2, %v698_v39  ;;  %v1203_v25 = vrot.slane %v1201_v0, 4  ;;  %v1207_v33 = vshrl.u32 %v1118_v1, 16  ;;  %v1210_v39 = vshll.u32 %v1118_v1, 16  ;;  %v1195_v18 = vor.u32 %v1194_v13, %v1191_v50 }
  0x4f   : > { %12206 = vmatprep.mubr.msk.bf16.mxu0 %vm742_vm2, %v706_v45  ;;  %v1216_v38 = vshrl.u32 %v1119_v14, 16  ;;  %v1219_v40 = vshll.u32 %v1119_v14, 16  ;;  %v1120_v51 = vpack.c.bf16 %v14910_v8, %v14898_v63  ;;  %v15021_v55 = vsel %vm1125_vm3, %v1177_v58, %v1186_v15 }
  0x50   : > { %v1204_v45 = vor.u32 %v1203_v25, %v1200_v5  ;;  %v1209_v59 = vrot.slane %v1207_v33, 3  ;;  %v1212_v34 = vrot.slane %v1210_v39, 4  ;;  %v15024_v53 = vsel %vm1125_vm3, %v1186_v15, %v1195_v18 }
  0x51   : > { %v1218_v56 = vrot.slane %v1216_v38, 3  ;;  %v1221_v62 = vrot.slane %v1219_v40, 4  ;;  %v1225_v37 = vshrl.u32 %v1120_v51, 16  ;;  %v1228_v22 = vshll.u32 %v1120_v51, 16 }
  0x52   : > { %v1205_v23 = vsel %vm1125_vm3, %v1195_v18, %v1204_v45  ;;  %v1213_v32 = vor.u32 %v1212_v34, %v1209_v59  ;;  %v1121_v2 = vpack.c.bf16 %v14926_v26, %v14913_v17  ;;  %v1122_v46 = vpack.c.bf16 %v611_v21, %v14929_v29  ;;  %v15154_v34 = vld [vmem:[%s18146_s3] ss:$0 sm:$0xff]  ;;  %s18121_s3 = scalar_lea.vmem [#allocation2], %s16110_s22 }
  0x53   : > { %v1222_v63 = vor.u32 %v1221_v62, %v1218_v56  ;;  %v1227_v8 = vrot.slane %v1225_v37, 3  ;;  %v1230_v28 = vrot.slane %v1228_v22, 4  ;;  %v18140_v52 = vshrl.u32 %v14940_v41, 16 }
  0x54   : > { %v1214_v47 = vsel %vm1125_vm3, %v1204_v45, %v1213_v32  ;;  %v1234_v42 = vshrl.u32 %v1121_v2, 16  ;;  %v1237_v58 = vshll.u32 %v1121_v2, 16  ;;  %v1243_v44 = vshrl.u32 %v1122_v46, 16 }
  0x55   : > { %v725_v43 = vor.u32 %v18140_v52, %v14955_v3  ;;  %v1223_v17 = vsel %vm1125_vm3, %v1213_v32, %v1222_v63  ;;  %v1246_v49 = vshll.u32 %v1122_v46, 16  ;;  %v18141_v29 = vshrl.u32 %v14947_v54, 16 }
  0x56   : > { %12207 = vmatmul.mubr.msk.bf16.gmra.mrb[16].mxu0 %vm742_vm2, %v14974_v4  ;;  %v1231_v50 = vor.u32 %v1230_v28, %v1227_v8  ;;  %v1236_v0 = vrot.slane %v1234_v42, 3  ;;  %v1239_v1 = vrot.slane %v1237_v58, 4  ;;  %v1245_v13 = vrot.slane %v1243_v44, 3 }
  0x57   : > { %12210 = vmatprep.mubr.msk.bf16.mxu0 %vm742_vm2, %v14982_v10  ;;  %v733_v4 = vor.u32 %v18141_v29, %v14963_v24  ;;  %v1248_v5 = vrot.slane %v1246_v49, 4  ;;  %v730_v15 = vsel %vm630_vm1, %v725_v43, %v14963_v24  ;;  %v18142_v21 = vshrl.u32 %v14952_v60, 16  ;;  %v10621_v24 = vld [vmem:[%s18136_s2 + $0x6] sm:$0x3]  ;;  %s14527_s2 = sshll.u32 %s14625_s29, 4  ;;  %s14528_s2 = int_to_ptr.vmem [resolvable:$false] %s14527_s2 }
  0x58   : > { %v1232_v14 = vsel %vm1125_vm3, %v1222_v63, %v1231_v50  ;;  %v1240_v10 = vor.u32 %v1239_v1, %v1236_v0  ;;  %v1476_v38 = vsel %vm785_vm0, %v10621_v24, 0  ;;  %s14529_s18 = scalar_lea.vmem %s14528_s2, 32 }
  0x59   : > { %v1249_v3 = vor.u32 %v1248_v5, %v1245_v13  ;;  %v738_v25 = vsel %vm630_vm1, %v733_v4, %v14966_v30  ;;  %v741_v18 = vor.u32 %v18142_v21, %v14966_v30  ;;  %v625_v30 = vpack.c.bf16 %v14926_v26, %v14926_v26  ;;  %v13970_v26 = vld [vmem:[%s18145_s4 + $0x4] ss:$8 sps:$4 sm:$0xff]  }
  0x5a   : > { %v1241_v33 = vsel %vm1125_vm3, %v1231_v50, %v1240_v10  ;;  %10647 = vmatprep.mubr.msk.bf16.mxu1 %vm1775_vm4, %v13970_v26 }
  0x5b   : > { %v1250_v39 = vsel %vm1125_vm3, %v1240_v10, %v1249_v3 }
  0x5e   : > { %12211 = vmatmul.mubr.msk.bf16.gmra.mrb[20].mxu0 %vm742_vm2, %v730_v15 }
  0x5f   : > { %12214 = vmatprep.mubr.msk.bf16.mxu0 %vm742_vm2, %v738_v25 }
  0x66   : > { %12215 = vmatmul.mubr.msk.bf16.gmra.mrb[24].mxu0 %vm742_vm2, %v741_v18 }
  0x67   : > { %12220 = vmatprep.mubr.msk.bf16.mxu0 %vm742_vm2, %v14788_v7  ;;  %v18143_v7 = vld [vmem:[#allocation10_spill] sm:$0xff] }
  0x6e   : > { %12221 = vmatmul.mubr.msk.bf16.vlgmr.msra.gmra.mrb[0].mxu0 %vm742_vm2, %v14796_v11 }
  0x6f   : > { %12249 = vmatpush3.bf16.msra.mxu0 %v14885_v57  ;;  %12224 = vmatprep.mubr.msk.bf16.mxu0 %vm742_vm2, %v14799_v12  ;;  %v18144_v57 = vld [vmem:[#allocation11_spill] sm:$0xff] }
  0x70   : > { %13911 = vmatprep.subr.msk.bf16.mxu0 %vm785_vm0, %v10621_v24 }
  0x76   : > { %12225 = vmatmul.mubr.msk.bf16.gmra.mrb[4].mxu0 %vm742_vm2, %v14816_v19 }
  0x77   : > { %12228 = vmatprep.mubr.msk.bf16.mxu0 %vm742_vm2, %v14840_v31 }
  0x7e   : > { %12229 = vmatmul.mubr.msk.bf16.gmra.mrb[8].mxu0 %vm742_vm2, %v14845_v35 }
  0x7f   : > { %12232 = vmatprep.mubr.msk.bf16.mxu0 %vm742_vm2, %v14849_v36 }
  0x86   : > { %12233 = vmatmul.mubr.msk.bf16.gmra.mrb[12].mxu0 %vm742_vm2, %v14892_v61 }
  0x87   : > { %12236 = vmatprep.mubr.msk.bf16.mxu0 %vm742_vm2, %v14907_v6 }
  0x8e   : > { %12237 = vmatmul.mubr.msk.bf16.gmra.mrb[16].mxu0 %vm742_vm2, %v18143_v7 }
  0x8f   : > { %12240 = vmatprep.mubr.msk.bf16.mxu0 %vm742_vm2, %v18144_v57 }
  0x96   : > { %12241 = vmatmul.mubr.msk.bf16.gmra.mrb[20].mxu0 %vm742_vm2, %v14940_v41 }
  0x97   : > { %12244 = vmatprep.mubr.msk.bf16.mxu0 %vm742_vm2, %v14947_v54 }
  0x9e   : > { %12245 = vmatmul.mubr.msk.bf16.gmra.mrb[28].mxu0 %vm742_vm2, %v625_v30 }
  0x9f   : > { %12250 = vmatprep.mubr.msk.bf16.mxu0 %vm742_vm2, %v14991_v20 }
  0xa6   : > { %12251 = vmatmul.mubr.msk.bf16.vlgmr.msra.gmra.mrb[0].mxu0 %vm742_vm2, %v15000_v27 }
  0xa7   : > { %12279 = vmatpush3.bf16.msra.mxu0 %v1476_v38  ;;  %12254 = vmatprep.mubr.msk.bf16.mxu0 %vm742_vm2, %v15003_v48 }
  0xae   : > { %12255 = vmatmul.mubr.msk.bf16.gmra.mrb[4].mxu0 %vm742_vm2, %v15006_v16 }
  0xaf   : > { %12258 = vmatprep.mubr.msk.bf16.mxu0 %vm742_vm2, %v15013_v9 }
  0xb6   : > { %12259 = vmatmul.mubr.msk.bf16.gmra.mrb[8].mxu0 %vm742_vm2, %v15021_v55 }
  0xb7   : > { %12262 = vmatprep.mubr.msk.bf16.mxu0 %vm742_vm2, %v15024_v53 }
  0xbe   : > { %12263 = vmatmul.mubr.msk.bf16.gmra.mrb[12].mxu0 %vm742_vm2, %v1205_v23 }
  0xbf   : > { %12266 = vmatprep.mubr.msk.bf16.mxu0 %vm742_vm2, %v1214_v47 }
  0xc6   : > { %12267 = vmatmul.mubr.msk.bf16.gmra.mrb[16].mxu0 %vm742_vm2, %v1223_v17 }
  0xc7   : > { %12270 = vmatprep.mubr.msk.bf16.mxu0 %vm742_vm2, %v1232_v14 }
  0xce   : > { %12271 = vmatmul.mubr.msk.bf16.gmra.mrb[20].mxu0 %vm742_vm2, %v1241_v33 }
  0xcf   : > { %12274 = vmatprep.mubr.msk.bf16.mxu0 %vm742_vm2, %v1250_v39 }
  0xd6   : > { %12275 = vmatmul.mubr.msk.bf16.gmra.mrb[32].mxu0 %vm742_vm2, %v1249_v3 }
  0xd7   : > { %12280 = vmatprep.mubr.msk.bf16.mxu0 %vm742_vm2, %v14796_v11  ;;  %v14522_v11 = vld [vmem:[%s14782_s26 + $0xe0] sm:$0xff]  ;;  %s18120_s26 = scalar_lea.vmem [#allocation4], %s16110_s22 }
  0xde   : > { %12281 = vmatmul.mubr.msk.bf16.vlgmr.msra.gmra.mrb[0].mxu0 %vm742_vm2, %v14799_v12  ;;  %v1467_v12 = vpack.c.bf16 %v14522_v11, %v14522_v11 }
  0xdf   : > { %12284 = vmatprep.mubr.msk.bf16.mxu0 %vm742_vm2, %v14816_v19 }
  0xe6   : > { %12285 = vmatmul.mubr.msk.bf16.gmra.mrb[4].mxu0 %vm742_vm2, %v14840_v31 }
  0xe7   : > { %12288 = vmatprep.mubr.msk.bf16.mxu0 %vm742_vm2, %v14845_v35  ;;  %v18114_v35 = vmov 0  }
  0xe8   : > { %1795 = vmatprep.subr.bf16.mxu1 %v18114_v35  ;;  %2212 = vmatprep.subr.bf16.mxu0 %v18114_v35 }
  0xee   : > { %12289 = vmatmul.mubr.msk.bf16.gmra.mrb[8].mxu0 %vm742_vm2, %v14849_v36 }
  0xef   : > { %12292 = vmatprep.mubr.msk.bf16.mxu0 %vm742_vm2, %v14892_v61 }
  0xf6   : > { %12293 = vmatmul.mubr.msk.bf16.gmra.mrb[12].mxu0 %vm742_vm2, %v14907_v6 }
  0xf7   : > { %12296 = vmatprep.mubr.msk.bf16.mxu0 %vm742_vm2, %v18143_v7 }
  0xfe   : > { %12297 = vmatmul.mubr.msk.bf16.gmra.mrb[16].mxu0 %vm742_vm2, %v18144_v57 }
  0xff   : > { %12300 = vmatprep.mubr.msk.bf16.mxu0 %vm742_vm2, %v14940_v41 }
 0x106   : > { %12301 = vmatmul.mubr.msk.bf16.gmra.mrb[20].mxu0 %vm742_vm2, %v14947_v54 }
 0x107   : > { %12304 = vmatprep.mubr.msk.bf16.mxu0 %vm742_vm2, %v14952_v60 }
 0x10e   : > { %12305 = vmatmul.mubr.msk.bf16.gmra.mrb[36].mxu0 %vm742_vm2, %v1467_v12 }
 0x139   : > { %v12216_v19 = vpop.f32.mrb[24].mxu0 }
 0x13a   : > { %v919_v31 = vpop.f32.mrb[25].mxu0 }
 0x13b   : > { %v12217_v36 = vpop.f32.mrb[26].mxu0 }
 0x13c   : > { %v922_v61 = vpop.f32.mrb[27].mxu0 }
 0x171   : > { %v12246_v6 = vpop.f32.mrb[28].mxu0 }
 0x172   : > { %v1104_v41 = vadd.f32 %v12246_v6, %v12216_v19  ;;  %v1095_v54 = vpop.f32.mrb[29].mxu0 }
 0x173   : > { %v1096_v60 = vadd.f32 %v1095_v54, %v919_v31  ;;  %v12247_v20 = vpop.f32.mrb[30].mxu0 }
 0x174   : > { %v1098_v27 = vpop.f32.mrb[31].mxu0 }
 0x175   : > { %v1099_v48 = vadd.f32 %v1098_v27, %v922_v61 }
 0x1a9   : > { %v12276_v16 = vpop.f32.mrb[32].mxu0 }
 0x1aa   : > { %v15145_v9 = vadd.f32 %v12276_v16, %v1104_v41  ;;  %v1426_v40 = vpop.f32.mrb[33].mxu0 }
 0x1ab   : > { %v15147_v51 = vadd.f32 %v1426_v40, %v1096_v60  ;;  %v12277_v55 = vpop.f32.mrb[34].mxu0 }
 0x1ac   : > { %v1429_v45 = vpop.f32.mrb[35].mxu0 }
 0x1ad   : > { %v15149_v59 = vadd.f32 %v1429_v45, %v1099_v48 }
 0x1b1   : > { %v12282_v53 = vpop.f32.mrb[0].mxu0 }
 0x1b2   : > { %v1658_v56 = vadd.f32 %v12282_v53, %v15154_v34  ;;  %v1512_v62 = vpop.f32.mrb[1].mxu0 }
 0x1b3   : > { %v1656_v37 = vadd.f32 %v15154_v34, %v1512_v62  ;;  %v12283_v23 = vpop.f32.mrb[2].mxu0 }
 0x1b4   : > { %v1659_v32 = vadd.f32 %v12283_v23, %v15154_v34  ;;  %v1515_v22 = vpop.f32.mrb[3].mxu0  ;;  %v1685_v63 = vmax.f32 %v1658_v56, 0.0 }
 0x1b5   : > { %v1657_v2 = vadd.f32 %v15154_v34, %v1515_v22  ;;  %v1683_v46 = vmax.f32 %v1656_v37, 0.0 }
 0x1b6   : > { %v1686_v8 = vmax.f32 %v1659_v32, 0.0 }
 0x1b7   : > { %v1684_v47 = vmax.f32 %v1657_v2, 0.0 }
 0x1b8   : > { %v15160_v28 = vpack.c.bf16 %v1686_v8, %v1685_v63 }
 0x1b9   : > { %v15162_v42 = vpack.c.bf16 %v1684_v47, %v1683_v46  ;;  %v12286_v58 = vpop.f32.mrb[4].mxu0 }
 0x1ba   : > { %v1662_v52 = vadd.f32 %v12286_v58, %v15154_v34  ;;  %v1528_v43 = vpop.f32.mrb[5].mxu0 }
 0x1bb   : > { %v1660_v17 = vadd.f32 %v15154_v34, %v1528_v43  ;;  %v12287_v44 = vpop.f32.mrb[6].mxu0  ;;  %1796 = vmatpush1.bf16.msra.mxu1 %v15162_v42  ;;  %2213 = vmatpush1.bf16.msra.mxu0 %v15162_v42 }
 0x1bc   : > { %v1663_v49 = vadd.f32 %v12287_v44, %v15154_v34  ;;  %v1531_v29 = vpop.f32.mrb[7].mxu0  ;;  %1797 = vmatprep.subr.bf16.mxu1 %v18114_v35  ;;  %2214 = vmatprep.subr.bf16.mxu0 %v18114_v35  ;;  %v1689_v50 = vmax.f32 %v1662_v52, 0.0 }
 0x1bd   : > { %v1661_v4 = vadd.f32 %v15154_v34, %v1531_v29  ;;  %v1687_v1 = vmax.f32 %v1660_v17, 0.0 }
 0x1be   : > { %v1690_v0 = vmax.f32 %v1663_v49, 0.0 }
 0x1bf   : > { %v1688_v13 = vmax.f32 %v1661_v4, 0.0  ;;  %1798 = vmatpush1.bf16.msra.mxu1 %v15160_v28  ;;  %2215 = vmatpush1.bf16.msra.mxu0 %v15160_v28 }
 0x1c0   : > { %v15174_v5 = vpack.c.bf16 %v1690_v0, %v1689_v50  ;;  %1799 = vmatprep.subr.bf16.mxu1 %v18114_v35  ;;  %2216 = vmatprep.subr.bf16.mxu0 %v18114_v35 }
 0x1c1   : > { %v15178_v14 = vpack.c.bf16 %v1688_v13, %v1687_v1  ;;  %v12290_v10 = vpop.f32.mrb[8].mxu0 }
 0x1c2   : > { %v1666_v15 = vadd.f32 %v12290_v10, %v15154_v34  ;;  %v1544_v3 = vpop.f32.mrb[9].mxu0 }
 0x1c3   : > { %v1664_v25 = vadd.f32 %v15154_v34, %v1544_v3  ;;  %v12291_v33 = vpop.f32.mrb[10].mxu0  ;;  %1800 = vmatpush1.bf16.msra.mxu1 %v15178_v14  ;;  %2217 = vmatpush1.bf16.msra.mxu0 %v15178_v14 }
 0x1c4   : > { %v1667_v39 = vadd.f32 %v12291_v33, %v15154_v34  ;;  %v1547_v21 = vpop.f32.mrb[11].mxu0  ;;  %1801 = vmatprep.subr.bf16.mxu1 %v18114_v35  ;;  %2218 = vmatprep.subr.bf16.mxu0 %v18114_v35  ;;  %v1693_v24 = vmax.f32 %v1666_v15, 0.0 }
 0x1c5   : > { %v1665_v18 = vadd.f32 %v15154_v34, %v1547_v21  ;;  %v1691_v57 = vmax.f32 %v1664_v25, 0.0 }
 0x1c6   : > { %v1694_v7 = vmax.f32 %v1667_v39, 0.0 }
 0x1c7   : > { %v1692_v30 = vmax.f32 %v1665_v18, 0.0  ;;  %1802 = vmatpush1.bf16.msra.mxu1 %v15174_v5  ;;  %2219 = vmatpush1.bf16.msra.mxu0 %v15174_v5 }
 0x1c8   : > { %v15190_v38 = vpack.c.bf16 %v1694_v7, %v1693_v24  ;;  %1803 = vmatprep.subr.bf16.mxu1 %v18114_v35  ;;  %2220 = vmatprep.subr.bf16.mxu0 %v18114_v35 }
 0x1c9   : > { %v15194_v11 = vpack.c.bf16 %v1692_v30, %v1691_v57  ;;  %v12294_v12 = vpop.f32.mrb[12].mxu0 }
 0x1ca   : > { %v1670_v19 = vadd.f32 %v12294_v12, %v15154_v34  ;;  %v1560_v31 = vpop.f32.mrb[13].mxu0 }
 0x1cb   : > { %v1668_v36 = vadd.f32 %v15154_v34, %v1560_v31  ;;  %v12295_v61 = vpop.f32.mrb[14].mxu0  ;;  %1804 = vmatpush1.bf16.msra.mxu1 %v15194_v11  ;;  %2221 = vmatpush1.bf16.msra.mxu0 %v15194_v11  ;;  %v13971_v31 = vld [vmem:[%s18145_s4 + $0x14] ss:$8 sps:$4 sm:$0xff]  }
 0x1cc   : > { %v1671_v6 = vadd.f32 %v12295_v61, %v15154_v34  ;;  %v1563_v26 = vpop.f32.mrb[15].mxu0  ;;  %1805 = vmatprep.subr.bf16.mxu1 %v18114_v35  ;;  %2222 = vmatprep.subr.bf16.mxu0 %v18114_v35  ;;  %v1697_v54 = vmax.f32 %v1670_v19, 0.0  ;;  %v13974_v61 = vld [vmem:[%s18145_s4 + $0x24] ss:$8 sps:$4 sm:$0xff]  }
 0x1cd   : > { %v1669_v41 = vadd.f32 %v15154_v34, %v1563_v26  ;;  %v1695_v20 = vmax.f32 %v1668_v36, 0.0  ;;  %v13973_v36 = vld [vmem:[%s18145_s4 + $0x10] ss:$8 sps:$4 sm:$0xff]   ;;  %v13977_v26 = vld [vmem:[%s18145_s4 + $0x34] ss:$8 sps:$4 sm:$0xff]  }
 0x1ce   : > { %v1698_v60 = vmax.f32 %v1671_v6, 0.0  ;;  %v13976_v6 = vld [vmem:[%s18145_s4 + $0x20] ss:$8 sps:$4 sm:$0xff]  }
 0x1cf   : > { %v1696_v27 = vmax.f32 %v1669_v41, 0.0  ;;  %1806 = vmatpush1.bf16.msra.mxu1 %v15190_v38  ;;  %2223 = vmatpush1.bf16.msra.mxu0 %v15190_v38  ;;  %v1732_v41 = vld [vmem:[%s18145_s4 + $0x40] sm:$0xff] }
 0x1d0   : > { %v15206_v48 = vpack.c.bf16 %v1698_v60, %v1697_v54  ;;  %1807 = vmatprep.subr.bf16.mxu1 %v18114_v35  ;;  %2224 = vmatprep.subr.bf16.mxu0 %v18114_v35  ;;  %v13979_v54 = vld [vmem:[%s18145_s4 + $0x30] ss:$8 sps:$4 sm:$0xff]   ;;  %v10646_v60 = vcombine.high %v1732_v41, %v1732_v41 }
 0x1d1   : > { %v15210_v16 = vpack.c.bf16 %v1696_v27, %v1695_v20  ;;  %v12298_v40 = vpop.f32.mrb[16].mxu0  ;;  %v10645_v20 = vcombine.low %v1732_v41, %v1732_v41  ;;  %v13984_v27 = vld [vmem:[%s18145_s4 + $0x4c] ss:$8 sps:$4 sm:$0xff]  }
 0x1d2   : > { %v1674_v55 = vadd.f32 %v12298_v40, %v15154_v34  ;;  %v1576_v45 = vpop.f32.mrb[17].mxu0  ;;  %v14012_v40 = vld [vmem:[%s18145_s4 + $0xdc] ss:$8 sps:$4 sm:$0xff]  }
 0x1d3   : > { %v1672_v53 = vadd.f32 %v15154_v34, %v1576_v45  ;;  %v12299_v56 = vpop.f32.mrb[18].mxu0  ;;  %1808 = vmatpush1.bf16.msra.mxu1 %v15210_v16  ;;  %2225 = vmatpush1.bf16.msra.mxu0 %v15210_v16  ;;  %v13982_v45 = vld [vmem:[%s18145_s4 + $0x48] ss:$8 sps:$4 sm:$0xff]  }
 0x1d4   : > { %v1675_v62 = vadd.f32 %v12299_v56, %v15154_v34  ;;  %v1579_v37 = vpop.f32.mrb[19].mxu0  ;;  %1809 = vmatprep.subr.bf16.mxu1 %v18114_v35  ;;  %2226 = vmatprep.subr.bf16.mxu0 %v18114_v35  ;;  %v1701_v32 = vmax.f32 %v1674_v55, 0.0  ;;  %v14010_v55 = vld [vmem:[%s18145_s4 + $0xd8] ss:$8 sps:$4 sm:$0xff]  }
 0x1d5   : > { %v1673_v23 = vadd.f32 %v15154_v34, %v1579_v37  ;;  %v1699_v2 = vmax.f32 %v1672_v53, 0.0  ;;  %10719 = vmatprep.mubr.msk.bf16.mxu0 %vm1775_vm4, %v14012_v40  ;;  %v13985_v53 = vld [vmem:[%s18145_s4 + $0x5c] ss:$8 sps:$4 sm:$0xff]   ;;  %v13987_v56 = vld [vmem:[%s18145_s4 + $0x58] ss:$8 sps:$4 sm:$0xff]  }
 0x1d6   : > { %v1702_v22 = vmax.f32 %v1675_v62, 0.0  ;;  %v13988_v62 = vld [vmem:[%s18145_s4 + $0x6c] ss:$8 sps:$4 sm:$0xff]   ;;  %v13990_v37 = vld [vmem:[%s18145_s4 + $0x68] ss:$8 sps:$4 sm:$0xff]  }
 0x1d7   : > { %v1700_v63 = vmax.f32 %v1673_v23, 0.0  ;;  %1810 = vmatpush1.bf16.msra.mxu1 %v15206_v48  ;;  %2227 = vmatpush1.bf16.msra.mxu0 %v15206_v48  ;;  %v13991_v23 = vld [vmem:[%s18145_s4 + $0x7c] ss:$8 sps:$4 sm:$0xff]  }
 0x1d8   : > { %v15222_v8 = vpack.c.bf16 %v1702_v22, %v1701_v32  ;;  %1811 = vmatprep.subr.bf16.mxu1 %v18114_v35  ;;  %2228 = vmatprep.subr.bf16.mxu0 %v18114_v35  ;;  %v10660_v32 = vld [vmem:[%s18145_s4 + $0x88] sm:$0xff]  ;;  %v13993_v22 = vld [vmem:[%s18145_s4 + $0x78] ss:$8 sps:$4 sm:$0xff]  }
 0x1d9   : > { %v15226_v46 = vpack.c.bf16 %v1700_v63, %v1699_v2  ;;  %v12302_v47 = vpop.f32.mrb[20].mxu0  ;;  %v10670_v2 = vcombine.high %v10660_v32, %v10660_v32  ;;  %v10669_v63 = vcombine.low %v10660_v32, %v10660_v32 }
 0x1da   : > { %v1678_v58 = vadd.f32 %v12302_v47, %v15154_v34  ;;  %v1592_v52 = vpop.f32.mrb[21].mxu0  ;;  %v13998_v47 = vld [vmem:[%s18145_s4 + $0x94] ss:$8 sps:$4 sm:$0xff]  }
 0x1db   : > { %v1676_v43 = vadd.f32 %v15154_v34, %v1592_v52  ;;  %v12303_v17 = vpop.f32.mrb[22].mxu0  ;;  %1812 = vmatpush1.bf16.msra.mxu1 %v15226_v46  ;;  %2229 = vmatpush1.bf16.msra.mxu0 %v15226_v46  ;;  %v13999_v52 = vld [vmem:[%s18145_s4 + $0xa4] ss:$8 sps:$4 sm:$0xff]  }
 0x1dc   : > { %v1679_v44 = vadd.f32 %v12303_v17, %v15154_v34  ;;  %v1595_v49 = vpop.f32.mrb[23].mxu0  ;;  %1813 = vmatprep.subr.bf16.mxu1 %v18114_v35  ;;  %2230 = vmatprep.subr.bf16.mxu0 %v18114_v35  ;;  %v1705_v4 = vmax.f32 %v1678_v58, 0.0  ;;  %v13996_v58 = vld [vmem:[%s18145_s4 + $0x90] ss:$8 sps:$4 sm:$0xff]   ;;  %v14002_v17 = vld [vmem:[%s18145_s4 + $0xb4] ss:$8 sps:$4 sm:$0xff]  }
 0x1dd   : > { %v1677_v29 = vadd.f32 %v15154_v34, %v1595_v49  ;;  %v1703_v0 = vmax.f32 %v1676_v43, 0.0  ;;  %v14001_v43 = vld [vmem:[%s18145_s4 + $0xa0] ss:$8 sps:$4 sm:$0xff]  }
 0x1de   : > { %v1706_v50 = vmax.f32 %v1679_v44, 0.0  ;;  %v14024_v49 = vld [vmem:[%s18147_s5 + $0x20] sm:$0xff]  }
 0x1df   : > { %v1704_v1 = vmax.f32 %v1677_v29, 0.0  ;;  %1814 = vmatpush1.bf16.msra.mxu1 %v15222_v8  ;;  %2231 = vmatpush1.bf16.msra.mxu0 %v15222_v8  ;;  %v15465_v29 = vld [vmem:[%s18147_s5] sm:$0xff]  }
 0x1e0   : > { %v15238_v13 = vpack.c.bf16 %v1706_v50, %v1705_v4  ;;  %1815 = vmatprep.subr.bf16.mxu1 %v18114_v35  ;;  %2232 = vmatprep.subr.bf16.mxu0 %v18114_v35  ;;  %v14016_v4 = vld [vmem:[%s18145_s4 + $0xfc] ss:$8 sps:$4 sm:$0xff]   ;;  %v14018_v50 = vld [vmem:[%s18145_s4 + $0xf8] ss:$8 sps:$4 sm:$0xff]  }
 0x1e1   : > { %v15242_v10 = vpack.c.bf16 %v1704_v1, %v1703_v0  ;;  %v12306_v15 = vpop.f32.mrb[36].mxu0  ;;  %v14019_v0 = vld [vmem:[%s18145_s4 + $0x10c] ss:$8 sps:$4 sm:$0xff]   ;;  %v10708_v1 = vld [vmem:[%s18145_s4 + $0x118] sm:$0xff] }
 0x1e2   : > { %v1648_v3 = vadd.f32 %v12306_v15, %v15145_v9  ;;  %v1608_v25 = vpop.f32.mrb[37].mxu0  ;;  %v10717_v15 = vcombine.low %v10708_v1, %v10708_v1 }
 0x1e3   : > { %v1646_v33 = vadd.f32 %v1608_v25, %v15147_v51  ;;  %v12307_v39 = vpop.f32.mrb[38].mxu0  ;;  %1816 = vmatpush1.bf16.msra.mxu1 %v15242_v10  ;;  %2233 = vmatpush1.bf16.msra.mxu0 %v15242_v10 }
 0x1e4   : > { %v1682_v21 = vadd.f32 %v15154_v34, %v1648_v3  ;;  %v1611_v18 = vpop.f32.mrb[39].mxu0  ;;  %1817 = vmatprep.subr.bf16.mxu1 %v18114_v35  ;;  %2234 = vmatprep.subr.bf16.mxu0 %v18114_v35 }
 0x1e5   : > { %v1680_v24 = vadd.f32 %v15154_v34, %v1646_v33  ;;  %v1647_v7 = vadd.f32 %v1611_v18, %v15149_v59 }
 0x1e6   : > { %v1709_v51 = vmax.f32 %v1682_v21, 0.0 }
 0x1e7   : > { %v1681_v9 = vadd.f32 %v15154_v34, %v1647_v7  ;;  %1818 = vmatpush1.bf16.msra.mxu1 %v15238_v13  ;;  %2235 = vmatpush1.bf16.msra.mxu0 %v15238_v13  ;;  %v1707_v57 = vmax.f32 %v1680_v24, 0.0  ;;  %v13968_v34 = vld [vmem:[%s18145_s4] ss:$8 sps:$4 sm:$0xff]  }
 0x1e8   : > { %1819 = vmatprep.subr.bf16.mxu1 %v18114_v35  ;;  %2236 = vmatprep.subr.bf16.mxu0 %v18114_v35  ;;  %v1723_v19 = vpack.c.bf16 %v1709_v51, %v1709_v51 }
 0x1e9   : > { %v1708_v30 = vmax.f32 %v1681_v9, 0.0 }
 0x1ea   : > { %v15264_v59 = vsel %vm1791_vm5, %v1723_v19, 0 }
 0x1eb   : > { %v15258_v12 = vpack.c.bf16 %v1708_v30, %v1707_v57 }
 0x1ed   : > { %1820 = vmatpush1.bf16.msra.mxu1 %v15258_v12  ;;  %2237 = vmatpush1.bf16.msra.mxu0 %v15258_v12 }
 0x1ee   : > { %1821 = vmatprep.subr.bf16.mxu1 %v18114_v35  ;;  %2238 = vmatprep.subr.bf16.mxu0 %v18114_v35 }
 0x1f1   : > { %1822 = vmatpush1.bf16.msra.mxu1 %v15264_v59  ;;  %2239 = vmatpush1.bf16.msra.mxu0 %v15264_v59 }
 0x1f2   : > { %1934 = vmatprep.subr.bf16.mxu1 %v18114_v35  ;;  %12308 = vmatprep.subr.bf16.mxu0 %v14024_v49 }
 0x1f4   : > { %1828 = vmatmul.mubr.bf16.vlgmr.msra.gmra.mrb[0].mxu1 %v13968_v34  ;;  %2245 = vmatmul.mubr.bf16.vlgmr.msra.gmra.mrb[40].mxu0 %v14010_v55 }
 0x1f5   : > { %1935 = vmatpush1.bf16.msra.mxu1 %v15162_v42  ;;  %10648 = vmatprep.mubr.msk.bf16.mxu1 %vm1775_vm4, %v13971_v31 }
 0x1f6   : > { %1936 = vmatprep.subr.bf16.mxu1 %v18114_v35  ;;  %12309 = vmatpush3.bf16.msra.mxu0 %v14024_v49 }
 0x1f9   : > { %1937 = vmatpush1.bf16.msra.mxu1 %v15160_v28 }
 0x1fa   : > { %1938 = vmatprep.subr.bf16.mxu1 %v18114_v35 }
 0x1fc   : > { %1836 = vmatmul.mubr.bf16.gmra.mrb[4].mxu1 %v13973_v36 }
 0x1fd   : > { %1939 = vmatpush1.bf16.msra.mxu1 %v15178_v14  ;;  %10649 = vmatprep.mubr.msk.bf16.mxu1 %vm1775_vm4, %v13974_v61 }
 0x1fe   : > { %1940 = vmatprep.subr.bf16.mxu1 %v18114_v35 }
 0x201   : > { %1941 = vmatpush1.bf16.msra.mxu1 %v15174_v5 }
 0x202   : > { %1942 = vmatprep.subr.bf16.mxu1 %v18114_v35 }
 0x204   : > { %1844 = vmatmul.mubr.bf16.gmra.mrb[8].mxu1 %v13976_v6 }
 0x205   : > { %1943 = vmatpush1.bf16.msra.mxu1 %v15194_v11  ;;  %10650 = vmatprep.mubr.msk.bf16.mxu1 %vm1775_vm4, %v13977_v26 }
 0x206   : > { %1944 = vmatprep.subr.bf16.mxu1 %v18114_v35 }
 0x209   : > { %1945 = vmatpush1.bf16.msra.mxu1 %v15190_v38 }
 0x20a   : > { %1946 = vmatprep.subr.bf16.mxu1 %v18114_v35 }
 0x20c   : > { %1852 = vmatmul.mubr.bf16.gmra.mrb[12].mxu1 %v13979_v54 }
 0x20d   : > { %1947 = vmatpush1.bf16.msra.mxu1 %v15210_v16  ;;  %10651 = vmatprep.mubr.msk.bf16.mxu1 %vm1775_vm4, %v10646_v60 }
 0x20e   : > { %1948 = vmatprep.subr.bf16.mxu1 %v18114_v35 }
 0x211   : > { %1949 = vmatpush1.bf16.msra.mxu1 %v15206_v48 }
 0x212   : > { %1950 = vmatprep.subr.bf16.mxu1 %v18114_v35 }
 0x214   : > { %1860 = vmatmul.mubr.bf16.gmra.mrb[16].mxu1 %v10645_v20 }
 0x215   : > { %1951 = vmatpush1.bf16.msra.mxu1 %v15226_v46  ;;  %10671 = vmatprep.mubr.msk.bf16.mxu1 %vm1775_vm4, %v13984_v27 }
 0x216   : > { %1952 = vmatprep.subr.bf16.mxu1 %v18114_v35 }
 0x219   : > { %1953 = vmatpush1.bf16.msra.mxu1 %v15222_v8 }
 0x21a   : > { %1954 = vmatprep.subr.bf16.mxu1 %v18114_v35 }
 0x21d   : > { %1955 = vmatpush1.bf16.msra.mxu1 %v15242_v10 }
 0x21e   : > { %1956 = vmatprep.subr.bf16.mxu1 %v18114_v35 }
 0x221   : > { %1957 = vmatpush1.bf16.msra.mxu1 %v15238_v13 }
 0x222   : > { %1958 = vmatprep.subr.bf16.mxu1 %v18114_v35 }
 0x225   : > { %1959 = vmatpush1.bf16.msra.mxu1 %v15258_v12 }
 0x226   : > { %1960 = vmatprep.subr.bf16.mxu1 %v18114_v35 }
 0x229   : > { %1961 = vmatpush1.bf16.msra.mxu1 %v15264_v59 }
 0x22a   : > { %2073 = vmatprep.subr.bf16.mxu1 %v18114_v35 }
 0x22c   : > { %1967 = vmatmul.mubr.bf16.vlgmr.msra.gmra.mrb[20].mxu1 %v13982_v45 }
 0x22d   : > { %2074 = vmatpush1.bf16.msra.mxu1 %v15162_v42  ;;  %10672 = vmatprep.mubr.msk.bf16.mxu1 %vm1775_vm4, %v13985_v53 }
 0x22e   : > { %2075 = vmatprep.subr.bf16.mxu1 %v18114_v35 }
 0x231   : > { %2076 = vmatpush1.bf16.msra.mxu1 %v15160_v28 }
 0x232   : > { %2077 = vmatprep.subr.bf16.mxu1 %v18114_v35 }
 0x234   : > { %1975 = vmatmul.mubr.bf16.gmra.mrb[24].mxu1 %v13987_v56 }
 0x235   : > { %2078 = vmatpush1.bf16.msra.mxu1 %v15178_v14  ;;  %10673 = vmatprep.mubr.msk.bf16.mxu1 %vm1775_vm4, %v13988_v62 }
 0x236   : > { %2079 = vmatprep.subr.bf16.mxu1 %v18114_v35 }
 0x239   : > { %2080 = vmatpush1.bf16.msra.mxu1 %v15174_v5 }
 0x23a   : > { %2081 = vmatprep.subr.bf16.mxu1 %v18114_v35 }
 0x23c   : > { %1983 = vmatmul.mubr.bf16.gmra.mrb[28].mxu1 %v13990_v37 }
 0x23d   : > { %2082 = vmatpush1.bf16.msra.mxu1 %v15194_v11  ;;  %10674 = vmatprep.mubr.msk.bf16.mxu1 %vm1775_vm4, %v13991_v23 }
 0x23e   : > { %2083 = vmatprep.subr.bf16.mxu1 %v18114_v35 }
 0x241   : > { %2084 = vmatpush1.bf16.msra.mxu1 %v15190_v38 }
 0x242   : > { %2085 = vmatprep.subr.bf16.mxu1 %v18114_v35 }
 0x244   : > { %1991 = vmatmul.mubr.bf16.gmra.mrb[32].mxu1 %v13993_v22 }
 0x245   : > { %2086 = vmatpush1.bf16.msra.mxu1 %v15210_v16  ;;  %10675 = vmatprep.mubr.msk.bf16.mxu1 %vm1775_vm4, %v10670_v2 }
 0x246   : > { %2087 = vmatprep.subr.bf16.mxu1 %v18114_v35 }
 0x249   : > { %2088 = vmatpush1.bf16.msra.mxu1 %v15206_v48 }
 0x24a   : > { %2089 = vmatprep.subr.bf16.mxu1 %v18114_v35 }
 0x24c   : > { %1999 = vmatmul.mubr.bf16.gmra.mrb[36].mxu1 %v10669_v63 }
 0x24d   : > { %2090 = vmatpush1.bf16.msra.mxu1 %v15226_v46  ;;  %10695 = vmatprep.mubr.msk.bf16.mxu1 %vm1775_vm4, %v13998_v47 }
 0x24e   : > { %2091 = vmatprep.subr.bf16.mxu1 %v18114_v35 }
 0x251   : > { %2092 = vmatpush1.bf16.msra.mxu1 %v15222_v8 }
 0x252   : > { %2093 = vmatprep.subr.bf16.mxu1 %v18114_v35 }
 0x255   : > { %2094 = vmatpush1.bf16.msra.mxu1 %v15242_v10 }
 0x256   : > { %2095 = vmatprep.subr.bf16.mxu1 %v18114_v35 }
 0x259   : > { %2096 = vmatpush1.bf16.msra.mxu1 %v15238_v13 }
 0x25a   : > { %2097 = vmatprep.subr.bf16.mxu1 %v18114_v35 }
 0x25d   : > { %2098 = vmatpush1.bf16.msra.mxu1 %v15258_v12 }
 0x25e   : > { %2099 = vmatprep.subr.bf16.mxu1 %v18114_v35 }
 0x261   : > { %2100 = vmatpush1.bf16.msra.mxu1 %v15264_v59 }
 0x262   : > { %13192 = vmatprep.subr.bf16.mxu1 %v18114_v35 }
 0x264   : > { %2106 = vmatmul.mubr.bf16.vlgmr.msra.gmra.mrb[40].mxu1 %v13996_v58 }
 0x265   : > { %13206 = vmatpush1.bf16.msra.mxu1 %v15162_v42  ;;  %10696 = vmatprep.mubr.msk.bf16.mxu1 %vm1775_vm4, %v13999_v52  ;;  %v14004_v42 = vld [vmem:[%s18145_s4 + $0xb0] ss:$8 sps:$4 sm:$0xff]  }
 0x266   : > { %13193 = vmatprep.subr.bf16.mxu1 %v18114_v35 }
 0x269   : > { %13207 = vmatpush1.bf16.msra.mxu1 %v15160_v28  ;;  %v14005_v28 = vld [vmem:[%s18145_s4 + $0xc4] ss:$8 sps:$4 sm:$0xff]  }
 0x26a   : > { %13194 = vmatprep.subr.bf16.mxu1 %v18114_v35 }
 0x26c   : > { %2114 = vmatmul.mubr.bf16.gmra.mrb[44].mxu1 %v14001_v43 }
 0x26d   : > { %13208 = vmatpush1.bf16.msra.mxu1 %v15178_v14  ;;  %10697 = vmatprep.mubr.msk.bf16.mxu1 %vm1775_vm4, %v14002_v17  ;;  %v10684_v14 = vld [vmem:[%s18145_s4 + $0xd0] sm:$0xff] }
 0x26e   : > { %13195 = vmatprep.subr.bf16.mxu1 %v18114_v35  ;;  %v10694_v44 = vcombine.high %v10684_v14, %v10684_v14 }
 0x271   : > { %13209 = vmatpush1.bf16.msra.mxu1 %v15174_v5  ;;  %v14007_v5 = vld [vmem:[%s18145_s4 + $0xc0] ss:$8 sps:$4 sm:$0xff]  }
 0x272   : > { %13196 = vmatprep.subr.bf16.mxu1 %v18114_v35 }
 0x274   : > { %2122 = vmatmul.mubr.bf16.gmra.mrb[48].mxu1 %v14004_v42 }
 0x275   : > { %13210 = vmatpush1.bf16.msra.mxu1 %v15194_v11  ;;  %10698 = vmatprep.mubr.msk.bf16.mxu1 %vm1775_vm4, %v14005_v28  ;;  %v10693_v11 = vcombine.low %v10684_v14, %v10684_v14 }
 0x276   : > { %13197 = vmatprep.subr.bf16.mxu1 %v18114_v35 }
 0x279   : > { %13211 = vmatpush1.bf16.msra.mxu1 %v15190_v38  ;;  %v14015_v38 = vld [vmem:[%s18145_s4 + $0xec] ss:$8 sps:$4 sm:$0xff]  }
 0x27a   : > { %13198 = vmatprep.subr.bf16.mxu1 %v18114_v35 }
 0x27c   : > { %2130 = vmatmul.mubr.bf16.gmra.mrb[52].mxu1 %v14007_v5 }
 0x27d   : > { %13212 = vmatpush1.bf16.msra.mxu1 %v15210_v16  ;;  %10699 = vmatprep.mubr.msk.bf16.mxu1 %vm1775_vm4, %v10694_v44  ;;  %v14025_v16 = vld [vmem:[%s18147_s5 + $0x28] sm:$0xff]  }
 0x27e   : > { %13199 = vmatprep.subr.bf16.mxu1 %v18114_v35  ;;  %12310 = vmatprep.subr.bf16.mxu0 %v14025_v16 }
 0x27f   : > { %12311 = vmatpush3.bf16.msra.mxu0 %v14025_v16 }
 0x281   : > { %13213 = vmatpush1.bf16.msra.mxu1 %v15206_v48  ;;  %v14026_v48 = vld [vmem:[%s18147_s5 + $0x30] sm:$0xff]  }
 0x282   : > { %13200 = vmatprep.subr.bf16.mxu1 %v18114_v35  ;;  %12312 = vmatprep.subr.bf16.mxu0 %v14026_v48 }
 0x283   : > { %12313 = vmatpush3.bf16.msra.mxu0 %v14026_v48 }
 0x284   : > { %2138 = vmatmul.mubr.bf16.gmra.mrb[56].mxu1 %v10693_v11 }
 0x285   : > { %13214 = vmatpush1.bf16.msra.mxu1 %v15226_v46  ;;  %10720 = vmatprep.mubr.msk.bf16.mxu1 %vm1775_vm4, %v14015_v38  ;;  %v14027_v46 = vld [vmem:[%s18147_s5 + $0x38] sm:$0xff]  }
 0x286   : > { %13201 = vmatprep.subr.bf16.mxu1 %v18114_v35  ;;  %12314 = vmatprep.subr.bf16.mxu0 %v14027_v46 }
 0x287   : > { %12315 = vmatpush3.bf16.msra.mxu0 %v14027_v46 }
 0x288   : > { %12324 = vmatprep.subr.bf16.mxu0 %v15465_v29 }
 0x289   : > { %13215 = vmatpush1.bf16.msra.mxu1 %v15222_v8  ;;  %v14013_v8 = vld [vmem:[%s18145_s4 + $0xe8] ss:$8 sps:$4 sm:$0xff]  }
 0x28a   : > { %13202 = vmatprep.subr.bf16.mxu1 %v18114_v35 }
 0x28d   : > { %13216 = vmatpush1.bf16.msra.mxu1 %v15242_v10  ;;  %v10718_v10 = vcombine.high %v10708_v1, %v10708_v1 }
 0x28e   : > { %13203 = vmatprep.subr.bf16.mxu1 %v18114_v35 }
 0x291   : > { %13217 = vmatpush1.bf16.msra.mxu1 %v15238_v13  ;;  %v14021_v13 = vld [vmem:[%s18145_s4 + $0x108] ss:$8 sps:$4 sm:$0xff]   ;;  %s18167_s4 = sld [smem:[#allocation19_spill]] }
 0x292   : > { %13204 = vmatprep.subr.bf16.mxu1 %v18114_v35 }
 0x295   : > { %13218 = vmatpush1.bf16.msra.mxu1 %v15258_v12 }
 0x296   : > { %13205 = vmatprep.subr.bf16.mxu1 %v18114_v35 }
 0x299   : > { %13219 = vmatpush1.bf16.msra.mxu1 %v15264_v59 }
 0x29c   : > { %2253 = vmatmul.mubr.bf16.vlgmr.msra.gmra.mrb[60].mxu1 %v14013_v8 }
 0x29d   : > { %10721 = vmatprep.mubr.msk.bf16.mxu1 %vm1775_vm4, %v14016_v4 }
 0x2a4   : > { %2261 = vmatmul.mubr.bf16.gmra.mrb[64].mxu1 %v14018_v50 }
 0x2a5   : > { %10722 = vmatprep.mubr.msk.bf16.mxu1 %vm1775_vm4, %v14019_v0 }
 0x2ac   : > { %2269 = vmatmul.mubr.bf16.gmra.mrb[68].mxu1 %v14021_v13 }
 0x2ad   : > { %10723 = vmatprep.mubr.msk.bf16.mxu1 %vm1775_vm4, %v10718_v10 }
 0x2b4   : > { %2277 = vmatmul.mubr.bf16.gmra.mrb[72].mxu1 %v10717_v15 }
 0x2b5   : > { %4877 = vmatprep.mubr.bf16.mxu1 %v18114_v35 }
 0x2c7   : > { %v1829_v3 = vpop.f32.mrb[0].mxu1  ;;  %v2246_v28 = vpop.f32.mrb[40].mxu0 }
 0x2c8   : > { %v1831_v25 = vpop.f32.mrb[1].mxu1  ;;  %v2248_v14 = vpop.f32.mrb[41].mxu0 }
 0x2c9   : > { %v1832_v33 = vpop.f32.mrb[2].mxu1  ;;  %v15538_v44 = vpop.f32.mrb[42].mxu0  ;;  %v14029_v25 = vld [vmem:[%s18147_s5 + $0x8] sm:$0xff]  }
 0x2ca   : > { %v15495_v39 = vpack.c.bf16 %v1832_v33, %v1829_v3  ;;  %v1834_v21 = vpop.f32.mrb[3].mxu1  ;;  %v15541_v11 = vpack.c.bf16 %v15538_v44, %v2246_v28  ;;  %v2251_v49 = vpop.f32.mrb[43].mxu0 }
 0x2cc   : > { %v2760_v35 = vshrl.u32 %v15495_v39, 16 }
 0x2cf   : > { %v1837_v18 = vpop.f32.mrb[4].mxu1 }
 0x2d0   : > { %v15497_v24 = vpack.c.bf16 %v1837_v18, %v1832_v33  ;;  %v1839_v7 = vpop.f32.mrb[5].mxu1 }
 0x2d1   : > { %v1840_v9 = vpop.f32.mrb[6].mxu1 }
 0x2d2   : > { %v15499_v51 = vpack.c.bf16 %v1840_v9, %v1837_v18  ;;  %v1842_v57 = vpop.f32.mrb[7].mxu1  ;;  %v3822_v30 = vshll.u32 %v15497_v24, 16  ;;  %v3820_v36 = vshrl.u32 %v15497_v24, 16 }
 0x2d4   : > { %v3824_v19 = vrot.slane %v3822_v30, 1 }
 0x2d6   : > { %v3825_v54 = vor.u32 %v3824_v19, %v3820_v36 }
 0x2d7   : > { %v1845_v12 = vpop.f32.mrb[8].mxu1 }
 0x2d8   : > { %v15502_v59 = vpack.c.bf16 %v1845_v12, %v1840_v9  ;;  %v1847_v34 = vpop.f32.mrb[9].mxu1  ;;  %v14030_v9 = vld [vmem:[%s18147_s5 + $0x10] sm:$0xff]  }
 0x2d9   : > { %v1848_v31 = vpop.f32.mrb[10].mxu1 }
 0x2da   : > { %v3826_v61 = vshll.u32 %v15502_v59, 16  ;;  %v15506_v6 = vpack.c.bf16 %v1848_v31, %v1845_v12  ;;  %v1850_v26 = vpop.f32.mrb[11].mxu1  ;;  %v3830_v60 = vshrl.u32 %v15502_v59, 16 }
 0x2dc   : > { %v3828_v41 = vrot.slane %v3826_v61, 1 }
 0x2de   : > { %v15510_v20 = vsel %vm630_vm1, %v3825_v54, %v3828_v41  ;;  %v3832_v53 = vor.u32 %v3830_v60, %v3828_v41  ;;  %v14031_v60 = vld [vmem:[%s18147_s5 + $0x18] sm:$0xff]  }
 0x2df   : > { %v15512_v27 = vpop.f32.mrb[12].mxu1 }
 0x2e0   : > { %v15515_v40 = vpack.c.bf16 %v15512_v27, %v1848_v31  ;;  %v1855_v55 = vpop.f32.mrb[13].mxu1 }
 0x2e1   : > { %v15517_v45 = vpop.f32.mrb[14].mxu1 }
 0x2e2   : > { %v3833_v56 = vshll.u32 %v15515_v40, 16  ;;  %v15522_v62 = vpack.c.bf16 %v15517_v45, %v15512_v27  ;;  %v1858_v37 = vpop.f32.mrb[15].mxu1  ;;  %v3837_v32 = vshrl.u32 %v15515_v40, 16 }
 0x2e4   : > { %v3835_v23 = vrot.slane %v3833_v56, 1 }
 0x2e6   : > { %v15526_v22 = vsel %vm630_vm1, %v3832_v53, %v3835_v23  ;;  %v3839_v17 = vor.u32 %v3837_v32, %v3835_v23 }
 0x2e7   : > { %v1861_v2 = vpop.f32.mrb[16].mxu1 }
 0x2e8   : > { %v15529_v63 = vpack.c.bf16 %v1861_v2, %v15517_v45  ;;  %v1863_v47 = vpop.f32.mrb[17].mxu1  ;;  %v14032_v2 = vld [vmem:[%s18147_s5 + $0x40] sm:$0xff]  }
 0x2e9   : > { %v1864_v58 = vpop.f32.mrb[18].mxu1 }
 0x2ea   : > { %v3841_v52 = vshll.u32 %v15529_v63, 16  ;;  %v1865_v43 = vpop.f32.mrb[19].mxu1 }
 0x2ec   : > { %v15532_v42 = vrot.slane %v3841_v52, 1 }
 0x2ee   : > { %v15536_v5 = vsel %vm630_vm1, %v3839_v17, %v15532_v42 }
 0x2ff   : > { %v1968_v38 = vpop.f32.mrb[20].mxu1 }
 0x300   : > { %v1970_v16 = vpop.f32.mrb[21].mxu1 }
 0x301   : > { %v1971_v48 = vpop.f32.mrb[22].mxu1 }
 0x302   : > { %v2296_v46 = vpack.c.bf16 %v1971_v48, %v1968_v38  ;;  %v1973_v8 = vpop.f32.mrb[23].mxu1 }
 0x304   : > { %12316 = vmatprep.mubr.msk.bf16.mxu0 %vm2333_vm6, %v2296_v46  ;;  %v2907_v4 = vshll.u32 %v2296_v46, 16  ;;  %v2905_v33 = vshrl.u32 %v2296_v46, 16 }
 0x306   : > { %v2909_v10 = vrot.slane %v2907_v4, 1 }
 0x307   : > { %v1976_v50 = vpop.f32.mrb[24].mxu1 }
 0x308   : > { %v15544_v0 = vpack.c.bf16 %v1976_v50, %v1971_v48  ;;  %v1978_v1 = vpop.f32.mrb[25].mxu1  ;;  %v2910_v57 = vor.u32 %v2909_v10, %v2905_v33  ;;  %v14033_v33 = vld [vmem:[%s18147_s5 + $0x48] sm:$0xff]  }
 0x309   : > { %v1979_v13 = vpop.f32.mrb[26].mxu1 }
 0x30a   : > { %v2297_v15 = vpack.c.bf16 %v1979_v13, %v1976_v50  ;;  %v1981_v3 = vpop.f32.mrb[27].mxu1  ;;  %v3967_v21 = vshll.u32 %v15544_v0, 16 }
 0x30c   : > { %v2911_v18 = vshll.u32 %v2297_v15, 16  ;;  %12317 = vmatmul.mubr.msk.bf16.vlgmr.msra.gmra.mrb[44].mxu0 %vm2333_vm6, %v2297_v15  ;;  %v3969_v12 = vrot.slane %v3967_v21, 1  ;;  %v2915_v19 = vshrl.u32 %v2297_v15, 16 }
 0x30d   : > { %12325 = vmatpush3.bf16.msra.mxu0 %v15465_v29  ;;  %v3965_v29 = vshrl.u32 %v15544_v0, 16 }
 0x30e   : > { %v2913_v7 = vrot.slane %v2911_v18, 1  ;;  %12326 = vmatprep.subr.bf16.mxu0 %v14029_v25 }
 0x30f   : > { %v1984_v30 = vpop.f32.mrb[28].mxu1  ;;  %v3970_v37 = vor.u32 %v3969_v12, %v3965_v29  ;;  %v14034_v12 = vld [vmem:[%s18147_s5 + $0x50] sm:$0xff]   ;;  %v14036_v29 = vld [vmem:[%s18147_s5 + $0x60] sm:$0xff]  }
 0x310   : > { %v15555_v34 = vpack.c.bf16 %v1984_v30, %v1979_v13  ;;  %v1986_v31 = vpop.f32.mrb[29].mxu1  ;;  %v15558_v36 = vsel %vm630_vm1, %v2910_v57, %v2913_v7  ;;  %v2917_v55 = vor.u32 %v2915_v19, %v2913_v7 }
 0x311   : > { %v1987_v61 = vpop.f32.mrb[30].mxu1  ;;  %12327 = vmatpush3.bf16.msra.mxu0 %v14029_v25  ;;  %v2287_v31 = vpack.c.bf16 %v15512_v27, %v15512_v27 }
 0x312   : > { %v3971_v26 = vshll.u32 %v15555_v34, 16  ;;  %v2298_v41 = vpack.c.bf16 %v1987_v61, %v1984_v30  ;;  %v1989_v54 = vpop.f32.mrb[31].mxu1  ;;  %12328 = vmatprep.subr.bf16.mxu0 %v14030_v9  ;;  %v3975_v23 = vshrl.u32 %v15555_v34, 16 }
 0x314   : > { %v3973_v53 = vrot.slane %v3971_v26, 1  ;;  %v2918_v56 = vshll.u32 %v2298_v41, 16  ;;  %12320 = vmatprep.mubr.msk.bf16.mxu0 %vm2333_vm6, %v2298_v41  ;;  %v2922_v52 = vshrl.u32 %v2298_v41, 16 }
 0x315   : > { %12329 = vmatpush3.bf16.msra.mxu0 %v14030_v9 }
 0x316   : > { %v2920_v32 = vrot.slane %v2918_v56, 1  ;;  %12330 = vmatprep.subr.bf16.mxu0 %v14031_v60  ;;  %v15571_v47 = vsel %vm630_vm1, %v3970_v37, %v3973_v53  ;;  %v3977_v38 = vor.u32 %v3975_v23, %v3973_v53 }
 0x317   : > { %v1992_v58 = vpop.f32.mrb[32].mxu1 }
 0x318   : > { %v2299_v43 = vpack.c.bf16 %v1992_v58, %v1992_v58  ;;  %v15573_v17 = vpack.c.bf16 %v1992_v58, %v1987_v61  ;;  %v1994_v28 = vpop.f32.mrb[33].mxu1  ;;  %v15576_v14 = vsel %vm630_vm1, %v2917_v55, %v2920_v32  ;;  %v2924_v50 = vor.u32 %v2922_v52, %v2920_v32  ;;  %v14035_v61 = vld [vmem:[%s18147_s5 + $0x58] sm:$0xff]   ;;  %v14037_v52 = vld [vmem:[%s18147_s5 + $0x68] sm:$0xff]  }
 0x319   : > { %v15578_v49 = vpop.f32.mrb[34].mxu1  ;;  %12331 = vmatpush3.bf16.msra.mxu0 %v14031_v60 }
 0x31a   : > { %v3978_v16 = vshll.u32 %v15573_v17, 16  ;;  %12321 = vmatmul.mubr.msk.bf16.gmra.mrb[48].mxu0 %vm2333_vm6, %v2299_v43  ;;  %v15583_v48 = vpack.c.bf16 %v15578_v49, %v1992_v58  ;;  %v1997_v46 = vpop.f32.mrb[35].mxu1  ;;  %12340 = vmatprep.subr.bf16.mxu0 %v14032_v2  ;;  %v3982_v1 = vshrl.u32 %v15573_v17, 16 }
 0x31b   : > { %12332 = vmatprep.mubr.msk.bf16.mxu0 %vm2333_vm6, %v15495_v39  ;;  %v14038_v46 = vld [vmem:[%s18147_s5 + $0x70] sm:$0xff]  }
 0x31c   : > { %v3980_v8 = vrot.slane %v3978_v16, 1  ;;  %v2926_v4 = vshll.u32 %v15583_v48, 16 }
 0x31e   : > { %v15589_v13 = vrot.slane %v2926_v4, 1  ;;  %v15592_v10 = vsel %vm630_vm1, %v3977_v38, %v3980_v8  ;;  %v3984_v57 = vor.u32 %v3982_v1, %v3980_v8 }
 0x31f   : > { %v2000_v15 = vpop.f32.mrb[36].mxu1 }
 0x320   : > { %v15595_v3 = vpack.c.bf16 %v2000_v15, %v15578_v49  ;;  %v2002_v25 = vpop.f32.mrb[37].mxu1  ;;  %v15602_v21 = vsel %vm630_vm1, %v2924_v50, %v15589_v13 }
 0x321   : > { %v2003_v18 = vpop.f32.mrb[38].mxu1 }
 0x322   : > { %18148 = vst [vmem:[#allocation10_spill] sm:$0xff] %v15595_v3  ;;  %v3986_v7 = vshll.u32 %v15595_v3, 16  ;;  %12333 = vmatmul.mubr.msk.bf16.vlgmr.msra.gmra.mrb[44].mxu0 %vm2333_vm6, %v15499_v51  ;;  %v2004_v9 = vpop.f32.mrb[39].mxu1 }
 0x323   : > { %12336 = vmatprep.mubr.msk.bf16.mxu0 %vm2333_vm6, %v15506_v6  ;;  %12341 = vmatpush3.bf16.msra.mxu0 %v14032_v2 }
 0x324   : > { %v15609_v30 = vrot.slane %v3986_v7, 1  ;;  %12342 = vmatprep.subr.bf16.mxu0 %v14033_v33 }
 0x326   : > { %18149 = vst [vmem:[#allocation11_spill] sm:$0xff] %v15609_v30  ;;  %v15616_v19 = vsel %vm630_vm1, %v3984_v57, %v15609_v30 }
 0x327   : > { %12343 = vmatpush3.bf16.msra.mxu0 %v14033_v33 }
 0x328   : > { %12344 = vmatprep.subr.bf16.mxu0 %v14034_v12 }
 0x32a   : > { %12337 = vmatmul.mubr.msk.bf16.gmra.mrb[52].mxu0 %vm2333_vm6, %v2287_v31  ;;  %v14039_v31 = vld [vmem:[%s18147_s5 + $0x78] sm:$0xff]  }
 0x32b   : > { %12345 = vmatpush3.bf16.msra.mxu0 %v14034_v12 }
 0x32c   : > { %12346 = vmatprep.subr.bf16.mxu0 %v14035_v61 }
 0x32f   : > { %12347 = vmatpush3.bf16.msra.mxu0 %v14035_v61 }
 0x330   : > { %12356 = vmatprep.subr.bf16.mxu0 %v14036_v29 }
 0x337   : > { %v2107_v26 = vpop.f32.mrb[40].mxu1 }
 0x338   : > { %v2109_v41 = vpop.f32.mrb[41].mxu1 }
 0x339   : > { %v2110_v54 = vpop.f32.mrb[42].mxu1 }
 0x33a   : > { %v2510_v60 = vpack.c.bf16 %v2110_v54, %v2107_v26  ;;  %v2112_v27 = vpop.f32.mrb[43].mxu1 }
 0x33b   : > { %v14040_v27 = vld [vmem:[%s18147_s5 + $0x80] sm:$0xff]  }
 0x33c   : > { %12348 = vmatprep.mubr.msk.bf16.mxu0 %vm2333_vm6, %v2510_v60  ;;  %v3052_v55 = vshll.u32 %v2510_v60, 16  ;;  %v3050_v43 = vshrl.u32 %v2510_v60, 16 }
 0x33e   : > { %v3054_v32 = vrot.slane %v3052_v55, 1 }
 0x33f   : > { %v2115_v53 = vpop.f32.mrb[44].mxu1 }
 0x340   : > { %v15628_v56 = vpack.c.bf16 %v2115_v53, %v2110_v54  ;;  %v2117_v37 = vpop.f32.mrb[45].mxu1  ;;  %v3055_v8 = vor.u32 %v3054_v32, %v3050_v43 }
 0x341   : > { %v2118_v23 = vpop.f32.mrb[46].mxu1 }
 0x342   : > { %v2511_v2 = vpack.c.bf16 %v2118_v23, %v2115_v53  ;;  %v2120_v58 = vpop.f32.mrb[47].mxu1  ;;  %v4112_v28 = vshll.u32 %v15628_v56, 16  ;;  %v4110_v7 = vshrl.u32 %v15628_v56, 16 }
 0x344   : > { %v3056_v38 = vshll.u32 %v2511_v2, 16  ;;  %12349 = vmatmul.mubr.msk.bf16.vlgmr.msra.gmra.mrb[44].mxu0 %vm2333_vm6, %v2511_v2  ;;  %v4114_v50 = vrot.slane %v4112_v28, 1  ;;  %v3060_v1 = vshrl.u32 %v2511_v2, 16 }
 0x345   : > { %12357 = vmatpush3.bf16.msra.mxu0 %v14036_v29 }
 0x346   : > { %v3058_v16 = vrot.slane %v3056_v38, 1  ;;  %12358 = vmatprep.subr.bf16.mxu0 %v14037_v52  ;;  %v4115_v41 = vor.u32 %v4114_v50, %v4110_v7 }
 0x347   : > { %v2123_v4 = vpop.f32.mrb[48].mxu1 }
 0x348   : > { %v15638_v15 = vpack.c.bf16 %v2123_v4, %v2118_v23  ;;  %v2125_v25 = vpop.f32.mrb[49].mxu1  ;;  %v15641_v33 = vsel %vm630_vm1, %v3055_v8, %v3058_v16  ;;  %v3062_v61 = vor.u32 %v3060_v1, %v3058_v16 }
 0x349   : > { %v2126_v18 = vpop.f32.mrb[50].mxu1  ;;  %12359 = vmatpush3.bf16.msra.mxu0 %v14037_v52 }
 0x34a   : > { %v4116_v9 = vshll.u32 %v15638_v15, 16  ;;  %v2512_v57 = vpack.c.bf16 %v2126_v18, %v2123_v4  ;;  %v2128_v12 = vpop.f32.mrb[51].mxu1  ;;  %12360 = vmatprep.subr.bf16.mxu0 %v14038_v46  ;;  %v4120_v54 = vshrl.u32 %v15638_v15, 16 }
 0x34c   : > { %v4118_v29 = vrot.slane %v4116_v9, 1  ;;  %v3063_v26 = vshll.u32 %v2512_v57, 16  ;;  %12352 = vmatprep.mubr.msk.bf16.mxu0 %vm2333_vm6, %v2512_v57  ;;  %v3067_v37 = vshrl.u32 %v2512_v57, 16 }
 0x34d   : > { %12361 = vmatpush3.bf16.msra.mxu0 %v14038_v46 }
 0x34e   : > { %v3065_v60 = vrot.slane %v3063_v26, 1  ;;  %12362 = vmatprep.subr.bf16.mxu0 %v14039_v31  ;;  %v15654_v55 = vsel %vm630_vm1, %v4115_v41, %v4118_v29  ;;  %v4122_v43 = vor.u32 %v4120_v54, %v4118_v29 }
 0x34f   : > { %18150 = vst [vmem:[#allocation12_spill] sm:$0xff] %v15654_v55  ;;  %v2131_v53 = vpop.f32.mrb[52].mxu1 }
 0x350   : > { %v2513_v23 = vpack.c.bf16 %v2131_v53, %v2131_v53  ;;  %v15656_v32 = vpack.c.bf16 %v2131_v53, %v2126_v18  ;;  %v2133_v2 = vpop.f32.mrb[53].mxu1  ;;  %v15659_v58 = vsel %vm630_vm1, %v3062_v61, %v3065_v60  ;;  %v3069_v4 = vor.u32 %v3067_v37, %v3065_v60 }
 0x351   : > { %v15661_v52 = vpop.f32.mrb[54].mxu1  ;;  %12363 = vmatpush3.bf16.msra.mxu0 %v14039_v31 }
 0x352   : > { %v4123_v28 = vshll.u32 %v15656_v32, 16  ;;  %12353 = vmatmul.mubr.msk.bf16.gmra.mrb[56].mxu0 %vm2333_vm6, %v2513_v23  ;;  %v15666_v38 = vpack.c.bf16 %v15661_v52, %v2131_v53  ;;  %v2136_v16 = vpop.f32.mrb[55].mxu1  ;;  %12372 = vmatprep.subr.bf16.mxu0 %v14040_v27  ;;  %v4127_v50 = vshrl.u32 %v15656_v32, 16 }
 0x353   : > { %12364 = vmatprep.mubr.msk.bf16.mxu0 %vm2333_vm6, %v15541_v11 }
 0x354   : > { %v4125_v46 = vrot.slane %v4123_v28, 1  ;;  %v3071_v8 = vshll.u32 %v15666_v38, 16 }
 0x356   : > { %v15672_v1 = vrot.slane %v3071_v8, 1  ;;  %v15675_v25 = vsel %vm630_vm1, %v4122_v43, %v4125_v46  ;;  %v4129_v29 = vor.u32 %v4127_v50, %v4125_v46  ;;  %v14041_v43 = vld [vmem:[%s18147_s5 + $0x88] sm:$0xff]   ;;  %v2762_v46 = vshll.u32 %v15495_v39, 16 }
 0x357   : > { %18151 = vst [vmem:[#allocation13_spill] sm:$0xff] %v15675_v25  ;;  %v2139_v18 = vpop.f32.mrb[56].mxu1 }
 0x358   : > { %v15678_v7 = vpack.c.bf16 %v2139_v18, %v15661_v52  ;;  %v2141_v9 = vpop.f32.mrb[57].mxu1  ;;  %v15682_v57 = vsel %vm630_vm1, %v3069_v4, %v15672_v1 }
 0x359   : > { %v2142_v12 = vpop.f32.mrb[58].mxu1  ;;  %v2766_v9 = vshll.u32 %v15499_v51, 16 }
 0x35a   : > { %18152 = vst [vmem:[#allocation14_spill] sm:$0xff] %v15678_v7  ;;  %v4131_v31 = vshll.u32 %v15678_v7, 16  ;;  %v2143_v61 = vpop.f32.mrb[59].mxu1 }
 0x35c   : > { %v15685_v26 = vrot.slane %v4131_v31, 1 }
 0x35e   : > { %18153 = vst [vmem:[#allocation15_spill] sm:$0xff] %v15685_v26  ;;  %v15689_v41 = vsel %vm630_vm1, %v4129_v29, %v15685_v26 }
 0x35f   : > { %18154 = vst [vmem:[#allocation16_spill] sm:$0xff] %v15689_v41 }
 0x36f   : > { %v2254_v54 = vpop.f32.mrb[60].mxu1 }
 0x370   : > { %v15692_v60 = vpack.c.bf16 %v2254_v54, %v15538_v44  ;;  %v2256_v53 = vpop.f32.mrb[61].mxu1  ;;  %v14042_v44 = vld [vmem:[%s18147_s5 + $0x90] sm:$0xff]  }
 0x371   : > { %v2257_v37 = vpop.f32.mrb[62].mxu1  ;;  %v14043_v53 = vld [vmem:[%s18147_s5 + $0x98] sm:$0xff]  }
 0x372   : > { %v2631_v23 = vpack.c.bf16 %v2257_v37, %v2254_v54  ;;  %v2259_v2 = vpop.f32.mrb[63].mxu1  ;;  %v4257_v28 = vshll.u32 %v15692_v60, 16  ;;  %v4255_v31 = vshrl.u32 %v15692_v60, 16 }
 0x374   : > { %12365 = vmatmul.mubr.msk.bf16.vlgmr.msra.gmra.mrb[44].mxu0 %vm2333_vm6, %v2631_v23  ;;  %v3201_v16 = vshll.u32 %v2631_v23, 16  ;;  %v4259_v4 = vrot.slane %v4257_v28, 1  ;;  %v3205_v2 = vshrl.u32 %v2631_v23, 16  ;;  %v2773_v23 = vshll.u32 %v15506_v6, 16 }
 0x375   : > { %12373 = vmatpush3.bf16.msra.mxu0 %v14040_v27 }
 0x376   : > { %12374 = vmatprep.subr.bf16.mxu0 %v14041_v43  ;;  %v15707_v27 = vrot.slane %v3201_v16, 1  ;;  %v2768_v16 = vrot.slane %v2766_v9, 1  ;;  %v2770_v9 = vshrl.u32 %v15499_v51, 16  ;;  %v2775_v51 = vrot.slane %v2773_v23, 1 }
 0x377   : > { %v2262_v8 = vpop.f32.mrb[64].mxu1 }
 0x378   : > { %v15703_v50 = vpack.c.bf16 %v2262_v8, %v2257_v37  ;;  %v2264_v18 = vpop.f32.mrb[65].mxu1  ;;  %v2764_v37 = vrot.slane %v2762_v46, 1  ;;  %v3207_v26 = vor.u32 %v3205_v2, %v15707_v27  ;;  %v2777_v2 = vshrl.u32 %v15506_v6, 16 }
 0x379   : > { %v2265_v12 = vpop.f32.mrb[66].mxu1  ;;  %12375 = vmatpush3.bf16.msra.mxu0 %v14041_v43  ;;  %v4260_v43 = vor.u32 %v4259_v4, %v4255_v31  ;;  %v2772_v41 = vor.u32 %v2770_v9, %v2768_v16 }
 0x37a   : > { %v4261_v61 = vshll.u32 %v15703_v50, 16  ;;  %v2632_v29 = vpack.c.bf16 %v2265_v12, %v2262_v8  ;;  %v2267_v54 = vpop.f32.mrb[67].mxu1  ;;  %12376 = vmatprep.subr.bf16.mxu0 %v14042_v44  ;;  %v2765_v7 = vor.u32 %v2764_v37, %v2760_v35  ;;  %v4265_v35 = vshrl.u32 %v15703_v50, 16 }
 0x37b   : > { %v14044_v54 = vld [vmem:[%s18147_s5 + $0xa0] sm:$0xff]   ;;  %v2779_v25 = vor.u32 %v2777_v2, %v2775_v51 }
 0x37c   : > { %v4263_v28 = vrot.slane %v4261_v61, 1  ;;  %v3208_v18 = vshll.u32 %v2632_v29, 16  ;;  %12368 = vmatprep.mubr.msk.bf16.mxu0 %vm2333_vm6, %v2632_v29 }
 0x37d   : > { %12377 = vmatpush3.bf16.msra.mxu0 %v14042_v44 }
 0x37e   : > { %v3210_v8 = vrot.slane %v3208_v18, 1  ;;  %12378 = vmatprep.subr.bf16.mxu0 %v14043_v53  ;;  %v15720_v46 = vsel %vm630_vm1, %v4260_v43, %v4263_v28  ;;  %v2769_v43 = vsel %vm630_vm1, %v2765_v7, %v2768_v16  ;;  %v4267_v6 = vor.u32 %v4265_v35, %v4263_v28 }
 0x37f   : > { %18155 = vst [vmem:[#allocation17_spill] sm:$0xff] %v15720_v46  ;;  %v2270_v61 = vpop.f32.mrb[68].mxu1  ;;  %v2781_v46 = vshll.u32 %v15522_v62, 16  ;;  %v2785_v35 = vshrl.u32 %v15522_v62, 16  ;;  %v14048_v62 = vld [vmem:[%s18147_s5 + $0xc0] sm:$0xff]  }
 0x380   : > { %v2633_v4 = vpack.c.bf16 %v2270_v61, %v2270_v61  ;;  %v15723_v31 = vpack.c.bf16 %v2270_v61, %v2265_v12  ;;  %v2272_v39 = vpop.f32.mrb[69].mxu1  ;;  %v15726_v44 = vsel %vm630_vm1, %v3207_v26, %v3210_v8 }
 0x381   : > { %v15730_v18 = vpop.f32.mrb[70].mxu1  ;;  %12379 = vmatpush3.bf16.msra.mxu0 %v14043_v53  ;;  %v3212_v39 = vshrl.u32 %v2632_v29, 16  ;;  %v2783_v55 = vrot.slane %v2781_v46, 1  ;;  %v14045_v29 = vld [vmem:[%s18147_s5 + $0xa8] sm:$0xff]   ;;  %v2776_v46 = vsel %vm630_vm1, %v2772_v41, %v2775_v51  ;;  %v14046_v41 = vld [vmem:[%s18147_s5 + $0xb0] sm:$0xff]  }
 0x382   : > { %v4268_v12 = vshll.u32 %v15723_v31, 16  ;;  %v15737_v37 = vpack.c.bf16 %v15730_v18, %v2270_v61  ;;  %v2275_v26 = vpop.f32.mrb[71].mxu1  ;;  %12369 = vmatmul.mubr.msk.bf16.gmra.mrb[60].mxu0 %vm2333_vm6, %v2633_v4  ;;  %12388 = vmatprep.subr.bf16.mxu0 %v14044_v54 }
 0x383   : > { %12380 = vmatprep.mubr.msk.bf16.mxu0 %vm2333_vm6, %v2769_v43  ;;  %v3214_v3 = vor.u32 %v3212_v39, %v3210_v8  ;;  %v4272_v8 = vshrl.u32 %v15723_v31, 16  ;;  %v2784_v2 = vsel %vm630_vm1, %v2779_v25, %v2783_v55  ;;  %v2787_v25 = vor.u32 %v2785_v35, %v2783_v55  ;;  %v14049_v55 = vld [vmem:[%s18147_s5 + $0xc8] sm:$0xff]  }
 0x384   : > { %v4270_v7 = vrot.slane %v4268_v12, 1  ;;  %v3216_v53 = vshll.u32 %v15737_v37, 16 }
 0x386   : > { %v15742_v30 = vrot.slane %v3216_v53, 1  ;;  %v15745_v61 = vsel %vm630_vm1, %v4267_v6, %v4270_v7  ;;  %v4274_v12 = vor.u32 %v4272_v8, %v4270_v7  ;;  %v14050_v6 = vld [vmem:[%s18147_s5 + $0xd0] sm:$0xff]   ;;  %v14051_v7 = vld [vmem:[%s18147_s5 + $0xd8] sm:$0xff]  }
 0x387   : > { %v2278_v26 = vpop.f32.mrb[72].mxu1  ;;  %v14067_v8 = vld [vmem:[%s18147_s5 + $0x158] sm:$0xff]  }
 0x388   : > { %v15748_v4 = vpack.c.bf16 %v2278_v26, %v15730_v18  ;;  %v15755_v28 = vsel %vm630_vm1, %v3214_v3, %v15742_v30  ;;  %v2280_v16 = vpop.f32.mrb[73].mxu1  ;;  %v14054_v26 = vld [vmem:[%s18147_s5 + $0xf0] sm:$0xff]  }
 0x389   : > { %v2281_v23 = vpop.f32.mrb[74].mxu1 }
 0x38a   : > { %v4276_v9 = vshll.u32 %v15748_v4, 16  ;;  %12381 = vmatmul.mubr.msk.bf16.vlgmr.msra.gmra.mrb[44].mxu0 %vm2333_vm6, %v2776_v46  ;;  %v2282_v43 = vpop.f32.mrb[75].mxu1  ;;  %v14059_v23 = vld [vmem:[%s18147_s5 + $0x118] sm:$0xff]  }
 0x38b   : > { %12384 = vmatprep.mubr.msk.bf16.mxu0 %vm2333_vm6, %v2784_v2  ;;  %12389 = vmatpush3.bf16.msra.mxu0 %v14044_v54  ;;  %v14047_v54 = vld [vmem:[%s18147_s5 + $0xb8] sm:$0xff]   ;;  %v3573_v43 = vpack.c.bf16 %v15661_v52, %v15661_v52  ;;  %v14073_v52 = vld [vmem:[%s18147_s5 + $0x188] sm:$0xff]  }
 0x38c   : > { %v15764_v3 = vrot.slane %v4276_v9, 1  ;;  %12390 = vmatprep.subr.bf16.mxu0 %v14045_v29 }
 0x38e   : > { %v15771_v51 = vsel %vm630_vm1, %v4274_v12, %v15764_v3 }
 0x38f   : > { %12391 = vmatpush3.bf16.msra.mxu0 %v14045_v29 }
 0x390   : > { %12392 = vmatprep.subr.bf16.mxu0 %v14046_v41 }
 0x392   : > { %12385 = vmatmul.mubr.msk.bf16.gmra.mrb[64].mxu0 %vm2333_vm6, %v2787_v25 }
 0x393   : > { %12393 = vmatpush3.bf16.msra.mxu0 %v14046_v41  ;;  %12396 = vmatprep.mubr.msk.bf16.mxu0 %vm2333_vm6, %v15558_v36  ;;  %v2930_v36 = vshrl.u32 %v15583_v48, 16  ;;  %v3197_v48 = vshll.u32 %v15541_v11, 16 }
 0x394   : > { %12394 = vmatprep.subr.bf16.mxu0 %v14047_v54 }
 0x395   : > { %v2932_v39 = vor.u32 %v2930_v36, %v15589_v13  ;;  %v14053_v13 = vld [vmem:[%s18147_s5 + $0xe8] sm:$0xff]   ;;  %v3199_v53 = vrot.slane %v3197_v48, 1 }
 0x396   : > { %v18157_v48 = vld [vmem:[#allocation11_spill] sm:$0xff] }
 0x397   : > { %12395 = vmatpush3.bf16.msra.mxu0 %v14047_v54 }
 0x398   : > { %12404 = vmatprep.subr.bf16.mxu0 %v14048_v62 }
 0x39a   : > { %12397 = vmatmul.mubr.msk.bf16.vlgmr.msra.gmra.mrb[44].mxu0 %vm2333_vm6, %v15576_v14  ;;  %v14052_v14 = vld [vmem:[%s18147_s5 + $0xe0] sm:$0xff]  }
 0x39b   : > { %12400 = vmatprep.mubr.msk.bf16.mxu0 %vm2333_vm6, %v15602_v21  ;;  %12405 = vmatpush3.bf16.msra.mxu0 %v14048_v62  ;;  %v3195_v21 = vshrl.u32 %v15541_v11, 16  ;;  %v14055_v11 = vld [vmem:[%s18147_s5 + $0xf8] sm:$0xff]  }
 0x39c   : > { %12406 = vmatprep.subr.bf16.mxu0 %v14049_v55 }
 0x39d   : > { %v3200_v29 = vor.u32 %v3199_v53, %v3195_v21  ;;  %v14083_v21 = vld [vmem:[%s18147_s5 + $0x1d8] sm:$0xff]  }
 0x39f   : > { %12407 = vmatpush3.bf16.msra.mxu0 %v14049_v55  ;;  %v3693_v55 = vpack.c.bf16 %v15730_v18, %v15730_v18  ;;  %v14077_v18 = vld [vmem:[%s18147_s5 + $0x1a8] sm:$0xff]  }
 0x3a0   : > { %12408 = vmatprep.subr.bf16.mxu0 %v14050_v6 }
 0x3a2   : > { %12401 = vmatmul.mubr.msk.bf16.gmra.mrb[68].mxu0 %vm2333_vm6, %v2932_v39  ;;  %v14078_v39 = vld [vmem:[%s18147_s5 + $0x1b0] sm:$0xff]  }
 0x3a3   : > { %12409 = vmatpush3.bf16.msra.mxu0 %v14050_v6  ;;  %12412 = vmatprep.mubr.msk.bf16.mxu0 %vm2333_vm6, %v15641_v33  ;;  %v3075_v33 = vshrl.u32 %v15666_v38, 16  ;;  %v14056_v38 = vld [vmem:[%s18147_s5 + $0x100] sm:$0xff]  }
 0x3a4   : > { %12410 = vmatprep.subr.bf16.mxu0 %v14051_v7  ;;  %v14076_v6 = vld [vmem:[%s18147_s5 + $0x1a0] sm:$0xff]  }
 0x3a5   : > { %v3077_v16 = vor.u32 %v3075_v33, %v15672_v1  ;;  %v14057_v1 = vld [vmem:[%s18147_s5 + $0x108] sm:$0xff]  }
 0x3a7   : > { %12411 = vmatpush3.bf16.msra.mxu0 %v14051_v7 }
 0x3a8   : > { %12420 = vmatprep.subr.bf16.mxu0 %v14052_v14 }
 0x3aa   : > { %12413 = vmatmul.mubr.msk.bf16.vlgmr.msra.gmra.mrb[44].mxu0 %vm2333_vm6, %v15659_v58  ;;  %v3204_v58 = vsel %vm630_vm1, %v3200_v29, %v15707_v27  ;;  %v3220_v27 = vshrl.u32 %v15737_v37, 16  ;;  %v3333_v37 = vpack.c.bf16 %v15517_v45, %v15517_v45  ;;  %v14066_v45 = vld [vmem:[%s18147_s5 + $0x150] sm:$0xff]  }
 0x3ab   : > { %12416 = vmatprep.mubr.msk.bf16.mxu0 %vm2333_vm6, %v15682_v57  ;;  %12421 = vmatpush3.bf16.msra.mxu0 %v14052_v14  ;;  %v14058_v57 = vld [vmem:[%s18147_s5 + $0x110] sm:$0xff]   ;;  %v14079_v14 = vld [vmem:[%s18147_s5 + $0x1b8] sm:$0xff]  }
 0x3ac   : > { %12422 = vmatprep.subr.bf16.mxu0 %v14053_v13  ;;  %v3222_v46 = vor.u32 %v3220_v27, %v15742_v30  ;;  %v14061_v30 = vld [vmem:[%s18147_s5 + $0x128] sm:$0xff]  }
 0x3ad   : > { %v18161_v27 = vld [vmem:[#allocation14_spill] sm:$0xff] }
 0x3af   : > { %12423 = vmatpush3.bf16.msra.mxu0 %v14053_v13 }
 0x3b0   : > { %12424 = vmatprep.subr.bf16.mxu0 %v14054_v26 }
 0x3b2   : > { %12417 = vmatmul.mubr.msk.bf16.gmra.mrb[72].mxu0 %vm2333_vm6, %v3077_v16 }
 0x3b3   : > { %12425 = vmatpush3.bf16.msra.mxu0 %v14054_v26  ;;  %12428 = vmatprep.mubr.msk.bf16.mxu0 %vm2333_vm6, %v3204_v58  ;;  %v14085_v58 = vld [vmem:[%s18147_s5 + $0x1e8] sm:$0xff]  }
 0x3b4   : > { %12426 = vmatprep.subr.bf16.mxu0 %v14055_v11 }
 0x3b7   : > { %12427 = vmatpush3.bf16.msra.mxu0 %v14055_v11 }
 0x3b8   : > { %12436 = vmatprep.subr.bf16.mxu0 %v14056_v38 }
 0x3ba   : > { %12429 = vmatmul.mubr.msk.bf16.vlgmr.msra.gmra.mrb[44].mxu0 %vm2333_vm6, %v15726_v44  ;;  %v14060_v44 = vld [vmem:[%s18147_s5 + $0x120] sm:$0xff]  }
 0x3bb   : > { %12432 = vmatprep.mubr.msk.bf16.mxu0 %vm2333_vm6, %v15755_v28  ;;  %12437 = vmatpush3.bf16.msra.mxu0 %v14056_v38  ;;  %v14063_v28 = vld [vmem:[%s18147_s5 + $0x138] sm:$0xff]  }
 0x3bc   : > { %12438 = vmatprep.subr.bf16.mxu0 %v14057_v1 }
 0x3bf   : > { %12439 = vmatpush3.bf16.msra.mxu0 %v14057_v1  ;;  %v18159_v1 = vld [vmem:[#allocation13_spill] sm:$0xff] }
 0x3c0   : > { %12440 = vmatprep.subr.bf16.mxu0 %v14058_v57 }
 0x3c2   : > { %12433 = vmatmul.mubr.msk.bf16.gmra.mrb[76].mxu0 %vm2333_vm6, %v3222_v46  ;;  %v4135_v46 = vshrl.u32 %v18161_v27, 16 }
 0x3c3   : > { %12441 = vmatpush3.bf16.msra.mxu0 %v14058_v57  ;;  %12444 = vmatprep.mubr.msk.bf16.mxu0 %vm2333_vm6, %v15497_v24  ;;  %v14062_v24 = vld [vmem:[%s18147_s5 + $0x130] sm:$0xff]  }
 0x3c4   : > { %12442 = vmatprep.subr.bf16.mxu0 %v14059_v23  ;;  %v18160_v57 = vld [vmem:[#allocation16_spill] sm:$0xff] }
 0x3c7   : > { %12443 = vmatpush3.bf16.msra.mxu0 %v14059_v23  ;;  %v14086_v23 = vld [vmem:[%s18147_s5 + $0x1f0] sm:$0xff]  }
 0x3c8   : > { %12452 = vmatprep.subr.bf16.mxu0 %v14060_v44 }
 0x3ca   : > { %12445 = vmatmul.mubr.msk.bf16.vlgmr.msra.gmra.mrb[44].mxu0 %vm2333_vm6, %v15502_v59  ;;  %v14064_v59 = vld [vmem:[%s18147_s5 + $0x140] sm:$0xff]  }
 0x3cb   : > { %12448 = vmatprep.mubr.msk.bf16.mxu0 %vm2333_vm6, %v15515_v40  ;;  %12453 = vmatpush3.bf16.msra.mxu0 %v14060_v44  ;;  %v14065_v40 = vld [vmem:[%s18147_s5 + $0x148] sm:$0xff]  }
 0x3cc   : > { %12454 = vmatprep.subr.bf16.mxu0 %v14061_v30  ;;  %v18162_v44 = vld [vmem:[#allocation15_spill] sm:$0xff] }
 0x3cf   : > { %12455 = vmatpush3.bf16.msra.mxu0 %v14061_v30  ;;  %v4137_v30 = vor.u32 %v4135_v46, %v18162_v44 }
 0x3d0   : > { %12456 = vmatprep.subr.bf16.mxu0 %v14062_v24 }
 0x3d2   : > { %12449 = vmatmul.mubr.msk.bf16.gmra.mrb[80].mxu0 %vm2333_vm6, %v3333_v37  ;;  %v18163_v37 = vld [vmem:[#allocation17_spill] sm:$0xff] }
 0x3d3   : > { %12457 = vmatpush3.bf16.msra.mxu0 %v14062_v24  ;;  %12460 = vmatprep.mubr.msk.bf16.mxu0 %vm2333_vm6, %v15544_v0  ;;  %v3453_v0 = vpack.c.bf16 %v15578_v49, %v15578_v49  ;;  %v14070_v49 = vld [vmem:[%s18147_s5 + $0x170] sm:$0xff]   ;;  %v14087_v24 = vld [vmem:[%s18147_s5 + $0x1f8] sm:$0xff]  }
 0x3d4   : > { %12458 = vmatprep.subr.bf16.mxu0 %v14063_v28 }
 0x3d7   : > { %12459 = vmatpush3.bf16.msra.mxu0 %v14063_v28  ;;  %v4280_v28 = vshrl.u32 %v15748_v4, 16 }
 0x3d8   : > { %12468 = vmatprep.subr.bf16.mxu0 %v14064_v59 }
 0x3da   : > { %12461 = vmatmul.mubr.msk.bf16.vlgmr.msra.gmra.mrb[44].mxu0 %vm2333_vm6, %v15555_v34  ;;  %v14068_v34 = vld [vmem:[%s18147_s5 + $0x160] sm:$0xff]  }
 0x3db   : > { %12464 = vmatprep.mubr.msk.bf16.mxu0 %vm2333_vm6, %v15573_v17  ;;  %12469 = vmatpush3.bf16.msra.mxu0 %v14064_v59  ;;  %v14069_v17 = vld [vmem:[%s18147_s5 + $0x168] sm:$0xff]   ;;  %v4282_v59 = vor.u32 %v4280_v28, %v15764_v3 }
 0x3dc   : > { %12470 = vmatprep.subr.bf16.mxu0 %v14065_v40 }
 0x3df   : > { %12471 = vmatpush3.bf16.msra.mxu0 %v14065_v40 }
 0x3e0   : > { %12472 = vmatprep.subr.bf16.mxu0 %v14066_v45 }
 0x3e2   : > { %12465 = vmatmul.mubr.msk.bf16.gmra.mrb[84].mxu0 %vm2333_vm6, %v3453_v0 }
 0x3e3   : > { %12473 = vmatpush3.bf16.msra.mxu0 %v14066_v45  ;;  %12476 = vmatprep.mubr.msk.bf16.mxu0 %vm2333_vm6, %v15628_v56 }
 0x3e4   : > { %12474 = vmatprep.subr.bf16.mxu0 %v14067_v8 }
 0x3e7   : > { %12475 = vmatpush3.bf16.msra.mxu0 %v14067_v8 }
 0x3e8   : > { %12484 = vmatprep.subr.bf16.mxu0 %v14068_v34 }
 0x3ea   : > { %12477 = vmatmul.mubr.msk.bf16.vlgmr.msra.gmra.mrb[44].mxu0 %vm2333_vm6, %v15638_v15  ;;  %v14071_v15 = vld [vmem:[%s18147_s5 + $0x178] sm:$0xff]  }
 0x3eb   : > { %12480 = vmatprep.mubr.msk.bf16.mxu0 %vm2333_vm6, %v15656_v32  ;;  %12485 = vmatpush3.bf16.msra.mxu0 %v14068_v34  ;;  %v14072_v32 = vld [vmem:[%s18147_s5 + $0x180] sm:$0xff]  }
 0x3ec   : > { %12486 = vmatprep.subr.bf16.mxu0 %v14069_v17 }
 0x3ed   : > { %v12322_v56 = vpop.f32.mrb[48].mxu0 }
 0x3ee   : > { %v2396_v9 = vpop.f32.mrb[49].mxu0 }
 0x3ef   : > { %12487 = vmatpush3.bf16.msra.mxu0 %v14069_v17  ;;  %v12323_v2 = vpop.f32.mrb[50].mxu0 }
 0x3f0   : > { %12488 = vmatprep.subr.bf16.mxu0 %v14070_v49  ;;  %v2399_v35 = vpop.f32.mrb[51].mxu0 }
 0x3f2   : > { %12481 = vmatmul.mubr.msk.bf16.gmra.mrb[88].mxu0 %vm2333_vm6, %v3573_v43 }
 0x3f3   : > { %12489 = vmatpush3.bf16.msra.mxu0 %v14070_v49  ;;  %12492 = vmatprep.mubr.msk.bf16.mxu0 %vm2333_vm6, %v15692_v60  ;;  %v14074_v60 = vld [vmem:[%s18147_s5 + $0x190] sm:$0xff]  }
 0x3f4   : > { %12490 = vmatprep.subr.bf16.mxu0 %v14071_v15 }
 0x3f7   : > { %12491 = vmatpush3.bf16.msra.mxu0 %v14071_v15 }
 0x3f8   : > { %12500 = vmatprep.subr.bf16.mxu0 %v14072_v32 }
 0x3fa   : > { %12493 = vmatmul.mubr.msk.bf16.vlgmr.msra.gmra.mrb[44].mxu0 %vm2333_vm6, %v15703_v50  ;;  %v14075_v50 = vld [vmem:[%s18147_s5 + $0x198] sm:$0xff]  }
 0x3fb   : > { %12496 = vmatprep.mubr.msk.bf16.mxu0 %vm2333_vm6, %v15723_v31  ;;  %12501 = vmatpush3.bf16.msra.mxu0 %v14072_v32 }
 0x3fc   : > { %12502 = vmatprep.subr.bf16.mxu0 %v14073_v52 }
 0x3fd   : > { %v12338_v41 = vpop.f32.mrb[52].mxu0 }
 0x3fe   : > { %v2505_v12 = vadd.f32 %v12338_v41, %v12322_v56  ;;  %v2496_v25 = vpop.f32.mrb[53].mxu0 }
 0x3ff   : > { %v2497_v54 = vadd.f32 %v2496_v25, %v2396_v9  ;;  %v12339_v62 = vpop.f32.mrb[54].mxu0  ;;  %12503 = vmatpush3.bf16.msra.mxu0 %v14073_v52 }
 0x400   : > { %v2499_v36 = vpop.f32.mrb[55].mxu0  ;;  %12504 = vmatprep.subr.bf16.mxu0 %v14074_v60 }
 0x401   : > { %v2500_v31 = vadd.f32 %v2499_v36, %v2399_v35 }
 0x402   : > { %12497 = vmatmul.mubr.msk.bf16.gmra.mrb[92].mxu0 %vm2333_vm6, %v3693_v55 }
 0x403   : > { %12505 = vmatpush3.bf16.msra.mxu0 %v14074_v60  ;;  %12508 = vmatprep.mubr.msk.bf16.mxu0 %vm2333_vm6, %v15510_v20  ;;  %v3845_v20 = vshrl.u32 %v15529_v63, 16  ;;  %v14081_v63 = vld [vmem:[%s18147_s5 + $0x1c8] sm:$0xff]  }
 0x404   : > { %12506 = vmatprep.subr.bf16.mxu0 %v14075_v50 }
 0x405   : > { %v3847_v7 = vor.u32 %v3845_v20, %v15532_v42  ;;  %v18156_v42 = vld [vmem:[#allocation10_spill] sm:$0xff] }
 0x407   : > { %12507 = vmatpush3.bf16.msra.mxu0 %v14075_v50 }
 0x408   : > { %12516 = vmatprep.subr.bf16.mxu0 %v14076_v6 }
 0x40a   : > { %12509 = vmatmul.mubr.msk.bf16.vlgmr.msra.gmra.mrb[44].mxu0 %vm2333_vm6, %v15526_v22  ;;  %v14080_v22 = vld [vmem:[%s18147_s5 + $0x1c0] sm:$0xff]  }
 0x40b   : > { %12512 = vmatprep.mubr.msk.bf16.mxu0 %vm2333_vm6, %v15536_v5  ;;  %12517 = vmatpush3.bf16.msra.mxu0 %v14076_v6  ;;  %v3990_v5 = vshrl.u32 %v18156_v42, 16 }
 0x40c   : > { %12518 = vmatprep.subr.bf16.mxu0 %v14077_v18 }
 0x40d   : > { %v3992_v13 = vor.u32 %v3990_v5, %v18157_v48 }
 0x40f   : > { %12519 = vmatpush3.bf16.msra.mxu0 %v14077_v18 }
 0x410   : > { %12520 = vmatprep.subr.bf16.mxu0 %v14078_v39 }
 0x412   : > { %12513 = vmatmul.mubr.msk.bf16.gmra.mrb[96].mxu0 %vm2333_vm6, %v3847_v7 }
 0x413   : > { %12521 = vmatpush3.bf16.msra.mxu0 %v14078_v39  ;;  %12524 = vmatprep.mubr.msk.bf16.mxu0 %vm2333_vm6, %v15571_v47  ;;  %v14082_v47 = vld [vmem:[%s18147_s5 + $0x1d0] sm:$0xff]  }
 0x414   : > { %12522 = vmatprep.subr.bf16.mxu0 %v14079_v14 }
 0x417   : > { %12523 = vmatpush3.bf16.msra.mxu0 %v14079_v14 }
 0x418   : > { %12532 = vmatprep.subr.bf16.mxu0 %v14080_v22 }
 0x41a   : > { %12525 = vmatmul.mubr.msk.bf16.vlgmr.msra.gmra.mrb[44].mxu0 %vm2333_vm6, %v15592_v10  ;;  %v18158_v10 = vld [vmem:[#allocation12_spill] sm:$0xff] }
 0x41b   : > { %12528 = vmatprep.mubr.msk.bf16.mxu0 %vm2333_vm6, %v15616_v19  ;;  %12533 = vmatpush3.bf16.msra.mxu0 %v14080_v22  ;;  %v14084_v19 = vld [vmem:[%s18147_s5 + $0x1e0] sm:$0xff]   ;;  %s576_s5 = scalar_lea.vmem %s18167_s4, %s14775_s30  ;;  %s11750_s4 = sshll.u32 %s14738_s28, 4 }
 0x41c   : > { %12534 = vmatprep.subr.bf16.mxu0 %v14081_v63 }
 0x41f   : > { %12535 = vmatpush3.bf16.msra.mxu0 %v14081_v63 }
 0x420   : > { %12536 = vmatprep.subr.bf16.mxu0 %v14082_v47 }
 0x422   : > { %12529 = vmatmul.mubr.msk.bf16.gmra.mrb[100].mxu0 %vm2333_vm6, %v3992_v13 }
 0x423   : > { %12537 = vmatpush3.bf16.msra.mxu0 %v14082_v47  ;;  %12540 = vmatprep.mubr.msk.bf16.mxu0 %vm2333_vm6, %v18158_v10 }
 0x424   : > { %12538 = vmatprep.subr.bf16.mxu0 %v14083_v21 }
 0x425   : > { %v12354_v53 = vpop.f32.mrb[56].mxu0 }
 0x426   : > { %v2629_v33 = vadd.f32 %v12354_v53, %v2505_v12  ;;  %v2609_v26 = vpop.f32.mrb[57].mxu0 }
 0x427   : > { %v2627_v29 = vadd.f32 %v2609_v26, %v2497_v54  ;;  %v12355_v16 = vpop.f32.mrb[58].mxu0  ;;  %12539 = vmatpush3.bf16.msra.mxu0 %v14083_v21 }
 0x428   : > { %v2612_v11 = vpop.f32.mrb[59].mxu0  ;;  %12548 = vmatprep.subr.bf16.mxu0 %v14084_v19 }
 0x429   : > { %v2628_v38 = vadd.f32 %v2612_v11, %v2500_v31 }
 0x42a   : > { %12541 = vmatmul.mubr.msk.bf16.vlgmr.msra.gmra.mrb[44].mxu0 %vm2333_vm6, %v18159_v1 }
 0x42b   : > { %12544 = vmatprep.mubr.msk.bf16.mxu0 %vm2333_vm6, %v18160_v57  ;;  %12549 = vmatpush3.bf16.msra.mxu0 %v14084_v19 }
 0x42c   : > { %12550 = vmatprep.subr.bf16.mxu0 %v14085_v58 }
 0x42f   : > { %12551 = vmatpush3.bf16.msra.mxu0 %v14085_v58 }
 0x430   : > { %12552 = vmatprep.subr.bf16.mxu0 %v14086_v23 }
 0x432   : > { %12545 = vmatmul.mubr.msk.bf16.gmra.mrb[104].mxu0 %vm2333_vm6, %v4137_v30 }
 0x433   : > { %12553 = vmatpush3.bf16.msra.mxu0 %v14086_v23  ;;  %12556 = vmatprep.mubr.msk.bf16.mxu0 %vm2333_vm6, %v18163_v37 }
 0x434   : > { %12554 = vmatprep.subr.bf16.mxu0 %v14087_v24 }
 0x437   : > { %12555 = vmatpush3.bf16.msra.mxu0 %v14087_v24 }
 0x43a   : > { %12557 = vmatmul.mubr.msk.bf16.vlgmr.msra.gmra.mrb[44].mxu0 %vm2333_vm6, %v15745_v61 }
 0x43b   : > { %12560 = vmatprep.mubr.msk.bf16.mxu0 %vm2333_vm6, %v15771_v51 }
 0x442   : > { %12561 = vmatmul.mubr.msk.bf16.gmra.mrb[108].mxu0 %vm2333_vm6, %v4282_v59 }
 0x455   : > { %v12370_v40 = vpop.f32.mrb[60].mxu0 }
 0x456   : > { %v2749_v45 = vadd.f32 %v12370_v40, %v2629_v33  ;;  %v2729_v0 = vpop.f32.mrb[61].mxu0 }
 0x457   : > { %v2747_v8 = vadd.f32 %v2729_v0, %v2627_v29  ;;  %v12371_v34 = vpop.f32.mrb[62].mxu0 }
 0x458   : > { %v2732_v17 = vpop.f32.mrb[63].mxu0 }
 0x459   : > { %v2748_v49 = vadd.f32 %v2732_v17, %v2628_v38 }
 0x465   : > { %v12386_v56 = vpop.f32.mrb[64].mxu0 }
 0x466   : > { %v2894_v9 = vadd.f32 %v12386_v56, %v2749_v45  ;;  %v2874_v2 = vpop.f32.mrb[65].mxu0 }
 0x467   : > { %v2892_v61 = vadd.f32 %v2874_v2, %v2747_v8  ;;  %v12387_v43 = vpop.f32.mrb[66].mxu0 }
 0x468   : > { %v2877_v15 = vpop.f32.mrb[67].mxu0 }
 0x469   : > { %v2893_v51 = vadd.f32 %v2877_v15, %v2748_v49 }
 0x475   : > { %v12402_v35 = vpop.f32.mrb[68].mxu0 }
 0x476   : > { %v3039_v4 = vadd.f32 %v12402_v35, %v2894_v9  ;;  %v3019_v32 = vpop.f32.mrb[69].mxu0 }
 0x477   : > { %v3037_v3 = vadd.f32 %v3019_v32, %v2892_v61  ;;  %v12403_v52 = vpop.f32.mrb[70].mxu0 }
 0x478   : > { %v3022_v60 = vpop.f32.mrb[71].mxu0 }
 0x479   : > { %v3038_v41 = vadd.f32 %v3022_v60, %v2893_v51 }
 0x485   : > { %v12418_v12 = vpop.f32.mrb[72].mxu0 }
 0x486   : > { %v3184_v25 = vadd.f32 %v12418_v12, %v3039_v4  ;;  %v3164_v54 = vpop.f32.mrb[73].mxu0 }
 0x487   : > { %v3182_v62 = vadd.f32 %v3164_v54, %v3037_v3  ;;  %v12419_v55 = vpop.f32.mrb[74].mxu0 }
 0x488   : > { %v3167_v36 = vpop.f32.mrb[75].mxu0 }
 0x489   : > { %v3183_v50 = vadd.f32 %v3167_v36, %v3038_v41  ;;  %v10972_v41 = vld [vmem:[%s18164_s6] ss:$0 sm:$0xff]  ;;  %v10989_v36 = vld [vmem:[%s18165_s7 + $0xb8] sm:$0xff] }
 0x495   : > { %v12434_v31 = vpop.f32.mrb[76].mxu0 }
 0x496   : > { %v3329_v6 = vadd.f32 %v12434_v31, %v3184_v25  ;;  %v3309_v18 = vpop.f32.mrb[77].mxu0 }
 0x497   : > { %v3327_v20 = vadd.f32 %v3309_v18, %v3182_v62  ;;  %v12435_v39 = vpop.f32.mrb[78].mxu0 }
 0x498   : > { %v3312_v7 = vpop.f32.mrb[79].mxu0 }
 0x499   : > { %v3328_v14 = vadd.f32 %v3312_v7, %v3183_v50  ;;  %v10982_v50 = vld [vmem:[%s18165_s7 + $0x80] sm:$0xff] }
 0x4a5   : > { %v12450_v22 = vpop.f32.mrb[80].mxu0 }
 0x4a6   : > { %v3449_v63 = vadd.f32 %v12450_v22, %v3329_v6  ;;  %v3429_v42 = vpop.f32.mrb[81].mxu0  ;;  %v10987_v22 = vld [vmem:[%s18165_s7 + $0xa8] sm:$0xff] }
 0x4a7   : > { %v3447_v5 = vadd.f32 %v3429_v42, %v3327_v20  ;;  %v12451_v47 = vpop.f32.mrb[82].mxu0 }
 0x4a8   : > { %v3432_v48 = vpop.f32.mrb[83].mxu0 }
 0x4a9   : > { %v3448_v13 = vadd.f32 %v3432_v48, %v3328_v14  ;;  %v4416_v14 = vld [vmem:[%s18165_s7 + $0x10] sm:$0xff] }
 0x4b5   : > { %v12466_v21 = vpop.f32.mrb[84].mxu0 }
 0x4b6   : > { %v3569_v10 = vadd.f32 %v12466_v21, %v3449_v63  ;;  %v3549_v19 = vpop.f32.mrb[85].mxu0 }
 0x4b7   : > { %v3567_v53 = vadd.f32 %v3549_v19, %v3447_v5  ;;  %v12467_v33 = vpop.f32.mrb[86].mxu0 }
 0x4b8   : > { %v3552_v26 = vpop.f32.mrb[87].mxu0  ;;  %v10990_v33 = vld [vmem:[%s18165_s7 + $0xc0] sm:$0xff] }
 0x4b9   : > { %v3568_v29 = vadd.f32 %v3552_v26, %v3448_v13 }
 0x4c5   : > { %v12482_v16 = vpop.f32.mrb[88].mxu0 }
 0x4c6   : > { %v3689_v11 = vadd.f32 %v12482_v16, %v3569_v10  ;;  %v3669_v58 = vpop.f32.mrb[89].mxu0 }
 0x4c7   : > { %v3687_v38 = vadd.f32 %v3669_v58, %v3567_v53  ;;  %v12483_v1 = vpop.f32.mrb[90].mxu0  ;;  %v10980_v53 = vld [vmem:[%s18165_s7 + $0x70] sm:$0xff] }
 0x4c8   : > { %v3672_v57 = vpop.f32.mrb[91].mxu0  ;;  %v10988_v1 = vld [vmem:[%s18165_s7 + $0xb0] sm:$0xff] }
 0x4c9   : > { %v3688_v27 = vadd.f32 %v3672_v57, %v3568_v29 }
 0x4d5   : > { %v12498_v46 = vpop.f32.mrb[92].mxu0 }
 0x4d6   : > { %v3809_v23 = vadd.f32 %v12498_v46, %v3689_v11  ;;  %v3789_v44 = vpop.f32.mrb[93].mxu0  ;;  %v10973_v46 = vld [vmem:[%s18165_s7 + $0x38] sm:$0xff] }
 0x4d7   : > { %v3807_v30 = vadd.f32 %v3789_v44, %v3687_v38  ;;  %v12499_v24 = vpop.f32.mrb[94].mxu0  ;;  %v4414_v38 = vld [vmem:[%s18165_s7] sm:$0xff] }
 0x4d8   : > { %v3792_v37 = vpop.f32.mrb[95].mxu0 }
 0x4d9   : > { %v3808_v28 = vadd.f32 %v3792_v37, %v3688_v27  ;;  %v10983_v37 = vld [vmem:[%s18165_s7 + $0x88] sm:$0xff] }
 0x4e5   : > { %v12514_v59 = vpop.f32.mrb[96].mxu0 }
 0x4e6   : > { %v3954_v40 = vadd.f32 %v12514_v59, %v3809_v23  ;;  %v3934_v45 = vpop.f32.mrb[97].mxu0  ;;  %v4415_v23 = vld [vmem:[%s18165_s7 + $0x8] sm:$0xff] }
 0x4e7   : > { %v3952_v0 = vadd.f32 %v3934_v45, %v3807_v30  ;;  %v12515_v8 = vpop.f32.mrb[98].mxu0 }
 0x4e8   : > { %v3937_v34 = vpop.f32.mrb[99].mxu0  ;;  %v10981_v8 = vld [vmem:[%s18165_s7 + $0x78] sm:$0xff] }
 0x4e9   : > { %v3953_v17 = vadd.f32 %v3937_v34, %v3808_v28  ;;  %v10974_v28 = vld [vmem:[%s18165_s7 + $0x40] sm:$0xff]  ;;  %v10993_v34 = vld [vmem:[%s18165_s7 + $0xd8] sm:$0xff] }
 0x4f5   : > { %v12530_v49 = vpop.f32.mrb[100].mxu0 }
 0x4f6   : > { %v4099_v56 = vadd.f32 %v12530_v49, %v3954_v40  ;;  %v4079_v9 = vpop.f32.mrb[101].mxu0 }
 0x4f7   : > { %v4097_v2 = vadd.f32 %v4079_v9, %v3952_v0  ;;  %v12531_v61 = vpop.f32.mrb[102].mxu0 }
 0x4f8   : > { %v4082_v43 = vpop.f32.mrb[103].mxu0  ;;  %v10991_v61 = vld [vmem:[%s18165_s7 + $0xc8] sm:$0xff] }
 0x4f9   : > { %v4098_v15 = vadd.f32 %v4082_v43, %v3953_v17 }
 0x505   : > { %v12546_v51 = vpop.f32.mrb[104].mxu0 }
 0x506   : > { %v4244_v35 = vadd.f32 %v12546_v51, %v4099_v56  ;;  %v4224_v4 = vpop.f32.mrb[105].mxu0 }
 0x507   : > { %v4242_v32 = vadd.f32 %v4224_v4, %v4097_v2  ;;  %v12547_v3 = vpop.f32.mrb[106].mxu0  ;;  %v10986_v2 = vld [vmem:[%s18165_s7 + $0xa0] sm:$0xff]  ;;  %v10992_v4 = vld [vmem:[%s18165_s7 + $0xd0] sm:$0xff] }
 0x508   : > { %v4227_v52 = vpop.f32.mrb[107].mxu0 }
 0x509   : > { %v4243_v60 = vadd.f32 %v4227_v52, %v4098_v15  ;;  %v10975_v52 = vld [vmem:[%s18165_s7 + $0x48] sm:$0xff] }
 0x50d   : > { %v12558_v12 = vpop.f32.mrb[44].mxu0 }
 0x50e   : > { %v4399_v25 = vadd.f32 %v12558_v12, %v10972_v41  ;;  %v4353_v54 = vpop.f32.mrb[45].mxu0 }
 0x50f   : > { %v4397_v62 = vadd.f32 %v10972_v41, %v4353_v54  ;;  %v12559_v55 = vpop.f32.mrb[46].mxu0  ;;  %v4417_v54 = vld [vmem:[%s18165_s7 + $0x18] sm:$0xff] }
 0x510   : > { %v16008_v31 = vmax.f32 %v4399_v25, 0.0  ;;  %v4356_v6 = vpop.f32.mrb[47].mxu0  ;;  %v4400_v20 = vadd.f32 %v12559_v55, %v10972_v41  ;;  %v10976_v25 = vld [vmem:[%s18165_s7 + $0x50] sm:$0xff] }
 0x511   : > { %v4404_v18 = vmax.f32 %v4397_v62, 0.0  ;;  %v4398_v63 = vadd.f32 %v10972_v41, %v4356_v6 }
 0x512   : > { %v4549_v39 = vmul.f32 %v10989_v36, %v16008_v31  ;;  %v4508_v7 = vmul.f32 %v10982_v50, %v16008_v31  ;;  %v16018_v5 = vmax.f32 %v4400_v20, 0.0  ;;  %v4423_v13 = vmul.f32 %v4416_v14, %v16008_v31  ;;  %v10977_v36 = vld [vmem:[%s18165_s7 + $0x58] sm:$0xff]  ;;  %v4418_v50 = vld [vmem:[%s18165_s7 + $0x20] sm:$0xff]  ;;  %v10979_v14 = vld [vmem:[%s18165_s7 + $0x68] sm:$0xff] }
 0x513   : > { %v4547_v21 = vmul.f32 %v10987_v22, %v4404_v18  ;;  %v4405_v16 = vmax.f32 %v4398_v63, 0.0  ;;  %v4506_v11 = vmul.f32 %v10980_v53, %v4404_v18  ;;  %v4421_v57 = vmul.f32 %v4414_v38, %v4404_v18  ;;  %v10978_v20 = vld [vmem:[%s18165_s7 + $0x60] sm:$0xff]  ;;  %v4419_v22 = vld [vmem:[%s18165_s7 + $0x28] sm:$0xff] }
 0x514   : > { %4558 = vadd.xlane.f32.xlu1 %v4549_v39  ;;  %4517 = vadd.xlane.f32.xlu0 %v4508_v7  ;;  %v4550_v58 = vmul.f32 %v10990_v33, %v16018_v5  ;;  %v4462_v30 = vmul.f32 %v10973_v46, %v4404_v18  ;;  %v4509_v45 = vmul.f32 %v10983_v37, %v16018_v5  ;;  %v4420_v18 = vld [vmem:[%s18165_s7 + $0x30] sm:$0xff] }
 0x515   : > { %v12562_v42 = vpop.f32.mrb[108].mxu0  ;;  %v4548_v27 = vmul.f32 %v10988_v1, %v4405_v16  ;;  %v4422_v24 = vmul.f32 %v4415_v23, %v4405_v16  ;;  %v4463_v0 = vmul.f32 %v10974_v28, %v4405_v16  ;;  %v4507_v56 = vmul.f32 %v10981_v8, %v4405_v16 }
 0x516   : > { %v4389_v47 = vadd.f32 %v12562_v42, %v4244_v35  ;;  %v4369_v48 = vpop.f32.mrb[109].mxu0  ;;  %v10984_v35 = vld [vmem:[%s18165_s7 + $0x90] sm:$0xff]  ;;  %v4465_v62 = vmul.f32 %v10976_v25, %v16018_v5  ;;  %v4424_v55 = vmul.f32 %v4417_v54, %v16018_v5  ;;  %v4411_v5 = vlaneseq }
 0x517   : > { %v4387_v10 = vadd.f32 %v4369_v48, %v4242_v32  ;;  %v12563_v19 = vpop.f32.mrb[110].mxu0 }
 0x518   : > { %4432 = vadd.xlane.f32.xlu0 %v4423_v13  ;;  %4554 = vadd.xlane.f32.xlu1 %v4547_v21  ;;  %v4372_v26 = vpop.f32.mrb[111].mxu0  ;;  %v4403_v44 = vadd.f32 %v10972_v41, %v4389_v47  ;;  %v16098_v47 = vshrl.u32 %v4411_v5, 7  ;;  %v16104_v13 = vld [vmem:[%s18166_s8] sm:$0x1] }
 0x519   : > { %v4388_v29 = vadd.f32 %v4372_v26, %v4243_v60  ;;  %v4401_v40 = vadd.f32 %v10972_v41, %v4387_v10  ;;  %v10985_v60 = vld [vmem:[%s18165_s7 + $0x98] sm:$0xff]  ;;  %s10417_s7 = scalar_lea.sflag [#allocation3], %s16110_s22 }
 0x51a   : > { %v4410_v59 = vmax.f32 %v4403_v44, 0.0  ;;  %v4584_v48 = vsub.s32 0, %v16098_v47 }
 0x51b   : > { %v4408_v17 = vmax.f32 %v4401_v40, 0.0  ;;  %v4402_v49 = vadd.f32 %v10972_v41, %v4388_v29  ;;  %v4464_v41 = vmul.f32 %v10975_v52, %v16008_v31 }
 0x51c   : > { %4513 = vadd.xlane.f32.xlu0 %v4506_v11  ;;  %4560 = vadd.xlane.f32.xlu1 %v4550_v58  ;;  %v4553_v9 = vmul.f32 %v10993_v34, %v4410_v59  ;;  %v4512_v15 = vmul.f32 %v10986_v2, %v4410_v59  ;;  %v4427_v39 = vmul.f32 %v4420_v18, %v4410_v59 }
 0x51d   : > { %v4409_v43 = vmax.f32 %v4402_v49, 0.0  ;;  %v4551_v51 = vmul.f32 %v10991_v61, %v4408_v17  ;;  %v4510_v32 = vmul.f32 %v10984_v35, %v4408_v17  ;;  %v4466_v31 = vmul.f32 %v10977_v36, %v4408_v17 }
 0x51e   : > { %v4425_v6 = vmul.f32 %v4418_v50, %v4408_v17  ;;  %v4468_v63 = vmul.f32 %v10979_v14, %v4410_v59  ;;  %v4585_v21 = vrot.slane %v16104_v13, %v4584_v48 }
 0x51f   : > { %v4552_v3 = vmul.f32 %v10992_v4, %v4409_v43  ;;  %v4511_v12 = vmul.f32 %v10985_v60, %v4409_v43  ;;  %v4467_v7 = vmul.f32 %v10978_v20, %v4409_v43  ;;  %v4426_v42 = vmul.f32 %v4419_v22, %v4409_v43 }
 0x520   : > { %4428 = vadd.xlane.f32.xlu0 %v4421_v57  ;;  %4556 = vadd.xlane.f32.xlu1 %v4548_v27 }
 0x524   : > { %4469 = vadd.xlane.f32.xlu0 %v4462_v30  ;;  %4430 = vadd.xlane.f32.xlu1 %v4422_v24 }
 0x528   : > { %4519 = vadd.xlane.f32.xlu0 %v4509_v45  ;;  %4471 = vadd.xlane.f32.xlu1 %v4463_v0 }
 0x52c   : > { %4515 = vadd.xlane.f32.xlu0 %v4507_v56  ;;  %4566 = vadd.xlane.f32.xlu1 %v4553_v9 }
 0x530   : > { %4525 = vadd.xlane.f32.xlu0 %v4512_v15  ;;  %4562 = vadd.xlane.f32.xlu1 %v4551_v51 }
 0x534   : > { %4521 = vadd.xlane.f32.xlu0 %v4510_v32  ;;  %4564 = vadd.xlane.f32.xlu1 %v4552_v3 }
 0x538   : > { %4473 = vadd.xlane.f32.xlu1 %v4464_v41  ;;  %4523 = vadd.xlane.f32.xlu0 %v4511_v12 }
 0x53c   : > { %4475 = vadd.xlane.f32.xlu1 %v4465_v62  ;;  %4434 = vadd.xlane.f32.xlu0 %v4424_v55 }
 0x540   : > { %4477 = vadd.xlane.f32.xlu1 %v4466_v31  ;;  %4436 = vadd.xlane.f32.xlu0 %v4425_v6 }
 0x544   : > { %4440 = vadd.xlane.f32.xlu0 %v4427_v39  ;;  %4479 = vadd.xlane.f32.xlu1 %v4467_v7  ;;  %v4412_v39 = vand.u32 127, %v4411_v5 }
 0x546   : > { %vm4413_vm7 = vcmp.eq.s32.totalorder %v4412_v39, 0  ;;  %v4607_v39 = vld [vmem:[%s18168_s9 + $0x40] sm:$0xff] }
 0x548   : > { %4481 = vadd.xlane.f32.xlu1 %v4468_v63  ;;  %4438 = vadd.xlane.f32.xlu0 %v4426_v42 }
 0x55e   : > { %4586 = vrot.lane.b32.xlu0 %v4585_v21, %s14620_s21 }
 0x5a1   : > { %v4559_v10 = vpop.xlane.xlu1 %4558  ;;  %v4518_v19 = vpop.xlane.xlu0 %4517 }
 0x5a5   : > { %v4433_v53 = vpop.xlane.xlu0 %4432  ;;  %v4555_v33 = vpop.xlane.xlu1 %4554 }
 0x5a9   : > { %v4514_v26 = vpop.xlane.xlu0 %4513  ;;  %v4561_v29 = vpop.xlane.xlu1 %4560 }
 0x5ad   : > { %v4429_v16 = vpop.xlane.xlu0 %4428  ;;  %v4557_v11 = vpop.xlane.xlu1 %4556 }
 0x5ae   : > { %v4568_v27 = vadd.f32 %v4557_v11, %v4555_v33 }
 0x5b0   : > { %v4569_v44 = vadd.f32 %v4568_v27, %v4559_v10 }
 0x5b1   : > { %v4470_v58 = vpop.xlane.xlu0 %4469  ;;  %v4431_v38 = vpop.xlane.xlu1 %4430 }
 0x5b2   : > { %v4570_v59 = vadd.f32 %v4569_v44, %v4561_v29  ;;  %v4442_v3 = vadd.f32 %v4431_v38, %v4429_v16 }
 0x5b4   : > { %v4443_v50 = vadd.f32 %v4442_v3, %v4433_v53  ;;  %v14108_v3 = vld [vmem:[%s18101_s10 + $0xe4] ss:$8 sps:$4 sm:$0xff]  }
 0x5b5   : > { %v4520_v1 = vpop.xlane.xlu0 %4519  ;;  %v4472_v57 = vpop.xlane.xlu1 %4471 }
 0x5b6   : > { %v4483_v52 = vadd.f32 %v4472_v57, %v4470_v58 }
 0x5b9   : > { %v4516_v46 = vpop.xlane.xlu0 %4515  ;;  %v4567_v23 = vpop.xlane.xlu1 %4566 }
 0x5ba   : > { %v4527_v30 = vadd.f32 %v4516_v46, %v4514_v26 }
 0x5bc   : > { %v4528_v28 = vadd.f32 %v4527_v30, %v4518_v19 }
 0x5bd   : > { %v4526_v24 = vpop.xlane.xlu0 %4525  ;;  %v4563_v37 = vpop.xlane.xlu1 %4562 }
 0x5be   : > { %v4571_v40 = vadd.f32 %v4570_v59, %v4563_v37  ;;  %v4529_v8 = vadd.f32 %v4528_v28, %v4520_v1  ;;  %v14088_v28 = vld [vmem:[%s18101_s10 + $0x80] ss:$8 sps:$4 sm:$0xff]   ;;  %v14090_v59 = vld [vmem:[%s18101_s10 + $0x84] ss:$8 sps:$4 sm:$0xff]  }
 0x5bf   : > { %4845 = vmatprep.subr.bf16.mxu1 %v14090_v59  ;;  %v11006_v59 = vld [vmem:[%s18168_s9 + $0xb8] sm:$0xff] }
 0x5c0   : > { %4846 = vmatpush1.bf16.msra.mxu1 %v14088_v28  ;;  %v11005_v28 = vld [vmem:[%s18168_s9 + $0xb0] sm:$0xff] }
 0x5c1   : > { %v4522_v45 = vpop.xlane.xlu0 %4521  ;;  %v4565_v0 = vpop.xlane.xlu1 %4564 }
 0x5c2   : > { %v4572_v34 = vadd.f32 %v4571_v40, %v4565_v0  ;;  %v4530_v17 = vadd.f32 %v4529_v8, %v4522_v45  ;;  %v14093_v40 = vld [vmem:[%s18101_s10 + $0x94] ss:$8 sps:$4 sm:$0xff]   ;;  %v14091_v8 = vld [vmem:[%s18101_s10 + $0x90] ss:$8 sps:$4 sm:$0xff]  }
 0x5c3   : > { %4847 = vmatprep.subr.bf16.mxu1 %v14093_v40  ;;  %v11007_v40 = vld [vmem:[%s18168_s9 + $0xc0] sm:$0xff] }
 0x5c4   : > { %v4573_v49 = vadd.f32 %v4572_v34, %v4567_v23  ;;  %4848 = vmatpush1.bf16.msra.mxu1 %v14091_v8 }
 0x5c5   : > { %v4474_v56 = vpop.xlane.xlu1 %4473  ;;  %v4524_v9 = vpop.xlane.xlu0 %4523 }
 0x5c6   : > { %v4574_v2 = vrot.slane %v4573_v49, 4  ;;  %v4531_v61 = vadd.f32 %v4530_v17, %v4524_v9  ;;  %v4484_v25 = vadd.f32 %v4483_v52, %v4474_v56  ;;  %v14096_v17 = vld [vmem:[%s18101_s10 + $0xa4] ss:$8 sps:$4 sm:$0xff]   ;;  %v4593_v56 = vld [vmem:[%s576_s5] sm:$0x1] }
 0x5c7   : > { %v14094_v9 = vld [vmem:[%s18101_s10 + $0xa0] ss:$8 sps:$4 sm:$0xff]   ;;  %4849 = vmatprep.subr.bf16.mxu1 %v14096_v17 }
 0x5c8   : > { %v4575_v43 = vadd.f32 %v4574_v2, %v4573_v49  ;;  %v4532_v15 = vadd.f32 %v4531_v61, %v4526_v24  ;;  %v14099_v61 = vld [vmem:[%s18101_s10 + $0xb4] ss:$8 sps:$4 sm:$0xff]   ;;  %4850 = vmatpush1.bf16.msra.mxu1 %v14094_v9  ;;  %v14106_v52 = vld [vmem:[%s18101_s10 + $0xe0] ss:$8 sps:$4 sm:$0xff]  }
 0x5c9   : > { %v4476_v51 = vpop.xlane.xlu1 %4475  ;;  %v4435_v35 = vpop.xlane.xlu0 %4434  ;;  %4851 = vmatprep.subr.bf16.mxu1 %v14099_v61 }
 0x5ca   : > { %v4533_v4 = vrot.slane %v4532_v15, 4  ;;  %v4576_v32 = vrot.slane %v4575_v43, 2  ;;  %v4485_v36 = vadd.f32 %v4484_v25, %v4476_v51  ;;  %v4444_v18 = vadd.f32 %v4443_v50, %v4435_v35  ;;  %v14100_v51 = vld [vmem:[%s18101_s10 + $0xc0] ss:$8 sps:$4 sm:$0xff]   ;;  %v14102_v35 = vld [vmem:[%s18101_s10 + $0xc4] ss:$8 sps:$4 sm:$0xff]  }
 0x5cc   : > { %v4534_v60 = vadd.f32 %v4533_v4, %v4532_v15  ;;  %v4577_v62 = vadd.f32 %v4576_v32, %v4575_v43  ;;  %v14105_v4 = vld [vmem:[%s18101_s10 + $0xd4] ss:$8 sps:$4 sm:$0xff]   ;;  %v14103_v32 = vld [vmem:[%s18101_s10 + $0xd0] ss:$8 sps:$4 sm:$0xff]  }
 0x5cd   : > { %v4478_v41 = vpop.xlane.xlu1 %4477  ;;  %v4437_v12 = vpop.xlane.xlu0 %4436 }
 0x5ce   : > { %v4535_v54 = vrot.slane %v4534_v60, 2  ;;  %v4486_v20 = vadd.f32 %v4485_v36, %v4478_v41  ;;  %v4578_v14 = vrot.slane %v4577_v62, 1  ;;  %v4445_v22 = vadd.f32 %v4444_v18, %v4437_v12  ;;  %v14109_v41 = vld [vmem:[%s18101_s10 + $0xf0] ss:$8 sps:$4 sm:$0xff]   ;;  %v14114_v12 = vld [vmem:[%s18101_s10 + $0x4] ss:$8 sps:$4 sm:$0xff]  }
 0x5cf   : > { %v4602_v36 = vld [vmem:[%s18168_s9 + $0x18] sm:$0xff]  ;;  %v4605_v18 = vld [vmem:[%s18168_s9 + $0x30] sm:$0xff] }
 0x5d0   : > { %v4536_v55 = vadd.f32 %v4535_v54, %v4534_v60  ;;  %v4579_v53 = vadd.f32 %v4578_v14, %v4577_v62  ;;  %v14111_v60 = vld [vmem:[%s18101_s10 + $0xf4] ss:$8 sps:$4 sm:$0xff]   ;;  %v4599_v54 = vld [vmem:[%s18168_s9] sm:$0xff]  ;;  %v4600_v62 = vld [vmem:[%s18168_s9 + $0x8] sm:$0xff] }
 0x5d1   : > { %v4441_v31 = vpop.xlane.xlu0 %4440  ;;  %v4480_v6 = vpop.xlane.xlu1 %4479  ;;  %v10996_v14 = vld [vmem:[%s18168_s9 + $0x68] sm:$0xff] }
 0x5d2   : > { %v4537_v7 = vrot.slane %v4536_v55, 1  ;;  %v4487_v63 = vadd.f32 %v4486_v20, %v4480_v6  ;;  %v4604_v6 = vld [vmem:[%s18168_s9 + $0x28] sm:$0xff]  ;;  %v4606_v20 = vld [vmem:[%s18168_s9 + $0x38] sm:$0xff] }
 0x5d4   : > { %v4538_v10 = vadd.f32 %v4537_v7, %v4536_v55  ;;  %v4601_v55 = vld [vmem:[%s18168_s9 + $0x10] sm:$0xff]  ;;  %v4608_v7 = vld [vmem:[%s18168_s9 + $0x48] sm:$0xff] }
 0x5d5   : > { %v4482_v42 = vpop.xlane.xlu1 %4481  ;;  %v4439_v21 = vpop.xlane.xlu0 %4438 }
 0x5d6   : > { %v4488_v19 = vadd.f32 %v4487_v63, %v4482_v42  ;;  %v4446_v33 = vadd.f32 %v4445_v22, %v4439_v21  ;;  %v4580_v16 = vsel %vm4413_vm7, %v4538_v10, %v4579_v53  ;;  %v10997_v22 = vld [vmem:[%s18168_s9 + $0x70] sm:$0xff]  ;;  %v10995_v53 = vld [vmem:[%s18168_s9 + $0x60] sm:$0xff] }
 0x5d7   : > { %v4609_v63 = vld [vmem:[%s18168_s9 + $0x50] sm:$0xff] }
 0x5d8   : > { %v4489_v26 = vrot.slane %v4488_v19, 4  ;;  %v4447_v29 = vadd.f32 %v4446_v33, %v4441_v31  ;;  %v4603_v31 = vld [vmem:[%s18168_s9 + $0x20] sm:$0xff]  ;;  %v10994_v33 = vld [vmem:[%s18168_s9 + $0x58] sm:$0xff] }
 0x5d9   : > { %v4587_v5 = vpop.permute.xlu0 %4586 }
 0x5da   : > { %v4490_v11 = vadd.f32 %v4489_v26, %v4488_v19  ;;  %v4448_v58 = vrot.slane %v4447_v29, 4  ;;  %v4589_v38 = vadd.f32 %v4587_v5, %v4580_v16  ;;  %v10998_v26 = vld [vmem:[%s18168_s9 + $0x78] sm:$0xff]  ;;  %v10999_v5 = vld [vmem:[%s18168_s9 + $0x80] sm:$0xff] }
 0x5dc   : > { %v4491_v1 = vrot.slane %v4490_v11, 2  ;;  %v4449_v57 = vadd.f32 %v4448_v58, %v4447_v29  ;;  %v4594_v27 = vmul.f32 0.5, %v4589_v38  ;;  %4592 = vst.msk [vmem:[%s18120_s26] sm:$0x1] %vm4590_vm8, %v4589_v38  ;;  %v11000_v38 = vld [vmem:[%s18168_s9 + $0x88] sm:$0xff]  ;;  %s17930_s26 = scalar_lea.hbm %s18106_s15, %s11750_s4 }
 0x5de   : > { %v4492_v46 = vadd.f32 %v4491_v1, %v4490_v11  ;;  %v4450_v23 = vrot.slane %v4449_v57, 2  ;;  %v4595_v44 = vmul.f32 1.442695, %v4594_v27  ;;  %v11001_v1 = vld [vmem:[%s18168_s9 + $0x90] sm:$0xff] }
 0x5e0   : > { %v4493_v30 = vrot.slane %v4492_v46, 1  ;;  %v4451_v24 = vadd.f32 %v4450_v23, %v4449_v57  ;;  %14408 = vpow2.f32 %v4595_v44 }
 0x5e2   : > { %v4452_v37 = vrot.slane %v4451_v24, 1  ;;  %v4494_v45 = vadd.f32 %v4493_v30, %v4492_v46 }
 0x5e4   : > { %v4453_v0 = vadd.f32 %v4452_v37, %v4451_v24 }
 0x5e6   : > { %v4495_v34 = vsel %vm4413_vm7, %v4453_v0, %v4494_v45  ;;  %v11008_v45 = vld [vmem:[%s18168_s9 + $0xc8] sm:$0xff] }
 0x5e7   : > { %v4497_v49 = vadd.f32 %v16104_v13, %v4495_v34  ;;  %v14097_v13 = vld [vmem:[%s18101_s10 + $0xb0] ss:$8 sps:$4 sm:$0xff]  }
 0x5e8   : > { %4852 = vmatpush1.bf16.msra.mxu1 %v14097_v13  ;;  %v11009_v34 = vld [vmem:[%s18168_s9 + $0xd0] sm:$0xff]  ;;  %v11012_v13 = vld [vmem:[%s18168_s9 + $0xe8] sm:$0xff] }
 0x5e9   : > { %4591 = vst.msk [vmem:[%s18121_s3] sm:$0x1] %vm4590_vm8, %v4497_v49  ;;  %4853 = vmatprep.subr.bf16.mxu1 %v14102_v35 }
 0x5ea   : > { %v14409_v2 = vpop.eup %14408 }
 0x5eb   : > { %v4597_v43 = vmul.f32 %v14409_v2, %v4593_v56 }
 0x5ec   : > { %4854 = vmatpush1.bf16.msra.mxu1 %v14100_v51 }
 0x5ed   : > { %v4598_v15 = vadd.f32 %v4597_v43, %v4497_v49  ;;  %4855 = vmatprep.subr.bf16.mxu1 %v14105_v4  ;;  %v11010_v43 = vld [vmem:[%s18168_s9 + $0xd8] sm:$0xff] }
 0x5ef   : > { %4637 = vrot.lane.b32.xlu1 %v4598_v15, %s14621_s23  ;;  %13914 = vpush %v4598_v15  ;;  %v11011_v15 = vld [vmem:[%s18168_s9 + $0xe0] sm:$0xff]  ;;  %s14623_s23 = smov 64  }
 0x5f0   : > { %4856 = vmatpush1.bf16.msra.mxu1 %v14103_v32 }
 0x5f1   : > { %4857 = vmatprep.subr.bf16.mxu1 %v14108_v3  ;;  %v11002_v3 = vld [vmem:[%s18168_s9 + $0x98] sm:$0xff] }
 0x5f4   : > { %4858 = vmatpush1.bf16.msra.mxu1 %v14106_v52 }
 0x5f5   : > { %4859 = vmatprep.subr.bf16.mxu1 %v14111_v60 }
 0x5f8   : > { %4860 = vmatpush1.bf16.msra.mxu1 %v14109_v41 }
 0x5f9   : > { %4998 = vmatprep.subr.bf16.mxu1 %v14114_v12 }
 0x620   : > { %s13915_s5 = spop %13914 }
 0x621   : > { %v4612_v50 = vstv %s13915_s5 }
 0x622   : > { %v4614_v42 = vmul.f32 %v4612_v50, %v4599_v54  ;;  %v4615_v21 = vmul.f32 %v4612_v50, %v4600_v62  ;;  %v4616_v10 = vmul.f32 %v4612_v50, %v4601_v55  ;;  %v4617_v19 = vmul.f32 %v4612_v50, %v4602_v36 }
 0x623   : > { %v4618_v29 = vmul.f32 %v4612_v50, %v4603_v31  ;;  %v4619_v16 = vmul.f32 %v4612_v50, %v4604_v6  ;;  %v4620_v11 = vmul.f32 %v4612_v50, %v4605_v18  ;;  %v4621_v58 = vmul.f32 %v4612_v50, %v4606_v20 }
 0x624   : > { %v4622_v27 = vmul.f32 %v4612_v50, %v4607_v39  ;;  %v16237_v46 = vmul.f32 %v4612_v50, %v4608_v7  ;;  %v16239_v23 = vmul.f32 %v4612_v50, %v4609_v63 }
 0x661   : > { %v4638_v25 = vpop.permute.xlu1 %4637 }
 0x662   : > { %13916 = vpush %v4638_v25 }
 0x693   : > { %s13917_s19 = spop %13916 }
 0x694   : > { %v16235_v57 = vstv %s13917_s19  ;;  %s18170_s19 = scalar_lea.vmem [#allocation2], %s16110_s22 }
 0x695   : > { %v4644_v44 = vmul.f32 %v10996_v14, %v16235_v57  ;;  %v4645_v30 = vmul.f32 %v10997_v22, %v16235_v57  ;;  %v4642_v24 = vmul.f32 %v10994_v33, %v16235_v57  ;;  %v4643_v37 = vmul.f32 %v10995_v53, %v16235_v57  ;;  %v11013_v53 = vld [vmem:[%s18168_s9 + $0xf0] sm:$0xff]  ;;  %s10438_s3 = sshll.u32 %s18170_s19, 4  ;;  %s10439_s3 = int_to_ptr.vmem [resolvable:$true] %s10438_s3 }
 0x696   : > { %v4646_v0 = vmul.f32 %v10998_v26, %v16235_v57  ;;  %v4647_v8 = vmul.f32 %v10999_v5, %v16235_v57  ;;  %v4648_v17 = vmul.f32 %v11000_v38, %v16235_v57  ;;  %v4649_v49 = vmul.f32 %v11001_v1, %v16235_v57  ;;  %p14530_p0 = scmp.lt.s32.totalorder %s10439_s3, %s14528_s2 }
 0x697   : > { %v4653_v56 = vadd.f32 %v4642_v24, %v4614_v42  ;;  %v4654_v9 = vadd.f32 %v4643_v37, %v4615_v21  ;;  %v4655_v2 = vadd.f32 %v4644_v44, %v4616_v10  ;;  %v4656_v61 = vadd.f32 %v4645_v30, %v4617_v19  ;;  %v14112_v44 = vld [vmem:[%s18101_s10] ss:$8 sps:$4 sm:$0xff]  }
 0x698   : > { %v4657_v51 = vadd.f32 %v4646_v0, %v4618_v29  ;;  %v4658_v35 = vadd.f32 %v4647_v8, %v4619_v16  ;;  %v4659_v4 = vadd.f32 %v4648_v17, %v4620_v11  ;;  %v4660_v32 = vadd.f32 %v4649_v49, %v4621_v58 }
 0x699   : > { %v4676_v52 = vadd.f32 %v11005_v28, %v4653_v56  ;;  %v4677_v60 = vadd.f32 %v11006_v59, %v4654_v9  ;;  %v4678_v41 = vadd.f32 %v11007_v40, %v4655_v2  ;;  %v4679_v12 = vadd.f32 %v11008_v45, %v4656_v61  ;;  %v14117_v28 = vld [vmem:[%s18101_s10 + $0x14] ss:$8 sps:$4 sm:$0xff]  }
 0x69a   : > { %v4680_v25 = vadd.f32 %v11009_v34, %v4657_v51  ;;  %v4681_v54 = vadd.f32 %v11010_v43, %v4658_v35  ;;  %v4682_v62 = vadd.f32 %v11011_v15, %v4659_v4  ;;  %v4683_v55 = vadd.f32 %v11012_v13, %v4660_v32  ;;  %v14115_v43 = vld [vmem:[%s18101_s10 + $0x10] ss:$8 sps:$4 sm:$0xff]   ;;  %v14120_v32 = vld [vmem:[%s18101_s10 + $0x24] ss:$8 sps:$4 sm:$0xff]  }
 0x69b   : > { %v16276_v36 = vpack.c.bf16 %v4677_v60, %v4676_v52  ;;  %v16278_v50 = vpack.c.bf16 %v4679_v12, %v4678_v41  ;;  %v4650_v31 = vmul.f32 %v11002_v3, %v16235_v57  ;;  %v16281_v6 = vpack.c.bf16 %v4678_v41, %v4677_v60 }
 0x69c   : > { %v16283_v18 = vpack.c.bf16 %v4681_v54, %v4680_v25  ;;  %v16285_v20 = vpack.c.bf16 %v4683_v55, %v4682_v62  ;;  %v16287_v39 = vpack.c.bf16 %v4680_v25, %v4679_v12  ;;  %v16289_v7 = vpack.c.bf16 %v4682_v62, %v4681_v54  ;;  %v11003_v12 = vld [vmem:[%s18168_s9 + $0xa0] sm:$0xff] }
 0x69d   : > { %v4726_v14 = vshrl.u32 %v16276_v36, 16  ;;  %v4728_v22 = vshll.u32 %v16276_v36, 16  ;;  %v4733_v63 = vshll.u32 %v16278_v50, 16  ;;  %v4737_v42 = vshrl.u32 %v16278_v50, 16 }
 0x69e   : > { %v4741_v21 = vshll.u32 %v16283_v18, 16  ;;  %v4745_v10 = vshrl.u32 %v16283_v18, 16  ;;  %v4749_v19 = vshll.u32 %v16285_v20, 16  ;;  %v4661_v33 = vadd.f32 %v4650_v31, %v4622_v27 }
 0x69f   : > { %v4730_v26 = vrot.slane %v4728_v22, 1  ;;  %v4735_v29 = vrot.slane %v4733_v63, 1  ;;  %v16303_v16 = vrot.slane %v4737_v42, 1  ;;  %v4753_v5 = vshrl.u32 %v16285_v20, 16 }
 0x6a0   : > { %v4743_v11 = vrot.slane %v4741_v21, 1  ;;  %v16306_v58 = vrot.slane %v4741_v21, 2  ;;  %v4751_v38 = vrot.slane %v4749_v19, 1  ;;  %v16310_v1 = vrot.slane %v4745_v10, 1 }
 0x6a1   : > { %v4731_v27 = vor.u32 %v4730_v26, %v4726_v14  ;;  %v4739_v30 = vor.u32 %v4737_v42, %v4735_v29  ;;  %v16315_v24 = vadd.f32 %v11013_v53, %v4661_v33  ;;  %v5094_v37 = vrot.slane %v16276_v36, 1 }
 0x6a2   : > { %v4747_v59 = vor.u32 %v4745_v10, %v4743_v11  ;;  %v4755_v40 = vor.u32 %v4753_v5, %v4751_v38  ;;  %v5095_v45 = vrot.slane %v16278_v50, 1  ;;  %v5097_v0 = vrot.slane %v16283_v18, 1 }
 0x6a3   : > { %v4736_v8 = vsel %vm630_vm1, %v4731_v27, %v4735_v29  ;;  %v4744_v34 = vsel %vm630_vm1, %v4739_v30, %v4743_v11  ;;  %v4707_v17 = vpack.c.bf16 %v16315_v24, %v16315_v24  ;;  %v16330_v49 = vrot.slane %v16285_v20, 1  ;;  %v14123_v29 = vld [vmem:[%s18101_s10 + $0x34] ss:$8 sps:$4 sm:$0xff]  }
 0x6a4   : > { %4878 = vmatmul.mubr.bf16.vlgmr.msra.gmra.mrb[76].mxu1 %v4736_v8  ;;  %v16333_v56 = vsel %vm630_vm1, %v4747_v59, %v4751_v38  ;;  %v16336_v9 = vsel %vm5093_vm9, %v5094_v37, %v5095_v45  ;;  %v16339_v2 = vsel %vm5093_vm9, %v5095_v45, %v5097_v0  ;;  %v5299_v61 = vshrl.u32 %v16281_v6, 16 }
 0x6a5   : > { %4999 = vmatpush1.bf16.msra.mxu1 %v14112_v44  ;;  %v18169_v15 = vmov 0   ;;  %v4757_v13 = vshll.u32 %v4707_v17, 16  ;;  %v16348_v51 = vsel %vm5093_vm9, %v5097_v0, %v16330_v49  ;;  %v5101_v35 = vrot.slane %v4707_v17, 1  ;;  %v11014_v44 = vld [vmem:[%s18168_s9 + $0xf8] sm:$0xff] }
 0x6a6   : > { %4887 = vmatprep.mubr.bf16.mxu1 %v18169_v15  ;;  %v5301_v4 = vshll.u32 %v16281_v6, 16  ;;  %5000 = vmatprep.subr.bf16.mxu1 %v14117_v28  ;;  %v5306_v3 = vshll.u32 %v16287_v39, 16  ;;  %v5310_v52 = vshrl.u32 %v16287_v39, 16  ;;  %v5314_v60 = vshll.u32 %v16289_v7, 16 }
 0x6a7   : > { %v16358_v41 = vpack.c.bf16 %v16315_v24, %v4683_v55  ;;  %v4759_v25 = vrot.slane %v4757_v13, 1  ;;  %v16365_v54 = vsel %vm5093_vm9, %v16330_v49, %v5101_v35  ;;  %v5318_v31 = vshrl.u32 %v16289_v7, 16  ;;  %v14118_v55 = vld [vmem:[%s18101_s10 + $0x20] ss:$8 sps:$4 sm:$0xff]   ;;  %v14126_v13 = vld [vmem:[%s18101_s10 + $0x44] ss:$8 sps:$4 sm:$0xff]  }
 0x6a8   : > { %v5303_v62 = vrot.slane %v5301_v4, 1  ;;  %v5308_v14 = vrot.slane %v5306_v3, 1  ;;  %v5316_v22 = vrot.slane %v5314_v60, 1  ;;  %v5732_v42 = vrot.slane %v5310_v52, 1 }
 0x6a9   : > { %v5322_v21 = vshll.u32 %v16358_v41, 16  ;;  %5001 = vmatpush1.bf16.msra.mxu1 %v14115_v43  ;;  %v16373_v10 = vsel %vm630_vm1, %v4755_v40, %v4759_v25  ;;  %v4651_v53 = vmul.f32 %v11003_v12, %v16235_v57  ;;  %v5326_v26 = vshrl.u32 %v16358_v41, 16  ;;  %v11004_v43 = vld [vmem:[%s18168_s9 + $0xa8] sm:$0xff] }
 0x6aa   : > { %v5304_v33 = vor.u32 %v5303_v62, %v5299_v61  ;;  %5002 = vmatprep.subr.bf16.mxu1 %v14120_v32  ;;  %v5312_v11 = vor.u32 %v5310_v52, %v5308_v14  ;;  %v5320_v38 = vor.u32 %v5318_v31, %v5316_v22  ;;  %v5529_v30 = vrot.slane %v16281_v6, 1  ;;  %v14121_v6 = vld [vmem:[%s18101_s10 + $0x30] ss:$8 sps:$4 sm:$0xff]  }
 0x6ab   : > { %v5324_v27 = vrot.slane %v5322_v21, 1  ;;  %v4662_v28 = vadd.f32 %v4651_v53, %v16237_v46  ;;  %v5530_v59 = vrot.slane %v16287_v39, 1  ;;  %v5532_v40 = vrot.slane %v16289_v7, 1  ;;  %v14124_v53 = vld [vmem:[%s18101_s10 + $0x40] ss:$8 sps:$4 sm:$0xff]  }
 0x6ac   : > { %v16385_v37 = vsel %vm630_vm1, %v5304_v33, %v5308_v14  ;;  %4888 = vmatmul.mubr.bf16.gmra.mrb[80].mxu1 %v4744_v34  ;;  %v16391_v45 = vsel %vm630_vm1, %v5312_v11, %v5316_v22  ;;  %v5534_v17 = vrot.slane %v16358_v41, 1  ;;  %v5729_v34 = vrot.slane %v5299_v61, 1 }
 0x6ad   : > { %v16394_v0 = vsel %vm630_vm1, %v5320_v38, %v5324_v27  ;;  %v5328_v8 = vor.u32 %v5326_v26, %v5324_v27  ;;  %5003 = vmatpush1.bf16.msra.mxu1 %v14118_v55  ;;  %4897 = vmatprep.mubr.bf16.mxu1 %v18169_v15  ;;  %v4685_v46 = vadd.f32 %v11014_v44, %v4662_v28  ;;  %v5730_v32 = vrot.slane %v5301_v4, 2 }
 0x6ae   : > { %v16402_v39 = vsel %vm5093_vm9, %v5529_v30, %v5530_v59  ;;  %v16405_v7 = vsel %vm5093_vm9, %v5530_v59, %v5532_v40  ;;  %5004 = vmatprep.subr.bf16.mxu1 %v14123_v29  ;;  %v16414_v35 = vsel %vm5093_vm9, %v5532_v40, %v5534_v17  ;;  %v5733_v52 = vrot.slane %v5306_v3, 2 }
 0x6af   : > { %v5736_v41 = vrot.slane %v5318_v31, 1  ;;  %v5280_v12 = vpack.c.bf16 %v4685_v46, %v4685_v46  ;;  %v5737_v25 = vrot.slane %v5314_v60, 2  ;;  %v5740_v62 = vrot.slane %v5326_v26, 1  ;;  %v11015_v60 = vld [vmem:[%s18168_s9 + $0x100] sm:$0xff] }
 0x6b0   : > { %v5741_v14 = vrot.slane %v5322_v21, 2  ;;  %v5731_v61 = vor.u32 %v5730_v32, %v5729_v34  ;;  %v5734_v22 = vor.u32 %v5733_v52, %v5732_v42  ;;  %v16417_v55 = vpack.c.bf16 %v4685_v46, %v16315_v24  ;;  %v14129_v24 = vld [vmem:[%s18101_s10 + $0x54] ss:$8 sps:$4 sm:$0xff]   ;;  %v14132_v46 = vld [vmem:[%s18101_s10 + $0x64] ss:$8 sps:$4 sm:$0xff]  }
 0x6b1   : > { %v4652_v33 = vmul.f32 %v11004_v43, %v16235_v57  ;;  %5005 = vmatpush1.bf16.msra.mxu1 %v14121_v6  ;;  %v5330_v4 = vshll.u32 %v5280_v12, 16  ;;  %v5536_v3 = vrot.slane %v5280_v12, 1  ;;  %v5738_v31 = vor.u32 %v5737_v25, %v5736_v41 }
 0x6b2   : > { %v5742_v29 = vor.u32 %v5741_v14, %v5740_v62  ;;  %5006 = vmatprep.subr.bf16.mxu1 %v14126_v13  ;;  %v16430_v57 = vsel %vm5728_vm10, %v5731_v61, %v5734_v22  ;;  %v5744_v42 = vshrl.u32 %v5280_v12, 16  ;;  %v5944_v21 = vrot.slane %v16417_v55, 1  ;;  %v14135_v61 = vld [vmem:[%s18101_s10 + $0x74] ss:$8 sps:$4 sm:$0xff]  }
 0x6b3   : > { %v4663_v26 = vadd.f32 %v4652_v33, %v16239_v23  ;;  %v5332_v11 = vrot.slane %v5330_v4, 1  ;;  %v16435_v38 = vsel %vm5093_vm9, %v5534_v17, %v5536_v3  ;;  %v16438_v27 = vsel %vm5728_vm10, %v5734_v22, %v5738_v31  ;;  %v14127_v23 = vld [vmem:[%s18101_s10 + $0x50] ss:$8 sps:$4 sm:$0xff]  }
 0x6b4   : > { %v16441_v44 = vsel %vm5728_vm10, %v5738_v31, %v5742_v29  ;;  %4898 = vmatmul.mubr.bf16.gmra.mrb[84].mxu1 %v16333_v56  ;;  %v5746_v30 = vrot.slane %v5744_v42, 1  ;;  %v5747_v28 = vrot.slane %v5330_v4, 2  ;;  %v16446_v59 = vsel %vm5093_vm9, %v16330_v49, %v5944_v21 }
 0x6b5   : > { %v4686_v40 = vadd.f32 %v11015_v60, %v4663_v26  ;;  %5007 = vmatpush1.bf16.msra.mxu1 %v14124_v53  ;;  %4907 = vmatprep.mubr.bf16.mxu1 %v18169_v15  ;;  %v16453_v17 = vsel %vm630_vm1, %v5328_v8, %v5332_v11  ;;  %v6137_v56 = vrot.slane %v4733_v63, 2  ;;  %v6141_v6 = vor.u32 %v16306_v58, %v16310_v1 }
 0x6b6   : > { %v6143_v49 = vrot.slane %v4753_v5, 1  ;;  %5008 = vmatprep.subr.bf16.mxu1 %v14129_v24  ;;  %v5748_v34 = vor.u32 %v5747_v28, %v5746_v30  ;;  %v6144_v8 = vrot.slane %v4749_v19, 2  ;;  %v6148_v13 = vshrl.u32 %v16417_v55, 16  ;;  %v14130_v19 = vld [vmem:[%s18101_s10 + $0x60] ss:$8 sps:$4 sm:$0xff]  }
 0x6b7   : > { %v5924_v43 = vpack.c.bf16 %v4686_v40, %v4686_v40  ;;  %v6138_v63 = vor.u32 %v6137_v56, %v16303_v16  ;;  %v6151_v32 = vshll.u32 %v16417_v55, 16  ;;  %v6356_v58 = vrot.slane %v16278_v50, 2  ;;  %v14136_v40 = vld [vmem:[%s18101_s10 + $0x100] ss:$8 sps:$4 sm:$0xff]   ;;  %v14139_v56 = vld [vmem:[%s18101_s10 + $0x110] ss:$8 sps:$4 sm:$0xff]  }
 0x6b8   : > { %v6357_v5 = vrot.slane %v16283_v18, 2  ;;  %v16472_v1 = vsel %vm5728_vm10, %v5742_v29, %v5748_v34  ;;  %v6145_v41 = vor.u32 %v6144_v8, %v6143_v49  ;;  %v6150_v12 = vrot.slane %v6148_v13, 1  ;;  %v14142_v49 = vld [vmem:[%s18101_s10 + $0x120] ss:$8 sps:$4 sm:$0xff]   ;;  %v14150_v34 = vld [vmem:[%s18101_s10 + $0x144] ss:$8 sps:$4 sm:$0xff]  }
 0x6b9   : > { %v5946_v52 = vrot.slane %v5924_v43, 1  ;;  %5009 = vmatpush1.bf16.msra.mxu1 %v14127_v23  ;;  %v16478_v25 = vsel %vm5728_vm10, %v6138_v63, %v6141_v6  ;;  %v6153_v16 = vrot.slane %v6151_v32, 2  ;;  %v6157_v62 = vshrl.u32 %v5924_v43, 16  ;;  %v14141_v23 = vld [vmem:[%s18101_s10 + $0x114] ss:$8 sps:$4 sm:$0xff]  }
 0x6ba   : > { %v6160_v14 = vshll.u32 %v5924_v43, 16  ;;  %5010 = vmatprep.subr.bf16.mxu1 %v14132_v46  ;;  %v16487_v33 = vsel %vm5728_vm10, %v6141_v6, %v6145_v41  ;;  %v16490_v53 = vsel %vm6355_vm11, %v6356_v58, %v6357_v5  ;;  %v6359_v4 = vrot.slane %v16285_v20, 2  ;;  %v14144_v6 = vld [vmem:[%s18101_s10 + $0x124] ss:$8 sps:$4 sm:$0xff]   ;;  %v14145_v46 = vld [vmem:[%s18101_s10 + $0x130] ss:$8 sps:$4 sm:$0xff]  }
 0x6bb   : > { %v16484_v22 = vsel %vm5093_vm9, %v5944_v21, %v5946_v52  ;;  %v6154_v3 = vor.u32 %v6153_v16, %v6150_v12  ;;  %v6159_v31 = vrot.slane %v6157_v62, 1  ;;  %v6361_v60 = vrot.slane %v16417_v55, 2  ;;  %v14133_v21 = vld [vmem:[%s18101_s10 + $0x70] ss:$8 sps:$4 sm:$0xff]   ;;  %v14156_v13 = vld [vmem:[%s18101_s10 + $0x164] ss:$8 sps:$4 sm:$0xff]  }
 0x6bc   : > { %v6162_v29 = vrot.slane %v6160_v14, 2  ;;  %4908 = vmatmul.mubr.bf16.gmra.mrb[88].mxu1 %v16373_v10  ;;  %v16496_v24 = vsel %vm6355_vm11, %v6357_v5, %v6359_v4  ;;  %v6363_v42 = vrot.slane %v5924_v43, 2  ;;  %v14138_v10 = vld [vmem:[%s18101_s10 + $0x104] ss:$8 sps:$4 sm:$0xff]   ;;  %v14148_v43 = vld [vmem:[%s18101_s10 + $0x140] ss:$8 sps:$4 sm:$0xff]  }
 0x6bd   : > { %5011 = vmatpush1.bf16.msra.mxu1 %v14130_v19  ;;  %5030 = vmatprep.mubr.bf16.mxu1 %v18169_v15  ;;  %v16503_v26 = vsel %vm5728_vm10, %v6145_v41, %v6154_v3  ;;  %v16506_v30 = vsel %vm6355_vm11, %v6359_v4, %v6361_v60  ;;  %v14151_v8 = vld [vmem:[%s18101_s10 + $0x150] ss:$8 sps:$4 sm:$0xff]   ;;  %v14154_v63 = vld [vmem:[%s18101_s10 + $0x160] ss:$8 sps:$4 sm:$0xff]   ;;  %v14162_v58 = vld [vmem:[%s18101_s10 + $0x184] ss:$8 sps:$4 sm:$0xff]  }
 0x6be   : > { %v6163_v11 = vor.u32 %v6162_v29, %v6159_v31  ;;  %5012 = vmatprep.subr.bf16.mxu1 %v14135_v61  ;;  %v16512_v55 = vsel %vm6355_vm11, %v6361_v60, %v6363_v42  ;;  %v14157_v32 = vld [vmem:[%s18101_s10 + $0x170] ss:$8 sps:$4 sm:$0xff]   ;;  %v14160_v5 = vld [vmem:[%s18101_s10 + $0x180] ss:$8 sps:$4 sm:$0xff]   ;;  %v14168_v41 = vld [vmem:[%s18101_s10 + $0x1a4] ss:$8 sps:$4 sm:$0xff]  }
 0x6bf   : > { %v14163_v52 = vld [vmem:[%s18101_s10 + $0x190] ss:$8 sps:$4 sm:$0xff]   ;;  %v14166_v12 = vld [vmem:[%s18101_s10 + $0x1a0] ss:$8 sps:$4 sm:$0xff]   ;;  %v14174_v16 = vld [vmem:[%s18101_s10 + $0x1c4] ss:$8 sps:$4 sm:$0xff]  }
 0x6c0   : > { %v16515_v28 = vsel %vm5728_vm10, %v6154_v3, %v6163_v11  ;;  %v14169_v19 = vld [vmem:[%s18101_s10 + $0x1b0] ss:$8 sps:$4 sm:$0xff]   ;;  %v14172_v62 = vld [vmem:[%s18101_s10 + $0x1c0] ss:$8 sps:$4 sm:$0xff]   ;;  %v14177_v14 = vld [vmem:[%s18101_s10 + $0x1d4] ss:$8 sps:$4 sm:$0xff]  }
 0x6c1   : > { %5013 = vmatpush1.bf16.msra.mxu1 %v14133_v21  ;;  %v14175_v61 = vld [vmem:[%s18101_s10 + $0x1d0] ss:$8 sps:$4 sm:$0xff]   ;;  %v14180_v4 = vld [vmem:[%s18101_s10 + $0x1e4] ss:$8 sps:$4 sm:$0xff]   ;;  %v14178_v3 = vld [vmem:[%s18101_s10 + $0x1e0] ss:$8 sps:$4 sm:$0xff]  }
 0x6c2   : > { %5187 = vmatprep.subr.bf16.mxu1 %v14138_v10  ;;  %v14183_v31 = vld [vmem:[%s18101_s10 + $0x1f4] ss:$8 sps:$4 sm:$0xff]   ;;  %v14181_v29 = vld [vmem:[%s18101_s10 + $0x1f0] ss:$8 sps:$4 sm:$0xff]   ;;  %v14186_v60 = vld [vmem:[%s18101_s10 + $0x204] ss:$8 sps:$4 sm:$0xff]  }
 0x6c3   : > { %v14184_v42 = vld [vmem:[%s18101_s10 + $0x200] ss:$8 sps:$4 sm:$0xff]   ;;  %v14187_v21 = vld [vmem:[%s18101_s10 + $0x210] ss:$8 sps:$4 sm:$0xff]   ;;  %v14192_v11 = vld [vmem:[%s18101_s10 + $0x224] ss:$8 sps:$4 sm:$0xff]  }
 0x6c4   : > { %5031 = vmatmul.mubr.bf16.vlgmr.msra.gmra.mrb[76].mxu1 %v16276_v36  ;;  %v14147_v36 = vld [vmem:[%s18101_s10 + $0x134] ss:$8 sps:$4 sm:$0xff]   ;;  %v14190_v10 = vld [vmem:[%s18101_s10 + $0x220] ss:$8 sps:$4 sm:$0xff]  }
 0x6c5   : > { %5188 = vmatpush1.bf16.msra.mxu1 %v14136_v40  ;;  %5040 = vmatprep.mubr.bf16.mxu1 %v18169_v15  ;;  %v14193_v40 = vld [vmem:[%s18101_s10 + $0x230] ss:$8 sps:$4 sm:$0xff]  }
 0x6c6   : > { %5189 = vmatprep.subr.bf16.mxu1 %v14141_v23  ;;  %v14198_v23 = vld [vmem:[%s18101_s10 + $0x244] ss:$8 sps:$4 sm:$0xff]  }
 0x6c9   : > { %5190 = vmatpush1.bf16.msra.mxu1 %v14139_v56  ;;  %v14196_v56 = vld [vmem:[%s18101_s10 + $0x240] ss:$8 sps:$4 sm:$0xff]  }
 0x6ca   : > { %5191 = vmatprep.subr.bf16.mxu1 %v14144_v6  ;;  %v14199_v6 = vld [vmem:[%s18101_s10 + $0x250] ss:$8 sps:$4 sm:$0xff]  }
 0x6cc   : > { %5041 = vmatmul.mubr.bf16.gmra.mrb[80].mxu1 %v16278_v50  ;;  %v14153_v50 = vld [vmem:[%s18101_s10 + $0x154] ss:$8 sps:$4 sm:$0xff]  }
 0x6cd   : > { %5192 = vmatpush1.bf16.msra.mxu1 %v14142_v49  ;;  %5050 = vmatprep.mubr.bf16.mxu1 %v18169_v15  ;;  %v14204_v49 = vld [vmem:[%s18101_s10 + $0x264] ss:$8 sps:$4 sm:$0xff]  }
 0x6ce   : > { %5193 = vmatprep.subr.bf16.mxu1 %v14147_v36  ;;  %v14202_v36 = vld [vmem:[%s18101_s10 + $0x260] ss:$8 sps:$4 sm:$0xff]  }
 0x6d1   : > { %5194 = vmatpush1.bf16.msra.mxu1 %v14145_v46  ;;  %v14205_v46 = vld [vmem:[%s18101_s10 + $0x270] ss:$8 sps:$4 sm:$0xff]  }
 0x6d2   : > { %5195 = vmatprep.subr.bf16.mxu1 %v14150_v34  ;;  %v14210_v34 = vld [vmem:[%s18101_s10 + $0x284] ss:$8 sps:$4 sm:$0xff]  }
 0x6d4   : > { %5051 = vmatmul.mubr.bf16.gmra.mrb[84].mxu1 %v16283_v18  ;;  %v14159_v18 = vld [vmem:[%s18101_s10 + $0x174] ss:$8 sps:$4 sm:$0xff]  }
 0x6d5   : > { %5196 = vmatpush1.bf16.msra.mxu1 %v14148_v43  ;;  %5060 = vmatprep.mubr.bf16.mxu1 %v18169_v15  ;;  %v14208_v43 = vld [vmem:[%s18101_s10 + $0x280] ss:$8 sps:$4 sm:$0xff]  }
 0x6d6   : > { %5197 = vmatprep.subr.bf16.mxu1 %v14153_v50  ;;  %v14211_v50 = vld [vmem:[%s18101_s10 + $0x290] ss:$8 sps:$4 sm:$0xff]  }
 0x6d9   : > { %5198 = vmatpush1.bf16.msra.mxu1 %v14151_v8  ;;  %v14216_v8 = vld [vmem:[%s18101_s10 + $0x2a4] ss:$8 sps:$4 sm:$0xff]  }
 0x6da   : > { %5199 = vmatprep.subr.bf16.mxu1 %v14156_v13  ;;  %v14214_v13 = vld [vmem:[%s18101_s10 + $0x2a0] ss:$8 sps:$4 sm:$0xff]  }
 0x6dc   : > { %5061 = vmatmul.mubr.bf16.gmra.mrb[88].mxu1 %v16285_v20  ;;  %v14165_v20 = vld [vmem:[%s18101_s10 + $0x194] ss:$8 sps:$4 sm:$0xff]  }
 0x6dd   : > { %5200 = vmatpush1.bf16.msra.mxu1 %v14154_v63  ;;  %5219 = vmatprep.mubr.bf16.mxu1 %v18169_v15  ;;  %v14217_v63 = vld [vmem:[%s18101_s10 + $0x2b0] ss:$8 sps:$4 sm:$0xff]  }
 0x6de   : > { %5201 = vmatprep.subr.bf16.mxu1 %v14159_v18  ;;  %v14222_v18 = vld [vmem:[%s18101_s10 + $0x2c4] ss:$8 sps:$4 sm:$0xff]  }
 0x6e1   : > { %5202 = vmatpush1.bf16.msra.mxu1 %v14157_v32  ;;  %v14220_v32 = vld [vmem:[%s18101_s10 + $0x2c0] ss:$8 sps:$4 sm:$0xff]  }
 0x6e2   : > { %5418 = vmatprep.subr.bf16.mxu1 %v14162_v58  ;;  %v14223_v58 = vld [vmem:[%s18101_s10 + $0x2d0] ss:$8 sps:$4 sm:$0xff]  }
 0x6e4   : > { %5220 = vmatmul.mubr.bf16.vlgmr.msra.gmra.mrb[76].mxu1 %v16336_v9  ;;  %v14171_v9 = vld [vmem:[%s18101_s10 + $0x1b4] ss:$8 sps:$4 sm:$0xff]  }
 0x6e5   : > { %5419 = vmatpush1.bf16.msra.mxu1 %v14160_v5  ;;  %5229 = vmatprep.mubr.bf16.mxu1 %v18169_v15  ;;  %v14228_v5 = vld [vmem:[%s18101_s10 + $0x2e4] ss:$8 sps:$4 sm:$0xff]  }
 0x6e6   : > { %5420 = vmatprep.subr.bf16.mxu1 %v14165_v20  ;;  %v14226_v20 = vld [vmem:[%s18101_s10 + $0x2e0] ss:$8 sps:$4 sm:$0xff]  }
 0x6e9   : > { %5421 = vmatpush1.bf16.msra.mxu1 %v14163_v52  ;;  %v14229_v52 = vld [vmem:[%s18101_s10 + $0x2f0] ss:$8 sps:$4 sm:$0xff]  }
 0x6ea   : > { %5422 = vmatprep.subr.bf16.mxu1 %v14168_v41  ;;  %v14234_v41 = vld [vmem:[%s18101_s10 + $0x304] ss:$8 sps:$4 sm:$0xff]  }
 0x6ec   : > { %5230 = vmatmul.mubr.bf16.gmra.mrb[80].mxu1 %v16339_v2 }
 0x6ed   : > { %5423 = vmatpush1.bf16.msra.mxu1 %v14166_v12  ;;  %5239 = vmatprep.mubr.bf16.mxu1 %v18169_v15  ;;  %v14232_v12 = vld [vmem:[%s18101_s10 + $0x300] ss:$8 sps:$4 sm:$0xff]  }
 0x6ee   : > { %5424 = vmatprep.subr.bf16.mxu1 %v14171_v9  ;;  %v14235_v9 = vld [vmem:[%s18101_s10 + $0x310] ss:$8 sps:$4 sm:$0xff]  }
 0x6f1   : > { %5425 = vmatpush1.bf16.msra.mxu1 %v14169_v19  ;;  %v14240_v19 = vld [vmem:[%s18101_s10 + $0x324] ss:$8 sps:$4 sm:$0xff]  }
 0x6f2   : > { %5426 = vmatprep.subr.bf16.mxu1 %v14174_v16  ;;  %v14238_v16 = vld [vmem:[%s18101_s10 + $0x320] ss:$8 sps:$4 sm:$0xff]  }
 0x6f4   : > { %5240 = vmatmul.mubr.bf16.gmra.mrb[84].mxu1 %v16348_v51 }
 0x6f5   : > { %5427 = vmatpush1.bf16.msra.mxu1 %v14172_v62  ;;  %5249 = vmatprep.mubr.bf16.mxu1 %v18169_v15  ;;  %v14241_v62 = vld [vmem:[%s18101_s10 + $0x330] ss:$8 sps:$4 sm:$0xff]  }
 0x6f6   : > { %5428 = vmatprep.subr.bf16.mxu1 %v14177_v14  ;;  %v14246_v14 = vld [vmem:[%s18101_s10 + $0x344] ss:$8 sps:$4 sm:$0xff]  }
 0x6f9   : > { %5429 = vmatpush1.bf16.msra.mxu1 %v14175_v61  ;;  %v14244_v61 = vld [vmem:[%s18101_s10 + $0x340] ss:$8 sps:$4 sm:$0xff]  }
 0x6fa   : > { %5430 = vmatprep.subr.bf16.mxu1 %v14180_v4  ;;  %v14247_v4 = vld [vmem:[%s18101_s10 + $0x350] ss:$8 sps:$4 sm:$0xff]  }
 0x6fc   : > { %5250 = vmatmul.mubr.bf16.gmra.mrb[88].mxu1 %v16365_v54  ;;  %v14189_v54 = vld [vmem:[%s18101_s10 + $0x214] ss:$8 sps:$4 sm:$0xff]  }
 0x6fd   : > { %5431 = vmatpush1.bf16.msra.mxu1 %v14178_v3  ;;  %5450 = vmatprep.mubr.bf16.mxu1 %v18169_v15  ;;  %v14252_v3 = vld [vmem:[%s18101_s10 + $0x364] ss:$8 sps:$4 sm:$0xff]  }
 0x6fe   : > { %5432 = vmatprep.subr.bf16.mxu1 %v14183_v31  ;;  %v14250_v31 = vld [vmem:[%s18101_s10 + $0x360] ss:$8 sps:$4 sm:$0xff]  }
 0x701   : > { %5433 = vmatpush1.bf16.msra.mxu1 %v14181_v29  ;;  %v14253_v29 = vld [vmem:[%s18101_s10 + $0x370] ss:$8 sps:$4 sm:$0xff]  }
 0x702   : > { %5622 = vmatprep.subr.bf16.mxu1 %v14186_v60  ;;  %v14258_v60 = vld [vmem:[%s18101_s10 + $0x384] ss:$8 sps:$4 sm:$0xff]  }
 0x704   : > { %5451 = vmatmul.mubr.bf16.vlgmr.msra.gmra.mrb[76].mxu1 %v16385_v37  ;;  %v14195_v37 = vld [vmem:[%s18101_s10 + $0x234] ss:$8 sps:$4 sm:$0xff]  }
 0x705   : > { %5623 = vmatpush1.bf16.msra.mxu1 %v14184_v42  ;;  %5460 = vmatprep.mubr.bf16.mxu1 %v18169_v15  ;;  %v14256_v42 = vld [vmem:[%s18101_s10 + $0x380] ss:$8 sps:$4 sm:$0xff]  }
 0x706   : > { %5624 = vmatprep.subr.bf16.mxu1 %v14189_v54  ;;  %v14259_v54 = vld [vmem:[%s18101_s10 + $0x390] ss:$8 sps:$4 sm:$0xff]  }
 0x709   : > { %5625 = vmatpush1.bf16.msra.mxu1 %v14187_v21  ;;  %v14264_v21 = vld [vmem:[%s18101_s10 + $0x3a4] ss:$8 sps:$4 sm:$0xff]  }
 0x70a   : > { %5626 = vmatprep.subr.bf16.mxu1 %v14192_v11  ;;  %v14262_v11 = vld [vmem:[%s18101_s10 + $0x3a0] ss:$8 sps:$4 sm:$0xff]  }
 0x70c   : > { %5461 = vmatmul.mubr.bf16.gmra.mrb[80].mxu1 %v16391_v45  ;;  %v14201_v45 = vld [vmem:[%s18101_s10 + $0x254] ss:$8 sps:$4 sm:$0xff]  }
 0x70d   : > { %5627 = vmatpush1.bf16.msra.mxu1 %v14190_v10  ;;  %5470 = vmatprep.mubr.bf16.mxu1 %v18169_v15  ;;  %v14265_v10 = vld [vmem:[%s18101_s10 + $0x3b0] ss:$8 sps:$4 sm:$0xff]  }
 0x70e   : > { %5628 = vmatprep.subr.bf16.mxu1 %v14195_v37  ;;  %v14270_v37 = vld [vmem:[%s18101_s10 + $0x3c4] ss:$8 sps:$4 sm:$0xff]  }
 0x711   : > { %5629 = vmatpush1.bf16.msra.mxu1 %v14193_v40  ;;  %v14268_v40 = vld [vmem:[%s18101_s10 + $0x3c0] ss:$8 sps:$4 sm:$0xff]  }
 0x712   : > { %5630 = vmatprep.subr.bf16.mxu1 %v14198_v23  ;;  %v14271_v23 = vld [vmem:[%s18101_s10 + $0x3d0] ss:$8 sps:$4 sm:$0xff]  }
 0x714   : > { %5471 = vmatmul.mubr.bf16.gmra.mrb[84].mxu1 %v16394_v0  ;;  %v14207_v0 = vld [vmem:[%s18101_s10 + $0x274] ss:$8 sps:$4 sm:$0xff]  }
 0x715   : > { %5631 = vmatpush1.bf16.msra.mxu1 %v14196_v56  ;;  %5480 = vmatprep.mubr.bf16.mxu1 %v18169_v15  ;;  %v14276_v56 = vld [vmem:[%s18101_s10 + $0x3e4] ss:$8 sps:$4 sm:$0xff]  }
 0x716   : > { %5632 = vmatprep.subr.bf16.mxu1 %v14201_v45  ;;  %v14274_v45 = vld [vmem:[%s18101_s10 + $0x3e0] ss:$8 sps:$4 sm:$0xff]  }
 0x719   : > { %5633 = vmatpush1.bf16.msra.mxu1 %v14199_v6  ;;  %v14277_v6 = vld [vmem:[%s18101_s10 + $0x3f0] ss:$8 sps:$4 sm:$0xff]  }
 0x71a   : > { %5634 = vmatprep.subr.bf16.mxu1 %v14204_v49  ;;  %v14282_v49 = vld [vmem:[%s18101_s10 + $0x404] ss:$8 sps:$4 sm:$0xff]  }
 0x71c   : > { %5481 = vmatmul.mubr.bf16.gmra.mrb[88].mxu1 %v16453_v17  ;;  %v14213_v17 = vld [vmem:[%s18101_s10 + $0x294] ss:$8 sps:$4 sm:$0xff]  }
 0x71d   : > { %5635 = vmatpush1.bf16.msra.mxu1 %v14202_v36  ;;  %5654 = vmatprep.mubr.bf16.mxu1 %v18169_v15  ;;  %v14280_v36 = vld [vmem:[%s18101_s10 + $0x400] ss:$8 sps:$4 sm:$0xff]  }
 0x71e   : > { %5636 = vmatprep.subr.bf16.mxu1 %v14207_v0  ;;  %v14283_v0 = vld [vmem:[%s18101_s10 + $0x410] ss:$8 sps:$4 sm:$0xff]  }
 0x721   : > { %5637 = vmatpush1.bf16.msra.mxu1 %v14205_v46  ;;  %v14288_v46 = vld [vmem:[%s18101_s10 + $0x424] ss:$8 sps:$4 sm:$0xff]  }
 0x722   : > { %5834 = vmatprep.subr.bf16.mxu1 %v14210_v34  ;;  %v14286_v34 = vld [vmem:[%s18101_s10 + $0x420] ss:$8 sps:$4 sm:$0xff]  }
 0x724   : > { %5655 = vmatmul.mubr.bf16.vlgmr.msra.gmra.mrb[76].mxu1 %v16402_v39  ;;  %v14219_v39 = vld [vmem:[%s18101_s10 + $0x2b4] ss:$8 sps:$4 sm:$0xff]  }
 0x725   : > { %5835 = vmatpush1.bf16.msra.mxu1 %v14208_v43  ;;  %5664 = vmatprep.mubr.bf16.mxu1 %v18169_v15  ;;  %v14289_v43 = vld [vmem:[%s18101_s10 + $0x430] ss:$8 sps:$4 sm:$0xff]  }
 0x726   : > { %5836 = vmatprep.subr.bf16.mxu1 %v14213_v17  ;;  %v14294_v17 = vld [vmem:[%s18101_s10 + $0x444] ss:$8 sps:$4 sm:$0xff]  }
 0x729   : > { %5837 = vmatpush1.bf16.msra.mxu1 %v14211_v50  ;;  %v14292_v50 = vld [vmem:[%s18101_s10 + $0x440] ss:$8 sps:$4 sm:$0xff]  }
 0x72a   : > { %5838 = vmatprep.subr.bf16.mxu1 %v14216_v8  ;;  %v14295_v8 = vld [vmem:[%s18101_s10 + $0x450] ss:$8 sps:$4 sm:$0xff]  }
 0x72c   : > { %5665 = vmatmul.mubr.bf16.gmra.mrb[80].mxu1 %v16405_v7  ;;  %v14225_v7 = vld [vmem:[%s18101_s10 + $0x2d4] ss:$8 sps:$4 sm:$0xff]  }
 0x72d   : > { %5839 = vmatpush1.bf16.msra.mxu1 %v14214_v13  ;;  %5674 = vmatprep.mubr.bf16.mxu1 %v18169_v15  ;;  %v14300_v13 = vld [vmem:[%s18101_s10 + $0x464] ss:$8 sps:$4 sm:$0xff]  }
 0x72e   : > { %5840 = vmatprep.subr.bf16.mxu1 %v14219_v39  ;;  %v14298_v39 = vld [vmem:[%s18101_s10 + $0x460] ss:$8 sps:$4 sm:$0xff]  }
 0x731   : > { %5841 = vmatpush1.bf16.msra.mxu1 %v14217_v63  ;;  %v14301_v63 = vld [vmem:[%s18101_s10 + $0x470] ss:$8 sps:$4 sm:$0xff]  }
 0x732   : > { %5842 = vmatprep.subr.bf16.mxu1 %v14222_v18  ;;  %v6538_v18 = vld [vmem:[%s18102_s11] sm:$0x3] }
 0x734   : > { %5675 = vmatmul.mubr.bf16.gmra.mrb[84].mxu1 %v16414_v35  ;;  %v14231_v35 = vld [vmem:[%s18101_s10 + $0x2f4] ss:$8 sps:$4 sm:$0xff]  }
 0x735   : > { %5843 = vmatpush1.bf16.msra.mxu1 %v14220_v32  ;;  %5684 = vmatprep.mubr.bf16.mxu1 %v18169_v15 }
 0x736   : > { %5844 = vmatprep.subr.bf16.mxu1 %v14225_v7 }
 0x739   : > { %5845 = vmatpush1.bf16.msra.mxu1 %v14223_v58 }
 0x73a   : > { %5846 = vmatprep.subr.bf16.mxu1 %v14228_v5 }
 0x73c   : > { %5685 = vmatmul.mubr.bf16.gmra.mrb[88].mxu1 %v16435_v38  ;;  %v14237_v38 = vld [vmem:[%s18101_s10 + $0x314] ss:$8 sps:$4 sm:$0xff]  }
 0x73d   : > { %5847 = vmatpush1.bf16.msra.mxu1 %v14226_v20  ;;  %5866 = vmatprep.mubr.bf16.mxu1 %v18169_v15 }
 0x73e   : > { %5848 = vmatprep.subr.bf16.mxu1 %v14231_v35 }
 0x741   : > { %5849 = vmatpush1.bf16.msra.mxu1 %v14229_v52 }
 0x742   : > { %6030 = vmatprep.subr.bf16.mxu1 %v14234_v41 }
 0x744   : > { %5867 = vmatmul.mubr.bf16.vlgmr.msra.gmra.mrb[76].mxu1 %v16430_v57  ;;  %v14243_v57 = vld [vmem:[%s18101_s10 + $0x334] ss:$8 sps:$4 sm:$0xff]  }
 0x745   : > { %6031 = vmatpush1.bf16.msra.mxu1 %v14232_v12  ;;  %5876 = vmatprep.mubr.bf16.mxu1 %v18169_v15 }
 0x746   : > { %6032 = vmatprep.subr.bf16.mxu1 %v14237_v38 }
 0x749   : > { %6033 = vmatpush1.bf16.msra.mxu1 %v14235_v9 }
 0x74a   : > { %6034 = vmatprep.subr.bf16.mxu1 %v14240_v19 }
 0x74c   : > { %5877 = vmatmul.mubr.bf16.gmra.mrb[80].mxu1 %v16438_v27  ;;  %v14249_v27 = vld [vmem:[%s18101_s10 + $0x354] ss:$8 sps:$4 sm:$0xff]  }
 0x74d   : > { %6035 = vmatpush1.bf16.msra.mxu1 %v14238_v16  ;;  %5886 = vmatprep.mubr.bf16.mxu1 %v18169_v15 }
 0x74e   : > { %6036 = vmatprep.subr.bf16.mxu1 %v14243_v57 }
 0x751   : > { %6037 = vmatpush1.bf16.msra.mxu1 %v14241_v62 }
 0x752   : > { %6038 = vmatprep.subr.bf16.mxu1 %v14246_v14 }
 0x754   : > { %5887 = vmatmul.mubr.bf16.gmra.mrb[84].mxu1 %v16441_v44  ;;  %v14255_v44 = vld [vmem:[%s18101_s10 + $0x374] ss:$8 sps:$4 sm:$0xff]  }
 0x755   : > { %6039 = vmatpush1.bf16.msra.mxu1 %v14244_v61  ;;  %5896 = vmatprep.mubr.bf16.mxu1 %v18169_v15 }
 0x756   : > { %6040 = vmatprep.subr.bf16.mxu1 %v14249_v27 }
 0x759   : > { %6041 = vmatpush1.bf16.msra.mxu1 %v14247_v4 }
 0x75a   : > { %6042 = vmatprep.subr.bf16.mxu1 %v14252_v3 }
 0x75c   : > { %5897 = vmatmul.mubr.bf16.gmra.mrb[88].mxu1 %v16472_v1  ;;  %v14261_v1 = vld [vmem:[%s18101_s10 + $0x394] ss:$8 sps:$4 sm:$0xff]  }
 0x75d   : > { %6043 = vmatpush1.bf16.msra.mxu1 %v14250_v31  ;;  %6062 = vmatprep.mubr.bf16.mxu1 %v18169_v15 }
 0x75e   : > { %6044 = vmatprep.subr.bf16.mxu1 %v14255_v44 }
 0x761   : > { %6045 = vmatpush1.bf16.msra.mxu1 %v14253_v29 }
 0x762   : > { %6249 = vmatprep.subr.bf16.mxu1 %v14258_v60 }
 0x764   : > { %6063 = vmatmul.mubr.bf16.vlgmr.msra.gmra.mrb[76].mxu1 %v16339_v2  ;;  %v14267_v2 = vld [vmem:[%s18101_s10 + $0x3b4] ss:$8 sps:$4 sm:$0xff]  }
 0x765   : > { %6250 = vmatpush1.bf16.msra.mxu1 %v14256_v42  ;;  %6072 = vmatprep.mubr.bf16.mxu1 %v18169_v15 }
 0x766   : > { %6251 = vmatprep.subr.bf16.mxu1 %v14261_v1 }
 0x769   : > { %6252 = vmatpush1.bf16.msra.mxu1 %v14259_v54 }
 0x76a   : > { %6253 = vmatprep.subr.bf16.mxu1 %v14264_v21 }
 0x76c   : > { %6073 = vmatmul.mubr.bf16.gmra.mrb[80].mxu1 %v16348_v51  ;;  %v14273_v51 = vld [vmem:[%s18101_s10 + $0x3d4] ss:$8 sps:$4 sm:$0xff]  }
 0x76d   : > { %6254 = vmatpush1.bf16.msra.mxu1 %v14262_v11  ;;  %6082 = vmatprep.mubr.bf16.mxu1 %v18169_v15 }
 0x76e   : > { %6255 = vmatprep.subr.bf16.mxu1 %v14267_v2 }
 0x771   : > { %6256 = vmatpush1.bf16.msra.mxu1 %v14265_v10 }
 0x772   : > { %6257 = vmatprep.subr.bf16.mxu1 %v14270_v37 }
 0x774   : > { %6083 = vmatmul.mubr.bf16.gmra.mrb[84].mxu1 %v16446_v59  ;;  %v14279_v59 = vld [vmem:[%s18101_s10 + $0x3f4] ss:$8 sps:$4 sm:$0xff]  }
 0x775   : > { %6258 = vmatpush1.bf16.msra.mxu1 %v14268_v40  ;;  %6092 = vmatprep.mubr.bf16.mxu1 %v18169_v15 }
 0x776   : > { %6259 = vmatprep.subr.bf16.mxu1 %v14273_v51 }
 0x779   : > { %6260 = vmatpush1.bf16.msra.mxu1 %v14271_v23 }
 0x77a   : > { %6261 = vmatprep.subr.bf16.mxu1 %v14276_v56 }
 0x77c   : > { %6093 = vmatmul.mubr.bf16.gmra.mrb[88].mxu1 %v16484_v22  ;;  %v14285_v22 = vld [vmem:[%s18101_s10 + $0x414] ss:$8 sps:$4 sm:$0xff]  }
 0x77d   : > { %6262 = vmatpush1.bf16.msra.mxu1 %v14274_v45  ;;  %6281 = vmatprep.mubr.bf16.mxu1 %v18169_v15 }
 0x77e   : > { %6263 = vmatprep.subr.bf16.mxu1 %v14279_v59 }
 0x781   : > { %6264 = vmatpush1.bf16.msra.mxu1 %v14277_v6 }
 0x782   : > { %6449 = vmatprep.subr.bf16.mxu1 %v14282_v49 }
 0x784   : > { %6282 = vmatmul.mubr.bf16.vlgmr.msra.gmra.mrb[76].mxu1 %v16478_v25  ;;  %v14291_v25 = vld [vmem:[%s18101_s10 + $0x434] ss:$8 sps:$4 sm:$0xff]  }
 0x785   : > { %6450 = vmatpush1.bf16.msra.mxu1 %v14280_v36  ;;  %6291 = vmatprep.mubr.bf16.mxu1 %v18169_v15 }
 0x786   : > { %6451 = vmatprep.subr.bf16.mxu1 %v14285_v22 }
 0x789   : > { %6452 = vmatpush1.bf16.msra.mxu1 %v14283_v0 }
 0x78a   : > { %6453 = vmatprep.subr.bf16.mxu1 %v14288_v46 }
 0x78c   : > { %6292 = vmatmul.mubr.bf16.gmra.mrb[80].mxu1 %v16487_v33  ;;  %v14297_v33 = vld [vmem:[%s18101_s10 + $0x454] ss:$8 sps:$4 sm:$0xff]  }
 0x78d   : > { %6454 = vmatpush1.bf16.msra.mxu1 %v14286_v34  ;;  %6301 = vmatprep.mubr.bf16.mxu1 %v18169_v15 }
 0x78e   : > { %6455 = vmatprep.subr.bf16.mxu1 %v14291_v25 }
 0x791   : > { %6456 = vmatpush1.bf16.msra.mxu1 %v14289_v43 }
 0x792   : > { %6457 = vmatprep.subr.bf16.mxu1 %v14294_v17 }
 0x794   : > { %6302 = vmatmul.mubr.bf16.gmra.mrb[84].mxu1 %v16503_v26  ;;  %v14303_v26 = vld [vmem:[%s18101_s10 + $0x474] ss:$8 sps:$4 sm:$0xff]  }
 0x795   : > { %6458 = vmatpush1.bf16.msra.mxu1 %v14292_v50  ;;  %6311 = vmatprep.mubr.bf16.mxu1 %v18169_v15 }
 0x796   : > { %6459 = vmatprep.subr.bf16.mxu1 %v14297_v33 }
 0x799   : > { %6460 = vmatpush1.bf16.msra.mxu1 %v14295_v8 }
 0x79a   : > { %6461 = vmatprep.subr.bf16.mxu1 %v14300_v13 }
 0x79c   : > { %6312 = vmatmul.mubr.bf16.gmra.mrb[88].mxu1 %v16515_v28  ;;  %v14622_v28 = vmov 0.0  }
 0x79d   : > { %6462 = vmatpush1.bf16.msra.mxu1 %v14298_v39  ;;  %6481 = vmatprep.mubr.bf16.mxu1 %v18169_v15 }
 0x79e   : > { %6463 = vmatprep.subr.bf16.mxu1 %v14303_v26  ;;  %12564 = vmatprep.subr.bf16.mxu0 %v14622_v28 }
 0x79f   : > { %12572 = vmatprep.mubr.msk.bf16.mxu0 %vm14624_vm12, %v14622_v28 }
 0x7a1   : > { %6464 = vmatpush1.bf16.msra.mxu1 %v14301_v63 }
 0x7a4   : > { %6482 = vmatmul.mubr.bf16.vlgmr.msra.gmra.mrb[76].mxu1 %v16490_v53  ;;  %v6546_v53 = vsub.s32 1, %v16098_v47 }
 0x7a5   : > { %6491 = vmatprep.mubr.bf16.mxu1 %v18169_v15 }
 0x7a6   : > { %v6547_v32 = vrot.slane %v6538_v18, %v6546_v53  ;;  %v14304_v53 = vld [vmem:[%s18103_s12 + $0x84] sm:$0xff]  }
 0x7ac   : > { %6492 = vmatmul.mubr.bf16.gmra.mrb[80].mxu1 %v16496_v24  ;;  %v6543_v24 = vrot.slane %v6538_v18, %v4584_v48 }
 0x7ad   : > { %6501 = vmatprep.mubr.bf16.mxu1 %v18169_v15 }
 0x7b4   : > { %6502 = vmatmul.mubr.bf16.gmra.mrb[84].mxu1 %v16506_v30 }
 0x7b5   : > { %6511 = vmatprep.mubr.bf16.mxu1 %v18169_v15 }
 0x7bc   : > { %6512 = vmatmul.mubr.bf16.gmra.mrb[88].mxu1 %v16512_v55 }
 0x877   : > { %v6483_v7 = vpop.f32.mrb[76].mxu1 }
 0x878   : > { %v6550_v58 = vadd.f32 %v6543_v24, %v6483_v7  ;;  %v6485_v30 = vpop.f32.mrb[77].mxu1  ;;  %v14307_v7 = vld [vmem:[%s18103_s12 + $0x9c] sm:$0xff]  }
 0x879   : > { %v6551_v5 = vadd.f32 %v6547_v32, %v6485_v30  ;;  %v6487_v15 = vpop.f32.mrb[78].mxu1  ;;  %v14309_v30 = vld [vmem:[%s18103_s12 + $0xac] sm:$0xff]  }
 0x87a   : > { %v6552_v20 = vadd.f32 %v6543_v24, %v6487_v15  ;;  %v6489_v55 = vpop.f32.mrb[79].mxu1  ;;  %v6566_v52 = vmax.f32 %v6550_v58, 0.0  ;;  %v14308_v58 = vld [vmem:[%s18103_s12 + $0xa4] sm:$0xff]   ;;  %v14311_v15 = vld [vmem:[%s18103_s12 + $0xbc] sm:$0xff]  }
 0x87b   : > { %v6553_v35 = vadd.f32 %v6547_v32, %v6489_v55  ;;  %v6567_v12 = vmax.f32 %v6551_v5, 0.0  ;;  %v14310_v5 = vld [vmem:[%s18103_s12 + $0xb4] sm:$0xff]   ;;  %v14313_v55 = vld [vmem:[%s18103_s12 + $0xcc] sm:$0xff]  }
 0x87c   : > { %v6568_v41 = vmax.f32 %v6552_v20, 0.0  ;;  %v14312_v20 = vld [vmem:[%s18103_s12 + $0xc4] sm:$0xff]  }
 0x87d   : > { %v6569_v38 = vmax.f32 %v6553_v35, 0.0  ;;  %v14314_v35 = vld [vmem:[%s18103_s12 + $0xd4] sm:$0xff]  }
 0x87e   : > { %v16920_v9 = vpack.c.bf16 %v6568_v41, %v6566_v52  ;;  %v14315_v52 = vld [vmem:[%s18103_s12 + $0xdc] sm:$0xff]   ;;  %v14316_v41 = vld [vmem:[%s18103_s12 + $0xe4] sm:$0xff]  }
 0x87f   : > { %v16922_v19 = vpack.c.bf16 %v6569_v38, %v6567_v12  ;;  %v6493_v16 = vpop.f32.mrb[80].mxu1  ;;  %v14317_v12 = vld [vmem:[%s18103_s12 + $0xec] sm:$0xff]   ;;  %v14318_v38 = vld [vmem:[%s18103_s12 + $0xf4] sm:$0xff]  }
 0x880   : > { %v6554_v47 = vadd.f32 %v6543_v24, %v6493_v16  ;;  %6740 = vrot.lane.b32.xlu1 %v16920_v9, %s14623_s23  ;;  %v6495_v48 = vpop.f32.mrb[81].mxu1  ;;  %v14320_v16 = vld [vmem:[%s18103_s12 + $0x104] ss:$0 sps:$4 sm:$0xff]  }
 0x881   : > { %v6555_v57 = vadd.f32 %v6547_v32, %v6495_v48  ;;  %v6497_v62 = vpop.f32.mrb[82].mxu1  ;;  %v14322_v48 = vld [vmem:[%s18103_s12 + $0x8] sm:$0xff]  }
 0x882   : > { %v6556_v14 = vadd.f32 %v6543_v24, %v6497_v62  ;;  %v6499_v61 = vpop.f32.mrb[83].mxu1  ;;  %v6570_v4 = vmax.f32 %v6554_v47, 0.0  ;;  %v14321_v47 = vld [vmem:[%s18103_s12] sm:$0xff]  }
 0x883   : > { %v6557_v27 = vadd.f32 %v6547_v32, %v6499_v61  ;;  %v6571_v31 = vmax.f32 %v6555_v57, 0.0  ;;  %v14324_v57 = vld [vmem:[%s18103_s12 + $0x18] sm:$0xff]   ;;  %v14325_v62 = vld [vmem:[%s18103_s12 + $0x20] sm:$0xff]   ;;  %v14327_v61 = vld [vmem:[%s18103_s12 + $0x30] sm:$0xff]  }
 0x884   : > { %v6572_v3 = vmax.f32 %v6556_v14, 0.0  ;;  %v14326_v14 = vld [vmem:[%s18103_s12 + $0x28] sm:$0xff]  }
 0x885   : > { %v6573_v44 = vmax.f32 %v6557_v27, 0.0  ;;  %v14328_v27 = vld [vmem:[%s18103_s12 + $0x38] sm:$0xff]  }
 0x886   : > { %v6616_v29 = vpack.c.bf16 %v6572_v3, %v6570_v4  ;;  %v14329_v4 = vld [vmem:[%s18103_s12 + $0x40] sm:$0xff]   ;;  %v14330_v3 = vld [vmem:[%s18103_s12 + $0x48] sm:$0xff]  }
 0x887   : > { %v16926_v60 = vpack.c.bf16 %v6573_v44, %v6571_v31  ;;  %v6503_v42 = vpop.f32.mrb[84].mxu1  ;;  %v14331_v31 = vld [vmem:[%s18103_s12 + $0x50] sm:$0xff]   ;;  %v14332_v44 = vld [vmem:[%s18103_s12 + $0x58] sm:$0xff]  }
 0x888   : > { %v6558_v1 = vadd.f32 %v6543_v24, %v6503_v42  ;;  %6742 = vrot.lane.b32.xlu1 %v6616_v29, %s14623_s23  ;;  %v6505_v54 = vpop.f32.mrb[85].mxu1  ;;  %v14335_v42 = vld [vmem:[%s18103_s12 + $0x70] sm:$0xff]  }
 0x889   : > { %v6559_v21 = vadd.f32 %v6547_v32, %v6505_v54  ;;  %v6507_v11 = vpop.f32.mrb[86].mxu1  ;;  %v14337_v54 = vld [vmem:[%s18103_s12 + $0x80] ss:$0 sps:$4 sm:$0xff]  }
 0x88a   : > { %v6560_v2 = vadd.f32 %v6543_v24, %v6507_v11  ;;  %v6509_v10 = vpop.f32.mrb[87].mxu1  ;;  %v6574_v40 = vmax.f32 %v6558_v1, 0.0  ;;  %v14336_v1 = vld [vmem:[%s18103_s12 + $0x78] sm:$0xff]  }
 0x88b   : > { %v6561_v37 = vadd.f32 %v6547_v32, %v6509_v10  ;;  %v6575_v23 = vmax.f32 %v6559_v21, 0.0  ;;  %v14338_v21 = vld [vmem:[%s18103_s12 + $0x108] sm:$0xff]   ;;  %v14339_v10 = vld [vmem:[%s18103_s12 + $0x110] sm:$0xff]  }
 0x88c   : > { %v6576_v51 = vmax.f32 %v6560_v2, 0.0 }
 0x88d   : > { %v6577_v56 = vmax.f32 %v6561_v37, 0.0 }
 0x88e   : > { %v6617_v45 = vpack.c.bf16 %v6576_v51, %v6574_v40  ;;  %v14340_v51 = vld [vmem:[%s18103_s12 + $0x118] sm:$0xff]  }
 0x88f   : > { %v16931_v59 = vpack.c.bf16 %v6577_v56, %v6575_v23  ;;  %v6513_v6 = vpop.f32.mrb[88].mxu1  ;;  %v14341_v23 = vld [vmem:[%s18103_s12 + $0x120] sm:$0xff]   ;;  %v14342_v56 = vld [vmem:[%s18103_s12 + $0x128] sm:$0xff]  }
 0x890   : > { %v6562_v49 = vadd.f32 %v6543_v24, %v6513_v6  ;;  %6744 = vrot.lane.b32.xlu0 %v6617_v45, %s14623_s23  ;;  %v6515_v36 = vpop.f32.mrb[89].mxu1  ;;  %v14345_v6 = vld [vmem:[%s18103_s12 + $0x140] sm:$0xff]  }
 0x891   : > { %v6563_v22 = vadd.f32 %v6547_v32, %v6515_v36  ;;  %v6517_v0 = vpop.f32.mrb[90].mxu1  ;;  %v14347_v36 = vld [vmem:[%s18103_s12 + $0x150] sm:$0xff]  }
 0x892   : > { %v6564_v46 = vadd.f32 %v6543_v24, %v6517_v0  ;;  %v6519_v34 = vpop.f32.mrb[91].mxu1  ;;  %v6578_v43 = vmax.f32 %v6562_v49, 0.0  ;;  %v14305_v24 = vld [vmem:[%s18103_s12 + $0x8c] sm:$0xff]   ;;  %v14349_v0 = vld [vmem:[%s18103_s12 + $0x160] sm:$0xff]  }
 0x893   : > { %v6565_v25 = vadd.f32 %v6547_v32, %v6519_v34  ;;  %v6579_v50 = vmax.f32 %v6563_v22, 0.0  ;;  %v14306_v32 = vld [vmem:[%s18103_s12 + $0x94] sm:$0xff]   ;;  %v14346_v49 = vld [vmem:[%s18103_s12 + $0x148] sm:$0xff]  }
 0x894   : > { %v6580_v17 = vmax.f32 %v6564_v46, 0.0  ;;  %7767 = vrot.lane.b32.xlu0 %v16922_v19, %s14623_s23  ;;  %v14348_v22 = vld [vmem:[%s18103_s12 + $0x158] sm:$0xff]   ;;  %v14350_v46 = vld [vmem:[%s18103_s12 + $0x168] sm:$0xff]   ;;  %v14351_v34 = vld [vmem:[%s18103_s12 + $0x170] sm:$0xff]  }
 0x895   : > { %v6581_v33 = vmax.f32 %v6565_v25, 0.0  ;;  %v14352_v25 = vld [vmem:[%s18103_s12 + $0x178] sm:$0xff]  }
 0x896   : > { %v6618_v8 = vpack.c.bf16 %v6580_v17, %v6578_v43  ;;  %v14353_v43 = vld [vmem:[%s18103_s12 + $0x180] sm:$0xff]   ;;  %v14354_v17 = vld [vmem:[%s18103_s12 + $0x188] ss:$0 sps:$4 sm:$0xff]  }
 0x897   : > { %v16936_v13 = vpack.c.bf16 %v6581_v33, %v6579_v50  ;;  %v14355_v50 = vld [vmem:[%s18103_s12 + $0x18c] sm:$0xff]   ;;  %v14356_v33 = vld [vmem:[%s18103_s12 + $0x194] sm:$0xff]  }
 0x898   : > { %7771 = vrot.lane.b32.xlu0 %v16931_v59, %s14623_s23  ;;  %6746 = vrot.lane.b32.xlu1 %v6618_v8, %s14623_s23 }
 0x89c   : > { %7769 = vrot.lane.b32.xlu1 %v16926_v60, %s14623_s23 }
 0x8a0   : > { %7773 = vrot.lane.b32.xlu1 %v16936_v13, %s14623_s23  ;;  %s14523_s23 = scalar_lea.vmem %s10439_s3, 16 }
 0x8a1   : > { %p14524_p11 = scmp.ne.s32.totalorder %s10439_s3, %s14523_s23  ;;  %p14531_p1 = scmp.lt.s32.totalorder %s14529_s18, %s14523_s23 }
 0x8a3   : > { %p14525_p12 = pnand %p14524_p11, %p14755_p5  ;;  %p14532_p2 = por %p14531_p1, %p14530_p0 }
 0x8a5   : > { %p14526_p13 = pneg %p14525_p12 }
 0x8a7   : > { %p14533_p3 = pnand %p14532_p2, %p14526_p13 }
 0x8f2   : > { %v6741_v39 = vpop.permute.xlu1 %6740 }
 0x8f3   : > { %12565 = vmatpush3.bf16.msra.mxu0 %v6741_v39  ;;  %v14359_v39 = vld [vmem:[%s18103_s12 + $0x1ac] sm:$0xff]  }
 0x8f4   : > { %12566 = vmatprep.subr.bf16.mxu0 %v14622_v28 }
 0x8fa   : > { %v6743_v26 = vpop.permute.xlu1 %6742 }
 0x8fb   : > { %12567 = vmatpush3.bf16.msra.mxu0 %v6743_v26  ;;  %v14360_v26 = vld [vmem:[%s18103_s12 + $0x1b4] sm:$0xff]  }
 0x8fc   : > { %12568 = vmatprep.subr.bf16.mxu0 %v14622_v28 }
 0x902   : > { %v6745_v63 = vpop.permute.xlu0 %6744 }
 0x903   : > { %12569 = vmatpush3.bf16.msra.mxu0 %v6745_v63  ;;  %v14361_v63 = vld [vmem:[%s18103_s12 + $0x1bc] sm:$0xff]  }
 0x904   : > { %12570 = vmatprep.subr.bf16.mxu0 %v14622_v28 }
 0x906   : > { %v7768_v11 = vpop.permute.xlu0 %7767 }
 0x90a   : > { %v6747_v18 = vpop.permute.xlu1 %6746  ;;  %v7772_v37 = vpop.permute.xlu0 %7771 }
 0x90b   : > { %12571 = vmatpush3.bf16.msra.mxu0 %v6747_v18  ;;  %v14362_v18 = vld [vmem:[%s18103_s12 + $0x1c4] sm:$0xff]  }
 0x90c   : > { %12640 = vmatprep.subr.bf16.mxu0 %v14622_v28 }
 0x90e   : > { %12573 = vmatmul.mubr.msk.bf16.vlgmr.msra.gmra.mrb[112].mxu0 %vm2333_vm6, %v14304_v53  ;;  %v7770_v2 = vpop.permute.xlu1 %7769  ;;  %v14363_v53 = vld [vmem:[%s18103_s12 + $0x1cc] sm:$0xff]  }
 0x90f   : > { %12641 = vmatpush3.bf16.msra.mxu0 %v16920_v9  ;;  %12576 = vmatprep.mubr.msk.bf16.mxu0 %vm14624_vm12, %v14622_v28  ;;  %v14319_v9 = vld [vmem:[%s18103_s12 + $0xfc] sm:$0xff]  }
 0x910   : > { %12642 = vmatprep.subr.bf16.mxu0 %v14622_v28 }
 0x912   : > { %v7774_v40 = vpop.permute.xlu1 %7773 }
 0x913   : > { %12643 = vmatpush3.bf16.msra.mxu0 %v6616_v29  ;;  %v14333_v29 = vld [vmem:[%s18103_s12 + $0x60] sm:$0xff]  }
 0x914   : > { %12644 = vmatprep.subr.bf16.mxu0 %v14622_v28 }
 0x916   : > { %12577 = vmatmul.mubr.msk.bf16.gmra.mrb[116].mxu0 %vm2333_vm6, %v14305_v24  ;;  %v14364_v24 = vld [vmem:[%s18103_s12 + $0x1d4] sm:$0xff]  }
 0x917   : > { %12645 = vmatpush3.bf16.msra.mxu0 %v6617_v45  ;;  %12580 = vmatprep.mubr.msk.bf16.mxu0 %vm14624_vm12, %v14622_v28  ;;  %v14343_v45 = vld [vmem:[%s18103_s12 + $0x130] sm:$0xff]  }
 0x918   : > { %12646 = vmatprep.subr.bf16.mxu0 %v14622_v28 }
 0x91b   : > { %12647 = vmatpush3.bf16.msra.mxu0 %v6618_v8  ;;  %v14357_v8 = vld [vmem:[%s18103_s12 + $0x19c] sm:$0xff]  }
 0x91c   : > { %12716 = vmatprep.subr.bf16.mxu0 %v14622_v28 }
 0x91e   : > { %12581 = vmatmul.mubr.msk.bf16.gmra.mrb[120].mxu0 %vm2333_vm6, %v14306_v32  ;;  %v14365_v32 = vld [vmem:[%s18103_s12 + $0x1dc] sm:$0xff]  }
 0x91f   : > { %12584 = vmatprep.mubr.msk.bf16.mxu0 %vm14624_vm12, %v14622_v28 }
 0x926   : > { %12585 = vmatmul.mubr.msk.bf16.gmra.mrb[124].mxu0 %vm2333_vm6, %v14307_v7  ;;  %v14366_v7 = vld [vmem:[%s18103_s12 + $0x1e4] sm:$0xff]  }
 0x927   : > { %12588 = vmatprep.mubr.msk.bf16.mxu0 %vm14624_vm12, %v14622_v28 }
 0x92e   : > { %12589 = vmatmul.mubr.msk.bf16.gmra.mrb[128].mxu0 %vm2333_vm6, %v14308_v58  ;;  %v14367_v58 = vld [vmem:[%s18103_s12 + $0x1ec] sm:$0xff]  }
 0x92f   : > { %12592 = vmatprep.mubr.msk.bf16.mxu0 %vm14624_vm12, %v14622_v28 }
 0x936   : > { %12593 = vmatmul.mubr.msk.bf16.gmra.mrb[132].mxu0 %vm2333_vm6, %v14309_v30  ;;  %v14372_v30 = vld [vmem:[%s18104_s13 + $0x20] sm:$0xff]  }
 0x937   : > { %12596 = vmatprep.mubr.msk.bf16.mxu0 %vm14624_vm12, %v14622_v28  ;;  %12868 = vmatprep.subr.bf16.mxu1 %v14372_v30 }
 0x938   : > { %12869 = vmatpush3.bf16.msra.mxu1 %v14372_v30 }
 0x93e   : > { %12597 = vmatmul.mubr.msk.bf16.gmra.mrb[136].mxu0 %vm2333_vm6, %v14310_v5  ;;  %v14373_v5 = vld [vmem:[%s18104_s13 + $0x28] sm:$0xff]  }
 0x93f   : > { %12600 = vmatprep.mubr.msk.bf16.mxu0 %vm14624_vm12, %v14622_v28  ;;  %12870 = vmatprep.subr.bf16.mxu1 %v14373_v5 }
 0x940   : > { %12871 = vmatpush3.bf16.msra.mxu1 %v14373_v5 }
 0x946   : > { %12601 = vmatmul.mubr.msk.bf16.gmra.mrb[140].mxu0 %vm2333_vm6, %v14311_v15  ;;  %v14368_v15 = vld [vmem:[%s18103_s12 + $0x1f4] sm:$0xff]  }
 0x947   : > { %12604 = vmatprep.mubr.msk.bf16.mxu0 %vm14624_vm12, %v14622_v28 }
 0x94e   : > { %12605 = vmatmul.mubr.msk.bf16.gmra.mrb[144].mxu0 %vm2333_vm6, %v14312_v20  ;;  %v14374_v20 = vld [vmem:[%s18104_s13 + $0x30] sm:$0xff]  }
 0x94f   : > { %12608 = vmatprep.mubr.msk.bf16.mxu0 %vm14624_vm12, %v14622_v28  ;;  %12872 = vmatprep.subr.bf16.mxu1 %v14374_v20 }
 0x950   : > { %12873 = vmatpush3.bf16.msra.mxu1 %v14374_v20 }
 0x956   : > { %12609 = vmatmul.mubr.msk.bf16.gmra.mrb[148].mxu0 %vm2333_vm6, %v14313_v55  ;;  %v14375_v55 = vld [vmem:[%s18104_s13 + $0x38] sm:$0xff]  }
 0x957   : > { %12612 = vmatprep.mubr.msk.bf16.mxu0 %vm14624_vm12, %v14622_v28  ;;  %12874 = vmatprep.subr.bf16.mxu1 %v14375_v55 }
 0x958   : > { %12875 = vmatpush3.bf16.msra.mxu1 %v14375_v55 }
 0x95e   : > { %12613 = vmatmul.mubr.msk.bf16.gmra.mrb[152].mxu0 %vm2333_vm6, %v14314_v35  ;;  %v14369_v35 = vld [vmem:[%s18103_s12 + $0x1fc] sm:$0xff]  }
 0x95f   : > { %12616 = vmatprep.mubr.msk.bf16.mxu0 %vm14624_vm12, %v14622_v28 }
 0x966   : > { %12617 = vmatmul.mubr.msk.bf16.gmra.mrb[156].mxu0 %vm2333_vm6, %v14315_v52  ;;  %v14370_v52 = vld [vmem:[%s18103_s12 + $0x204] sm:$0xff]  }
 0x967   : > { %12620 = vmatprep.mubr.msk.bf16.mxu0 %vm14624_vm12, %v14622_v28 }
 0x96e   : > { %12621 = vmatmul.mubr.msk.bf16.gmra.mrb[160].mxu0 %vm2333_vm6, %v14316_v41  ;;  %v14371_v41 = vld [vmem:[%s18103_s12 + $0x20c] ss:$0 sps:$4 sm:$0xff]  }
 0x96f   : > { %12624 = vmatprep.mubr.msk.bf16.mxu0 %vm14624_vm12, %v14622_v28 }
 0x976   : > { %12625 = vmatmul.mubr.msk.bf16.gmra.mrb[164].mxu0 %vm2333_vm6, %v14317_v12  ;;  %v14376_v12 = vld [vmem:[%s18104_s13] sm:$0xff]  }
 0x977   : > { %12628 = vmatprep.mubr.msk.bf16.mxu0 %vm14624_vm12, %v14622_v28  ;;  %12904 = vmatprep.subr.bf16.mxu1 %v14376_v12 }
 0x97e   : > { %12629 = vmatmul.mubr.msk.bf16.gmra.mrb[168].mxu0 %vm2333_vm6, %v14318_v38 }
 0x97f   : > { %12632 = vmatprep.mubr.msk.bf16.mxu0 %vm14624_vm12, %v14622_v28 }
 0x986   : > { %12633 = vmatmul.mubr.msk.bf16.gmra.mrb[172].mxu0 %vm2333_vm6, %v14319_v9 }
 0x987   : > { %12636 = vmatprep.mubr.msk.bf16.mxu0 %vm14624_vm12, %v14622_v28 }
 0x98e   : > { %12637 = vmatmul.mubr.msk.bf16.gmra.mrb[176].mxu0 %vm2333_vm6, %v14320_v16 }
 0x98f   : > { %12648 = vmatprep.mubr.msk.bf16.mxu0 %vm14624_vm12, %v14622_v28 }
 0x996   : > { %12649 = vmatmul.mubr.msk.bf16.vlgmr.msra.gmra.mrb[112].mxu0 %vm2333_vm6, %v14321_v47 }
 0x997   : > { %12717 = vmatpush3.bf16.msra.mxu0 %v16922_v19  ;;  %12652 = vmatprep.mubr.msk.bf16.mxu0 %vm14624_vm12, %v14622_v28  ;;  %v14323_v19 = vld [vmem:[%s18103_s12 + $0x10] sm:$0xff]  }
 0x998   : > { %12718 = vmatprep.subr.bf16.mxu0 %v14622_v28 }
 0x99b   : > { %12719 = vmatpush3.bf16.msra.mxu0 %v16926_v60  ;;  %v14334_v60 = vld [vmem:[%s18103_s12 + $0x68] sm:$0xff]  }
 0x99c   : > { %12720 = vmatprep.subr.bf16.mxu0 %v14622_v28 }
 0x99e   : > { %12653 = vmatmul.mubr.msk.bf16.gmra.mrb[116].mxu0 %vm2333_vm6, %v14322_v48 }
 0x99f   : > { %12721 = vmatpush3.bf16.msra.mxu0 %v16931_v59  ;;  %12656 = vmatprep.mubr.msk.bf16.mxu0 %vm14624_vm12, %v14622_v28  ;;  %v14344_v59 = vld [vmem:[%s18103_s12 + $0x138] sm:$0xff]  }
 0x9a0   : > { %12722 = vmatprep.subr.bf16.mxu0 %v14622_v28 }
 0x9a3   : > { %12723 = vmatpush3.bf16.msra.mxu0 %v16936_v13  ;;  %v14358_v13 = vld [vmem:[%s18103_s12 + $0x1a4] sm:$0xff]  }
 0x9a4   : > { %12792 = vmatprep.subr.bf16.mxu0 %v14622_v28 }
 0x9a6   : > { %12657 = vmatmul.mubr.msk.bf16.gmra.mrb[120].mxu0 %vm2333_vm6, %v14323_v19 }
 0x9a7   : > { %12660 = vmatprep.mubr.msk.bf16.mxu0 %vm14624_vm12, %v14622_v28 }
 0x9ae   : > { %12661 = vmatmul.mubr.msk.bf16.gmra.mrb[124].mxu0 %vm2333_vm6, %v14324_v57 }
 0x9af   : > { %12664 = vmatprep.mubr.msk.bf16.mxu0 %vm14624_vm12, %v14622_v28 }
 0x9b6   : > { %12665 = vmatmul.mubr.msk.bf16.gmra.mrb[128].mxu0 %vm2333_vm6, %v14325_v62 }
 0x9b7   : > { %12668 = vmatprep.mubr.msk.bf16.mxu0 %vm14624_vm12, %v14622_v28 }
 0x9be   : > { %12669 = vmatmul.mubr.msk.bf16.gmra.mrb[132].mxu0 %vm2333_vm6, %v14326_v14 }
 0x9bf   : > { %12672 = vmatprep.mubr.msk.bf16.mxu0 %vm14624_vm12, %v14622_v28 }
 0x9c6   : > { %12673 = vmatmul.mubr.msk.bf16.gmra.mrb[136].mxu0 %vm2333_vm6, %v14327_v61 }
 0x9c7   : > { %12676 = vmatprep.mubr.msk.bf16.mxu0 %vm14624_vm12, %v14622_v28 }
 0x9ce   : > { %12677 = vmatmul.mubr.msk.bf16.gmra.mrb[140].mxu0 %vm2333_vm6, %v14328_v27 }
 0x9cf   : > { %12680 = vmatprep.mubr.msk.bf16.mxu0 %vm14624_vm12, %v14622_v28 }
 0x9d6   : > { %12681 = vmatmul.mubr.msk.bf16.gmra.mrb[144].mxu0 %vm2333_vm6, %v14329_v4 }
 0x9d7   : > { %12684 = vmatprep.mubr.msk.bf16.mxu0 %vm14624_vm12, %v14622_v28 }
 0x9de   : > { %12685 = vmatmul.mubr.msk.bf16.gmra.mrb[148].mxu0 %vm2333_vm6, %v14330_v3 }
 0x9df   : > { %12688 = vmatprep.mubr.msk.bf16.mxu0 %vm14624_vm12, %v14622_v28 }
 0x9e6   : > { %12689 = vmatmul.mubr.msk.bf16.gmra.mrb[152].mxu0 %vm2333_vm6, %v14331_v31 }
 0x9e7   : > { %12692 = vmatprep.mubr.msk.bf16.mxu0 %vm14624_vm12, %v14622_v28 }
 0x9ee   : > { %12693 = vmatmul.mubr.msk.bf16.gmra.mrb[156].mxu0 %vm2333_vm6, %v14332_v44 }
 0x9ef   : > { %12696 = vmatprep.mubr.msk.bf16.mxu0 %vm14624_vm12, %v14622_v28 }
 0x9f6   : > { %12697 = vmatmul.mubr.msk.bf16.gmra.mrb[160].mxu0 %vm2333_vm6, %v14333_v29 }
 0x9f7   : > { %12700 = vmatprep.mubr.msk.bf16.mxu0 %vm14624_vm12, %v14622_v28 }
 0x9fe   : > { %12701 = vmatmul.mubr.msk.bf16.gmra.mrb[164].mxu0 %vm2333_vm6, %v14334_v60 }
 0x9ff   : > { %12704 = vmatprep.mubr.msk.bf16.mxu0 %vm14624_vm12, %v14622_v28 }
 0xa06   : > { %12705 = vmatmul.mubr.msk.bf16.gmra.mrb[168].mxu0 %vm2333_vm6, %v14335_v42 }
 0xa07   : > { %12708 = vmatprep.mubr.msk.bf16.mxu0 %vm14624_vm12, %v14622_v28 }
 0xa0e   : > { %12709 = vmatmul.mubr.msk.bf16.gmra.mrb[172].mxu0 %vm2333_vm6, %v14336_v1 }
 0xa0f   : > { %12712 = vmatprep.mubr.msk.bf16.mxu0 %vm14624_vm12, %v14622_v28 }
 0xa16   : > { %12713 = vmatmul.mubr.msk.bf16.gmra.mrb[176].mxu0 %vm2333_vm6, %v14337_v54 }
 0xa17   : > { %12724 = vmatprep.mubr.msk.bf16.mxu0 %vm14624_vm12, %v14622_v28 }
 0xa1e   : > { %12725 = vmatmul.mubr.msk.bf16.vlgmr.msra.gmra.mrb[112].mxu0 %vm2333_vm6, %v14338_v21 }
 0xa1f   : > { %12793 = vmatpush3.bf16.msra.mxu0 %v7768_v11  ;;  %12728 = vmatprep.mubr.msk.bf16.mxu0 %vm14624_vm12, %v14622_v28 }
 0xa20   : > { %12794 = vmatprep.subr.bf16.mxu0 %v14622_v28 }
 0xa23   : > { %12795 = vmatpush3.bf16.msra.mxu0 %v7770_v2 }
 0xa24   : > { %12796 = vmatprep.subr.bf16.mxu0 %v14622_v28 }
 0xa26   : > { %12729 = vmatmul.mubr.msk.bf16.gmra.mrb[116].mxu0 %vm2333_vm6, %v14339_v10 }
 0xa27   : > { %12797 = vmatpush3.bf16.msra.mxu0 %v7772_v37  ;;  %12732 = vmatprep.mubr.msk.bf16.mxu0 %vm14624_vm12, %v14622_v28 }
 0xa28   : > { %12798 = vmatprep.subr.bf16.mxu0 %v14622_v28 }
 0xa2b   : > { %12799 = vmatpush3.bf16.msra.mxu0 %v7774_v40 }
 0xa2e   : > { %12733 = vmatmul.mubr.msk.bf16.gmra.mrb[120].mxu0 %vm2333_vm6, %v14340_v51  ;;  %v14377_v51 = vld [vmem:[%s18104_s13 + $0x8] sm:$0xff]  }
 0xa2f   : > { %12736 = vmatprep.mubr.msk.bf16.mxu0 %vm14624_vm12, %v14622_v28 }
 0xa36   : > { %12737 = vmatmul.mubr.msk.bf16.gmra.mrb[124].mxu0 %vm2333_vm6, %v14341_v23 }
 0xa37   : > { %12740 = vmatprep.mubr.msk.bf16.mxu0 %vm14624_vm12, %v14622_v28 }
 0xa3e   : > { %12741 = vmatmul.mubr.msk.bf16.gmra.mrb[128].mxu0 %vm2333_vm6, %v14342_v56 }
 0xa3f   : > { %12744 = vmatprep.mubr.msk.bf16.mxu0 %vm14624_vm12, %v14622_v28 }
 0xa46   : > { %12745 = vmatmul.mubr.msk.bf16.gmra.mrb[132].mxu0 %vm2333_vm6, %v14343_v45 }
 0xa47   : > { %12748 = vmatprep.mubr.msk.bf16.mxu0 %vm14624_vm12, %v14622_v28 }
 0xa4e   : > { %12749 = vmatmul.mubr.msk.bf16.gmra.mrb[136].mxu0 %vm2333_vm6, %v14344_v59 }
 0xa4f   : > { %12752 = vmatprep.mubr.msk.bf16.mxu0 %vm14624_vm12, %v14622_v28 }
 0xa56   : > { %12753 = vmatmul.mubr.msk.bf16.gmra.mrb[140].mxu0 %vm2333_vm6, %v14345_v6 }
 0xa57   : > { %12756 = vmatprep.mubr.msk.bf16.mxu0 %vm14624_vm12, %v14622_v28 }
 0xa5e   : > { %12757 = vmatmul.mubr.msk.bf16.gmra.mrb[144].mxu0 %vm2333_vm6, %v14346_v49  ;;  %v14378_v49 = vld [vmem:[%s18104_s13 + $0x10] sm:$0xff]  }
 0xa5f   : > { %12760 = vmatprep.mubr.msk.bf16.mxu0 %vm14624_vm12, %v14622_v28 }
 0xa66   : > { %12761 = vmatmul.mubr.msk.bf16.gmra.mrb[148].mxu0 %vm2333_vm6, %v14347_v36 }
 0xa67   : > { %12764 = vmatprep.mubr.msk.bf16.mxu0 %vm14624_vm12, %v14622_v28 }
 0xa6e   : > { %12765 = vmatmul.mubr.msk.bf16.gmra.mrb[152].mxu0 %vm2333_vm6, %v14348_v22 }
 0xa6f   : > { %12768 = vmatprep.mubr.msk.bf16.mxu0 %vm14624_vm12, %v14622_v28 }
 0xa76   : > { %12769 = vmatmul.mubr.msk.bf16.gmra.mrb[156].mxu0 %vm2333_vm6, %v14349_v0 }
 0xa77   : > { %12772 = vmatprep.mubr.msk.bf16.mxu0 %vm14624_vm12, %v14622_v28 }
 0xa7e   : > { %12773 = vmatmul.mubr.msk.bf16.gmra.mrb[160].mxu0 %vm2333_vm6, %v14350_v46 }
 0xa7f   : > { %12776 = vmatprep.mubr.msk.bf16.mxu0 %vm14624_vm12, %v14622_v28 }
 0xa86   : > { %12777 = vmatmul.mubr.msk.bf16.gmra.mrb[164].mxu0 %vm2333_vm6, %v14351_v34 }
 0xa87   : > { %12780 = vmatprep.mubr.msk.bf16.mxu0 %vm14624_vm12, %v14622_v28 }
 0xa8e   : > { %12781 = vmatmul.mubr.msk.bf16.gmra.mrb[168].mxu0 %vm2333_vm6, %v14352_v25  ;;  %v14379_v25 = vld [vmem:[%s18104_s13 + $0x18] sm:$0xff]  }
 0xa8f   : > { %12784 = vmatprep.mubr.msk.bf16.mxu0 %vm14624_vm12, %v14622_v28 }
 0xa96   : > { %12785 = vmatmul.mubr.msk.bf16.gmra.mrb[172].mxu0 %vm2333_vm6, %v14353_v43 }
 0xa97   : > { %12788 = vmatprep.mubr.msk.bf16.mxu0 %vm14624_vm12, %v14622_v28 }
 0xa9e   : > { %12789 = vmatmul.mubr.msk.bf16.gmra.mrb[176].mxu0 %vm2333_vm6, %v14354_v17 }
 0xa9f   : > { %12800 = vmatprep.mubr.msk.bf16.mxu0 %vm14624_vm12, %v14622_v28 }
 0xaa6   : > { %12801 = vmatmul.mubr.msk.bf16.vlgmr.msra.gmra.mrb[112].mxu0 %vm2333_vm6, %v14355_v50 }
 0xaa7   : > { %12804 = vmatprep.mubr.msk.bf16.mxu0 %vm14624_vm12, %v14622_v28 }
 0xaae   : > { %12805 = vmatmul.mubr.msk.bf16.gmra.mrb[116].mxu0 %vm2333_vm6, %v14356_v33 }
 0xaaf   : > { %12808 = vmatprep.mubr.msk.bf16.mxu0 %vm14624_vm12, %v14622_v28 }
 0xab6   : > { %12809 = vmatmul.mubr.msk.bf16.gmra.mrb[120].mxu0 %vm2333_vm6, %v14357_v8 }
 0xab7   : > { %12812 = vmatprep.mubr.msk.bf16.mxu0 %vm14624_vm12, %v14622_v28 }
 0xabe   : > { %12813 = vmatmul.mubr.msk.bf16.gmra.mrb[124].mxu0 %vm2333_vm6, %v14358_v13  ;;  %v17427_v13 = vld [vmem:[%s18104_s13 + $0x40] sm:$0xff]  }
 0xabf   : > { %12816 = vmatprep.mubr.msk.bf16.mxu0 %vm14624_vm12, %v14622_v28 }
 0xac6   : > { %12817 = vmatmul.mubr.msk.bf16.gmra.mrb[128].mxu0 %vm2333_vm6, %v14359_v39 }
 0xac7   : > { %12820 = vmatprep.mubr.msk.bf16.mxu0 %vm14624_vm12, %v14622_v28 }
 0xace   : > { %12821 = vmatmul.mubr.msk.bf16.gmra.mrb[132].mxu0 %vm2333_vm6, %v14360_v26 }
 0xacf   : > { %12824 = vmatprep.mubr.msk.bf16.mxu0 %vm14624_vm12, %v14622_v28 }
 0xad6   : > { %12825 = vmatmul.mubr.msk.bf16.gmra.mrb[136].mxu0 %vm2333_vm6, %v14361_v63 }
 0xad7   : > { %12828 = vmatprep.mubr.msk.bf16.mxu0 %vm14624_vm12, %v14622_v28 }
 0xade   : > { %12829 = vmatmul.mubr.msk.bf16.gmra.mrb[140].mxu0 %vm2333_vm6, %v14362_v18 }
 0xadf   : > { %12832 = vmatprep.mubr.msk.bf16.mxu0 %vm14624_vm12, %v14622_v28 }
 0xae6   : > { %12833 = vmatmul.mubr.msk.bf16.gmra.mrb[144].mxu0 %vm2333_vm6, %v14363_v53 }
 0xae7   : > { %12836 = vmatprep.mubr.msk.bf16.mxu0 %vm14624_vm12, %v14622_v28 }
 0xaee   : > { %12837 = vmatmul.mubr.msk.bf16.gmra.mrb[148].mxu0 %vm2333_vm6, %v14364_v24 }
 0xaef   : > { %12840 = vmatprep.mubr.msk.bf16.mxu0 %vm14624_vm12, %v14622_v28 }
 0xaf6   : > { %12841 = vmatmul.mubr.msk.bf16.gmra.mrb[152].mxu0 %vm2333_vm6, %v14365_v32 }
 0xaf7   : > { %12844 = vmatprep.mubr.msk.bf16.mxu0 %vm14624_vm12, %v14622_v28 }
 0xafe   : > { %12845 = vmatmul.mubr.msk.bf16.gmra.mrb[156].mxu0 %vm2333_vm6, %v14366_v7 }
 0xaff   : > { %12848 = vmatprep.mubr.msk.bf16.mxu0 %vm14624_vm12, %v14622_v28 }
 0xb06   : > { %12849 = vmatmul.mubr.msk.bf16.gmra.mrb[160].mxu0 %vm2333_vm6, %v14367_v58 }
 0xb07   : > { %12852 = vmatprep.mubr.msk.bf16.mxu0 %vm14624_vm12, %v14622_v28 }
 0xb0e   : > { %12853 = vmatmul.mubr.msk.bf16.gmra.mrb[164].mxu0 %vm2333_vm6, %v14368_v15 }
 0xb0f   : > { %12856 = vmatprep.mubr.msk.bf16.mxu0 %vm14624_vm12, %v14622_v28 }
 0xb16   : > { %12857 = vmatmul.mubr.msk.bf16.gmra.mrb[168].mxu0 %vm2333_vm6, %v14369_v35 }
 0xb17   : > { %12860 = vmatprep.mubr.msk.bf16.mxu0 %vm14624_vm12, %v14622_v28 }
 0xb1e   : > { %12861 = vmatmul.mubr.msk.bf16.gmra.mrb[172].mxu0 %vm2333_vm6, %v14370_v52 }
 0xb1f   : > { %12864 = vmatprep.mubr.msk.bf16.mxu0 %vm14624_vm12, %v14622_v28 }
 0xb26   : > { %12865 = vmatmul.mubr.msk.bf16.gmra.mrb[176].mxu0 %vm2333_vm6, %v14371_v41 }
 0xb79   : > { %v7864_v38 = vpop.f32.mrb[112].mxu0 }
 0xb7a   : > { %v12802_v9 = vpop.f32.mrb[113].mxu0 }
 0xb7b   : > { %v7867_v16 = vpop.f32.mrb[114].mxu0 }
 0xb7c   : > { %v17386_v47 = vpack.c.bf16 %v7867_v16, %v7864_v38  ;;  %v12803_v48 = vpop.f32.mrb[115].mxu0 }
 0xb7e   : > { %v8066_v19 = vshll.u32 %v17386_v47, 16  ;;  %v8064_v4 = vshrl.u32 %v17386_v47, 16 }
 0xb80   : > { %v8068_v14 = vrot.slane %v8066_v19, 1 }
 0xb81   : > { %v7872_v28 = vpop.f32.mrb[116].mxu0 }
 0xb82   : > { %v12806_v57 = vpop.f32.mrb[117].mxu0  ;;  %v8069_v31 = vor.u32 %v8068_v14, %v8064_v4 }
 0xb83   : > { %v7875_v62 = vpop.f32.mrb[118].mxu0 }
 0xb84   : > { %v17389_v61 = vpack.c.bf16 %v7875_v62, %v7872_v28  ;;  %v12807_v27 = vpop.f32.mrb[119].mxu0 }
 0xb86   : > { %v8071_v3 = vshll.u32 %v17389_v61, 16  ;;  %v8075_v11 = vshrl.u32 %v17389_v61, 16 }
 0xb88   : > { %v8073_v44 = vrot.slane %v8071_v3, 1 }
 0xb89   : > { %v7880_v29 = vpop.f32.mrb[120].mxu0 }
 0xb8a   : > { %v12810_v60 = vpop.f32.mrb[121].mxu0  ;;  %v8074_v42 = vsel %vm630_vm1, %v8069_v31, %v8073_v44  ;;  %v8077_v10 = vor.u32 %v8075_v11, %v8073_v44 }
 0xb8b   : > { %v7883_v1 = vpop.f32.mrb[122].mxu0  ;;  %12876 = vmatprep.mubr.msk.bf16.mxu1 %vm2333_vm6, %v8074_v42 }
 0xb8c   : > { %v17395_v54 = vpack.c.bf16 %v7883_v1, %v7880_v29  ;;  %v12811_v21 = vpop.f32.mrb[123].mxu0 }
 0xb8e   : > { %v8079_v2 = vshll.u32 %v17395_v54, 16  ;;  %v8083_v36 = vshrl.u32 %v17395_v54, 16 }
 0xb90   : > { %v8081_v37 = vrot.slane %v8079_v2, 1 }
 0xb91   : > { %v7888_v40 = vpop.f32.mrb[124].mxu0 }
 0xb92   : > { %v12814_v23 = vpop.f32.mrb[125].mxu0  ;;  %v17403_v56 = vsel %vm630_vm1, %v8077_v10, %v8081_v37  ;;  %v8085_v0 = vor.u32 %v8083_v36, %v8081_v37 }
 0xb93   : > { %v7891_v45 = vpop.f32.mrb[126].mxu0  ;;  %12877 = vmatmul.mubr.msk.bf16.vlgmr.msra.gmra.mrb[92].mxu1 %vm2333_vm6, %v17403_v56 }
 0xb94   : > { %v17407_v59 = vpack.c.bf16 %v7891_v45, %v7888_v40  ;;  %v12815_v6 = vpop.f32.mrb[127].mxu0  ;;  %12905 = vmatpush3.bf16.msra.mxu1 %v14376_v12 }
 0xb95   : > { %12906 = vmatprep.subr.bf16.mxu1 %v14377_v51 }
 0xb96   : > { %v8087_v22 = vshll.u32 %v17407_v59, 16  ;;  %v8091_v39 = vshrl.u32 %v17407_v59, 16 }
 0xb98   : > { %v8089_v46 = vrot.slane %v8087_v22, 1  ;;  %12907 = vmatpush3.bf16.msra.mxu1 %v14377_v51 }
 0xb99   : > { %v7896_v34 = vpop.f32.mrb[128].mxu0  ;;  %12908 = vmatprep.subr.bf16.mxu1 %v14378_v49 }
 0xb9a   : > { %v12818_v43 = vpop.f32.mrb[129].mxu0  ;;  %v17418_v17 = vsel %vm630_vm1, %v8085_v0, %v8089_v46  ;;  %v8093_v63 = vor.u32 %v8091_v39, %v8089_v46 }
 0xb9b   : > { %v7899_v50 = vpop.f32.mrb[130].mxu0  ;;  %12880 = vmatprep.mubr.msk.bf16.mxu1 %vm2333_vm6, %v17418_v17 }
 0xb9c   : > { %v17422_v33 = vpack.c.bf16 %v7899_v50, %v7896_v34  ;;  %v12819_v8 = vpop.f32.mrb[131].mxu0  ;;  %12909 = vmatpush3.bf16.msra.mxu1 %v14378_v49 }
 0xb9d   : > { %12910 = vmatprep.subr.bf16.mxu1 %v14379_v25 }
 0xb9e   : > { %v8095_v26 = vshll.u32 %v17422_v33, 16  ;;  %v8099_v5 = vshrl.u32 %v17422_v33, 16 }
 0xba0   : > { %v8097_v18 = vrot.slane %v8095_v26, 1  ;;  %12911 = vmatpush3.bf16.msra.mxu1 %v14379_v25 }
 0xba1   : > { %v7904_v53 = vpop.f32.mrb[132].mxu0  ;;  %12940 = vmatprep.subr.bf16.mxu1 %v17427_v13 }
 0xba2   : > { %v12822_v24 = vpop.f32.mrb[133].mxu0  ;;  %v17433_v32 = vsel %vm630_vm1, %v8093_v63, %v8097_v18  ;;  %v8101_v20 = vor.u32 %v8099_v5, %v8097_v18 }
 0xba3   : > { %v7907_v7 = vpop.f32.mrb[134].mxu0  ;;  %12881 = vmatmul.mubr.msk.bf16.gmra.mrb[96].mxu1 %vm2333_vm6, %v17433_v32 }
 0xba4   : > { %v17437_v58 = vpack.c.bf16 %v7907_v7, %v7904_v53  ;;  %v12823_v30 = vpop.f32.mrb[135].mxu0 }
 0xba6   : > { %v8103_v15 = vshll.u32 %v17437_v58, 16  ;;  %v8107_v16 = vshrl.u32 %v17437_v58, 16 }
 0xba8   : > { %v8105_v55 = vrot.slane %v8103_v15, 1 }
 0xba9   : > { %v7912_v35 = vpop.f32.mrb[136].mxu0 }
 0xbaa   : > { %v12826_v52 = vpop.f32.mrb[137].mxu0  ;;  %v17442_v41 = vsel %vm630_vm1, %v8101_v20, %v8105_v55  ;;  %v8109_v19 = vor.u32 %v8107_v16, %v8105_v55 }
 0xbab   : > { %v7915_v12 = vpop.f32.mrb[138].mxu0  ;;  %12884 = vmatprep.mubr.msk.bf16.mxu1 %vm2333_vm6, %v17442_v41 }
 0xbac   : > { %v17446_v38 = vpack.c.bf16 %v7915_v12, %v7912_v35  ;;  %v12827_v9 = vpop.f32.mrb[139].mxu0 }
 0xbae   : > { %v8111_v48 = vshll.u32 %v17446_v38, 16  ;;  %v8115_v31 = vshrl.u32 %v17446_v38, 16 }
 0xbb0   : > { %v8113_v28 = vrot.slane %v8111_v48, 1 }
 0xbb1   : > { %v7920_v57 = vpop.f32.mrb[140].mxu0 }
 0xbb2   : > { %v12830_v62 = vpop.f32.mrb[141].mxu0  ;;  %v17451_v14 = vsel %vm630_vm1, %v8109_v19, %v8113_v28  ;;  %v8117_v29 = vor.u32 %v8115_v31, %v8113_v28 }
 0xbb3   : > { %v7923_v27 = vpop.f32.mrb[142].mxu0  ;;  %12885 = vmatmul.mubr.msk.bf16.gmra.mrb[100].mxu1 %vm2333_vm6, %v17451_v14 }
 0xbb4   : > { %v17455_v4 = vpack.c.bf16 %v7923_v27, %v7920_v57  ;;  %v12831_v3 = vpop.f32.mrb[143].mxu0 }
 0xbb6   : > { %v8119_v44 = vshll.u32 %v17455_v4, 16  ;;  %v8123_v37 = vshrl.u32 %v17455_v4, 16 }
 0xbb8   : > { %v8121_v60 = vrot.slane %v8119_v44, 1 }
 0xbb9   : > { %v7928_v42 = vpop.f32.mrb[144].mxu0 }
 0xbba   : > { %v12834_v1 = vpop.f32.mrb[145].mxu0  ;;  %v17460_v21 = vsel %vm630_vm1, %v8117_v29, %v8121_v60  ;;  %v8125_v51 = vor.u32 %v8123_v37, %v8121_v60 }
 0xbbb   : > { %v7931_v11 = vpop.f32.mrb[146].mxu0  ;;  %12888 = vmatprep.mubr.msk.bf16.mxu1 %vm2333_vm6, %v17460_v21 }
 0xbbc   : > { %v17464_v2 = vpack.c.bf16 %v7931_v11, %v7928_v42  ;;  %v12835_v10 = vpop.f32.mrb[147].mxu0 }
 0xbbe   : > { %v8127_v40 = vshll.u32 %v17464_v2, 16  ;;  %v8131_v46 = vshrl.u32 %v17464_v2, 16 }
 0xbc0   : > { %v8129_v23 = vrot.slane %v8127_v40, 1 }
 0xbc1   : > { %v7936_v45 = vpop.f32.mrb[148].mxu0 }
 0xbc2   : > { %v12838_v6 = vpop.f32.mrb[149].mxu0  ;;  %v17469_v49 = vsel %vm630_vm1, %v8125_v51, %v8129_v23  ;;  %v8133_v25 = vor.u32 %v8131_v46, %v8129_v23 }
 0xbc3   : > { %v7939_v36 = vpop.f32.mrb[150].mxu0  ;;  %12889 = vmatmul.mubr.msk.bf16.gmra.mrb[104].mxu1 %vm2333_vm6, %v17469_v49 }
 0xbc4   : > { %v17473_v22 = vpack.c.bf16 %v7939_v36, %v7936_v45  ;;  %v12839_v0 = vpop.f32.mrb[151].mxu0 }
 0xbc6   : > { %v8135_v34 = vshll.u32 %v17473_v22, 16  ;;  %v8139_v53 = vshrl.u32 %v17473_v22, 16 }
 0xbc8   : > { %v8137_v43 = vrot.slane %v8135_v34, 1 }
 0xbc9   : > { %v7944_v50 = vpop.f32.mrb[152].mxu0 }
 0xbca   : > { %v12842_v8 = vpop.f32.mrb[153].mxu0  ;;  %v17478_v39 = vsel %vm630_vm1, %v8133_v25, %v8137_v43  ;;  %v8141_v7 = vor.u32 %v8139_v53, %v8137_v43 }
 0xbcb   : > { %v7947_v26 = vpop.f32.mrb[154].mxu0  ;;  %12892 = vmatprep.mubr.msk.bf16.mxu1 %vm2333_vm6, %v17478_v39 }
 0xbcc   : > { %v17482_v63 = vpack.c.bf16 %v7947_v26, %v7944_v50  ;;  %v12843_v18 = vpop.f32.mrb[155].mxu0 }
 0xbce   : > { %v8143_v24 = vshll.u32 %v17482_v63, 16  ;;  %v8147_v12 = vshrl.u32 %v17482_v63, 16 }
 0xbd0   : > { %v8145_v30 = vrot.slane %v8143_v24, 1 }
 0xbd1   : > { %v7952_v5 = vpop.f32.mrb[156].mxu0 }
 0xbd2   : > { %v12846_v15 = vpop.f32.mrb[157].mxu0  ;;  %v17487_v20 = vsel %vm630_vm1, %v8141_v7, %v8145_v30  ;;  %v8149_v16 = vor.u32 %v8147_v12, %v8145_v30 }
 0xbd3   : > { %v7955_v55 = vpop.f32.mrb[158].mxu0  ;;  %12893 = vmatmul.mubr.msk.bf16.gmra.mrb[108].mxu1 %vm2333_vm6, %v17487_v20 }
 0xbd4   : > { %v17491_v35 = vpack.c.bf16 %v7955_v55, %v7952_v5  ;;  %v12847_v52 = vpop.f32.mrb[159].mxu0 }
 0xbd5   : > { %v14381_v52 = vld [vmem:[%s18104_s13 + $0x48] sm:$0xff]  }
 0xbd6   : > { %v8151_v9 = vshll.u32 %v17491_v35, 16  ;;  %v8155_v31 = vshrl.u32 %v17491_v35, 16 }
 0xbd8   : > { %v8153_v48 = vrot.slane %v8151_v9, 1 }
 0xbd9   : > { %v7960_v19 = vpop.f32.mrb[160].mxu0 }
 0xbda   : > { %v12850_v28 = vpop.f32.mrb[161].mxu0  ;;  %v17496_v57 = vsel %vm630_vm1, %v8149_v16, %v8153_v48  ;;  %v8157_v29 = vor.u32 %v8155_v31, %v8153_v48  ;;  %v14382_v48 = vld [vmem:[%s18104_s13 + $0x50] sm:$0xff]  }
 0xbdb   : > { %v7963_v62 = vpop.f32.mrb[162].mxu0  ;;  %12896 = vmatprep.mubr.msk.bf16.mxu1 %vm2333_vm6, %v17496_v57  ;;  %v14383_v28 = vld [vmem:[%s18104_s13 + $0x58] sm:$0xff]  }
 0xbdc   : > { %v17500_v27 = vpack.c.bf16 %v7963_v62, %v7960_v19  ;;  %v12851_v3 = vpop.f32.mrb[163].mxu0  ;;  %v8612_v62 = vrot.slane %v17389_v61, 1 }
 0xbdd   : > { %v8611_v3 = vrot.slane %v17386_v47, 1 }
 0xbde   : > { %v8159_v44 = vshll.u32 %v17500_v27, 16  ;;  %v8163_v51 = vshrl.u32 %v17500_v27, 16 }
 0xbdf   : > { %v8613_v31 = vsel %vm5093_vm9, %v8611_v3, %v8612_v62  ;;  %v14392_v3 = vld [vmem:[%s18104_s13 + $0xa0] sm:$0xff]  }
 0xbe0   : > { %v8161_v60 = vrot.slane %v8159_v44, 1  ;;  %v8614_v44 = vrot.slane %v17395_v54, 1 }
 0xbe1   : > { %v7968_v42 = vpop.f32.mrb[164].mxu0 }
 0xbe2   : > { %v12854_v1 = vpop.f32.mrb[165].mxu0  ;;  %v17505_v11 = vsel %vm630_vm1, %v8157_v29, %v8161_v60  ;;  %v8165_v45 = vor.u32 %v8163_v51, %v8161_v60  ;;  %v8616_v29 = vrot.slane %v17407_v59, 1  ;;  %v14385_v60 = vld [vmem:[%s18104_s13 + $0x68] sm:$0xff]   ;;  %v14387_v51 = vld [vmem:[%s18104_s13 + $0x78] sm:$0xff]  }
 0xbe3   : > { %v7971_v10 = vpop.f32.mrb[166].mxu0  ;;  %12897 = vmatmul.mubr.msk.bf16.gmra.mrb[112].mxu1 %vm2333_vm6, %v17505_v11  ;;  %v14386_v1 = vld [vmem:[%s18104_s13 + $0x70] sm:$0xff]  }
 0xbe4   : > { %v17509_v37 = vpack.c.bf16 %v7971_v10, %v7968_v42  ;;  %v12855_v40 = vpop.f32.mrb[167].mxu0  ;;  %v17587_v42 = vsel %vm5093_vm9, %v8612_v62, %v8614_v44  ;;  %v8618_v10 = vrot.slane %v17422_v33, 1  ;;  %v14389_v62 = vld [vmem:[%s18104_s13 + $0x88] sm:$0xff]  }
 0xbe5   : > { %v8620_v40 = vrot.slane %v17437_v58, 1 }
 0xbe6   : > { %v8167_v23 = vshll.u32 %v17509_v37, 16  ;;  %v8171_v26 = vshrl.u32 %v17509_v37, 16 }
 0xbe8   : > { %v8169_v6 = vrot.slane %v8167_v23, 1  ;;  %v17605_v23 = vsel %vm5093_vm9, %v8616_v29, %v8618_v10 }
 0xbe9   : > { %v7976_v36 = vpop.f32.mrb[168].mxu0 }
 0xbea   : > { %v17513_v0 = vpack.c.bf16 %v7976_v36, %v7976_v36  ;;  %v12858_v46 = vpop.f32.mrb[169].mxu0  ;;  %v17516_v34 = vsel %vm630_vm1, %v8165_v45, %v8169_v6  ;;  %v17524_v53 = vor.u32 %v8171_v26, %v8169_v6  ;;  %v17610_v45 = vsel %vm5093_vm9, %v8618_v10, %v8620_v40  ;;  %v14388_v6 = vld [vmem:[%s18104_s13 + $0x80] sm:$0xff]  }
 0xbeb   : > { %v7979_v25 = vpop.f32.mrb[170].mxu0  ;;  %12900 = vmatprep.mubr.msk.bf16.mxu1 %vm2333_vm6, %v17516_v34  ;;  %v8624_v46 = vrot.slane %v17455_v4, 1  ;;  %v8628_v26 = vrot.slane %v17473_v22, 1 }
 0xbec   : > { %v8175_v43 = vshll.u32 %v17513_v0, 16  ;;  %v17521_v50 = vpack.c.bf16 %v7979_v25, %v7976_v36  ;;  %v12859_v8 = vpop.f32.mrb[171].mxu0  ;;  %v8622_v36 = vrot.slane %v17446_v38, 1 }
 0xbed   : > { %v8626_v8 = vrot.slane %v17464_v2, 1 }
 0xbee   : > { %v8177_v18 = vrot.slane %v8175_v43, 1  ;;  %v17620_v25 = vsel %vm5093_vm9, %v8620_v40, %v8622_v36  ;;  %v17625_v43 = vsel %vm5093_vm9, %v8622_v36, %v8624_v46  ;;  %v9103_v36 = vshrl.u32 %v17521_v50, 16 }
 0xbf0   : > { %v8178_v24 = vsel %vm630_vm1, %v17524_v53, %v8177_v18  ;;  %v17632_v18 = vsel %vm5093_vm9, %v8624_v46, %v8626_v8 }
 0xbf1   : > { %v17528_v7 = vpop.f32.mrb[172].mxu0  ;;  %12901 = vmatmul.mubr.msk.bf16.gmra.mrb[116].mxu1 %vm2333_vm6, %v8178_v24  ;;  %v17637_v24 = vsel %vm5093_vm9, %v8626_v8, %v8628_v26  ;;  %v14398_v8 = vld [vmem:[%s18104_s13 + $0xd0] sm:$0xff]  }
 0xbf2   : > { %v12862_v30 = vpop.f32.mrb[173].mxu0  ;;  %12912 = vmatprep.mubr.msk.bf16.mxu1 %vm2333_vm6, %v17386_v47  ;;  %v17592_v47 = vsel %vm5093_vm9, %v8614_v44, %v8616_v29  ;;  %v14394_v44 = vld [vmem:[%s18104_s13 + $0xb0] sm:$0xff]   ;;  %v14396_v29 = vld [vmem:[%s18104_s13 + $0xc0] sm:$0xff]  }
 0xbf3   : > { %v7987_v5 = vpop.f32.mrb[174].mxu0  ;;  %v8630_v30 = vrot.slane %v17482_v63, 1 }
 0xbf4   : > { %v17534_v15 = vpack.c.bf16 %v7987_v5, %v17528_v7  ;;  %v12863_v55 = vpop.f32.mrb[175].mxu0  ;;  %v8632_v5 = vrot.slane %v17491_v35, 1 }
 0xbf5   : > { %v17644_v55 = vsel %vm5093_vm9, %v8628_v26, %v8630_v30  ;;  %v14400_v26 = vld [vmem:[%s18104_s13 + $0xe0] sm:$0xff]  }
 0xbf9   : > { %v17539_v12 = vpop.f32.mrb[176].mxu0  ;;  %12913 = vmatmul.mubr.msk.bf16.vlgmr.msra.gmra.mrb[92].mxu1 %vm2333_vm6, %v17389_v61 }
 0xbfa   : > { %v12866_v9 = vpop.f32.mrb[177].mxu0  ;;  %12916 = vmatprep.mubr.msk.bf16.mxu1 %vm2333_vm6, %v17395_v54  ;;  %12941 = vmatpush3.bf16.msra.mxu1 %v17427_v13  ;;  %v14384_v13 = vld [vmem:[%s18104_s13 + $0x60] sm:$0xff]  }
 0xbfb   : > { %v7995_v16 = vpop.f32.mrb[178].mxu0  ;;  %12942 = vmatprep.subr.bf16.mxu1 %v14381_v52  ;;  %v8634_v9 = vrot.slane %v17500_v27, 1 }
 0xbfc   : > { %v12867_v19 = vpop.f32.mrb[179].mxu0  ;;  %v17655_v16 = vrot.slane %v17509_v37, 1 }
 0xbfe   : > { %12943 = vmatpush3.bf16.msra.mxu1 %v14381_v52  ;;  %v17649_v52 = vsel %vm5093_vm9, %v8630_v30, %v8632_v5  ;;  %v17664_v19 = vsel %vm5093_vm9, %v8634_v9, %v17655_v16  ;;  %v17798_v30 = vrot.slane %v17521_v50, 1 }
 0xbff   : > { %12944 = vmatprep.subr.bf16.mxu1 %v14382_v48 }
 0xc01   : > { %12917 = vmatmul.mubr.msk.bf16.gmra.mrb[96].mxu1 %vm2333_vm6, %v17407_v59 }
 0xc02   : > { %12920 = vmatprep.mubr.msk.bf16.mxu1 %vm2333_vm6, %v17422_v33  ;;  %12945 = vmatpush3.bf16.msra.mxu1 %v14382_v48  ;;  %v17658_v48 = vsel %vm5093_vm9, %v8632_v5, %v8634_v9  ;;  %v17805_v5 = vsel %vm5093_vm9, %v17655_v16, %v17798_v30 }
 0xc03   : > { %12946 = vmatprep.subr.bf16.mxu1 %v14383_v28 }
 0xc06   : > { %12947 = vmatpush3.bf16.msra.mxu1 %v14383_v28  ;;  %v8638_v28 = vrot.slane %v17513_v0, 1  ;;  %v14390_v0 = vld [vmem:[%s18104_s13 + $0x90] sm:$0xff]  }
 0xc07   : > { %12976 = vmatprep.subr.bf16.mxu1 %v14384_v13 }
 0xc09   : > { %12921 = vmatmul.mubr.msk.bf16.gmra.mrb[100].mxu1 %vm2333_vm6, %v17437_v58 }
 0xc0a   : > { %12924 = vmatprep.mubr.msk.bf16.mxu1 %vm2333_vm6, %v17446_v38 }
 0xc11   : > { %12925 = vmatmul.mubr.msk.bf16.gmra.mrb[104].mxu1 %vm2333_vm6, %v17455_v4 }
 0xc12   : > { %12928 = vmatprep.mubr.msk.bf16.mxu1 %vm2333_vm6, %v17464_v2 }
 0xc19   : > { %12929 = vmatmul.mubr.msk.bf16.gmra.mrb[108].mxu1 %vm2333_vm6, %v17473_v22 }
 0xc1a   : > { %12932 = vmatprep.mubr.msk.bf16.mxu1 %vm2333_vm6, %v17482_v63 }
 0xc21   : > { %12933 = vmatmul.mubr.msk.bf16.gmra.mrb[112].mxu1 %vm2333_vm6, %v17491_v35 }
 0xc22   : > { %12936 = vmatprep.mubr.msk.bf16.mxu1 %vm2333_vm6, %v17500_v27 }
 0xc29   : > { %12937 = vmatmul.mubr.msk.bf16.gmra.mrb[116].mxu1 %vm2333_vm6, %v17509_v37 }
 0xc2a   : > { %12948 = vmatprep.mubr.msk.bf16.mxu1 %vm2333_vm6, %v8613_v31  ;;  %v14393_v31 = vld [vmem:[%s18104_s13 + $0xa8] sm:$0xff]  }
 0xc31   : > { %12949 = vmatmul.mubr.msk.bf16.vlgmr.msra.gmra.mrb[92].mxu1 %vm2333_vm6, %v17587_v42 }
 0xc32   : > { %12952 = vmatprep.mubr.msk.bf16.mxu1 %vm2333_vm6, %v17592_v47  ;;  %12977 = vmatpush3.bf16.msra.mxu1 %v14384_v13  ;;  %v8639_v13 = vsel %vm5093_vm9, %v17655_v16, %v8638_v28  ;;  %v14402_v16 = vld [vmem:[%s18104_s13 + $0xf0] sm:$0xff]  }
 0xc33   : > { %12978 = vmatprep.subr.bf16.mxu1 %v14385_v60 }
 0xc36   : > { %12979 = vmatpush3.bf16.msra.mxu1 %v14385_v60  ;;  %v9099_v60 = vshll.u32 %v17521_v50, 16 }
 0xc37   : > { %12980 = vmatprep.subr.bf16.mxu1 %v14386_v1 }
 0xc38   : > { %v9101_v10 = vrot.slane %v9099_v60, 1 }
 0xc39   : > { %12953 = vmatmul.mubr.msk.bf16.gmra.mrb[96].mxu1 %vm2333_vm6, %v17605_v23 }
 0xc3a   : > { %12956 = vmatprep.mubr.msk.bf16.mxu1 %vm2333_vm6, %v17610_v45  ;;  %12981 = vmatpush3.bf16.msra.mxu1 %v14386_v1  ;;  %v9089_v1 = vpack.c.bf16 %v17528_v7, %v17528_v7  ;;  %v17758_v46 = vor.u32 %v9103_v36, %v9101_v10 }
 0xc3b   : > { %12982 = vmatprep.subr.bf16.mxu1 %v14387_v51 }
 0xc3c   : > { %v9107_v40 = vshll.u32 %v9089_v1, 16  ;;  %v9327_v9 = vrot.slane %v9089_v1, 1 }
 0xc3e   : > { %12983 = vmatpush3.bf16.msra.mxu1 %v14387_v51  ;;  %v17753_v51 = vsel %vm630_vm1, %v17524_v53, %v9101_v10  ;;  %v14397_v53 = vld [vmem:[%s18104_s13 + $0xc8] sm:$0xff]   ;;  %v9328_v28 = vsel %vm5093_vm9, %v17798_v30, %v9327_v9 }
 0xc3f   : > { %13012 = vmatprep.subr.bf16.mxu1 %v14388_v6 }
 0xc41   : > { %12957 = vmatmul.mubr.msk.bf16.gmra.mrb[100].mxu1 %vm2333_vm6, %v17620_v25 }
 0xc42   : > { %12960 = vmatprep.mubr.msk.bf16.mxu1 %vm2333_vm6, %v17625_v43 }
 0xc49   : > { %12961 = vmatmul.mubr.msk.bf16.gmra.mrb[104].mxu1 %vm2333_vm6, %v17632_v18 }
 0xc4a   : > { %12964 = vmatprep.mubr.msk.bf16.mxu1 %vm2333_vm6, %v17637_v24 }
 0xc51   : > { %12965 = vmatmul.mubr.msk.bf16.gmra.mrb[108].mxu1 %vm2333_vm6, %v17644_v55 }
 0xc52   : > { %12968 = vmatprep.mubr.msk.bf16.mxu1 %vm2333_vm6, %v17649_v52 }
 0xc59   : > { %12969 = vmatmul.mubr.msk.bf16.gmra.mrb[112].mxu1 %vm2333_vm6, %v17658_v48 }
 0xc5a   : > { %12972 = vmatprep.mubr.msk.bf16.mxu1 %vm2333_vm6, %v17664_v19 }
 0xc61   : > { %12973 = vmatmul.mubr.msk.bf16.gmra.mrb[116].mxu1 %vm2333_vm6, %v8639_v13  ;;  %v14401_v13 = vld [vmem:[%s18104_s13 + $0xe8] sm:$0xff]  }
 0xc62   : > { %12984 = vmatprep.mubr.msk.bf16.mxu1 %vm2333_vm6, %v17389_v61  ;;  %v14391_v61 = vld [vmem:[%s18104_s13 + $0x98] sm:$0xff]  }
 0xc69   : > { %12985 = vmatmul.mubr.msk.bf16.vlgmr.msra.gmra.mrb[92].mxu1 %vm2333_vm6, %v17395_v54 }
 0xc6a   : > { %12988 = vmatprep.mubr.msk.bf16.mxu1 %vm2333_vm6, %v17407_v59  ;;  %13013 = vmatpush3.bf16.msra.mxu1 %v14388_v6  ;;  %v9109_v6 = vrot.slane %v9107_v40, 1 }
 0xc6b   : > { %13014 = vmatprep.subr.bf16.mxu1 %v14389_v62 }
 0xc6c   : > { %v9110_v7 = vsel %vm630_vm1, %v17758_v46, %v9109_v6 }
 0xc6e   : > { %13015 = vmatpush3.bf16.msra.mxu1 %v14389_v62 }
 0xc6f   : > { %13016 = vmatprep.subr.bf16.mxu1 %v14390_v0 }
 0xc71   : > { %12989 = vmatmul.mubr.msk.bf16.gmra.mrb[96].mxu1 %vm2333_vm6, %v17422_v33 }
 0xc72   : > { %12992 = vmatprep.mubr.msk.bf16.mxu1 %vm2333_vm6, %v17437_v58  ;;  %13017 = vmatpush3.bf16.msra.mxu1 %v14390_v0 }
 0xc73   : > { %13018 = vmatprep.subr.bf16.mxu1 %v14391_v61 }
 0xc76   : > { %13019 = vmatpush3.bf16.msra.mxu1 %v14391_v61 }
 0xc77   : > { %13048 = vmatprep.subr.bf16.mxu1 %v14392_v3 }
 0xc79   : > { %12993 = vmatmul.mubr.msk.bf16.gmra.mrb[100].mxu1 %vm2333_vm6, %v17446_v38 }
 0xc7a   : > { %12996 = vmatprep.mubr.msk.bf16.mxu1 %vm2333_vm6, %v17455_v4 }
 0xc81   : > { %12997 = vmatmul.mubr.msk.bf16.gmra.mrb[104].mxu1 %vm2333_vm6, %v17464_v2 }
 0xc82   : > { %13000 = vmatprep.mubr.msk.bf16.mxu1 %vm2333_vm6, %v17473_v22 }
 0xc89   : > { %13001 = vmatmul.mubr.msk.bf16.gmra.mrb[108].mxu1 %vm2333_vm6, %v17482_v63 }
 0xc8a   : > { %13004 = vmatprep.mubr.msk.bf16.mxu1 %vm2333_vm6, %v17491_v35 }
 0xc91   : > { %13005 = vmatmul.mubr.msk.bf16.gmra.mrb[112].mxu1 %vm2333_vm6, %v17500_v27 }
 0xc92   : > { %13008 = vmatprep.mubr.msk.bf16.mxu1 %vm2333_vm6, %v17509_v37 }
 0xc99   : > { %13009 = vmatmul.mubr.msk.bf16.gmra.mrb[116].mxu1 %vm2333_vm6, %v17521_v50 }
 0xc9a   : > { %13020 = vmatprep.mubr.msk.bf16.mxu1 %vm2333_vm6, %v17403_v56  ;;  %v14395_v56 = vld [vmem:[%s18104_s13 + $0xb8] sm:$0xff]  }
 0xca1   : > { %13021 = vmatmul.mubr.msk.bf16.vlgmr.msra.gmra.mrb[92].mxu1 %vm2333_vm6, %v17418_v17 }
 0xca2   : > { %13024 = vmatprep.mubr.msk.bf16.mxu1 %vm2333_vm6, %v17433_v32  ;;  %13049 = vmatpush3.bf16.msra.mxu1 %v14392_v3 }
 0xca3   : > { %13050 = vmatprep.subr.bf16.mxu1 %v14393_v31 }
 0xca6   : > { %13051 = vmatpush3.bf16.msra.mxu1 %v14393_v31 }
 0xca7   : > { %13052 = vmatprep.subr.bf16.mxu1 %v14394_v44 }
 0xca9   : > { %13025 = vmatmul.mubr.msk.bf16.gmra.mrb[96].mxu1 %vm2333_vm6, %v17442_v41 }
 0xcaa   : > { %13028 = vmatprep.mubr.msk.bf16.mxu1 %vm2333_vm6, %v17451_v14  ;;  %13053 = vmatpush3.bf16.msra.mxu1 %v14394_v44 }
 0xcab   : > { %13054 = vmatprep.subr.bf16.mxu1 %v14395_v56 }
 0xcae   : > { %13055 = vmatpush3.bf16.msra.mxu1 %v14395_v56 }
 0xcaf   : > { %13084 = vmatprep.subr.bf16.mxu1 %v14396_v29 }
 0xcb1   : > { %13029 = vmatmul.mubr.msk.bf16.gmra.mrb[100].mxu1 %vm2333_vm6, %v17460_v21 }
 0xcb2   : > { %13032 = vmatprep.mubr.msk.bf16.mxu1 %vm2333_vm6, %v17469_v49 }
 0xcb9   : > { %13033 = vmatmul.mubr.msk.bf16.gmra.mrb[104].mxu1 %vm2333_vm6, %v17478_v39 }
 0xcba   : > { %13036 = vmatprep.mubr.msk.bf16.mxu1 %vm2333_vm6, %v17487_v20 }
 0xcc1   : > { %13037 = vmatmul.mubr.msk.bf16.gmra.mrb[108].mxu1 %vm2333_vm6, %v17496_v57 }
 0xcc2   : > { %13040 = vmatprep.mubr.msk.bf16.mxu1 %vm2333_vm6, %v17505_v11 }
 0xcc9   : > { %13041 = vmatmul.mubr.msk.bf16.gmra.mrb[112].mxu1 %vm2333_vm6, %v17516_v34 }
 0xcca   : > { %13044 = vmatprep.mubr.msk.bf16.mxu1 %vm2333_vm6, %v17753_v51 }
 0xcd1   : > { %13045 = vmatmul.mubr.msk.bf16.gmra.mrb[116].mxu1 %vm2333_vm6, %v9110_v7 }
 0xcd2   : > { %13056 = vmatprep.mubr.msk.bf16.mxu1 %vm2333_vm6, %v17587_v42  ;;  %v14399_v42 = vld [vmem:[%s18104_s13 + $0xd8] sm:$0xff]  }
 0xcd9   : > { %13057 = vmatmul.mubr.msk.bf16.vlgmr.msra.gmra.mrb[92].mxu1 %vm2333_vm6, %v17592_v47 }
 0xcda   : > { %13060 = vmatprep.mubr.msk.bf16.mxu1 %vm2333_vm6, %v17605_v23  ;;  %13085 = vmatpush3.bf16.msra.mxu1 %v14396_v29 }
 0xcdb   : > { %13086 = vmatprep.subr.bf16.mxu1 %v14397_v53 }
 0xcde   : > { %13087 = vmatpush3.bf16.msra.mxu1 %v14397_v53 }
 0xcdf   : > { %13088 = vmatprep.subr.bf16.mxu1 %v14398_v8 }
 0xce1   : > { %13061 = vmatmul.mubr.msk.bf16.gmra.mrb[96].mxu1 %vm2333_vm6, %v17610_v45 }
 0xce2   : > { %13064 = vmatprep.mubr.msk.bf16.mxu1 %vm2333_vm6, %v17620_v25  ;;  %13089 = vmatpush3.bf16.msra.mxu1 %v14398_v8 }
 0xce3   : > { %13090 = vmatprep.subr.bf16.mxu1 %v14399_v42 }
 0xce6   : > { %13091 = vmatpush3.bf16.msra.mxu1 %v14399_v42 }
 0xce7   : > { %13120 = vmatprep.subr.bf16.mxu1 %v14400_v26 }
 0xce9   : > { %13065 = vmatmul.mubr.msk.bf16.gmra.mrb[100].mxu1 %vm2333_vm6, %v17625_v43 }
 0xcea   : > { %13068 = vmatprep.mubr.msk.bf16.mxu1 %vm2333_vm6, %v17632_v18 }
 0xcf1   : > { %13069 = vmatmul.mubr.msk.bf16.gmra.mrb[104].mxu1 %vm2333_vm6, %v17637_v24 }
 0xcf2   : > { %13072 = vmatprep.mubr.msk.bf16.mxu1 %vm2333_vm6, %v17644_v55 }
 0xcf9   : > { %13073 = vmatmul.mubr.msk.bf16.gmra.mrb[108].mxu1 %vm2333_vm6, %v17649_v52 }
 0xcfa   : > { %13076 = vmatprep.mubr.msk.bf16.mxu1 %vm2333_vm6, %v17658_v48 }
 0xd01   : > { %13077 = vmatmul.mubr.msk.bf16.gmra.mrb[112].mxu1 %vm2333_vm6, %v17664_v19 }
 0xd02   : > { %13080 = vmatprep.mubr.msk.bf16.mxu1 %vm2333_vm6, %v17805_v5 }
 0xd09   : > { %13081 = vmatmul.mubr.msk.bf16.gmra.mrb[116].mxu1 %vm2333_vm6, %v9328_v28 }
 0xd0a   : > { %13092 = vmatprep.mubr.msk.bf16.mxu1 %vm2333_vm6, %v17395_v54  ;;  %v14403_v54 = vld [vmem:[%s18104_s13 + $0xf8] sm:$0xff]  }
 0xd11   : > { %13093 = vmatmul.mubr.msk.bf16.vlgmr.msra.gmra.mrb[92].mxu1 %vm2333_vm6, %v17407_v59  ;;  %v14404_v59 = vld [vmem:[%s18104_s13 + $0x100] sm:$0xff]  }
 0xd12   : > { %13096 = vmatprep.mubr.msk.bf16.mxu1 %vm2333_vm6, %v17422_v33  ;;  %13121 = vmatpush3.bf16.msra.mxu1 %v14400_v26  ;;  %v14405_v33 = vld [vmem:[%s18104_s13 + $0x108] sm:$0xff]  }
 0xd13   : > { %13122 = vmatprep.subr.bf16.mxu1 %v14401_v13 }
 0xd16   : > { %13123 = vmatpush3.bf16.msra.mxu1 %v14401_v13 }
 0xd17   : > { %13124 = vmatprep.subr.bf16.mxu1 %v14402_v16 }
 0xd19   : > { %13097 = vmatmul.mubr.msk.bf16.gmra.mrb[96].mxu1 %vm2333_vm6, %v17437_v58  ;;  %v14406_v58 = vld [vmem:[%s18104_s13 + $0x110] sm:$0xff]  }
 0xd1a   : > { %13100 = vmatprep.mubr.msk.bf16.mxu1 %vm2333_vm6, %v17446_v38  ;;  %13125 = vmatpush3.bf16.msra.mxu1 %v14402_v16 }
 0xd1b   : > { %13126 = vmatprep.subr.bf16.mxu1 %v14403_v54 }
 0xd1e   : > { %13127 = vmatpush3.bf16.msra.mxu1 %v14403_v54 }
 0xd1f   : > { %13156 = vmatprep.subr.bf16.mxu1 %v14404_v59 }
 0xd21   : > { %13101 = vmatmul.mubr.msk.bf16.gmra.mrb[100].mxu1 %vm2333_vm6, %v17455_v4 }
 0xd22   : > { %13104 = vmatprep.mubr.msk.bf16.mxu1 %vm2333_vm6, %v17464_v2 }
 0xd29   : > { %13105 = vmatmul.mubr.msk.bf16.gmra.mrb[104].mxu1 %vm2333_vm6, %v17473_v22 }
 0xd2a   : > { %13108 = vmatprep.mubr.msk.bf16.mxu1 %vm2333_vm6, %v17482_v63 }
 0xd31   : > { %13109 = vmatmul.mubr.msk.bf16.gmra.mrb[108].mxu1 %vm2333_vm6, %v17491_v35 }
 0xd32   : > { %13112 = vmatprep.mubr.msk.bf16.mxu1 %vm2333_vm6, %v17500_v27 }
 0xd39   : > { %13113 = vmatmul.mubr.msk.bf16.gmra.mrb[112].mxu1 %vm2333_vm6, %v17509_v37 }
 0xd3a   : > { %13116 = vmatprep.mubr.msk.bf16.mxu1 %vm2333_vm6, %v17521_v50 }
 0xd41   : > { %13117 = vmatmul.mubr.msk.bf16.gmra.mrb[116].mxu1 %vm2333_vm6, %v17534_v15 }
 0xd42   : > { %13128 = vmatprep.mubr.msk.bf16.mxu1 %vm2333_vm6, %v17418_v17  ;;  %v14407_v17 = vld [vmem:[%s18104_s13 + $0x118] sm:$0xff]  }
 0xd49   : > { %13129 = vmatmul.mubr.msk.bf16.vlgmr.msra.gmra.mrb[92].mxu1 %vm2333_vm6, %v17433_v32  ;;  %v9752_v32 = vshll.u32 %v17534_v15, 16 }
 0xd4a   : > { %13132 = vmatprep.mubr.msk.bf16.mxu1 %vm2333_vm6, %v17442_v41  ;;  %13157 = vmatpush3.bf16.msra.mxu1 %v14404_v59  ;;  %v9742_v41 = vpack.c.bf16 %v17539_v12, %v17539_v12 }
 0xd4b   : > { %13158 = vmatprep.subr.bf16.mxu1 %v14405_v33  ;;  %v9754_v38 = vrot.slane %v9752_v32, 1 }
 0xd4d   : > { %v9755_v4 = vsel %vm630_vm1, %v17758_v46, %v9754_v38 }
 0xd4e   : > { %13159 = vmatpush3.bf16.msra.mxu1 %v14405_v33 }
 0xd4f   : > { %13160 = vmatprep.subr.bf16.mxu1 %v14406_v58 }
 0xd51   : > { %13133 = vmatmul.mubr.msk.bf16.gmra.mrb[96].mxu1 %vm2333_vm6, %v17451_v14  ;;  %v9760_v14 = vshll.u32 %v9742_v41, 16 }
 0xd52   : > { %13136 = vmatprep.mubr.msk.bf16.mxu1 %vm2333_vm6, %v17460_v21  ;;  %13161 = vmatpush3.bf16.msra.mxu1 %v14406_v58  ;;  %v9756_v21 = vshrl.u32 %v17534_v15, 16 }
 0xd53   : > { %13162 = vmatprep.subr.bf16.mxu1 %v14407_v17  ;;  %v9762_v2 = vrot.slane %v9760_v14, 1 }
 0xd56   : > { %13163 = vmatpush3.bf16.msra.mxu1 %v14407_v17 }
 0xd59   : > { %13137 = vmatmul.mubr.msk.bf16.gmra.mrb[100].mxu1 %vm2333_vm6, %v17469_v49  ;;  %v9758_v49 = vor.u32 %v9756_v21, %v9754_v38 }
 0xd5a   : > { %13140 = vmatprep.mubr.msk.bf16.mxu1 %vm2333_vm6, %v17478_v39  ;;  %v9978_v39 = vrot.slane %v17534_v15, 1 }
 0xd5b   : > { %v9763_v22 = vsel %vm630_vm1, %v9758_v49, %v9762_v2 }
 0xd5c   : > { %v9979_v63 = vsel %vm5093_vm9, %v17798_v30, %v9978_v39 }
 0xd61   : > { %13141 = vmatmul.mubr.msk.bf16.gmra.mrb[104].mxu1 %vm2333_vm6, %v17487_v20  ;;  %v9980_v20 = vrot.slane %v9742_v41, 1 }
 0xd62   : > { %13144 = vmatprep.mubr.msk.bf16.mxu1 %vm2333_vm6, %v17496_v57 }
 0xd63   : > { %v9981_v35 = vsel %vm5093_vm9, %v9978_v39, %v9980_v20 }
 0xd69   : > { %13145 = vmatmul.mubr.msk.bf16.gmra.mrb[108].mxu1 %vm2333_vm6, %v17505_v11 }
 0xd6a   : > { %13148 = vmatprep.mubr.msk.bf16.mxu1 %vm2333_vm6, %v17516_v34 }
 0xd71   : > { %13149 = vmatmul.mubr.msk.bf16.gmra.mrb[112].mxu1 %vm2333_vm6, %v17753_v51 }
 0xd72   : > { %13152 = vmatprep.mubr.msk.bf16.mxu1 %vm2333_vm6, %v9755_v4 }
 0xd79   : > { %13153 = vmatmul.mubr.msk.bf16.gmra.mrb[116].mxu1 %vm2333_vm6, %v9763_v22 }
 0xd7a   : > { %13164 = vmatprep.mubr.msk.bf16.mxu1 %vm2333_vm6, %v17592_v47 }
 0xd81   : > { %13165 = vmatmul.mubr.msk.bf16.vlgmr.msra.gmra.mrb[92].mxu1 %vm2333_vm6, %v17605_v23 }
 0xd82   : > { %13168 = vmatprep.mubr.msk.bf16.mxu1 %vm2333_vm6, %v17610_v45 }
 0xd89   : > { %13169 = vmatmul.mubr.msk.bf16.gmra.mrb[96].mxu1 %vm2333_vm6, %v17620_v25 }
 0xd8a   : > { %13172 = vmatprep.mubr.msk.bf16.mxu1 %vm2333_vm6, %v17625_v43 }
 0xd91   : > { %13173 = vmatmul.mubr.msk.bf16.gmra.mrb[100].mxu1 %vm2333_vm6, %v17632_v18 }
 0xd92   : > { %13176 = vmatprep.mubr.msk.bf16.mxu1 %vm2333_vm6, %v17637_v24 }
 0xd99   : > { %13177 = vmatmul.mubr.msk.bf16.gmra.mrb[104].mxu1 %vm2333_vm6, %v17644_v55 }
 0xd9a   : > { %13180 = vmatprep.mubr.msk.bf16.mxu1 %vm2333_vm6, %v17649_v52 }
 0xda1   : > { %13181 = vmatmul.mubr.msk.bf16.gmra.mrb[108].mxu1 %vm2333_vm6, %v17658_v48 }
 0xda2   : > { %13184 = vmatprep.mubr.msk.bf16.mxu1 %vm2333_vm6, %v17664_v19 }
 0xda9   : > { %13185 = vmatmul.mubr.msk.bf16.gmra.mrb[112].mxu1 %vm2333_vm6, %v17805_v5 }
 0xdaa   : > { %13188 = vmatprep.mubr.msk.bf16.mxu1 %vm2333_vm6, %v9979_v63 }
 0xdb1   : > { %13189 = vmatmul.mubr.msk.bf16.gmra.mrb[116].mxu1 %vm2333_vm6, %v9981_v35 }
 0xdb2   : > { %14536 = shalt.err (!%p14533_p3)
}
 0xdb3   : > { %s14537_s21 = scalar_lea.hbm %s17930_s26, 16  ;;  %s14541_s19 = scalar_lea.hbm %s18106_s15, 32 }
 0xdb4   : > { %p14538_p4 = scmp.ne.s32.totalorder %s17930_s26, %s14537_s21  ;;  %p14542_p9 = scmp.lt.u32.totalorder %s17930_s26, %s18106_s15 }
 0xdb5   : > { %p14543_p10 = scmp.lt.u32.totalorder %s14541_s19, %s14537_s21  ;;  %p14545_p12 = scmp.lt.u32.totalorder %s14537_s21, %s17930_s26 }
 0xdb6   : > { %p14539_p7 = pnand %p14538_p4, %p14755_p5 }
 0xdb7   : > { %p14544_p11 = por %p14543_p10, %p14542_p9 }
 0xdb8   : > { %p14540_p8 = pneg %p14539_p7 }
 0xdb9   : > { %p14546_p13 = por %p14545_p12, %p14544_p11 }
 0xdbb   : > { %p14547_p0 = pnand %p14546_p13, %p14540_p8 }
 0xdbd   : > { %14550 = shalt.err (!%p14547_p0)
}
 0xdbe   : > { %13918 = dma.vmem_to_hbm [thread:$0]  (%p14755_p5), %s10439_s3, 16, %s17930_s26, %s10417_s7  }
 0xdbf   : > { %s17957_s6 = scalar_lea.hbm %s18107_s16, %s11750_s4  ;;  %s18171_s5 = scalar_lea.vmem [#allocation4], %s16110_s22 }
 0xdc0   : > { %s10451_s19 = sshll.u32 %s18171_s5, 4  ;;  %s10421_s21 = scalar_lea.sflag [#allocation5], %s16110_s22  ;;  %s10452_s19 = int_to_ptr.vmem [resolvable:$true] %s10451_s19 }
 0xdc1   : > { %s14551_s29 = scalar_lea.vmem %s10452_s19, 16  ;;  %s14626_s2 = smov [#allocation4]  }
 0xdc2   : > { %p14552_p1 = scmp.ne.s32.totalorder %s10452_s19, %s14551_s29  ;;  %s14555_s8 = sshll.u32 %s14626_s2, 4  ;;  %s14556_s8 = int_to_ptr.vmem [resolvable:$false] %s14555_s8 }
 0xdc3   : > { %s14557_s9 = scalar_lea.vmem %s14556_s8, 32  ;;  %p14558_p4 = scmp.lt.s32.totalorder %s10452_s19, %s14556_s8 }
 0xdc4   : > { %p14553_p2 = pnand %p14552_p1, %p14755_p5  ;;  %p14559_p7 = scmp.lt.s32.totalorder %s14557_s9, %s14551_s29 }
 0xdc6   : > { %p14554_p3 = pneg %p14553_p2  ;;  %p14560_p8 = por %p14559_p7, %p14558_p4 }
 0xdc8   : > { %p14561_p9 = pnand %p14560_p8, %p14554_p3 }
 0xdca   : > { %14564 = shalt.err (!%p14561_p9)
}
 0xdcb   : > { %s14565_s28 = scalar_lea.hbm %s17957_s6, 16  ;;  %s14569_s26 = scalar_lea.hbm %s18107_s16, 32 }
 0xdcc   : > { %p14566_p10 = scmp.ne.s32.totalorder %s17957_s6, %s14565_s28  ;;  %p14570_p13 = scmp.lt.u32.totalorder %s17957_s6, %s18107_s16 }
 0xdcd   : > { %p14571_p0 = scmp.lt.u32.totalorder %s14569_s26, %s14565_s28  ;;  %p14573_p2 = scmp.lt.u32.totalorder %s14565_s28, %s17957_s6 }
 0xdce   : > { %p14567_p11 = pnand %p14566_p10, %p14755_p5 }
 0xdcf   : > { %p14572_p1 = por %p14571_p0, %p14570_p13 }
 0xdd0   : > { %p14568_p12 = pneg %p14567_p11 }
 0xdd1   : > { %p14574_p3 = por %p14573_p2, %p14572_p1 }
 0xdd3   : > { %p14575_p4 = pnand %p14574_p3, %p14568_p12 }
 0xdd5   : > { %14578 = shalt.err (!%p14575_p4)
}
 0xdd6   : > { %13919 = dma.vmem_to_hbm [thread:$0]  (%p14755_p5), %s10452_s19, 16, %s17957_s6, %s10421_s21   ;;  %v17982_v57 = vld [vmem:[%s18105_s14] ss:$0 sm:$0xff] }
 0xdd7   : > { %s13913_s1 = smul.u32 224, %s14775_s30 }
 0xdd9   : > { %s18003_s18 = scalar_lea.vmem %s18108_s17, %s13913_s1 }
 0xe54   : > { %v13166_v27 = vpop.f32.mrb[92].mxu1 }
 0xe55   : > { %v10194_v11 = vadd.f32 %v13166_v27, %v17982_v57  ;;  %v10046_v37 = vpop.f32.mrb[93].mxu1 }
 0xe56   : > { %v10192_v34 = vadd.f32 %v17982_v57, %v10046_v37  ;;  %v13167_v50 = vpop.f32.mrb[94].mxu1 }
 0xe57   : > { %v10222_v15 = vsub.f32 0.0, %v10194_v11  ;;  %v10195_v12 = vadd.f32 %v13167_v50, %v17982_v57  ;;  %v10049_v47 = vpop.f32.mrb[95].mxu1 }
 0xe58   : > { %v10220_v23 = vsub.f32 0.0, %v10192_v34  ;;  %v10193_v45 = vadd.f32 %v17982_v57, %v10049_v47 }
 0xe59   : > { %v10252_v25 = vmul.f32 1.442695, %v10222_v15  ;;  %v10223_v43 = vsub.f32 0.0, %v10195_v12 }
 0xe5a   : > { %v10248_v18 = vmul.f32 1.442695, %v10220_v23  ;;  %v10221_v24 = vsub.f32 0.0, %v10193_v45 }
 0xe5b   : > { %14410 = vpow2.f32 %v10252_v25  ;;  %v10254_v55 = vmul.f32 1.442695, %v10223_v43 }
 0xe5c   : > { %14412 = vpow2.f32 %v10248_v18  ;;  %v10250_v52 = vmul.f32 1.442695, %v10221_v24  ;;  %v13170_v48 = vpop.f32.mrb[96].mxu1 }
 0xe5d   : > { %14414 = vpow2.f32 %v10254_v55  ;;  %v10198_v19 = vadd.f32 %v13170_v48, %v17982_v57  ;;  %v10062_v62 = vpop.f32.mrb[97].mxu1 }
 0xe5e   : > { %14416 = vpow2.f32 %v10250_v52  ;;  %v10196_v0 = vadd.f32 %v17982_v57, %v10062_v62  ;;  %v13171_v61 = vpop.f32.mrb[98].mxu1 }
 0xe5f   : > { %v10226_v3 = vsub.f32 0.0, %v10198_v19  ;;  %v10199_v31 = vadd.f32 %v13171_v61, %v17982_v57  ;;  %v10065_v44 = vpop.f32.mrb[99].mxu1 }
 0xe60   : > { %v10224_v56 = vsub.f32 0.0, %v10196_v0  ;;  %v10197_v29 = vadd.f32 %v17982_v57, %v10065_v44 }
 0xe61   : > { %v10260_v60 = vmul.f32 1.442695, %v10226_v3  ;;  %v10227_v1 = vsub.f32 0.0, %v10199_v31 }
 0xe62   : > { %v10256_v10 = vmul.f32 1.442695, %v10224_v56  ;;  %v10225_v40 = vsub.f32 0.0, %v10197_v29 }
 0xe63   : > { %14418 = vpow2.f32 %v10260_v60  ;;  %v10262_v51 = vmul.f32 1.442695, %v10227_v1 }
 0xe64   : > { %14420 = vpow2.f32 %v10256_v10  ;;  %v10258_v6 = vmul.f32 1.442695, %v10225_v40  ;;  %v13174_v36 = vpop.f32.mrb[100].mxu1 }
 0xe65   : > { %v14411_v46 = vpop.eup %14410  ;;  %14422 = vpow2.f32 %v10262_v51  ;;  %v10202_v7 = vadd.f32 %v13174_v36, %v17982_v57  ;;  %v10078_v53 = vpop.f32.mrb[101].mxu1 }
 0xe66   : > { %v14413_v8 = vpop.eup %14412  ;;  %v10306_v42 = vadd.f32 1.0, %v14411_v46  ;;  %14424 = vpow2.f32 %v10258_v6  ;;  %v10200_v26 = vadd.f32 %v17982_v57, %v10078_v53  ;;  %v13175_v30 = vpop.f32.mrb[102].mxu1 }
 0xe67   : > { %v14415_v5 = vpop.eup %14414  ;;  %v10304_v9 = vadd.f32 1.0, %v14413_v8  ;;  %v10230_v28 = vsub.f32 0.0, %v10202_v7  ;;  %v10203_v13 = vadd.f32 %v13175_v30, %v17982_v57  ;;  %v10081_v16 = vpop.f32.mrb[103].mxu1 }
 0xe68   : > { %v14417_v54 = vpop.eup %14416  ;;  %14426 = vrcp.f32 %v10306_v42  ;;  %v10307_v59 = vadd.f32 1.0, %v14415_v5  ;;  %v10228_v33 = vsub.f32 0.0, %v10200_v26  ;;  %v10201_v58 = vadd.f32 %v17982_v57, %v10081_v16 }
 0xe69   : > { %14428 = vrcp.f32 %v10304_v9  ;;  %v10305_v17 = vadd.f32 1.0, %v14417_v54  ;;  %v10268_v32 = vmul.f32 1.442695, %v10230_v28  ;;  %v10231_v41 = vsub.f32 0.0, %v10203_v13 }
 0xe6a   : > { %14430 = vrcp.f32 %v10307_v59  ;;  %v10264_v38 = vmul.f32 1.442695, %v10228_v33  ;;  %v10229_v14 = vsub.f32 0.0, %v10201_v58 }
 0xe6b   : > { %14432 = vrcp.f32 %v10305_v17  ;;  %v10270_v4 = vmul.f32 1.442695, %v10231_v41 }
 0xe6c   : > { %14434 = vpow2.f32 %v10268_v32  ;;  %v10266_v21 = vmul.f32 1.442695, %v10229_v14  ;;  %v13178_v2 = vpop.f32.mrb[104].mxu1 }
 0xe6d   : > { %v14419_v49 = vpop.eup %14418  ;;  %14436 = vpow2.f32 %v10264_v38  ;;  %v10206_v22 = vadd.f32 %v13178_v2, %v17982_v57  ;;  %v10094_v39 = vpop.f32.mrb[105].mxu1 }
 0xe6e   : > { %v14421_v63 = vpop.eup %14420  ;;  %v10310_v20 = vadd.f32 1.0, %v14419_v49  ;;  %14438 = vpow2.f32 %v10270_v4  ;;  %v10204_v35 = vadd.f32 %v17982_v57, %v10094_v39  ;;  %v13179_v27 = vpop.f32.mrb[106].mxu1 }
 0xe6f   : > { %v14423_v11 = vpop.eup %14422  ;;  %v10308_v37 = vadd.f32 1.0, %v14421_v63  ;;  %14440 = vpow2.f32 %v10266_v21  ;;  %v10234_v34 = vsub.f32 0.0, %v10206_v22  ;;  %v10207_v50 = vadd.f32 %v13179_v27, %v17982_v57  ;;  %v10097_v15 = vpop.f32.mrb[107].mxu1 }
 0xe70   : > { %v14425_v12 = vpop.eup %14424  ;;  %14442 = vrcp.f32 %v10310_v20  ;;  %v10311_v47 = vadd.f32 1.0, %v14423_v11  ;;  %v10232_v23 = vsub.f32 0.0, %v10204_v35  ;;  %v10205_v45 = vadd.f32 %v17982_v57, %v10097_v15 }
 0xe71   : > { %14444 = vrcp.f32 %v10308_v37  ;;  %v10309_v25 = vadd.f32 1.0, %v14425_v12  ;;  %v10276_v43 = vmul.f32 1.442695, %v10234_v34  ;;  %v10235_v18 = vsub.f32 0.0, %v10207_v50 }
 0xe72   : > { %v14427_v24 = vpop.eup %14426  ;;  %14446 = vrcp.f32 %v10311_v47  ;;  %v10272_v55 = vmul.f32 1.442695, %v10232_v23  ;;  %v10233_v52 = vsub.f32 0.0, %v10205_v45 }
 0xe73   : > { %v14429_v48 = vpop.eup %14428  ;;  %10390 = vst.msk [vmem:[%s18003_s18 + $0x10] sm:$0xff] %vm742_vm2, %v14427_v24  ;;  %14448 = vrcp.f32 %v10309_v25  ;;  %v10278_v19 = vmul.f32 1.442695, %v10235_v18 }
 0xe74   : > { %v14431_v62 = vpop.eup %14430  ;;  %10388 = vst.msk [vmem:[%s18003_s18] sm:$0xff] %vm742_vm2, %v14429_v48  ;;  %14450 = vpow2.f32 %v10276_v43  ;;  %v10274_v0 = vmul.f32 1.442695, %v10233_v52  ;;  %v13182_v61 = vpop.f32.mrb[108].mxu1 }
 0xe75   : > { %v14433_v3 = vpop.eup %14432  ;;  %10391 = vst.msk [vmem:[%s18003_s18 + $0x18] sm:$0xff] %vm742_vm2, %v14431_v62  ;;  %14452 = vpow2.f32 %v10272_v55  ;;  %v10210_v31 = vadd.f32 %v13182_v61, %v17982_v57  ;;  %v10110_v44 = vpop.f32.mrb[109].mxu1 }
 0xe76   : > { %v14435_v56 = vpop.eup %14434  ;;  %10389 = vst.msk [vmem:[%s18003_s18 + $0x8] sm:$0xff] %vm742_vm2, %v14433_v3  ;;  %14454 = vpow2.f32 %v10278_v19  ;;  %v10208_v29 = vadd.f32 %v17982_v57, %v10110_v44  ;;  %v13183_v60 = vpop.f32.mrb[110].mxu1 }
 0xe77   : > { %v14437_v1 = vpop.eup %14436  ;;  %v10314_v10 = vadd.f32 1.0, %v14435_v56  ;;  %14456 = vpow2.f32 %v10274_v0  ;;  %v10238_v40 = vsub.f32 0.0, %v10210_v31  ;;  %v10211_v51 = vadd.f32 %v13183_v60, %v17982_v57  ;;  %v10113_v6 = vpop.f32.mrb[111].mxu1 }
 0xe78   : > { %v14439_v36 = vpop.eup %14438  ;;  %v10312_v46 = vadd.f32 1.0, %v14437_v1  ;;  %v10236_v7 = vsub.f32 0.0, %v10208_v29  ;;  %v10209_v53 = vadd.f32 %v17982_v57, %v10113_v6 }
 0xe79   : > { %v14441_v8 = vpop.eup %14440  ;;  %14458 = vrcp.f32 %v10314_v10  ;;  %v10315_v42 = vadd.f32 1.0, %v14439_v36  ;;  %v10284_v26 = vmul.f32 1.442695, %v10238_v40  ;;  %v10239_v30 = vsub.f32 0.0, %v10211_v51 }
 0xe7a   : > { %v14443_v5 = vpop.eup %14442  ;;  %14460 = vrcp.f32 %v10312_v46  ;;  %v10313_v9 = vadd.f32 1.0, %v14441_v8  ;;  %v10280_v28 = vmul.f32 1.442695, %v10236_v7  ;;  %v10237_v13 = vsub.f32 0.0, %v10209_v53 }
 0xe7b   : > { %v14445_v16 = vpop.eup %14444  ;;  %10394 = vst.msk [vmem:[%s18003_s18 + $0x30] sm:$0xff] %vm742_vm2, %v14443_v5  ;;  %14462 = vrcp.f32 %v10315_v42  ;;  %v10286_v54 = vmul.f32 1.442695, %v10239_v30 }
 0xe7c   : > { %v14447_v59 = vpop.eup %14446  ;;  %10392 = vst.msk [vmem:[%s18003_s18 + $0x20] sm:$0xff] %vm742_vm2, %v14445_v16  ;;  %14464 = vrcp.f32 %v10313_v9  ;;  %v10282_v33 = vmul.f32 1.442695, %v10237_v13  ;;  %v13186_v58 = vpop.f32.mrb[112].mxu1 }
 0xe7d   : > { %v14449_v17 = vpop.eup %14448  ;;  %10395 = vst.msk [vmem:[%s18003_s18 + $0x38] sm:$0xff] %vm742_vm2, %v14447_v59  ;;  %14466 = vpow2.f32 %v10284_v26  ;;  %v10214_v32 = vadd.f32 %v13186_v58, %v17982_v57  ;;  %v10126_v41 = vpop.f32.mrb[113].mxu1 }
 0xe7e   : > { %v14451_v38 = vpop.eup %14450  ;;  %10393 = vst.msk [vmem:[%s18003_s18 + $0x28] sm:$0xff] %vm742_vm2, %v14449_v17  ;;  %14468 = vpow2.f32 %v10280_v28  ;;  %v10212_v14 = vadd.f32 %v17982_v57, %v10126_v41  ;;  %v13187_v4 = vpop.f32.mrb[114].mxu1 }
 0xe7f   : > { %v14453_v21 = vpop.eup %14452  ;;  %v10318_v2 = vadd.f32 1.0, %v14451_v38  ;;  %14470 = vpow2.f32 %v10286_v54  ;;  %v10242_v49 = vsub.f32 0.0, %v10214_v32  ;;  %v10215_v22 = vadd.f32 %v13187_v4, %v17982_v57  ;;  %v10129_v39 = vpop.f32.mrb[115].mxu1 }
 0xe80   : > { %v14455_v63 = vpop.eup %14454  ;;  %v10316_v20 = vadd.f32 1.0, %v14453_v21  ;;  %14472 = vpow2.f32 %v10282_v33  ;;  %v10240_v35 = vsub.f32 0.0, %v10212_v14  ;;  %v10213_v27 = vadd.f32 %v17982_v57, %v10129_v39 }
 0xe81   : > { %v14457_v11 = vpop.eup %14456  ;;  %14474 = vrcp.f32 %v10318_v2  ;;  %v10319_v37 = vadd.f32 1.0, %v14455_v63  ;;  %v10292_v34 = vmul.f32 1.442695, %v10242_v49  ;;  %v10243_v50 = vsub.f32 0.0, %v10215_v22 }
 0xe82   : > { %14476 = vrcp.f32 %v10316_v20  ;;  %v10317_v15 = vadd.f32 1.0, %v14457_v11  ;;  %v10288_v12 = vmul.f32 1.442695, %v10240_v35  ;;  %v10241_v47 = vsub.f32 0.0, %v10213_v27 }
 0xe83   : > { %v14459_v23 = vpop.eup %14458  ;;  %14478 = vrcp.f32 %v10319_v37  ;;  %v10294_v45 = vmul.f32 1.442695, %v10243_v50 }
 0xe84   : > { %v14461_v25 = vpop.eup %14460  ;;  %10398 = vst.msk [vmem:[%s18003_s18 + $0x50] sm:$0xff] %vm742_vm2, %v14459_v23  ;;  %14480 = vrcp.f32 %v10317_v15  ;;  %v10290_v43 = vmul.f32 1.442695, %v10241_v47  ;;  %v13190_v18 = vpop.f32.mrb[116].mxu1 }
 0xe85   : > { %v14463_v24 = vpop.eup %14462  ;;  %10396 = vst.msk [vmem:[%s18003_s18 + $0x40] sm:$0xff] %vm742_vm2, %v14461_v25  ;;  %14482 = vpow2.f32 %v10292_v34  ;;  %v10218_v55 = vadd.f32 %v13190_v18, %v17982_v57  ;;  %v10142_v52 = vpop.f32.mrb[117].mxu1 }
 0xe86   : > { %v14465_v48 = vpop.eup %14464  ;;  %10399 = vst.msk [vmem:[%s18003_s18 + $0x58] sm:$0xff] %vm742_vm2, %v14463_v24  ;;  %14484 = vpow2.f32 %v10288_v12  ;;  %v10216_v19 = vadd.f32 %v17982_v57, %v10142_v52  ;;  %v13191_v62 = vpop.f32.mrb[118].mxu1 }
 0xe87   : > { %v14467_v0 = vpop.eup %14466  ;;  %10397 = vst.msk [vmem:[%s18003_s18 + $0x48] sm:$0xff] %vm742_vm2, %v14465_v48  ;;  %14486 = vpow2.f32 %v10294_v45  ;;  %v10246_v61 = vsub.f32 0.0, %v10218_v55  ;;  %v10219_v3 = vadd.f32 %v13191_v62, %v17982_v57  ;;  %v10145_v31 = vpop.f32.mrb[119].mxu1 }
 0xe88   : > { %v14469_v44 = vpop.eup %14468  ;;  %v10322_v56 = vadd.f32 1.0, %v14467_v0  ;;  %14488 = vpow2.f32 %v10290_v43  ;;  %v10244_v29 = vsub.f32 0.0, %v10216_v19  ;;  %v10217_v60 = vadd.f32 %v17982_v57, %v10145_v31 }
 0xe89   : > { %v14471_v1 = vpop.eup %14470  ;;  %v10320_v10 = vadd.f32 1.0, %v14469_v44  ;;  %v10247_v40 = vsub.f32 0.0, %v10219_v3  ;;  %v10300_v36 = vmul.f32 1.442695, %v10246_v61 }
 0xe8a   : > { %v14473_v51 = vpop.eup %14472  ;;  %14490 = vrcp.f32 %v10322_v56  ;;  %v10323_v6 = vadd.f32 1.0, %v14471_v1  ;;  %v10245_v46 = vsub.f32 0.0, %v10217_v60  ;;  %v10296_v8 = vmul.f32 1.442695, %v10244_v29 }
 0xe8b   : > { %v14475_v7 = vpop.eup %14474  ;;  %14492 = vrcp.f32 %v10320_v10  ;;  %v10321_v53 = vadd.f32 1.0, %v14473_v51  ;;  %v10302_v57 = vmul.f32 1.442695, %v10247_v40 }
 0xe8c   : > { %v14477_v42 = vpop.eup %14476  ;;  %10402 = vst.msk [vmem:[%s18003_s18 + $0x70] sm:$0xff] %vm742_vm2, %v14475_v7  ;;  %14494 = vrcp.f32 %v10323_v6  ;;  %v10298_v30 = vmul.f32 1.442695, %v10245_v46 }
 0xe8d   : > { %v14479_v26 = vpop.eup %14478  ;;  %10400 = vst.msk [vmem:[%s18003_s18 + $0x60] sm:$0xff] %vm742_vm2, %v14477_v42  ;;  %14496 = vrcp.f32 %v10321_v53 }
 0xe8e   : > { %v14481_v5 = vpop.eup %14480  ;;  %10403 = vst.msk [vmem:[%s18003_s18 + $0x78] sm:$0xff] %vm742_vm2, %v14479_v26  ;;  %14498 = vpow2.f32 %v10300_v36 }
 0xe8f   : > { %v14483_v9 = vpop.eup %14482  ;;  %10401 = vst.msk [vmem:[%s18003_s18 + $0x68] sm:$0xff] %vm742_vm2, %v14481_v5  ;;  %14500 = vpow2.f32 %v10296_v8 }
 0xe90   : > { %v14485_v28 = vpop.eup %14484  ;;  %v10326_v13 = vadd.f32 1.0, %v14483_v9  ;;  %14502 = vpow2.f32 %v10302_v57 }
 0xe91   : > { %v14487_v16 = vpop.eup %14486  ;;  %v10324_v54 = vadd.f32 1.0, %v14485_v28  ;;  %14504 = vpow2.f32 %v10298_v30 }
 0xe92   : > { %v14489_v59 = vpop.eup %14488  ;;  %14506 = vrcp.f32 %v10326_v13  ;;  %v10327_v33 = vadd.f32 1.0, %v14487_v16 }
 0xe93   : > { %14508 = vrcp.f32 %v10324_v54  ;;  %v10325_v58 = vadd.f32 1.0, %v14489_v59 }
 0xe94   : > { %v14491_v17 = vpop.eup %14490  ;;  %14510 = vrcp.f32 %v10327_v33 }
 0xe95   : > { %v14493_v32 = vpop.eup %14492  ;;  %10406 = vst.msk [vmem:[%s18003_s18 + $0x90] sm:$0xff] %vm742_vm2, %v14491_v17  ;;  %14512 = vrcp.f32 %v10325_v58 }
 0xe96   : > { %v14495_v41 = vpop.eup %14494  ;;  %10404 = vst.msk [vmem:[%s18003_s18 + $0x80] sm:$0xff] %vm742_vm2, %v14493_v32 }
 0xe97   : > { %v14497_v38 = vpop.eup %14496  ;;  %10407 = vst.msk [vmem:[%s18003_s18 + $0x98] sm:$0xff] %vm742_vm2, %v14495_v41 }
 0xe98   : > { %v14499_v14 = vpop.eup %14498  ;;  %10405 = vst.msk [vmem:[%s18003_s18 + $0x88] sm:$0xff] %vm742_vm2, %v14497_v38 }
 0xe99   : > { %v14501_v4 = vpop.eup %14500  ;;  %v10330_v21 = vadd.f32 1.0, %v14499_v14 }
 0xe9a   : > { %v14503_v2 = vpop.eup %14502  ;;  %v10328_v49 = vadd.f32 1.0, %v14501_v4 }
 0xe9b   : > { %v14505_v22 = vpop.eup %14504  ;;  %14514 = vrcp.f32 %v10330_v21  ;;  %v10331_v39 = vadd.f32 1.0, %v14503_v2 }
 0xe9c   : > { %v14507_v63 = vpop.eup %14506  ;;  %14516 = vrcp.f32 %v10328_v49  ;;  %v10329_v20 = vadd.f32 1.0, %v14505_v22 }
 0xe9d   : > { %v14509_v35 = vpop.eup %14508  ;;  %10410 = vst.msk [vmem:[%s18003_s18 + $0xb0] sm:$0xff] %vm742_vm2, %v14507_v63  ;;  %14518 = vrcp.f32 %v10331_v39 }
 0xe9e   : > { %v14511_v27 = vpop.eup %14510  ;;  %10408 = vst.msk [vmem:[%s18003_s18 + $0xa0] sm:$0xff] %vm742_vm2, %v14509_v35  ;;  %14520 = vrcp.f32 %v10329_v20 }
 0xe9f   : > { %v14513_v11 = vpop.eup %14512  ;;  %10411 = vst.msk [vmem:[%s18003_s18 + $0xb8] sm:$0xff] %vm742_vm2, %v14511_v27 }
 0xea0   : > { %10409 = vst.msk [vmem:[%s18003_s18 + $0xa8] sm:$0xff] %vm742_vm2, %v14513_v11 }
 0xea5   : > { %v14515_v37 = vpop.eup %14514 }
 0xea6   : > { %v14517_v34 = vpop.eup %14516  ;;  %10414 = vst.msk [vmem:[%s18003_s18 + $0xd0] sm:$0xff] %vm742_vm2, %v14515_v37 }
 0xea7   : > { %v14519_v50 = vpop.eup %14518  ;;  %10412 = vst.msk [vmem:[%s18003_s18 + $0xc0] sm:$0xff] %vm742_vm2, %v14517_v34 }
 0xea8   : > { %v14521_v15 = vpop.eup %14520  ;;  %10415 = vst.msk [vmem:[%s18003_s18 + $0xd8] sm:$0xff] %vm742_vm2, %v14519_v50 }
 0xea9   : > { %10413 = vst.msk [vmem:[%s18003_s18 + $0xc8] sm:$0xff] %vm742_vm2, %v14521_v15 }
 0xeaa PF: > { %p13929_p5 = scmp.ge.s32.totalorder %s14617_s27, 2  ;;  %s10466_s6 = sand.u32 1, %s14605_s24  }
 0xeab   : > { %s10467_s5 = scalar_lea.sflag [#allocation3], %s10466_s6 }
 0xeac   : > { %p13923_p7 = pnand %p13929_p5, %p14759_p6 }
 0xeae   : > { %14596 = dma.done.wait (!%p13923_p7), %s10467_s5, 16  }
 0xeaf   : > { %14598 = vsyncadd (!%p13923_p7), %s10467_s5, 4294967280  ;;  %s10475_s19 = scalar_lea.sflag [#allocation5], %s10466_s6 }
 0xeb0   : > { %14600 = dma.done.wait (!%p13923_p7), %s10475_s19, 16  }
 0xeb1   : > { %14602 = vsyncadd (!%p13923_p7), %s10475_s19, 4294967280  ;;  %s18172_s21 = sld [smem:[#allocation8_spill]]  ;;  %s18173_s26 = sld [smem:[#allocation9_spill]] }
 0xeb2   : > { %p31_p8 = scmp.ge.s32.totalorder %s14742_s0, 4   ;;  %s18174_s24 = smov %s14609_s25 }
 0xeb3   : > { %s18176_s27 = smov %s14742_s0 }
 0xeb4   :  { %33 = sbr.rel (!%p31_p8) target bundleno = 16 (0x10), region = 192 }
 0xeb7   : > { %s18175_s25 = smov %s18172_s21 }
 0xebb   :  { %10487 = vsyncpa [#allocation3], 1 }
 0xebc   :  { %10489 = vsyncpa [#allocation3 + $0x1], 1 }
 0xebd   :  { %10490 = vsyncpa [#allocation5], 1 }
 0xebe   :  { %10492 = vsyncpa [#allocation5 + $0x1], 1 }

</bundles_post_ra>
